<compile_context>
chip_gen: v6e
topology: v6e:2x2x1
jax: 0.10.0
libtpu: 0.0.40
codegen_flags: <defaults>
</compile_context>

<pallas_src>
import functools

import jax
import jax.numpy as jnp
from jax.experimental import pallas as pl
from jax.experimental.pallas import tpu as pltpu


def _round_up(n, m):
    return ((n + m - 1) // m) * m


# ----------------------------- Pallas kernel -----------------------------

def _lstm_fc_kernel(
        x_ref,                         # (Tc, TILE_B, C) current time chunk (f32)
        wih0_ref,                      # (C,  4*Hp) f32  layer-0 input->gates (VPU)
        whh0_ref,                      # (Hp, 4*Hp) mxu  layer-0 hidden->gates
        b0_ref,                        # (1,  4*Hp) f32
        wih1_ref,                      # (Hp, 4*Hp) mxu  layer-1 input->gates
        whh1_ref,                      # (Hp, 4*Hp) mxu  layer-1 hidden->gates
        b1_ref,                        # (1,  4*Hp) f32
        wfc1_ref,                      # (Hp, Fp)   mxu
        bfc1_ref,                      # (1,  Fp)   f32
        wfc2_ref,                      # (Fp, NCp)  mxu
        bfc2_ref,                      # (1,  NCp)  f32
        out_ref,                       # (TILE_B, NCp)
        gates0_buf,                    # VMEM (Tc, TILE_B, 4*Hp) f32
        seq_buf,                       # VMEM (Tc, TILE_B, Hp)   mxu dtype
        gates1_buf,                    # VMEM (Tc, TILE_B, 4*Hp) f32
        h0_s, c0_s, h1_s, c1_s,        # VMEM (TILE_B, Hp) f32 carried LSTM state
        *, T):
    Tc, TILE_B, C = x_ref.shape
    Hp = whh0_ref.shape[0]
    cdt = whh0_ref.dtype               # MXU operand dtype (f32 or bf16)
    t_idx = pl.program_id(1)
    needs_mask = (T % Tc) != 0         # static Python bool

    # ---- reset carried state at the start of each batch tile's sequence ----
    @pl.when(t_idx == 0)
    def _init():
        h0_s[...] = jnp.zeros_like(h0_s)
        c0_s[...] = jnp.zeros_like(c0_s)
        h1_s[...] = jnp.zeros_like(h1_s)
        c1_s[...] = jnp.zeros_like(c1_s)

    # ---- layer-0 input projection for this chunk: VPU broadcast-FMA over C ----
    # (input_size is tiny; a K=C matmul would run the MXU at ~1-3% occupancy)
    # TODO(synk): for large input_size use a chunk-level MXU matmul here instead.
    x_chunk = x_ref[...].astype(jnp.float32)                     # (Tc, TILE_B, C)
    acc = jnp.zeros((Tc, TILE_B, 4 * Hp), jnp.float32) + b0_ref[...]
    for c in range(C):
        acc = acc + x_chunk[:, :, c:c + 1] * wih0_ref[c:c + 1, :]
    gates0_buf[...] = acc

    def step(tt, gates, h, c):
        # gate lanes are [i | f | o | g], each lane-aligned to Hp -> whole-vreg
        # slices, no sub-128-lane shuffles per step.
        sig = jax.nn.sigmoid(gates[:, :3 * Hp])                  # [i | f | o]
        g_g = jnp.tanh(gates[:, 3 * Hp:])                        # g
        c_new = sig[:, Hp:2 * Hp] * c + sig[:, :Hp] * g_g
        h_new = sig[:, 2 * Hp:3 * Hp] * jnp.tanh(c_new)
        if needs_mask:                                           # only when T % Tc != 0
            keep = (t_idx * Tc + tt < T).astype(jnp.float32)
            c_new = keep * c_new + (1.0 - keep) * c
            h_new = keep * h_new + (1.0 - keep) * h
        return h_new, c_new

    # ---- layer-0 recurrence over this chunk (bounded static unroll of Tc) ----
    whh0 = whh0_ref[...]
    h0 = h0_s[...]
    c0 = c0_s[...]
    for tt in range(Tc):
        gates = gates0_buf[tt] + jnp.dot(h0.astype(cdt), whh0,
                                         preferred_element_type=jnp.float32)
        h0, c0 = step(tt, gates, h0, c0)
        seq_buf[tt] = h0.astype(seq_buf.dtype)                   # lane-dense (TILE_B, Hp)
    h0_s[...] = h0
    c0_s[...] = c0

    # ---- layer-1 input projection for the whole chunk (one MXU matmul) ----
    # (nn.LSTM inter-layer dropout is identity in eval mode)
    seq2d = seq_buf[...].reshape(Tc * TILE_B, Hp)
    g1 = jnp.dot(seq2d, wih1_ref[...], preferred_element_type=jnp.float32)
    gates1_buf[...] = (g1 + b1_ref[...]).reshape(Tc, TILE_B, 4 * Hp)

    # ---- layer-1 recurrence over this chunk ----
    whh1 = whh1_ref[...]
    h1 = h1_s[...]
    c1 = c1_s[...]
    for tt in range(Tc):
        gates = gates1_buf[tt] + jnp.dot(h1.astype(cdt), whh1,
                                         preferred_element_type=jnp.float32)
        h1, c1 = step(tt, gates, h1, c1)
    h1_s[...] = h1
    c1_s[...] = c1

    # ---- FC head on the final hidden state (ReLU; Dropout = identity in eval) ----
    @pl.when(t_idx == pl.num_programs(1) - 1)
    def _head():
        z = jnp.dot(h1.astype(cdt), wfc1_ref[...],
                    preferred_element_type=jnp.float32) + bfc1_ref[...]
        z = jnp.maximum(z, 0.0)
        out = jnp.dot(z.astype(cdt), wfc2_ref[...],
                      preferred_element_type=jnp.float32) + bfc2_ref[...]
        out_ref[...] = out.astype(out_ref.dtype)


# ----------------------------- wrapper -----------------------------

def _pack_gate_matrix(w, H, Hp, pad_rows_to=None):
    """PyTorch (4H, in) gate-major weight -> (in[, padded rows], 4*Hp).

    Gate order is remapped [i,f,g,o] -> [i,f,o,g]; each gate block is padded
    from H to Hp columns so every gate slice in the kernel is lane-aligned."""
    i, f, g, o = jnp.split(w, 4, axis=0)
    blocks = [jnp.pad(blk.T, ((0, 0), (0, Hp - H))) for blk in (i, f, o, g)]
    out = jnp.concatenate(blocks, axis=1)                        # (in, 4*Hp)
    if pad_rows_to is not None:
        out = jnp.pad(out, ((0, pad_rows_to - out.shape[0]), (0, 0)))
    return out


def _pack_gate_bias(b, H, Hp):
    i, f, g, o = jnp.split(b, 4)
    blocks = [jnp.pad(v, (0, Hp - H)) for v in (i, f, o, g)]
    return jnp.concatenate(blocks).reshape(1, 4 * Hp)


def light_curve_rnn_forward(x, params, *, mxu_dtype=jnp.float32, chunk_T=8):
    """x: (B, input_size, T) float32 (PyTorch NCL layout). Returns (B, num_classes)."""
    B, C, T = x.shape
    H = params["whh0"].shape[1]
    F = params["wfc1"].shape[0]          # = 128 in the module
    num_classes = params["wfc2"].shape[0]

    Hp = _round_up(H, 128)               # lane-aligned hidden / gate blocks
    Fp = _round_up(F, 128)
    NCp = _round_up(num_classes, 128)    # lane-dense output width

    # Batch tile: multiple of 16 sublanes (covers bf16 packing). Batches above
    # one tile are split across the parallel grid axis (2nd TensorCore on v7x).
    TILE_B = min(128, _round_up(B, 16))
    Bp = _round_up(B, TILE_B)
    nb = Bp // TILE_B

    Tc = max(1, min(chunk_T, T))         # timesteps per chunk (VMEM independent of T)
    Tp = _round_up(T, Tc)
    nt = Tp // Tc

    # ---- input: time-major (Tp, Bp, C), zero-padded ----
    x_tm = jnp.transpose(x, (2, 0, 1)).astype(jnp.float32)       # (T, B, C)
    x_tm = jnp.pad(x_tm, ((0, Tp - T), (0, Bp - B), (0, 0)))     # (Tp, Bp, C)

    # ---- weights: gate order [i,f,o,g], lane-aligned gate blocks ----
    wih0 = _pack_gate_matrix(params["wih0"], H, Hp)                                  # (C, 4Hp) f32 (VPU)
    whh0 = _pack_gate_matrix(params["whh0"], H, Hp, pad_rows_to=Hp).astype(mxu_dtype)
    b0 = _pack_gate_bias(params["bih0"] + params["bhh0"], H, Hp)
    wih1 = _pack_gate_matrix(params["wih1"], H, Hp, pad_rows_to=Hp).astype(mxu_dtype)
    whh1 = _pack_gate_matrix(params["whh1"], H, Hp, pad_rows_to=Hp).astype(mxu_dtype)
    b1 = _pack_gate_bias(params["bih1"] + params["bhh1"], H, Hp)

    wfc1 = jnp.pad(params["wfc1"].T, ((0, Hp - H), (0, Fp - F))).astype(mxu_dtype)   # (Hp, Fp)
    bfc1 = jnp.pad(params["bfc1"], (0, Fp - F)).reshape(1, Fp)
    wfc2 = jnp.pad(params["wfc2"].T,
                   ((0, Fp - F), (0, NCp - num_classes))).astype(mxu_dtype)          # (Fp, NCp)
    bfc2 = jnp.pad(params["bfc2"], (0, NCp - num_classes)).reshape(1, NCp)

    vmem = pl.BlockSpec(memory_space=pltpu.MemorySpace.VMEM)     # small, resident weights
    in_specs = [
        pl.BlockSpec((Tc, TILE_B, C), lambda b, t: (t, b, 0)),   # x streamed over T & batch
        vmem, vmem, vmem, vmem, vmem, vmem, vmem, vmem, vmem, vmem,
    ]
    out_spec = pl.BlockSpec((TILE_B, NCp), lambda b, t: (b, 0))  # resident across t, written at last chunk

    operands = [x_tm, wih0, whh0, b0, wih1, whh1, b1, wfc1, bfc1, wfc2, bfc2]
    flops = int(2 * Tp * Bp * (C + 3 * Hp) * 4 * Hp + 2 * Bp * (Hp * Fp + Fp * NCp))
    transcendentals = int(2 * Tp * Bp * 5 * Hp)
    bytes_accessed = int(sum(a.size * a.dtype.itemsize for a in operands)
                         + Bp * NCp * 4)

    out = pl.pallas_call(
        functools.partial(_lstm_fc_kernel, T=T),
        out_shape=jax.ShapeDtypeStruct((Bp, NCp), jnp.float32),
        grid=(nb, nt),
        in_specs=in_specs,
        out_specs=out_spec,
        scratch_shapes=[
            pltpu.VMEM((Tc, TILE_B, 4 * Hp), jnp.float32),   # layer-0 ih gates (chunk)
            pltpu.VMEM((Tc, TILE_B, Hp), mxu_dtype),         # layer-0 hidden chunk (lane-dense)
            pltpu.VMEM((Tc, TILE_B, 4 * Hp), jnp.float32),   # layer-1 ih gates (chunk)
            pltpu.VMEM((TILE_B, Hp), jnp.float32),           # h0 carry
            pltpu.VMEM((TILE_B, Hp), jnp.float32),           # c0 carry
            pltpu.VMEM((TILE_B, Hp), jnp.float32),           # h1 carry
            pltpu.VMEM((TILE_B, Hp), jnp.float32),           # c1 carry
        ],
        compiler_params=pltpu.CompilerParams(
            dimension_semantics=("parallel", "arbitrary")),
        cost_estimate=pl.CostEstimate(
            flops=flops, transcendentals=transcendentals,
            bytes_accessed=bytes_accessed),
    )(*operands)

    return out[:B, :num_classes]


# ----------------------------- pure-JAX reference -----------------------------

def reference_forward(x, params):
    B, C, T = x.shape
    seq = jnp.transpose(x, (0, 2, 1))  # (B, T, C) — matches x.permute(0, 2, 1)

    def lstm_layer(inp, wih, whh, bih, bhh):
        H = whh.shape[1]
        h = jnp.zeros((B, H), jnp.float32)
        c = jnp.zeros((B, H), jnp.float32)
        outs = []
        for t in range(inp.shape[1]):
            g = inp[:, t, :] @ wih.T + h @ whh.T + bih + bhh
            i = jax.nn.sigmoid(g[:, :H])
            f = jax.nn.sigmoid(g[:, H:2 * H])
            gg = jnp.tanh(g[:, 2 * H:3 * H])
            o = jax.nn.sigmoid(g[:, 3 * H:])
            c = f * c + i * gg
            h = o * jnp.tanh(c)
            outs.append(h)
        return jnp.stack(outs, axis=1), h

    seq0, _ = lstm_layer(seq, params["wih0"], params["whh0"], params["bih0"], params["bhh0"])
    _, hn = lstm_layer(seq0, params["wih1"], params["whh1"], params["bih1"], params["bhh1"])
    z = jnp.maximum(hn @ params["wfc1"].T + params["bfc1"], 0.0)
    return z @ params["wfc2"].T + params["bfc2"]


# ----------------------------- main -----------------------------

if __name__ == "__main__":
    # Small shapes consistent with the module's forward pass.
    B, input_size, T = 2, 4, 16
    H, num_layers, num_classes = 32, 2, 5   # num_layers fixed to 2 (both layers in-kernel)

    key = jax.random.PRNGKey(0)
    keys = jax.random.split(key, 16)

    def init(k, shape, scale=0.1):
        return scale * jax.random.normal(k, shape, dtype=jnp.float32)

    params = {
        # LSTM layer 0 (input_size -> H), PyTorch gate order [i, f, g, o]
        "wih0": init(keys[0], (4 * H, input_size)),
        "whh0": init(keys[1], (4 * H, H)),
        "bih0": init(keys[2], (4 * H,)),
        "bhh0": init(keys[3], (4 * H,)),
        # LSTM layer 1 (H -> H)
        "wih1": init(keys[4], (4 * H, H)),
        "whh1": init(keys[5], (4 * H, H)),
        "bih1": init(keys[6], (4 * H,)),
        "bhh1": init(keys[7], (4 * H,)),
        # FC head
        "wfc1": init(keys[8], (128, H)),
        "bfc1": init(keys[9], (128,)),
        "wfc2": init(keys[10], (num_classes, 128)),
        "bfc2": init(keys[11], (num_classes,)),
    }

    x = jax.random.normal(keys[12], (B, input_size, T), dtype=jnp.float32)

    ref = jax.block_until_ready(reference_forward(x, params))

    # f32 MXU-operand path (bit-exact-ish vs the f32 reference).
    out = jax.block_until_ready(light_curve_rnn_forward(x, params))
    assert out.shape == (B, num_classes)
    assert jnp.allclose(out, ref, atol=1e-4, rtol=1e-4), (out, ref)

    # bf16 MXU-operand path (v6e/v7x): weights + dot inputs in bf16, gating and
    # cell/hidden state kept in f32 -> small, bounded drift vs the f32 reference.
    out_bf16 = jax.block_until_ready(
        light_curve_rnn_forward(x, params, mxu_dtype=jnp.bfloat16))
    assert out_bf16.shape == (B, num_classes)
    assert jnp.allclose(out_bf16, ref, atol=5e-2, rtol=5e-2), (out_bf16, ref)

    print("KERNEL_OK")
</pallas_src>

<mosaic_0001>
module attributes {stable_mosaic.version = 11 : i64} {
  func.func @_lstm_fc_kernel(%arg0: i32, %arg1: i32, %arg2: memref<8x16x4xf32, #tpu.memory_space<vmem>>, %arg3: memref<4x512xf32, #tpu.memory_space<vmem>>, %arg4: memref<128x512xf32, #tpu.memory_space<vmem>>, %arg5: memref<1x512xf32, #tpu.memory_space<vmem>>, %arg6: memref<128x512xf32, #tpu.memory_space<vmem>>, %arg7: memref<128x512xf32, #tpu.memory_space<vmem>>, %arg8: memref<1x512xf32, #tpu.memory_space<vmem>>, %arg9: memref<128x128xf32, #tpu.memory_space<vmem>>, %arg10: memref<1x128xf32, #tpu.memory_space<vmem>>, %arg11: memref<128x128xf32, #tpu.memory_space<vmem>>, %arg12: memref<1x128xf32, #tpu.memory_space<vmem>>, %arg13: memref<16x128xf32, #tpu.memory_space<vmem>>, %arg14: memref<8x16x512xf32, #tpu.memory_space<vmem>>, %arg15: memref<8x16x128xf32, #tpu.memory_space<vmem>>, %arg16: memref<8x16x512xf32, #tpu.memory_space<vmem>>, %arg17: memref<16x128xf32, #tpu.memory_space<vmem>>, %arg18: memref<16x128xf32, #tpu.memory_space<vmem>>, %arg19: memref<16x128xf32, #tpu.memory_space<vmem>>, %arg20: memref<16x128xf32, #tpu.memory_space<vmem>>) attributes {dimension_semantics = [#tpu.dimension_semantics<parallel>, #tpu.dimension_semantics<arbitrary>], iteration_bounds = array<i64: 1, 2>, scalar_prefetch = 0 : i64, scratch_operands = 7 : i64, tpu.core_type = #tpu.core_type<tc>, window_params = [{transform_indices = @transform_0, window_bounds = array<i64: 8, 16, 4>}, {pipeline_mode = #tpu.pipeline_mode<synchronous>, transform_indices = @transform_1, window_bounds = array<i64: 4, 512>}, {pipeline_mode = #tpu.pipeline_mode<synchronous>, transform_indices = @transform_2, window_bounds = array<i64: 128, 512>}, {pipeline_mode = #tpu.pipeline_mode<synchronous>, transform_indices = @transform_3, window_bounds = array<i64: 1, 512>}, {pipeline_mode = #tpu.pipeline_mode<synchronous>, transform_indices = @transform_4, window_bounds = array<i64: 128, 512>}, {pipeline_mode = #tpu.pipeline_mode<synchronous>, transform_indices = @transform_5, window_bounds = array<i64: 128, 512>}, {pipeline_mode = #tpu.pipeline_mode<synchronous>, transform_indices = @transform_6, window_bounds = array<i64: 1, 512>}, {pipeline_mode = #tpu.pipeline_mode<synchronous>, transform_indices = @transform_7, window_bounds = array<i64: 128, 128>}, {pipeline_mode = #tpu.pipeline_mode<synchronous>, transform_indices = @transform_8, window_bounds = array<i64: 1, 128>}, {pipeline_mode = #tpu.pipeline_mode<synchronous>, transform_indices = @transform_9, window_bounds = array<i64: 128, 128>}, {pipeline_mode = #tpu.pipeline_mode<synchronous>, transform_indices = @transform_10, window_bounds = array<i64: 1, 128>}, {transform_indices = @transform_11, window_bounds = array<i64: 16, 128>}]} {
    %c0_i32 = arith.constant 0 : i32
    %0 = arith.cmpi eq, %arg1, %c0_i32 : i32
    %1 = arith.extui %0 : i1 to i32
    %c0_i32_0 = arith.constant 0 : i32
    %2 = arith.cmpi ne, %1, %c0_i32_0 : i32
    scf.if %2 {
      %cst_145 = arith.constant 0.000000e+00 : f32
      %404 = vector.broadcast %cst_145 : f32 to vector<16x128xf32>
      %c0_146 = arith.constant 0 : index
      %c0_147 = arith.constant 0 : index
      %405 = vector.load %arg17[%c0_146, %c0_147] : memref<16x128xf32, #tpu.memory_space<vmem>>, vector<16x128xf32>
      tpu.vector_store %arg17[%c0_146, %c0_147], %404 {strides = array<i32>} : memref<16x128xf32, #tpu.memory_space<vmem>>, vector<16x128xf32>,
      %cst_148 = arith.constant 0.000000e+00 : f32
      %406 = vector.broadcast %cst_148 : f32 to vector<16x128xf32>
      %c0_149 = arith.constant 0 : index
      %c0_150 = arith.constant 0 : index
      %407 = vector.load %arg18[%c0_149, %c0_150] : memref<16x128xf32, #tpu.memory_space<vmem>>, vector<16x128xf32>
      tpu.vector_store %arg18[%c0_149, %c0_150], %406 {strides = array<i32>} : memref<16x128xf32, #tpu.memory_space<vmem>>, vector<16x128xf32>,
      %cst_151 = arith.constant 0.000000e+00 : f32
      %408 = vector.broadcast %cst_151 : f32 to vector<16x128xf32>
      %c0_152 = arith.constant 0 : index
      %c0_153 = arith.constant 0 : index
      %409 = vector.load %arg19[%c0_152, %c0_153] : memref<16x128xf32, #tpu.memory_space<vmem>>, vector<16x128xf32>
      tpu.vector_store %arg19[%c0_152, %c0_153], %408 {strides = array<i32>} : memref<16x128xf32, #tpu.memory_space<vmem>>, vector<16x128xf32>,
      %cst_154 = arith.constant 0.000000e+00 : f32
      %410 = vector.broadcast %cst_154 : f32 to vector<16x128xf32>
      %c0_155 = arith.constant 0 : index
      %c0_156 = arith.constant 0 : index
      %411 = vector.load %arg20[%c0_155, %c0_156] : memref<16x128xf32, #tpu.memory_space<vmem>>, vector<16x128xf32>
      tpu.vector_store %arg20[%c0_155, %c0_156], %410 {strides = array<i32>} : memref<16x128xf32, #tpu.memory_space<vmem>>, vector<16x128xf32>,
    } else {
    }
    %c0 = arith.constant 0 : index
    %c0_1 = arith.constant 0 : index
    %c0_2 = arith.constant 0 : index
    %3 = vector.load %arg2[%c0, %c0_1, %c0_2] : memref<8x16x4xf32, #tpu.memory_space<vmem>>, vector<8x16x4xf32>
    %cst = arith.constant 0.000000e+00 : f32
    %4 = vector.broadcast %cst : f32 to vector<8x16x512xf32>
    %c0_3 = arith.constant 0 : index
    %c0_4 = arith.constant 0 : index
    %5 = vector.load %arg5[%c0_3, %c0_4] : memref<1x512xf32, #tpu.memory_space<vmem>>, vector<1x512xf32>
    %6 = vector.shape_cast %5 : vector<1x512xf32> to vector<1x1x512xf32>
    %7 = vector.broadcast %6 : vector<1x1x512xf32> to vector<8x16x512xf32>
    %8 = arith.addf %4, %7 : vector<8x16x512xf32>
    %9 = vector.extract_strided_slice %3 {offsets = [0, 0, 0], sizes = [8, 16, 1], strides = [1, 1, 1]} : vector<8x16x4xf32> to vector<8x16x1xf32>
    %c0_5 = arith.constant 0 : index
    %c0_6 = arith.constant 0 : index
    %10 = vector.load %arg3[%c0_5, %c0_6] : memref<4x512xf32, #tpu.memory_space<vmem>>, vector<1x512xf32>
    %11 = vector.shape_cast %10 : vector<1x512xf32> to vector<1x1x512xf32>
    %12 = vector.broadcast %9 : vector<8x16x1xf32> to vector<8x16x512xf32>
    %13 = vector.broadcast %11 : vector<1x1x512xf32> to vector<8x16x512xf32>
    %14 = arith.mulf %12, %13 : vector<8x16x512xf32>
    %15 = arith.addf %8, %14 : vector<8x16x512xf32>
    %16 = vector.extract_strided_slice %3 {offsets = [0, 0, 1], sizes = [8, 16, 1], strides = [1, 1, 1]} : vector<8x16x4xf32> to vector<8x16x1xf32>
    %c1 = arith.constant 1 : index
    %c0_7 = arith.constant 0 : index
    %17 = vector.load %arg3[%c1, %c0_7] : memref<4x512xf32, #tpu.memory_space<vmem>>, vector<1x512xf32>
    %18 = vector.shape_cast %17 : vector<1x512xf32> to vector<1x1x512xf32>
    %19 = vector.broadcast %16 : vector<8x16x1xf32> to vector<8x16x512xf32>
    %20 = vector.broadcast %18 : vector<1x1x512xf32> to vector<8x16x512xf32>
    %21 = arith.mulf %19, %20 : vector<8x16x512xf32>
    %22 = arith.addf %15, %21 : vector<8x16x512xf32>
    %23 = vector.extract_strided_slice %3 {offsets = [0, 0, 2], sizes = [8, 16, 1], strides = [1, 1, 1]} : vector<8x16x4xf32> to vector<8x16x1xf32>
    %c2 = arith.constant 2 : index
    %c0_8 = arith.constant 0 : index
    %24 = vector.load %arg3[%c2, %c0_8] : memref<4x512xf32, #tpu.memory_space<vmem>>, vector<1x512xf32>
    %25 = vector.shape_cast %24 : vector<1x512xf32> to vector<1x1x512xf32>
    %26 = vector.broadcast %23 : vector<8x16x1xf32> to vector<8x16x512xf32>
    %27 = vector.broadcast %25 : vector<1x1x512xf32> to vector<8x16x512xf32>
    %28 = arith.mulf %26, %27 : vector<8x16x512xf32>
    %29 = arith.addf %22, %28 : vector<8x16x512xf32>
    %30 = vector.extract_strided_slice %3 {offsets = [0, 0, 3], sizes = [8, 16, 1], strides = [1, 1, 1]} : vector<8x16x4xf32> to vector<8x16x1xf32>
    %c3 = arith.constant 3 : index
    %c0_9 = arith.constant 0 : index
    %31 = vector.load %arg3[%c3, %c0_9] : memref<4x512xf32, #tpu.memory_space<vmem>>, vector<1x512xf32>
    %32 = vector.shape_cast %31 : vector<1x512xf32> to vector<1x1x512xf32>
    %33 = vector.broadcast %30 : vector<8x16x1xf32> to vector<8x16x512xf32>
    %34 = vector.broadcast %32 : vector<1x1x512xf32> to vector<8x16x512xf32>
    %35 = arith.mulf %33, %34 : vector<8x16x512xf32>
    %36 = arith.addf %29, %35 : vector<8x16x512xf32>
    %c0_10 = arith.constant 0 : index
    %c0_11 = arith.constant 0 : index
    %c0_12 = arith.constant 0 : index
    %37 = vector.load %arg14[%c0_10, %c0_11, %c0_12] : memref<8x16x512xf32, #tpu.memory_space<vmem>>, vector<8x16x512xf32>
    tpu.vector_store %arg14[%c0_10, %c0_11, %c0_12], %36 {strides = array<i32>} : memref<8x16x512xf32, #tpu.memory_space<vmem>>, vector<8x16x512xf32>,
    %c0_13 = arith.constant 0 : index
    %c0_14 = arith.constant 0 : index
    %38 = vector.load %arg4[%c0_13, %c0_14] : memref<128x512xf32, #tpu.memory_space<vmem>>, vector<128x512xf32>
    %c0_15 = arith.constant 0 : index
    %c0_16 = arith.constant 0 : index
    %39 = vector.load %arg17[%c0_15, %c0_16] : memref<16x128xf32, #tpu.memory_space<vmem>>, vector<16x128xf32>
    %c0_17 = arith.constant 0 : index
    %c0_18 = arith.constant 0 : index
    %40 = vector.load %arg18[%c0_17, %c0_18] : memref<16x128xf32, #tpu.memory_space<vmem>>, vector<16x128xf32>
    %c0_19 = arith.constant 0 : index
    %c0_20 = arith.constant 0 : index
    %c0_21 = arith.constant 0 : index
    %41 = vector.load %arg14[%c0_19, %c0_20, %c0_21] : memref<8x16x512xf32, #tpu.memory_space<vmem>>, vector<1x16x512xf32>
    %42 = vector.shape_cast %41 : vector<1x16x512xf32> to vector<16x512xf32>
    %cst_22 = arith.constant dense<0.000000e+00> : vector<16x512xf32>
    %43 = tpu.matmul %39, %38, %cst_22 {dimension_numbers = #tpu.dot_dimension_numbers<[1], [0], [0], [1], [0, 0, 1, 1], [], []>} : vector<16x128xf32>, vector<128x512xf32>, vector<16x512xf32> -> vector<16x512xf32>
    %44 = arith.addf %42, %43 : vector<16x512xf32>
    %45 = vector.extract_strided_slice %44 {offsets = [0, 0], sizes = [16, 384], strides = [1, 1]} : vector<16x512xf32> to vector<16x384xf32>
    %46 = arith.negf %45 : vector<16x384xf32>
    %47 = math.exp %46 : vector<16x384xf32>
    %cst_23 = arith.constant 1.000000e+00 : f32
    %48 = vector.broadcast %cst_23 : f32 to vector<16x384xf32>
    %49 = arith.addf %48, %47 : vector<16x384xf32>
    %50 = arith.divf %48, %49 : vector<16x384xf32>
    %51 = vector.extract_strided_slice %44 {offsets = [0, 384], sizes = [16, 128], strides = [1, 1]} : vector<16x512xf32> to vector<16x128xf32>
    %52 = math.tanh %51 : vector<16x128xf32>
    %53 = vector.extract_strided_slice %50 {offsets = [0, 128], sizes = [16, 128], strides = [1, 1]} : vector<16x384xf32> to vector<16x128xf32>
    %54 = arith.mulf %53, %40 : vector<16x128xf32>
    %55 = vector.extract_strided_slice %50 {offsets = [0, 0], sizes = [16, 128], strides = [1, 1]} : vector<16x384xf32> to vector<16x128xf32>
    %56 = arith.mulf %55, %52 : vector<16x128xf32>
    %57 = arith.addf %54, %56 : vector<16x128xf32>
    %58 = vector.extract_strided_slice %50 {offsets = [0, 256], sizes = [16, 128], strides = [1, 1]} : vector<16x384xf32> to vector<16x128xf32>
    %59 = math.tanh %57 : vector<16x128xf32>
    %60 = arith.mulf %58, %59 : vector<16x128xf32>
    %c0_24 = arith.constant 0 : index
    %c0_25 = arith.constant 0 : index
    %c0_26 = arith.constant 0 : index
    %61 = vector.load %arg15[%c0_24, %c0_25, %c0_26] : memref<8x16x128xf32, #tpu.memory_space<vmem>>, vector<1x16x128xf32>
    %62 = vector.shape_cast %61 : vector<1x16x128xf32> to vector<16x128xf32>
    %63 = vector.shape_cast %60 : vector<16x128xf32> to vector<1x16x128xf32>
    tpu.vector_store %arg15[%c0_24, %c0_25, %c0_26], %63 {strides = array<i32>} : memref<8x16x128xf32, #tpu.memory_space<vmem>>, vector<1x16x128xf32>,
    %c1_27 = arith.constant 1 : index
    %c0_28 = arith.constant 0 : index
    %c0_29 = arith.constant 0 : index
    %64 = vector.load %arg14[%c1_27, %c0_28, %c0_29] : memref<8x16x512xf32, #tpu.memory_space<vmem>>, vector<1x16x512xf32>
    %65 = vector.shape_cast %64 : vector<1x16x512xf32> to vector<16x512xf32>
    %cst_30 = arith.constant dense<0.000000e+00> : vector<16x512xf32>
    %66 = tpu.matmul %60, %38, %cst_30 {dimension_numbers = #tpu.dot_dimension_numbers<[1], [0], [0], [1], [0, 0, 1, 1], [], []>} : vector<16x128xf32>, vector<128x512xf32>, vector<16x512xf32> -> vector<16x512xf32>
    %67 = arith.addf %65, %66 : vector<16x512xf32>
    %68 = vector.extract_strided_slice %67 {offsets = [0, 0], sizes = [16, 384], strides = [1, 1]} : vector<16x512xf32> to vector<16x384xf32>
    %69 = arith.negf %68 : vector<16x384xf32>
    %70 = math.exp %69 : vector<16x384xf32>
    %cst_31 = arith.constant 1.000000e+00 : f32
    %71 = vector.broadcast %cst_31 : f32 to vector<16x384xf32>
    %72 = arith.addf %71, %70 : vector<16x384xf32>
    %73 = arith.divf %71, %72 : vector<16x384xf32>
    %74 = vector.extract_strided_slice %67 {offsets = [0, 384], sizes = [16, 128], strides = [1, 1]} : vector<16x512xf32> to vector<16x128xf32>
    %75 = math.tanh %74 : vector<16x128xf32>
    %76 = vector.extract_strided_slice %73 {offsets = [0, 128], sizes = [16, 128], strides = [1, 1]} : vector<16x384xf32> to vector<16x128xf32>
    %77 = arith.mulf %76, %57 : vector<16x128xf32>
    %78 = vector.extract_strided_slice %73 {offsets = [0, 0], sizes = [16, 128], strides = [1, 1]} : vector<16x384xf32> to vector<16x128xf32>
    %79 = arith.mulf %78, %75 : vector<16x128xf32>
    %80 = arith.addf %77, %79 : vector<16x128xf32>
    %81 = vector.extract_strided_slice %73 {offsets = [0, 256], sizes = [16, 128], strides = [1, 1]} : vector<16x384xf32> to vector<16x128xf32>
    %82 = math.tanh %80 : vector<16x128xf32>
    %83 = arith.mulf %81, %82 : vector<16x128xf32>
    %c1_32 = arith.constant 1 : index
    %c0_33 = arith.constant 0 : index
    %c0_34 = arith.constant 0 : index
    %84 = vector.load %arg15[%c1_32, %c0_33, %c0_34] : memref<8x16x128xf32, #tpu.memory_space<vmem>>, vector<1x16x128xf32>
    %85 = vector.shape_cast %84 : vector<1x16x128xf32> to vector<16x128xf32>
    %86 = vector.shape_cast %83 : vector<16x128xf32> to vector<1x16x128xf32>
    tpu.vector_store %arg15[%c1_32, %c0_33, %c0_34], %86 {strides = array<i32>} : memref<8x16x128xf32, #tpu.memory_space<vmem>>, vector<1x16x128xf32>,
    %c2_35 = arith.constant 2 : index
    %c0_36 = arith.constant 0 : index
    %c0_37 = arith.constant 0 : index
    %87 = vector.load %arg14[%c2_35, %c0_36, %c0_37] : memref<8x16x512xf32, #tpu.memory_space<vmem>>, vector<1x16x512xf32>
    %88 = vector.shape_cast %87 : vector<1x16x512xf32> to vector<16x512xf32>
    %cst_38 = arith.constant dense<0.000000e+00> : vector<16x512xf32>
    %89 = tpu.matmul %83, %38, %cst_38 {dimension_numbers = #tpu.dot_dimension_numbers<[1], [0], [0], [1], [0, 0, 1, 1], [], []>} : vector<16x128xf32>, vector<128x512xf32>, vector<16x512xf32> -> vector<16x512xf32>
    %90 = arith.addf %88, %89 : vector<16x512xf32>
    %91 = vector.extract_strided_slice %90 {offsets = [0, 0], sizes = [16, 384], strides = [1, 1]} : vector<16x512xf32> to vector<16x384xf32>
    %92 = arith.negf %91 : vector<16x384xf32>
    %93 = math.exp %92 : vector<16x384xf32>
    %cst_39 = arith.constant 1.000000e+00 : f32
    %94 = vector.broadcast %cst_39 : f32 to vector<16x384xf32>
    %95 = arith.addf %94, %93 : vector<16x384xf32>
    %96 = arith.divf %94, %95 : vector<16x384xf32>
    %97 = vector.extract_strided_slice %90 {offsets = [0, 384], sizes = [16, 128], strides = [1, 1]} : vector<16x512xf32> to vector<16x128xf32>
    %98 = math.tanh %97 : vector<16x128xf32>
    %99 = vector.extract_strided_slice %96 {offsets = [0, 128], sizes = [16, 128], strides = [1, 1]} : vector<16x384xf32> to vector<16x128xf32>
    %100 = arith.mulf %99, %80 : vector<16x128xf32>
    %101 = vector.extract_strided_slice %96 {offsets = [0, 0], sizes = [16, 128], strides = [1, 1]} : vector<16x384xf32> to vector<16x128xf32>
    %102 = arith.mulf %101, %98 : vector<16x128xf32>
    %103 = arith.addf %100, %102 : vector<16x128xf32>
    %104 = vector.extract_strided_slice %96 {offsets = [0, 256], sizes = [16, 128], strides = [1, 1]} : vector<16x384xf32> to vector<16x128xf32>
    %105 = math.tanh %103 : vector<16x128xf32>
    %106 = arith.mulf %104, %105 : vector<16x128xf32>
    %c2_40 = arith.constant 2 : index
    %c0_41 = arith.constant 0 : index
    %c0_42 = arith.constant 0 : index
    %107 = vector.load %arg15[%c2_40, %c0_41, %c0_42] : memref<8x16x128xf32, #tpu.memory_space<vmem>>, vector<1x16x128xf32>
    %108 = vector.shape_cast %107 : vector<1x16x128xf32> to vector<16x128xf32>
    %109 = vector.shape_cast %106 : vector<16x128xf32> to vector<1x16x128xf32>
    tpu.vector_store %arg15[%c2_40, %c0_41, %c0_42], %109 {strides = array<i32>} : memref<8x16x128xf32, #tpu.memory_space<vmem>>, vector<1x16x128xf32>,
    %c3_43 = arith.constant 3 : index
    %c0_44 = arith.constant 0 : index
    %c0_45 = arith.constant 0 : index
    %110 = vector.load %arg14[%c3_43, %c0_44, %c0_45] : memref<8x16x512xf32, #tpu.memory_space<vmem>>, vector<1x16x512xf32>
    %111 = vector.shape_cast %110 : vector<1x16x512xf32> to vector<16x512xf32>
    %cst_46 = arith.constant dense<0.000000e+00> : vector<16x512xf32>
    %112 = tpu.matmul %106, %38, %cst_46 {dimension_numbers = #tpu.dot_dimension_numbers<[1], [0], [0], [1], [0, 0, 1, 1], [], []>} : vector<16x128xf32>, vector<128x512xf32>, vector<16x512xf32> -> vector<16x512xf32>
    %113 = arith.addf %111, %112 : vector<16x512xf32>
    %114 = vector.extract_strided_slice %113 {offsets = [0, 0], sizes = [16, 384], strides = [1, 1]} : vector<16x512xf32> to vector<16x384xf32>
    %115 = arith.negf %114 : vector<16x384xf32>
    %116 = math.exp %115 : vector<16x384xf32>
    %cst_47 = arith.constant 1.000000e+00 : f32
    %117 = vector.broadcast %cst_47 : f32 to vector<16x384xf32>
    %118 = arith.addf %117, %116 : vector<16x384xf32>
    %119 = arith.divf %117, %118 : vector<16x384xf32>
    %120 = vector.extract_strided_slice %113 {offsets = [0, 384], sizes = [16, 128], strides = [1, 1]} : vector<16x512xf32> to vector<16x128xf32>
    %121 = math.tanh %120 : vector<16x128xf32>
    %122 = vector.extract_strided_slice %119 {offsets = [0, 128], sizes = [16, 128], strides = [1, 1]} : vector<16x384xf32> to vector<16x128xf32>
    %123 = arith.mulf %122, %103 : vector<16x128xf32>
    %124 = vector.extract_strided_slice %119 {offsets = [0, 0], sizes = [16, 128], strides = [1, 1]} : vector<16x384xf32> to vector<16x128xf32>
    %125 = arith.mulf %124, %121 : vector<16x128xf32>
    %126 = arith.addf %123, %125 : vector<16x128xf32>
    %127 = vector.extract_strided_slice %119 {offsets = [0, 256], sizes = [16, 128], strides = [1, 1]} : vector<16x384xf32> to vector<16x128xf32>
    %128 = math.tanh %126 : vector<16x128xf32>
    %129 = arith.mulf %127, %128 : vector<16x128xf32>
    %c3_48 = arith.constant 3 : index
    %c0_49 = arith.constant 0 : index
    %c0_50 = arith.constant 0 : index
    %130 = vector.load %arg15[%c3_48, %c0_49, %c0_50] : memref<8x16x128xf32, #tpu.memory_space<vmem>>, vector<1x16x128xf32>
    %131 = vector.shape_cast %130 : vector<1x16x128xf32> to vector<16x128xf32>
    %132 = vector.shape_cast %129 : vector<16x128xf32> to vector<1x16x128xf32>
    tpu.vector_store %arg15[%c3_48, %c0_49, %c0_50], %132 {strides = array<i32>} : memref<8x16x128xf32, #tpu.memory_space<vmem>>, vector<1x16x128xf32>,
    %c4 = arith.constant 4 : index
    %c0_51 = arith.constant 0 : index
    %c0_52 = arith.constant 0 : index
    %133 = vector.load %arg14[%c4, %c0_51, %c0_52] : memref<8x16x512xf32, #tpu.memory_space<vmem>>, vector<1x16x512xf32>
    %134 = vector.shape_cast %133 : vector<1x16x512xf32> to vector<16x512xf32>
    %cst_53 = arith.constant dense<0.000000e+00> : vector<16x512xf32>
    %135 = tpu.matmul %129, %38, %cst_53 {dimension_numbers = #tpu.dot_dimension_numbers<[1], [0], [0], [1], [0, 0, 1, 1], [], []>} : vector<16x128xf32>, vector<128x512xf32>, vector<16x512xf32> -> vector<16x512xf32>
    %136 = arith.addf %134, %135 : vector<16x512xf32>
    %137 = vector.extract_strided_slice %136 {offsets = [0, 0], sizes = [16, 384], strides = [1, 1]} : vector<16x512xf32> to vector<16x384xf32>
    %138 = arith.negf %137 : vector<16x384xf32>
    %139 = math.exp %138 : vector<16x384xf32>
    %cst_54 = arith.constant 1.000000e+00 : f32
    %140 = vector.broadcast %cst_54 : f32 to vector<16x384xf32>
    %141 = arith.addf %140, %139 : vector<16x384xf32>
    %142 = arith.divf %140, %141 : vector<16x384xf32>
    %143 = vector.extract_strided_slice %136 {offsets = [0, 384], sizes = [16, 128], strides = [1, 1]} : vector<16x512xf32> to vector<16x128xf32>
    %144 = math.tanh %143 : vector<16x128xf32>
    %145 = vector.extract_strided_slice %142 {offsets = [0, 128], sizes = [16, 128], strides = [1, 1]} : vector<16x384xf32> to vector<16x128xf32>
    %146 = arith.mulf %145, %126 : vector<16x128xf32>
    %147 = vector.extract_strided_slice %142 {offsets = [0, 0], sizes = [16, 128], strides = [1, 1]} : vector<16x384xf32> to vector<16x128xf32>
    %148 = arith.mulf %147, %144 : vector<16x128xf32>
    %149 = arith.addf %146, %148 : vector<16x128xf32>
    %150 = vector.extract_strided_slice %142 {offsets = [0, 256], sizes = [16, 128], strides = [1, 1]} : vector<16x384xf32> to vector<16x128xf32>
    %151 = math.tanh %149 : vector<16x128xf32>
    %152 = arith.mulf %150, %151 : vector<16x128xf32>
    %c4_55 = arith.constant 4 : index
    %c0_56 = arith.constant 0 : index
    %c0_57 = arith.constant 0 : index
    %153 = vector.load %arg15[%c4_55, %c0_56, %c0_57] : memref<8x16x128xf32, #tpu.memory_space<vmem>>, vector<1x16x128xf32>
    %154 = vector.shape_cast %153 : vector<1x16x128xf32> to vector<16x128xf32>
    %155 = vector.shape_cast %152 : vector<16x128xf32> to vector<1x16x128xf32>
    tpu.vector_store %arg15[%c4_55, %c0_56, %c0_57], %155 {strides = array<i32>} : memref<8x16x128xf32, #tpu.memory_space<vmem>>, vector<1x16x128xf32>,
    %c5 = arith.constant 5 : index
    %c0_58 = arith.constant 0 : index
    %c0_59 = arith.constant 0 : index
    %156 = vector.load %arg14[%c5, %c0_58, %c0_59] : memref<8x16x512xf32, #tpu.memory_space<vmem>>, vector<1x16x512xf32>
    %157 = vector.shape_cast %156 : vector<1x16x512xf32> to vector<16x512xf32>
    %cst_60 = arith.constant dense<0.000000e+00> : vector<16x512xf32>
    %158 = tpu.matmul %152, %38, %cst_60 {dimension_numbers = #tpu.dot_dimension_numbers<[1], [0], [0], [1], [0, 0, 1, 1], [], []>} : vector<16x128xf32>, vector<128x512xf32>, vector<16x512xf32> -> vector<16x512xf32>
    %159 = arith.addf %157, %158 : vector<16x512xf32>
    %160 = vector.extract_strided_slice %159 {offsets = [0, 0], sizes = [16, 384], strides = [1, 1]} : vector<16x512xf32> to vector<16x384xf32>
    %161 = arith.negf %160 : vector<16x384xf32>
    %162 = math.exp %161 : vector<16x384xf32>
    %cst_61 = arith.constant 1.000000e+00 : f32
    %163 = vector.broadcast %cst_61 : f32 to vector<16x384xf32>
    %164 = arith.addf %163, %162 : vector<16x384xf32>
    %165 = arith.divf %163, %164 : vector<16x384xf32>
    %166 = vector.extract_strided_slice %159 {offsets = [0, 384], sizes = [16, 128], strides = [1, 1]} : vector<16x512xf32> to vector<16x128xf32>
    %167 = math.tanh %166 : vector<16x128xf32>
    %168 = vector.extract_strided_slice %165 {offsets = [0, 128], sizes = [16, 128], strides = [1, 1]} : vector<16x384xf32> to vector<16x128xf32>
    %169 = arith.mulf %168, %149 : vector<16x128xf32>
    %170 = vector.extract_strided_slice %165 {offsets = [0, 0], sizes = [16, 128], strides = [1, 1]} : vector<16x384xf32> to vector<16x128xf32>
    %171 = arith.mulf %170, %167 : vector<16x128xf32>
    %172 = arith.addf %169, %171 : vector<16x128xf32>
    %173 = vector.extract_strided_slice %165 {offsets = [0, 256], sizes = [16, 128], strides = [1, 1]} : vector<16x384xf32> to vector<16x128xf32>
    %174 = math.tanh %172 : vector<16x128xf32>
    %175 = arith.mulf %173, %174 : vector<16x128xf32>
    %c5_62 = arith.constant 5 : index
    %c0_63 = arith.constant 0 : index
    %c0_64 = arith.constant 0 : index
    %176 = vector.load %arg15[%c5_62, %c0_63, %c0_64] : memref<8x16x128xf32, #tpu.memory_space<vmem>>, vector<1x16x128xf32>
    %177 = vector.shape_cast %176 : vector<1x16x128xf32> to vector<16x128xf32>
    %178 = vector.shape_cast %175 : vector<16x128xf32> to vector<1x16x128xf32>
    tpu.vector_store %arg15[%c5_62, %c0_63, %c0_64], %178 {strides = array<i32>} : memref<8x16x128xf32, #tpu.memory_space<vmem>>, vector<1x16x128xf32>,
    %c6 = arith.constant 6 : index
    %c0_65 = arith.constant 0 : index
    %c0_66 = arith.constant 0 : index
    %179 = vector.load %arg14[%c6, %c0_65, %c0_66] : memref<8x16x512xf32, #tpu.memory_space<vmem>>, vector<1x16x512xf32>
    %180 = vector.shape_cast %179 : vector<1x16x512xf32> to vector<16x512xf32>
    %cst_67 = arith.constant dense<0.000000e+00> : vector<16x512xf32>
    %181 = tpu.matmul %175, %38, %cst_67 {dimension_numbers = #tpu.dot_dimension_numbers<[1], [0], [0], [1], [0, 0, 1, 1], [], []>} : vector<16x128xf32>, vector<128x512xf32>, vector<16x512xf32> -> vector<16x512xf32>
    %182 = arith.addf %180, %181 : vector<16x512xf32>
    %183 = vector.extract_strided_slice %182 {offsets = [0, 0], sizes = [16, 384], strides = [1, 1]} : vector<16x512xf32> to vector<16x384xf32>
    %184 = arith.negf %183 : vector<16x384xf32>
    %185 = math.exp %184 : vector<16x384xf32>
    %cst_68 = arith.constant 1.000000e+00 : f32
    %186 = vector.broadcast %cst_68 : f32 to vector<16x384xf32>
    %187 = arith.addf %186, %185 : vector<16x384xf32>
    %188 = arith.divf %186, %187 : vector<16x384xf32>
    %189 = vector.extract_strided_slice %182 {offsets = [0, 384], sizes = [16, 128], strides = [1, 1]} : vector<16x512xf32> to vector<16x128xf32>
    %190 = math.tanh %189 : vector<16x128xf32>
    %191 = vector.extract_strided_slice %188 {offsets = [0, 128], sizes = [16, 128], strides = [1, 1]} : vector<16x384xf32> to vector<16x128xf32>
    %192 = arith.mulf %191, %172 : vector<16x128xf32>
    %193 = vector.extract_strided_slice %188 {offsets = [0, 0], sizes = [16, 128], strides = [1, 1]} : vector<16x384xf32> to vector<16x128xf32>
    %194 = arith.mulf %193, %190 : vector<16x128xf32>
    %195 = arith.addf %192, %194 : vector<16x128xf32>
    %196 = vector.extract_strided_slice %188 {offsets = [0, 256], sizes = [16, 128], strides = [1, 1]} : vector<16x384xf32> to vector<16x128xf32>
    %197 = math.tanh %195 : vector<16x128xf32>
    %198 = arith.mulf %196, %197 : vector<16x128xf32>
    %c6_69 = arith.constant 6 : index
    %c0_70 = arith.constant 0 : index
    %c0_71 = arith.constant 0 : index
    %199 = vector.load %arg15[%c6_69, %c0_70, %c0_71] : memref<8x16x128xf32, #tpu.memory_space<vmem>>, vector<1x16x128xf32>
    %200 = vector.shape_cast %199 : vector<1x16x128xf32> to vector<16x128xf32>
    %201 = vector.shape_cast %198 : vector<16x128xf32> to vector<1x16x128xf32>
    tpu.vector_store %arg15[%c6_69, %c0_70, %c0_71], %201 {strides = array<i32>} : memref<8x16x128xf32, #tpu.memory_space<vmem>>, vector<1x16x128xf32>,
    %c7 = arith.constant 7 : index
    %c0_72 = arith.constant 0 : index
    %c0_73 = arith.constant 0 : index
    %202 = vector.load %arg14[%c7, %c0_72, %c0_73] : memref<8x16x512xf32, #tpu.memory_space<vmem>>, vector<1x16x512xf32>
    %203 = vector.shape_cast %202 : vector<1x16x512xf32> to vector<16x512xf32>
    %cst_74 = arith.constant dense<0.000000e+00> : vector<16x512xf32>
    %204 = tpu.matmul %198, %38, %cst_74 {dimension_numbers = #tpu.dot_dimension_numbers<[1], [0], [0], [1], [0, 0, 1, 1], [], []>} : vector<16x128xf32>, vector<128x512xf32>, vector<16x512xf32> -> vector<16x512xf32>
    %205 = arith.addf %203, %204 : vector<16x512xf32>
    %206 = vector.extract_strided_slice %205 {offsets = [0, 0], sizes = [16, 384], strides = [1, 1]} : vector<16x512xf32> to vector<16x384xf32>
    %207 = arith.negf %206 : vector<16x384xf32>
    %208 = math.exp %207 : vector<16x384xf32>
    %cst_75 = arith.constant 1.000000e+00 : f32
    %209 = vector.broadcast %cst_75 : f32 to vector<16x384xf32>
    %210 = arith.addf %209, %208 : vector<16x384xf32>
    %211 = arith.divf %209, %210 : vector<16x384xf32>
    %212 = vector.extract_strided_slice %205 {offsets = [0, 384], sizes = [16, 128], strides = [1, 1]} : vector<16x512xf32> to vector<16x128xf32>
    %213 = math.tanh %212 : vector<16x128xf32>
    %214 = vector.extract_strided_slice %211 {offsets = [0, 128], sizes = [16, 128], strides = [1, 1]} : vector<16x384xf32> to vector<16x128xf32>
    %215 = arith.mulf %214, %195 : vector<16x128xf32>
    %216 = vector.extract_strided_slice %211 {offsets = [0, 0], sizes = [16, 128], strides = [1, 1]} : vector<16x384xf32> to vector<16x128xf32>
    %217 = arith.mulf %216, %213 : vector<16x128xf32>
    %218 = arith.addf %215, %217 : vector<16x128xf32>
    %219 = vector.extract_strided_slice %211 {offsets = [0, 256], sizes = [16, 128], strides = [1, 1]} : vector<16x384xf32> to vector<16x128xf32>
    %220 = math.tanh %218 : vector<16x128xf32>
    %221 = arith.mulf %219, %220 : vector<16x128xf32>
    %c7_76 = arith.constant 7 : index
    %c0_77 = arith.constant 0 : index
    %c0_78 = arith.constant 0 : index
    %222 = vector.load %arg15[%c7_76, %c0_77, %c0_78] : memref<8x16x128xf32, #tpu.memory_space<vmem>>, vector<1x16x128xf32>
    %223 = vector.shape_cast %222 : vector<1x16x128xf32> to vector<16x128xf32>
    %224 = vector.shape_cast %221 : vector<16x128xf32> to vector<1x16x128xf32>
    tpu.vector_store %arg15[%c7_76, %c0_77, %c0_78], %224 {strides = array<i32>} : memref<8x16x128xf32, #tpu.memory_space<vmem>>, vector<1x16x128xf32>,
    %c0_79 = arith.constant 0 : index
    %c0_80 = arith.constant 0 : index
    %225 = vector.load %arg17[%c0_79, %c0_80] : memref<16x128xf32, #tpu.memory_space<vmem>>, vector<16x128xf32>
    tpu.vector_store %arg17[%c0_79, %c0_80], %221 {strides = array<i32>} : memref<16x128xf32, #tpu.memory_space<vmem>>, vector<16x128xf32>,
    %c0_81 = arith.constant 0 : index
    %c0_82 = arith.constant 0 : index
    %226 = vector.load %arg18[%c0_81, %c0_82] : memref<16x128xf32, #tpu.memory_space<vmem>>, vector<16x128xf32>
    tpu.vector_store %arg18[%c0_81, %c0_82], %218 {strides = array<i32>} : memref<16x128xf32, #tpu.memory_space<vmem>>, vector<16x128xf32>,
    %c0_83 = arith.constant 0 : index
    %c0_84 = arith.constant 0 : index
    %c0_85 = arith.constant 0 : index
    %227 = vector.load %arg15[%c0_83, %c0_84, %c0_85] : memref<8x16x128xf32, #tpu.memory_space<vmem>>, vector<8x16x128xf32>
    %228 = vector.shape_cast %227 : vector<8x16x128xf32> to vector<128x128xf32>
    %c0_86 = arith.constant 0 : index
    %c0_87 = arith.constant 0 : index
    %229 = vector.load %arg6[%c0_86, %c0_87] : memref<128x512xf32, #tpu.memory_space<vmem>>, vector<128x512xf32>
    %cst_88 = arith.constant dense<0.000000e+00> : vector<128x512xf32>
    %230 = tpu.matmul %228, %229, %cst_88 {dimension_numbers = #tpu.dot_dimension_numbers<[1], [0], [0], [1], [0, 0, 1, 1], [], []>} : vector<128x128xf32>, vector<128x512xf32>, vector<128x512xf32> -> vector<128x512xf32>
    %c0_89 = arith.constant 0 : index
    %c0_90 = arith.constant 0 : index
    %231 = vector.load %arg8[%c0_89, %c0_90] : memref<1x512xf32, #tpu.memory_space<vmem>>, vector<1x512xf32>
    %232 = vector.broadcast %231 : vector<1x512xf32> to vector<128x512xf32>
    %233 = arith.addf %230, %232 : vector<128x512xf32>
    %234 = vector.shape_cast %233 : vector<128x512xf32> to vector<8x16x512xf32>
    %c0_91 = arith.constant 0 : index
    %c0_92 = arith.constant 0 : index
    %c0_93 = arith.constant 0 : index
    %235 = vector.load %arg16[%c0_91, %c0_92, %c0_93] : memref<8x16x512xf32, #tpu.memory_space<vmem>>, vector<8x16x512xf32>
    tpu.vector_store %arg16[%c0_91, %c0_92, %c0_93], %234 {strides = array<i32>} : memref<8x16x512xf32, #tpu.memory_space<vmem>>, vector<8x16x512xf32>,
    %c0_94 = arith.constant 0 : index
    %c0_95 = arith.constant 0 : index
    %236 = vector.load %arg7[%c0_94, %c0_95] : memref<128x512xf32, #tpu.memory_space<vmem>>, vector<128x512xf32>
    %c0_96 = arith.constant 0 : index
    %c0_97 = arith.constant 0 : index
    %237 = vector.load %arg19[%c0_96, %c0_97] : memref<16x128xf32, #tpu.memory_space<vmem>>, vector<16x128xf32>
    %c0_98 = arith.constant 0 : index
    %c0_99 = arith.constant 0 : index
    %238 = vector.load %arg20[%c0_98, %c0_99] : memref<16x128xf32, #tpu.memory_space<vmem>>, vector<16x128xf32>
    %c0_100 = arith.constant 0 : index
    %c0_101 = arith.constant 0 : index
    %c0_102 = arith.constant 0 : index
    %239 = vector.load %arg16[%c0_100, %c0_101, %c0_102] : memref<8x16x512xf32, #tpu.memory_space<vmem>>, vector<1x16x512xf32>
    %240 = vector.shape_cast %239 : vector<1x16x512xf32> to vector<16x512xf32>
    %cst_103 = arith.constant dense<0.000000e+00> : vector<16x512xf32>
    %241 = tpu.matmul %237, %236, %cst_103 {dimension_numbers = #tpu.dot_dimension_numbers<[1], [0], [0], [1], [0, 0, 1, 1], [], []>} : vector<16x128xf32>, vector<128x512xf32>, vector<16x512xf32> -> vector<16x512xf32>
    %242 = arith.addf %240, %241 : vector<16x512xf32>
    %243 = vector.extract_strided_slice %242 {offsets = [0, 0], sizes = [16, 384], strides = [1, 1]} : vector<16x512xf32> to vector<16x384xf32>
    %244 = arith.negf %243 : vector<16x384xf32>
    %245 = math.exp %244 : vector<16x384xf32>
    %cst_104 = arith.constant 1.000000e+00 : f32
    %246 = vector.broadcast %cst_104 : f32 to vector<16x384xf32>
    %247 = arith.addf %246, %245 : vector<16x384xf32>
    %248 = arith.divf %246, %247 : vector<16x384xf32>
    %249 = vector.extract_strided_slice %242 {offsets = [0, 384], sizes = [16, 128], strides = [1, 1]} : vector<16x512xf32> to vector<16x128xf32>
    %250 = math.tanh %249 : vector<16x128xf32>
    %251 = vector.extract_strided_slice %248 {offsets = [0, 128], sizes = [16, 128], strides = [1, 1]} : vector<16x384xf32> to vector<16x128xf32>
    %252 = arith.mulf %251, %238 : vector<16x128xf32>
    %253 = vector.extract_strided_slice %248 {offsets = [0, 0], sizes = [16, 128], strides = [1, 1]} : vector<16x384xf32> to vector<16x128xf32>
    %254 = arith.mulf %253, %250 : vector<16x128xf32>
    %255 = arith.addf %252, %254 : vector<16x128xf32>
    %256 = vector.extract_strided_slice %248 {offsets = [0, 256], sizes = [16, 128], strides = [1, 1]} : vector<16x384xf32> to vector<16x128xf32>
    %257 = math.tanh %255 : vector<16x128xf32>
    %258 = arith.mulf %256, %257 : vector<16x128xf32>
    %c1_105 = arith.constant 1 : index
    %c0_106 = arith.constant 0 : index
    %c0_107 = arith.constant 0 : index
    %259 = vector.load %arg16[%c1_105, %c0_106, %c0_107] : memref<8x16x512xf32, #tpu.memory_space<vmem>>, vector<1x16x512xf32>
    %260 = vector.shape_cast %259 : vector<1x16x512xf32> to vector<16x512xf32>
    %cst_108 = arith.constant dense<0.000000e+00> : vector<16x512xf32>
    %261 = tpu.matmul %258, %236, %cst_108 {dimension_numbers = #tpu.dot_dimension_numbers<[1], [0], [0], [1], [0, 0, 1, 1], [], []>} : vector<16x128xf32>, vector<128x512xf32>, vector<16x512xf32> -> vector<16x512xf32>
    %262 = arith.addf %260, %261 : vector<16x512xf32>
    %263 = vector.extract_strided_slice %262 {offsets = [0, 0], sizes = [16, 384], strides = [1, 1]} : vector<16x512xf32> to vector<16x384xf32>
    %264 = arith.negf %263 : vector<16x384xf32>
    %265 = math.exp %264 : vector<16x384xf32>
    %cst_109 = arith.constant 1.000000e+00 : f32
    %266 = vector.broadcast %cst_109 : f32 to vector<16x384xf32>
    %267 = arith.addf %266, %265 : vector<16x384xf32>
    %268 = arith.divf %266, %267 : vector<16x384xf32>
    %269 = vector.extract_strided_slice %262 {offsets = [0, 384], sizes = [16, 128], strides = [1, 1]} : vector<16x512xf32> to vector<16x128xf32>
    %270 = math.tanh %269 : vector<16x128xf32>
    %271 = vector.extract_strided_slice %268 {offsets = [0, 128], sizes = [16, 128], strides = [1, 1]} : vector<16x384xf32> to vector<16x128xf32>
    %272 = arith.mulf %271, %255 : vector<16x128xf32>
    %273 = vector.extract_strided_slice %268 {offsets = [0, 0], sizes = [16, 128], strides = [1, 1]} : vector<16x384xf32> to vector<16x128xf32>
    %274 = arith.mulf %273, %270 : vector<16x128xf32>
    %275 = arith.addf %272, %274 : vector<16x128xf32>
    %276 = vector.extract_strided_slice %268 {offsets = [0, 256], sizes = [16, 128], strides = [1, 1]} : vector<16x384xf32> to vector<16x128xf32>
    %277 = math.tanh %275 : vector<16x128xf32>
    %278 = arith.mulf %276, %277 : vector<16x128xf32>
    %c2_110 = arith.constant 2 : index
    %c0_111 = arith.constant 0 : index
    %c0_112 = arith.constant 0 : index
    %279 = vector.load %arg16[%c2_110, %c0_111, %c0_112] : memref<8x16x512xf32, #tpu.memory_space<vmem>>, vector<1x16x512xf32>
    %280 = vector.shape_cast %279 : vector<1x16x512xf32> to vector<16x512xf32>
    %cst_113 = arith.constant dense<0.000000e+00> : vector<16x512xf32>
    %281 = tpu.matmul %278, %236, %cst_113 {dimension_numbers = #tpu.dot_dimension_numbers<[1], [0], [0], [1], [0, 0, 1, 1], [], []>} : vector<16x128xf32>, vector<128x512xf32>, vector<16x512xf32> -> vector<16x512xf32>
    %282 = arith.addf %280, %281 : vector<16x512xf32>
    %283 = vector.extract_strided_slice %282 {offsets = [0, 0], sizes = [16, 384], strides = [1, 1]} : vector<16x512xf32> to vector<16x384xf32>
    %284 = arith.negf %283 : vector<16x384xf32>
    %285 = math.exp %284 : vector<16x384xf32>
    %cst_114 = arith.constant 1.000000e+00 : f32
    %286 = vector.broadcast %cst_114 : f32 to vector<16x384xf32>
    %287 = arith.addf %286, %285 : vector<16x384xf32>
    %288 = arith.divf %286, %287 : vector<16x384xf32>
    %289 = vector.extract_strided_slice %282 {offsets = [0, 384], sizes = [16, 128], strides = [1, 1]} : vector<16x512xf32> to vector<16x128xf32>
    %290 = math.tanh %289 : vector<16x128xf32>
    %291 = vector.extract_strided_slice %288 {offsets = [0, 128], sizes = [16, 128], strides = [1, 1]} : vector<16x384xf32> to vector<16x128xf32>
    %292 = arith.mulf %291, %275 : vector<16x128xf32>
    %293 = vector.extract_strided_slice %288 {offsets = [0, 0], sizes = [16, 128], strides = [1, 1]} : vector<16x384xf32> to vector<16x128xf32>
    %294 = arith.mulf %293, %290 : vector<16x128xf32>
    %295 = arith.addf %292, %294 : vector<16x128xf32>
    %296 = vector.extract_strided_slice %288 {offsets = [0, 256], sizes = [16, 128], strides = [1, 1]} : vector<16x384xf32> to vector<16x128xf32>
    %297 = math.tanh %295 : vector<16x128xf32>
    %298 = arith.mulf %296, %297 : vector<16x128xf32>
    %c3_115 = arith.constant 3 : index
    %c0_116 = arith.constant 0 : index
    %c0_117 = arith.constant 0 : index
    %299 = vector.load %arg16[%c3_115, %c0_116, %c0_117] : memref<8x16x512xf32, #tpu.memory_space<vmem>>, vector<1x16x512xf32>
    %300 = vector.shape_cast %299 : vector<1x16x512xf32> to vector<16x512xf32>
    %cst_118 = arith.constant dense<0.000000e+00> : vector<16x512xf32>
    %301 = tpu.matmul %298, %236, %cst_118 {dimension_numbers = #tpu.dot_dimension_numbers<[1], [0], [0], [1], [0, 0, 1, 1], [], []>} : vector<16x128xf32>, vector<128x512xf32>, vector<16x512xf32> -> vector<16x512xf32>
    %302 = arith.addf %300, %301 : vector<16x512xf32>
    %303 = vector.extract_strided_slice %302 {offsets = [0, 0], sizes = [16, 384], strides = [1, 1]} : vector<16x512xf32> to vector<16x384xf32>
    %304 = arith.negf %303 : vector<16x384xf32>
    %305 = math.exp %304 : vector<16x384xf32>
    %cst_119 = arith.constant 1.000000e+00 : f32
    %306 = vector.broadcast %cst_119 : f32 to vector<16x384xf32>
    %307 = arith.addf %306, %305 : vector<16x384xf32>
    %308 = arith.divf %306, %307 : vector<16x384xf32>
    %309 = vector.extract_strided_slice %302 {offsets = [0, 384], sizes = [16, 128], strides = [1, 1]} : vector<16x512xf32> to vector<16x128xf32>
    %310 = math.tanh %309 : vector<16x128xf32>
    %311 = vector.extract_strided_slice %308 {offsets = [0, 128], sizes = [16, 128], strides = [1, 1]} : vector<16x384xf32> to vector<16x128xf32>
    %312 = arith.mulf %311, %295 : vector<16x128xf32>
    %313 = vector.extract_strided_slice %308 {offsets = [0, 0], sizes = [16, 128], strides = [1, 1]} : vector<16x384xf32> to vector<16x128xf32>
    %314 = arith.mulf %313, %310 : vector<16x128xf32>
    %315 = arith.addf %312, %314 : vector<16x128xf32>
    %316 = vector.extract_strided_slice %308 {offsets = [0, 256], sizes = [16, 128], strides = [1, 1]} : vector<16x384xf32> to vector<16x128xf32>
    %317 = math.tanh %315 : vector<16x128xf32>
    %318 = arith.mulf %316, %317 : vector<16x128xf32>
    %c4_120 = arith.constant 4 : index
    %c0_121 = arith.constant 0 : index
    %c0_122 = arith.constant 0 : index
    %319 = vector.load %arg16[%c4_120, %c0_121, %c0_122] : memref<8x16x512xf32, #tpu.memory_space<vmem>>, vector<1x16x512xf32>
    %320 = vector.shape_cast %319 : vector<1x16x512xf32> to vector<16x512xf32>
    %cst_123 = arith.constant dense<0.000000e+00> : vector<16x512xf32>
    %321 = tpu.matmul %318, %236, %cst_123 {dimension_numbers = #tpu.dot_dimension_numbers<[1], [0], [0], [1], [0, 0, 1, 1], [], []>} : vector<16x128xf32>, vector<128x512xf32>, vector<16x512xf32> -> vector<16x512xf32>
    %322 = arith.addf %320, %321 : vector<16x512xf32>
    %323 = vector.extract_strided_slice %322 {offsets = [0, 0], sizes = [16, 384], strides = [1, 1]} : vector<16x512xf32> to vector<16x384xf32>
    %324 = arith.negf %323 : vector<16x384xf32>
    %325 = math.exp %324 : vector<16x384xf32>
    %cst_124 = arith.constant 1.000000e+00 : f32
    %326 = vector.broadcast %cst_124 : f32 to vector<16x384xf32>
    %327 = arith.addf %326, %325 : vector<16x384xf32>
    %328 = arith.divf %326, %327 : vector<16x384xf32>
    %329 = vector.extract_strided_slice %322 {offsets = [0, 384], sizes = [16, 128], strides = [1, 1]} : vector<16x512xf32> to vector<16x128xf32>
    %330 = math.tanh %329 : vector<16x128xf32>
    %331 = vector.extract_strided_slice %328 {offsets = [0, 128], sizes = [16, 128], strides = [1, 1]} : vector<16x384xf32> to vector<16x128xf32>
    %332 = arith.mulf %331, %315 : vector<16x128xf32>
    %333 = vector.extract_strided_slice %328 {offsets = [0, 0], sizes = [16, 128], strides = [1, 1]} : vector<16x384xf32> to vector<16x128xf32>
    %334 = arith.mulf %333, %330 : vector<16x128xf32>
    %335 = arith.addf %332, %334 : vector<16x128xf32>
    %336 = vector.extract_strided_slice %328 {offsets = [0, 256], sizes = [16, 128], strides = [1, 1]} : vector<16x384xf32> to vector<16x128xf32>
    %337 = math.tanh %335 : vector<16x128xf32>
    %338 = arith.mulf %336, %337 : vector<16x128xf32>
    %c5_125 = arith.constant 5 : index
    %c0_126 = arith.constant 0 : index
    %c0_127 = arith.constant 0 : index
    %339 = vector.load %arg16[%c5_125, %c0_126, %c0_127] : memref<8x16x512xf32, #tpu.memory_space<vmem>>, vector<1x16x512xf32>
    %340 = vector.shape_cast %339 : vector<1x16x512xf32> to vector<16x512xf32>
    %cst_128 = arith.constant dense<0.000000e+00> : vector<16x512xf32>
    %341 = tpu.matmul %338, %236, %cst_128 {dimension_numbers = #tpu.dot_dimension_numbers<[1], [0], [0], [1], [0, 0, 1, 1], [], []>} : vector<16x128xf32>, vector<128x512xf32>, vector<16x512xf32> -> vector<16x512xf32>
    %342 = arith.addf %340, %341 : vector<16x512xf32>
    %343 = vector.extract_strided_slice %342 {offsets = [0, 0], sizes = [16, 384], strides = [1, 1]} : vector<16x512xf32> to vector<16x384xf32>
    %344 = arith.negf %343 : vector<16x384xf32>
    %345 = math.exp %344 : vector<16x384xf32>
    %cst_129 = arith.constant 1.000000e+00 : f32
    %346 = vector.broadcast %cst_129 : f32 to vector<16x384xf32>
    %347 = arith.addf %346, %345 : vector<16x384xf32>
    %348 = arith.divf %346, %347 : vector<16x384xf32>
    %349 = vector.extract_strided_slice %342 {offsets = [0, 384], sizes = [16, 128], strides = [1, 1]} : vector<16x512xf32> to vector<16x128xf32>
    %350 = math.tanh %349 : vector<16x128xf32>
    %351 = vector.extract_strided_slice %348 {offsets = [0, 128], sizes = [16, 128], strides = [1, 1]} : vector<16x384xf32> to vector<16x128xf32>
    %352 = arith.mulf %351, %335 : vector<16x128xf32>
    %353 = vector.extract_strided_slice %348 {offsets = [0, 0], sizes = [16, 128], strides = [1, 1]} : vector<16x384xf32> to vector<16x128xf32>
    %354 = arith.mulf %353, %350 : vector<16x128xf32>
    %355 = arith.addf %352, %354 : vector<16x128xf32>
    %356 = vector.extract_strided_slice %348 {offsets = [0, 256], sizes = [16, 128], strides = [1, 1]} : vector<16x384xf32> to vector<16x128xf32>
    %357 = math.tanh %355 : vector<16x128xf32>
    %358 = arith.mulf %356, %357 : vector<16x128xf32>
    %c6_130 = arith.constant 6 : index
    %c0_131 = arith.constant 0 : index
    %c0_132 = arith.constant 0 : index
    %359 = vector.load %arg16[%c6_130, %c0_131, %c0_132] : memref<8x16x512xf32, #tpu.memory_space<vmem>>, vector<1x16x512xf32>
    %360 = vector.shape_cast %359 : vector<1x16x512xf32> to vector<16x512xf32>
    %cst_133 = arith.constant dense<0.000000e+00> : vector<16x512xf32>
    %361 = tpu.matmul %358, %236, %cst_133 {dimension_numbers = #tpu.dot_dimension_numbers<[1], [0], [0], [1], [0, 0, 1, 1], [], []>} : vector<16x128xf32>, vector<128x512xf32>, vector<16x512xf32> -> vector<16x512xf32>
    %362 = arith.addf %360, %361 : vector<16x512xf32>
    %363 = vector.extract_strided_slice %362 {offsets = [0, 0], sizes = [16, 384], strides = [1, 1]} : vector<16x512xf32> to vector<16x384xf32>
    %364 = arith.negf %363 : vector<16x384xf32>
    %365 = math.exp %364 : vector<16x384xf32>
    %cst_134 = arith.constant 1.000000e+00 : f32
    %366 = vector.broadcast %cst_134 : f32 to vector<16x384xf32>
    %367 = arith.addf %366, %365 : vector<16x384xf32>
    %368 = arith.divf %366, %367 : vector<16x384xf32>
    %369 = vector.extract_strided_slice %362 {offsets = [0, 384], sizes = [16, 128], strides = [1, 1]} : vector<16x512xf32> to vector<16x128xf32>
    %370 = math.tanh %369 : vector<16x128xf32>
    %371 = vector.extract_strided_slice %368 {offsets = [0, 128], sizes = [16, 128], strides = [1, 1]} : vector<16x384xf32> to vector<16x128xf32>
    %372 = arith.mulf %371, %355 : vector<16x128xf32>
    %373 = vector.extract_strided_slice %368 {offsets = [0, 0], sizes = [16, 128], strides = [1, 1]} : vector<16x384xf32> to vector<16x128xf32>
    %374 = arith.mulf %373, %370 : vector<16x128xf32>
    %375 = arith.addf %372, %374 : vector<16x128xf32>
    %376 = vector.extract_strided_slice %368 {offsets = [0, 256], sizes = [16, 128], strides = [1, 1]} : vector<16x384xf32> to vector<16x128xf32>
    %377 = math.tanh %375 : vector<16x128xf32>
    %378 = arith.mulf %376, %377 : vector<16x128xf32>
    %c7_135 = arith.constant 7 : index
    %c0_136 = arith.constant 0 : index
    %c0_137 = arith.constant 0 : index
    %379 = vector.load %arg16[%c7_135, %c0_136, %c0_137] : memref<8x16x512xf32, #tpu.memory_space<vmem>>, vector<1x16x512xf32>
    %380 = vector.shape_cast %379 : vector<1x16x512xf32> to vector<16x512xf32>
    %cst_138 = arith.constant dense<0.000000e+00> : vector<16x512xf32>
    %381 = tpu.matmul %378, %236, %cst_138 {dimension_numbers = #tpu.dot_dimension_numbers<[1], [0], [0], [1], [0, 0, 1, 1], [], []>} : vector<16x128xf32>, vector<128x512xf32>, vector<16x512xf32> -> vector<16x512xf32>
    %382 = arith.addf %380, %381 : vector<16x512xf32>
    %383 = vector.extract_strided_slice %382 {offsets = [0, 0], sizes = [16, 384], strides = [1, 1]} : vector<16x512xf32> to vector<16x384xf32>
    %384 = arith.negf %383 : vector<16x384xf32>
    %385 = math.exp %384 : vector<16x384xf32>
    %cst_139 = arith.constant 1.000000e+00 : f32
    %386 = vector.broadcast %cst_139 : f32 to vector<16x384xf32>
    %387 = arith.addf %386, %385 : vector<16x384xf32>
    %388 = arith.divf %386, %387 : vector<16x384xf32>
    %389 = vector.extract_strided_slice %382 {offsets = [0, 384], sizes = [16, 128], strides = [1, 1]} : vector<16x512xf32> to vector<16x128xf32>
    %390 = math.tanh %389 : vector<16x128xf32>
    %391 = vector.extract_strided_slice %388 {offsets = [0, 128], sizes = [16, 128], strides = [1, 1]} : vector<16x384xf32> to vector<16x128xf32>
    %392 = arith.mulf %391, %375 : vector<16x128xf32>
    %393 = vector.extract_strided_slice %388 {offsets = [0, 0], sizes = [16, 128], strides = [1, 1]} : vector<16x384xf32> to vector<16x128xf32>
    %394 = arith.mulf %393, %390 : vector<16x128xf32>
    %395 = arith.addf %392, %394 : vector<16x128xf32>
    %396 = vector.extract_strided_slice %388 {offsets = [0, 256], sizes = [16, 128], strides = [1, 1]} : vector<16x384xf32> to vector<16x128xf32>
    %397 = math.tanh %395 : vector<16x128xf32>
    %398 = arith.mulf %396, %397 : vector<16x128xf32>
    %c0_140 = arith.constant 0 : index
    %c0_141 = arith.constant 0 : index
    %399 = vector.load %arg19[%c0_140, %c0_141] : memref<16x128xf32, #tpu.memory_space<vmem>>, vector<16x128xf32>
    tpu.vector_store %arg19[%c0_140, %c0_141], %398 {strides = array<i32>} : memref<16x128xf32, #tpu.memory_space<vmem>>, vector<16x128xf32>,
    %c0_142 = arith.constant 0 : index
    %c0_143 = arith.constant 0 : index
    %400 = vector.load %arg20[%c0_142, %c0_143] : memref<16x128xf32, #tpu.memory_space<vmem>>, vector<16x128xf32>
    tpu.vector_store %arg20[%c0_142, %c0_143], %395 {strides = array<i32>} : memref<16x128xf32, #tpu.memory_space<vmem>>, vector<16x128xf32>,
    %c1_i32 = arith.constant 1 : i32
    %401 = arith.cmpi eq, %arg1, %c1_i32 : i32
    %402 = arith.extui %401 : i1 to i32
    %c0_i32_144 = arith.constant 0 : i32
    %403 = arith.cmpi ne, %402, %c0_i32_144 : i32
    scf.if %403 {
      %c0_145 = arith.constant 0 : index
      %c0_146 = arith.constant 0 : index
      %404 = vector.load %arg9[%c0_145, %c0_146] : memref<128x128xf32, #tpu.memory_space<vmem>>, vector<128x128xf32>
      %cst_147 = arith.constant dense<0.000000e+00> : vector<16x128xf32>
      %405 = tpu.matmul %398, %404, %cst_147 {dimension_numbers = #tpu.dot_dimension_numbers<[1], [0], [0], [1], [0, 0, 1, 1], [], []>} : vector<16x128xf32>, vector<128x128xf32>, vector<16x128xf32> -> vector<16x128xf32>
      %c0_148 = arith.constant 0 : index
      %c0_149 = arith.constant 0 : index
      %406 = vector.load %arg10[%c0_148, %c0_149] : memref<1x128xf32, #tpu.memory_space<vmem>>, vector<1x128xf32>
      %407 = vector.broadcast %406 : vector<1x128xf32> to vector<16x128xf32>
      %408 = arith.addf %405, %407 : vector<16x128xf32>
      %cst_150 = arith.constant 0.000000e+00 : f32
      %409 = vector.broadcast %cst_150 : f32 to vector<16x128xf32>
      %410 = arith.maximumf %408, %409 : vector<16x128xf32>
      %c0_151 = arith.constant 0 : index
      %c0_152 = arith.constant 0 : index
      %411 = vector.load %arg11[%c0_151, %c0_152] : memref<128x128xf32, #tpu.memory_space<vmem>>, vector<128x128xf32>
      %cst_153 = arith.constant dense<0.000000e+00> : vector<16x128xf32>
      %412 = tpu.matmul %410, %411, %cst_153 {dimension_numbers = #tpu.dot_dimension_numbers<[1], [0], [0], [1], [0, 0, 1, 1], [], []>} : vector<16x128xf32>, vector<128x128xf32>, vector<16x128xf32> -> vector<16x128xf32>
      %c0_154 = arith.constant 0 : index
      %c0_155 = arith.constant 0 : index
      %413 = vector.load %arg12[%c0_154, %c0_155] : memref<1x128xf32, #tpu.memory_space<vmem>>, vector<1x128xf32>
      %414 = vector.broadcast %413 : vector<1x128xf32> to vector<16x128xf32>
      %415 = arith.addf %412, %414 : vector<16x128xf32>
      %c0_156 = arith.constant 0 : index
      %c0_157 = arith.constant 0 : index
      %416 = vector.load %arg13[%c0_156, %c0_157] : memref<16x128xf32, #tpu.memory_space<vmem>>, vector<16x128xf32>
      tpu.vector_store %arg13[%c0_156, %c0_157], %415 {strides = array<i32>} : memref<16x128xf32, #tpu.memory_space<vmem>>, vector<16x128xf32>,
    } else {
    }
    return
  }
  func.func @transform_0(%arg0: i32, %arg1: i32) -> (i32, i32, i32) {
    %c0_i32 = arith.constant 0 : i32
    %c0_i32_0 = arith.constant 0 : i32
    return %arg1, %arg0, %c0_i32 : i32, i32, i32
  }
  func.func @transform_1(%arg0: i32, %arg1: i32) -> (i32, i32) {
    %c0_i32 = arith.constant 0 : i32
    %c0_i32_0 = arith.constant 0 : i32
    %c0_i32_1 = arith.constant 0 : i32
    return %c0_i32, %c0_i32_0 : i32, i32
  }
  func.func @transform_2(%arg0: i32, %arg1: i32) -> (i32, i32) {
    %c0_i32 = arith.constant 0 : i32
    %c0_i32_0 = arith.constant 0 : i32
    %c0_i32_1 = arith.constant 0 : i32
    return %c0_i32, %c0_i32_0 : i32, i32
  }
  func.func @transform_3(%arg0: i32, %arg1: i32) -> (i32, i32) {
    %c0_i32 = arith.constant 0 : i32
    %c0_i32_0 = arith.constant 0 : i32
    %c0_i32_1 = arith.constant 0 : i32
    return %c0_i32, %c0_i32_0 : i32, i32
  }
  func.func @transform_4(%arg0: i32, %arg1: i32) -> (i32, i32) {
    %c0_i32 = arith.constant 0 : i32
    %c0_i32_0 = arith.constant 0 : i32
    %c0_i32_1 = arith.constant 0 : i32
    return %c0_i32, %c0_i32_0 : i32, i32
  }
  func.func @transform_5(%arg0: i32, %arg1: i32) -> (i32, i32) {
    %c0_i32 = arith.constant 0 : i32
    %c0_i32_0 = arith.constant 0 : i32
    %c0_i32_1 = arith.constant 0 : i32
    return %c0_i32, %c0_i32_0 : i32, i32
  }
  func.func @transform_6(%arg0: i32, %arg1: i32) -> (i32, i32) {
    %c0_i32 = arith.constant 0 : i32
    %c0_i32_0 = arith.constant 0 : i32
    %c0_i32_1 = arith.constant 0 : i32
    return %c0_i32, %c0_i32_0 : i32, i32
  }
  func.func @transform_7(%arg0: i32, %arg1: i32) -> (i32, i32) {
    %c0_i32 = arith.constant 0 : i32
    %c0_i32_0 = arith.constant 0 : i32
    %c0_i32_1 = arith.constant 0 : i32
    return %c0_i32, %c0_i32_0 : i32, i32
  }
  func.func @transform_8(%arg0: i32, %arg1: i32) -> (i32, i32) {
    %c0_i32 = arith.constant 0 : i32
    %c0_i32_0 = arith.constant 0 : i32
    %c0_i32_1 = arith.constant 0 : i32
    return %c0_i32, %c0_i32_0 : i32, i32
  }
  func.func @transform_9(%arg0: i32, %arg1: i32) -> (i32, i32) {
    %c0_i32 = arith.constant 0 : i32
    %c0_i32_0 = arith.constant 0 : i32
    %c0_i32_1 = arith.constant 0 : i32
    return %c0_i32, %c0_i32_0 : i32, i32
  }
  func.func @transform_10(%arg0: i32, %arg1: i32) -> (i32, i32) {
    %c0_i32 = arith.constant 0 : i32
    %c0_i32_0 = arith.constant 0 : i32
    %c0_i32_1 = arith.constant 0 : i32
    return %c0_i32, %c0_i32_0 : i32, i32
  }
  func.func @transform_11(%arg0: i32, %arg1: i32) -> (i32, i32) {
    %c0_i32 = arith.constant 0 : i32
    %c0_i32_0 = arith.constant 0 : i32
    return %arg0, %c0_i32 : i32, i32
  }
}

</mosaic_0001>

<bundles_post_ra>
// kernel: tpu_custom_call.1
= control target key start
LH: loop header
LB: loop body
LE: loop exit
PB: predicated region body
PF: predicated region fallthrough
CT: control target
= control target key end

     0   :  { %16 = vsyncpa [#allocation10], 0  ;;  %s10300_s0 = inlined_call_operand.vmem [shape: f32[16,16,4], index: 0, kind: input, shape index: {}]   ;;  %s10301_s1 = inlined_call_operand.vmem [shape: f32[4,512], index: 1, kind: input, shape index: {}]   ;;  %s10302_s2 = inlined_call_operand.hbm [shape: f32[128,512], index: 2, kind: input, shape index: {}]   ;;  %s10303_s3 = inlined_call_operand.vmem [shape: f32[1,512], index: 3, kind: input, shape index: {}]   ;;  %s10304_s4 = inlined_call_operand.hbm [shape: f32[128,512], index: 4, kind: input, shape index: {}]   ;;  %s10305_s5 = inlined_call_operand.hbm [shape: f32[128,512], index: 5, kind: input, shape index: {}]   ;;  %s10306_s6 = inlined_call_operand.vmem [shape: f32[1,512], index: 6, kind: input, shape index: {}]   ;;  %s10307_s7 = inlined_call_operand.vmem [shape: f32[128,128], index: 7, kind: input, shape index: {}]   ;;  %s10308_s8 = inlined_call_operand.vmem [shape: f32[1,128], index: 8, kind: input, shape index: {}]   ;;  %s10309_s9 = inlined_call_operand.vmem [shape: f32[128,128], index: 9, kind: input, shape index: {}]   ;;  %s10310_s10 = inlined_call_operand.vmem [shape: f32[1,128], index: 10, kind: input, shape index: {}]   ;;  %s10311_s11 = inlined_call_operand.hbm [shape: f32[16,128], index: 11, kind: output, shape index: {}]  }
   0x1   :  { %17 = vsyncpa [#allocation13], 0 }
   0x2   :  { %18 = vsyncpa [#allocation11], 0  ;;  %s7239_s17 = smov 0   ;;  %s7241_s18 = smov 0  }
   0x3   :  { %s7243_s19 = smov 0  }
   0x4 LB: > { %s5909_s20 = sadd.s32 4294967295, %s7163_s19   ;;  %p5910_p0 = scmp.ge.s32.totalorder %s7163_s19, 1  ;;  %s7163_s19 = sphi %s7243_s19, %s24_s19   ;;  %s7159_s18 = sphi %s7241_s18, %s11507_s18   ;;  %s7155_s17 = sphi %s7239_s17, %s11506_s17  }
   0x5   : > { %p305_p1 = scmp.lt.s32.totalorder %s7163_s19, 3  ;;  %p7259_p2 = scmp.eq.s32.totalorder %s5909_s20, 0 }
   0x6   : > { %s7165_s23 = smov [#allocation12]   ;;  %s33_s26 = sadd.s32 1, %s7159_s18 }
   0x7   : > { %p7263_p3 = pnand %p5910_p0, %p305_p1  ;;  %s336_s24 = sshll.u32 %s7165_s23, 4  ;;  %s337_s24 = int_to_ptr.vmem [resolvable:$true] %s336_s24 }
   0x8   : > { %p7276_p6 = scmp.ge.s32.totalorder %s33_s26, 2  ;;  %s7166_s28 = smov [#allocation9]  }
   0x9   : > { %p6152_p4 = pneg %p7263_p3  ;;  %s320_s29 = sshll.u32 %s7166_s28, 4  ;;  %s321_s29 = int_to_ptr.vmem [resolvable:$true] %s320_s29 }
   0xa   : > { %s7038_s30 = scalar_lea.vmem %s337_s24, 8192  ;;  %p7046_p11 = scmp.lt.s32.totalorder %s337_s24, %s337_s24 }
   0xb   : > { %p7271_p5 = pnand %p7259_p2, %p6152_p4  ;;  %p7039_p8 = scmp.ne.s32.totalorder %s337_s24, %s7038_s30 }
   0xc   : > { %p7047_p12 = scmp.lt.s32.totalorder %s7038_s30, %s7038_s30 }
   0xd   : > { %p7029_p7 = pneg %p7271_p5 }
   0xe   : > { %p7048_p13 = por %p7047_p12, %p7046_p11 }
   0xf   : > { %p7041_p9 = pnand %p7039_p8, %p7029_p7 }
  0x11   : > { %p7042_p10 = pneg %p7041_p9 }
  0x13   : > { %p7049_p0 = pnand %p7048_p13, %p7042_p10 }
  0x15   : > { %7052 = shalt.err (!%p7049_p0)
}
  0x16   : > { %s7167_s12 = smov 512   ;;  %s7168_s13 = smov 32  }
  0x17   : > { %6158 = dma.hbm_to_vmem [thread:$0]  (!%p7271_p5), %s10304_s4, 8192, %s337_s24, [#allocation13], %s7167_s12, %s7167_s12, %s7168_s13  }
  0x18   : > { %s11509_s26 = smov (%p7276_p6, %s33_s26), 0  ;;  %s7064_s16 = scalar_lea.vmem %s321_s29, 8192 }
  0x19   : > { %p7065_p1 = scmp.ne.s32.totalorder %s321_s29, %s7064_s16  ;;  %p7072_p9 = scmp.lt.s32.totalorder %s321_s29, %s321_s29 }
  0x1a   : > { %p7073_p10 = scmp.lt.s32.totalorder %s7064_s16, %s7064_s16 }
  0x1b   : > { %p7067_p4 = pnand %p7065_p1, %p7029_p7 }
  0x1c   : > { %p7074_p11 = por %p7073_p10, %p7072_p9 }
  0x1d   : > { %p7068_p8 = pneg %p7067_p4 }
  0x1f   : > { %p7075_p12 = pnand %p7074_p11, %p7068_p8 }
  0x21   : > { %7078 = shalt.err (!%p7075_p12)
}
  0x22   : > { %6155 = dma.hbm_to_vmem [thread:$0]  (!%p7271_p5), %s10302_s2, 8192, %s321_s29, [#allocation10], %s7167_s12, %s7167_s12, %s7168_s13  }
  0x23   : > { %s7169_s27 = smov [#allocation14]  }
  0x24   : > { %s349_s28 = sshll.u32 %s7169_s27, 4  ;;  %s350_s28 = int_to_ptr.vmem [resolvable:$true] %s349_s28 }
  0x25   : > { %s7090_s30 = scalar_lea.vmem %s350_s28, 8192  ;;  %p7098_p1 = scmp.lt.s32.totalorder %s350_s28, %s350_s28 }
  0x26   : > { %p7091_p6 = scmp.ne.s32.totalorder %s350_s28, %s7090_s30  ;;  %p7099_p4 = scmp.lt.s32.totalorder %s7090_s30, %s7090_s30 }
  0x28   : > { %p7093_p13 = pnand %p7091_p6, %p7029_p7  ;;  %p7100_p8 = por %p7099_p4, %p7098_p1 }
  0x2a   : > { %p7094_p0 = pneg %p7093_p13 }
  0x2c   : > { %p7101_p9 = pnand %p7100_p8, %p7094_p0 }
  0x2e   : > { %7104 = shalt.err (!%p7101_p9)
}
  0x2f   : > { %6161 = dma.hbm_to_vmem [thread:$0]  (!%p7271_p5), %s10305_s5, 8192, %s350_s28, [#allocation13], %s7167_s12, %s7167_s12, %s7168_s13  }
  0x30   : > { %395 = sbr.rel (%p7263_p3) target bundleno = 4548 (0x11c4), region = 64 }
  0x35   : > { %7142 = dma.done.wait (%p7259_p2), [#allocation10], 8192  }
  0x36   : > { %7144 = vsyncadd (%p7259_p2), [#allocation10], 4294959104 }
  0x37   : > { %7146 = dma.done.wait (%p7259_p2), [#allocation13], 16384  }
  0x38   : > { %7148 = vsyncadd (%p7259_p2), [#allocation13], 4294950912  ;;  %s5919_s25 = sshll.u32 %s7155_s17, 3  ;;  %p5922_p3 = scmp.ne.s32.totalorder %s7155_s17, 0 }
  0x39   : > { %p445_p7 = scmp.lt.s32.totalorder %s5919_s25, 15 }
  0x3a   : > { %459 = sbr.rel (%p5922_p3) target bundleno = 68 (0x44), region = 80 }
  0x3b   : > { %s11511_s25 = smov (!%p445_p7, %s5919_s25), 15 }
  0x3c   : > { %s6029_s12 = sshll.u32 %s11511_s25, 4 }
  0x3d   : > { %s7333_s15 = scalar_lea.vmem %s10300_s0, %s6029_s12 }
  0x3f   : > { %v7170_v0 = vmov 0.0  }
  0x40   : > { %460 = vst [vmem:[#allocation5] sm:$0xff] %v7170_v0  ;;  %461 = vst [vmem:[#allocation5 + $0x8] sm:$0xff] %v7170_v0 }
  0x41   : > { %462 = vst [vmem:[#allocation6 + $0x8] sm:$0xff] %v7170_v0  ;;  %463 = vst [vmem:[#allocation6] sm:$0xff] %v7170_v0 }
  0x42   : > { %464 = vst [vmem:[#allocation7 + $0x8] sm:$0xff] %v7170_v0  ;;  %465 = vst [vmem:[#allocation7] sm:$0xff] %v7170_v0 }
  0x43   : > { %466 = vst [vmem:[#allocation8] sm:$0xff] %v7170_v0  ;;  %467 = vst [vmem:[#allocation8 + $0x8] sm:$0xff] %v7170_v0 }
  0x44 PF: > { %v7336_v1 = vld [vmem:[#allocation9 + $0x1e8] sm:$0xff]  ;;  %v7338_v2 = vld [vmem:[#allocation9 + $0x1f8] sm:$0xff]  ;;  %v7340_v3 = vld [vmem:[#allocation9 + $0x1e0] sm:$0xff]  ;;  %p6022_p2 = scmp.ne.s32.totalorder %s7155_s17, 1 }
  0x45   : > { %10748 = vst [vmem:[#allocation19_spill] sm:$0xff] %v7336_v1  ;;  %10749 = vst [vmem:[#allocation20_spill] sm:$0xff] %v7338_v2  ;;  %1525 = vmatprep.subr.mxu0 %v7336_v1  ;;  %1602 = vmatprep.subr.mxu1 %v7338_v2  ;;  %v7344_v4 = vld [vmem:[#allocation9 + $0x1f0] sm:$0xff]  ;;  %v7346_v5 = vld [vmem:[#allocation9 + $0x1c8] sm:$0xff] }
  0x46   : > { %v7348_v6 = vld [vmem:[#allocation9 + $0x1d8] sm:$0xff]  ;;  %1526 = vmatpush1.msra.mxu0 %v7340_v3  ;;  %1603 = vmatpush1.msra.mxu1 %v7344_v4  ;;  %v7352_v7 = vld [vmem:[#allocation9 + $0x1c0] sm:$0xff]  ;;  %v7354_v8 = vld [vmem:[#allocation9 + $0x1d0] sm:$0xff] }
  0x47   : > { %v7356_v9 = vld [vmem:[#allocation9 + $0x1a8] sm:$0xff]  ;;  %1527 = vmatprep.subr.mxu0 %v7346_v5  ;;  %1604 = vmatprep.subr.mxu1 %v7348_v6  ;;  %v7360_v10 = vld [vmem:[#allocation9 + $0x1b8] sm:$0xff]  ;;  %v7362_v11 = vld [vmem:[#allocation9 + $0x1a0] sm:$0xff] }
  0x48   : > { %v7364_v12 = vld [vmem:[#allocation9 + $0x1b0] sm:$0xff]  ;;  %1528 = vmatpush1.msra.mxu0 %v7352_v7  ;;  %1605 = vmatpush1.msra.mxu1 %v7354_v8  ;;  %v7368_v13 = vld [vmem:[#allocation9 + $0x188] sm:$0xff]  ;;  %v7370_v14 = vld [vmem:[#allocation9 + $0x198] sm:$0xff] }
  0x49   : > { %1529 = vmatprep.subr.mxu0 %v7356_v9  ;;  %1606 = vmatprep.subr.mxu1 %v7360_v10  ;;  %v7374_v15 = vld [vmem:[#allocation9 + $0x180] sm:$0xff]  ;;  %v7376_v16 = vld [vmem:[#allocation9 + $0x190] sm:$0xff]  ;;  %v7380_v17 = vld [vmem:[#allocation9 + $0x168] sm:$0xff] }
  0x4a   : > { %1530 = vmatpush1.msra.mxu0 %v7362_v11  ;;  %1607 = vmatpush1.msra.mxu1 %v7364_v12  ;;  %v7382_v18 = vld [vmem:[#allocation9 + $0x178] sm:$0xff]  ;;  %v7386_v19 = vld [vmem:[#allocation9 + $0x160] sm:$0xff]  ;;  %v7388_v20 = vld [vmem:[#allocation9 + $0x170] sm:$0xff] }
  0x4b   : > { %1531 = vmatprep.subr.mxu0 %v7368_v13  ;;  %1608 = vmatprep.subr.mxu1 %v7370_v14  ;;  %v7392_v21 = vld [vmem:[#allocation9 + $0x148] sm:$0xff]  ;;  %v7394_v22 = vld [vmem:[#allocation9 + $0x158] sm:$0xff]  ;;  %v7398_v23 = vld [vmem:[#allocation9 + $0x140] sm:$0xff] }
  0x4c   : > { %1532 = vmatpush1.msra.mxu0 %v7374_v15  ;;  %1609 = vmatpush1.msra.mxu1 %v7376_v16  ;;  %v7400_v24 = vld [vmem:[#allocation9 + $0x150] sm:$0xff]  ;;  %v7404_v25 = vld [vmem:[#allocation9 + $0x128] sm:$0xff]  ;;  %v7406_v26 = vld [vmem:[#allocation9 + $0x138] sm:$0xff] }
  0x4d   : > { %1533 = vmatprep.subr.mxu0 %v7380_v17  ;;  %1610 = vmatprep.subr.mxu1 %v7382_v18  ;;  %10750 = vst [vmem:[#allocation21_spill] sm:$0xff] %v7400_v24  ;;  %10751 = vst [vmem:[#allocation22_spill] sm:$0xff] %v7404_v25  ;;  %v7410_v27 = vld [vmem:[#allocation9 + $0x120] sm:$0xff]  ;;  %v7412_v28 = vld [vmem:[#allocation9 + $0x130] sm:$0xff] }
  0x4e   : > { %1534 = vmatpush1.msra.mxu0 %v7386_v19  ;;  %1611 = vmatpush1.msra.mxu1 %v7388_v20  ;;  %10752 = vst [vmem:[#allocation23_spill] sm:$0xff] %v7406_v26  ;;  %10753 = vst [vmem:[#allocation24_spill] sm:$0xff] %v7410_v27  ;;  %v7416_v29 = vld [vmem:[#allocation9 + $0x108] sm:$0xff]  ;;  %v7418_v30 = vld [vmem:[#allocation9 + $0x118] sm:$0xff] }
  0x4f   : > { %1535 = vmatprep.subr.mxu0 %v7392_v21  ;;  %1612 = vmatprep.subr.mxu1 %v7394_v22  ;;  %10754 = vst [vmem:[#allocation25_spill] sm:$0xff] %v7412_v28  ;;  %10755 = vst [vmem:[#allocation26_spill] sm:$0xff] %v7416_v29  ;;  %v7422_v31 = vld [vmem:[#allocation9 + $0x100] sm:$0xff]  ;;  %v7424_v32 = vld [vmem:[#allocation9 + $0x110] sm:$0xff] }
  0x50   : > { %1536 = vmatpush1.msra.mxu0 %v7398_v23  ;;  %1613 = vmatpush1.msra.mxu1 %v7400_v24  ;;  %10756 = vst [vmem:[#allocation27_spill] sm:$0xff] %v7418_v30  ;;  %10757 = vst [vmem:[#allocation28_spill] sm:$0xff] %v7422_v31  ;;  %v7428_v33 = vld [vmem:[#allocation9 + $0xe8] sm:$0xff]  ;;  %v7430_v34 = vld [vmem:[#allocation9 + $0xf8] sm:$0xff] }
  0x51   : > { %1537 = vmatprep.subr.mxu0 %v7404_v25  ;;  %1614 = vmatprep.subr.mxu1 %v7406_v26  ;;  %10758 = vst [vmem:[#allocation29_spill] sm:$0xff] %v7424_v32  ;;  %10759 = vst [vmem:[#allocation30_spill] sm:$0xff] %v7428_v33  ;;  %v7434_v35 = vld [vmem:[#allocation9 + $0xe0] sm:$0xff]  ;;  %v7436_v36 = vld [vmem:[#allocation9 + $0xf0] sm:$0xff] }
  0x52   : > { %1538 = vmatpush1.msra.mxu0 %v7410_v27  ;;  %1615 = vmatpush1.msra.mxu1 %v7412_v28  ;;  %10760 = vst [vmem:[#allocation31_spill] sm:$0xff] %v7430_v34  ;;  %10761 = vst [vmem:[#allocation32_spill] sm:$0xff] %v7434_v35  ;;  %v7440_v37 = vld [vmem:[#allocation9 + $0xc8] sm:$0xff]  ;;  %v7442_v38 = vld [vmem:[#allocation9 + $0xd8] sm:$0xff] }
  0x53   : > { %1539 = vmatprep.subr.mxu0 %v7416_v29  ;;  %1616 = vmatprep.subr.mxu1 %v7418_v30  ;;  %10762 = vst [vmem:[#allocation33_spill] sm:$0xff] %v7436_v36  ;;  %10763 = vst [vmem:[#allocation34_spill] sm:$0xff] %v7440_v37  ;;  %v7446_v39 = vld [vmem:[#allocation9 + $0xc0] sm:$0xff]  ;;  %v7448_v40 = vld [vmem:[#allocation9 + $0xd0] sm:$0xff] }
  0x54   : > { %1540 = vmatpush1.msra.mxu0 %v7422_v31  ;;  %1617 = vmatpush1.msra.mxu1 %v7424_v32  ;;  %10764 = vst [vmem:[#allocation35_spill] sm:$0xff] %v7442_v38  ;;  %10765 = vst [vmem:[#allocation36_spill] sm:$0xff] %v7446_v39  ;;  %v7452_v41 = vld [vmem:[#allocation9 + $0xa8] sm:$0xff]  ;;  %v7454_v42 = vld [vmem:[#allocation9 + $0xb8] sm:$0xff] }
  0x55   : > { %1541 = vmatprep.subr.mxu0 %v7428_v33  ;;  %1618 = vmatprep.subr.mxu1 %v7430_v34  ;;  %10766 = vst [vmem:[#allocation37_spill] sm:$0xff] %v7448_v40  ;;  %10767 = vst [vmem:[#allocation38_spill] sm:$0xff] %v7452_v41  ;;  %v7458_v43 = vld [vmem:[#allocation9 + $0xa0] sm:$0xff]  ;;  %v7460_v44 = vld [vmem:[#allocation9 + $0xb0] sm:$0xff] }
  0x56   : > { %1542 = vmatpush1.msra.mxu0 %v7434_v35  ;;  %1619 = vmatpush1.msra.mxu1 %v7436_v36  ;;  %10768 = vst [vmem:[#allocation39_spill] sm:$0xff] %v7454_v42  ;;  %10769 = vst [vmem:[#allocation40_spill] sm:$0xff] %v7458_v43  ;;  %v7464_v45 = vld [vmem:[#allocation9 + $0x88] sm:$0xff]  ;;  %v7466_v46 = vld [vmem:[#allocation9 + $0x98] sm:$0xff] }
  0x57   : > { %1543 = vmatprep.subr.mxu0 %v7440_v37  ;;  %1620 = vmatprep.subr.mxu1 %v7442_v38  ;;  %10770 = vst [vmem:[#allocation41_spill] sm:$0xff] %v7460_v44  ;;  %10771 = vst [vmem:[#allocation42_spill] sm:$0xff] %v7464_v45  ;;  %v7470_v47 = vld [vmem:[#allocation9 + $0x80] sm:$0xff]  ;;  %v7472_v48 = vld [vmem:[#allocation9 + $0x90] sm:$0xff] }
  0x58   : > { %1544 = vmatpush1.msra.mxu0 %v7446_v39  ;;  %1621 = vmatpush1.msra.mxu1 %v7448_v40  ;;  %10772 = vst [vmem:[#allocation43_spill] sm:$0xff] %v7466_v46  ;;  %10773 = vst [vmem:[#allocation44_spill] sm:$0xff] %v7470_v47  ;;  %v7476_v49 = vld [vmem:[#allocation9 + $0x68] sm:$0xff]  ;;  %v7478_v50 = vld [vmem:[#allocation9 + $0x78] sm:$0xff] }
  0x59   : > { %1545 = vmatprep.subr.mxu0 %v7452_v41  ;;  %1622 = vmatprep.subr.mxu1 %v7454_v42  ;;  %10774 = vst [vmem:[#allocation45_spill] sm:$0xff] %v7472_v48  ;;  %10775 = vst [vmem:[#allocation46_spill] sm:$0xff] %v7476_v49  ;;  %v7482_v51 = vld [vmem:[#allocation9 + $0x60] sm:$0xff]  ;;  %v7484_v52 = vld [vmem:[#allocation9 + $0x70] sm:$0xff] }
  0x5a   : > { %1546 = vmatpush1.msra.mxu0 %v7458_v43  ;;  %1623 = vmatpush1.msra.mxu1 %v7460_v44  ;;  %10776 = vst [vmem:[#allocation47_spill] sm:$0xff] %v7478_v50  ;;  %10777 = vst [vmem:[#allocation48_spill] sm:$0xff] %v7482_v51  ;;  %v7488_v53 = vld [vmem:[#allocation9 + $0x48] sm:$0xff]  ;;  %v7490_v54 = vld [vmem:[#allocation9 + $0x58] sm:$0xff] }
  0x5b   : > { %1547 = vmatprep.subr.mxu0 %v7464_v45  ;;  %1624 = vmatprep.subr.mxu1 %v7466_v46  ;;  %10778 = vst [vmem:[#allocation49_spill] sm:$0xff] %v7484_v52  ;;  %10779 = vst [vmem:[#allocation50_spill] sm:$0xff] %v7488_v53  ;;  %v7494_v55 = vld [vmem:[#allocation9 + $0x40] sm:$0xff]  ;;  %v7496_v56 = vld [vmem:[#allocation9 + $0x50] sm:$0xff] }
  0x5c   : > { %1548 = vmatpush1.msra.mxu0 %v7470_v47  ;;  %1625 = vmatpush1.msra.mxu1 %v7472_v48  ;;  %10780 = vst [vmem:[#allocation51_spill] sm:$0xff] %v7490_v54  ;;  %10781 = vst [vmem:[#allocation52_spill] sm:$0xff] %v7494_v55  ;;  %v7500_v57 = vld [vmem:[#allocation9 + $0x28] sm:$0xff]  ;;  %v7502_v58 = vld [vmem:[#allocation9 + $0x38] sm:$0xff] }
  0x5d   : > { %1549 = vmatprep.subr.mxu0 %v7476_v49  ;;  %1626 = vmatprep.subr.mxu1 %v7478_v50  ;;  %10782 = vst [vmem:[#allocation53_spill] sm:$0xff] %v7496_v56  ;;  %10783 = vst [vmem:[#allocation54_spill] sm:$0xff] %v7500_v57  ;;  %v7506_v59 = vld [vmem:[#allocation9 + $0x20] sm:$0xff]  ;;  %v7508_v60 = vld [vmem:[#allocation9 + $0x30] sm:$0xff] }
  0x5e   : > { %1550 = vmatpush1.msra.mxu0 %v7482_v51  ;;  %1627 = vmatpush1.msra.mxu1 %v7484_v52  ;;  %10784 = vst [vmem:[#allocation55_spill] sm:$0xff] %v7502_v58  ;;  %10785 = vst [vmem:[#allocation56_spill] sm:$0xff] %v7506_v59  ;;  %v7512_v61 = vld [vmem:[#allocation9 + $0x8] sm:$0xff]  ;;  %v7514_v62 = vld [vmem:[#allocation9 + $0x18] sm:$0xff] }
  0x5f   : > { %1551 = vmatprep.subr.mxu0 %v7488_v53  ;;  %1628 = vmatprep.subr.mxu1 %v7490_v54  ;;  %10786 = vst [vmem:[#allocation57_spill] sm:$0xff] %v7508_v60  ;;  %10787 = vst [vmem:[#allocation58_spill] sm:$0xff] %v7512_v61  ;;  %v7518_v63 = vld [vmem:[#allocation9] sm:$0xff]  ;;  %v7522_v0 = vld [vmem:[#allocation9 + $0x10] sm:$0xff] }
  0x60   : > { %1552 = vmatpush1.msra.mxu0 %v7494_v55  ;;  %1629 = vmatpush1.msra.mxu1 %v7496_v56  ;;  %10788 = vst [vmem:[#allocation59_spill] sm:$0xff] %v7514_v62  ;;  %10789 = vst [vmem:[#allocation60_spill] sm:$0xff] %v7518_v63  ;;  %v1513_v56 = vld [vmem:[#allocation5] sm:$0xff] }
  0x61   : > { %1553 = vmatprep.subr.mxu0 %v7500_v57  ;;  %1630 = vmatprep.subr.mxu1 %v7502_v58  ;;  %10790 = vst [vmem:[#allocation61_spill] sm:$0xff] %v7522_v0  ;;  %v10324_v57 = vmov 0.0  }
  0x62   : > { %1554 = vmatpush1.msra.mxu0 %v7506_v59  ;;  %1631 = vmatpush1.msra.mxu1 %v7508_v60  ;;  %v469_v60 = vld [vmem:[%s7333_s15 + $0x8] sm:$0xff]  ;;  %v10330_v59 = vmov 0  }
  0x63   : > { %1555 = vmatprep.subr.mxu0 %v7512_v61  ;;  %1632 = vmatprep.subr.mxu1 %v7514_v62  ;;  %v1514_v61 = vld [vmem:[#allocation5 + $0x8] sm:$0xff]  ;;  %v468_v62 = vld [vmem:[%s7333_s15] sm:$0xff] }
  0x64   : > { %1556 = vmatpush1.msra.mxu0 %v7518_v63  ;;  %1589 = vmatprep.mubr.f32.mxu0 %v10324_v57 }
  0x65   : > { %1633 = vmatpush1.msra.mxu1 %v7522_v0  ;;  %1666 = vmatprep.mubr.f32.mxu1 %v10324_v57 }
  0x66   : > { %1590 = vmatmul.mubr.f32.vlgmr.msra.gmra.mxu0 %v1513_v56  ;;  %1667 = vmatmul.mubr.f32.vlgmr.msra.gmra.mxu1 %v1513_v56  ;;  %v10328_v56 = vmov 2  }
  0x67   : > { %1595 = vmatprep.mubr.f32.mxu0 %v10324_v57  ;;  %1672 = vmatprep.mubr.f32.mxu1 %v10324_v57  ;;  %v10332_v57 = vmov 1  }
  0x68   : > { %6210 = vset.pattern.permute.xlu1 %v10330_v59  ;;  %6208 = vset.pattern.permute.xlu0 %v10330_v59  ;;  %v10795_v59 = vld [vmem:[#allocation58_spill] sm:$0xff] }
  0x69   : > { %518 = vperm.xlu1 %6210, %v469_v60   ;;  %513 = vperm.xlu0 %6208, %v468_v62  }
  0x6a   : > { %1596 = vmatmul.mubr.f32.gmra.mxu0 %v1514_v61  ;;  %1673 = vmatmul.mubr.f32.gmra.mxu1 %v1514_v61  ;;  %v10326_v61 = vmov 3  }
  0x6b   : > { %1746 = vmatprep.subr.mxu0 %v7336_v1  ;;  %1823 = vmatprep.subr.mxu1 %v7338_v2 }
  0x6c   : > { %1747 = vmatpush1.msra.mxu0 %v7340_v3  ;;  %1824 = vmatpush1.msra.mxu1 %v7344_v4 }
  0x6d   : > { %6211 = vset.pattern.permute.xlu1 %v10328_v56  ;;  %6209 = vset.pattern.permute.xlu0 %v10332_v57 }
  0x6e   : > { %958 = vperm.xlu1 %6211, %v468_v62   ;;  %743 = vperm.xlu0 %6209, %v468_v62  }
  0x6f   : > { %1748 = vmatprep.subr.mxu0 %v7346_v5  ;;  %1825 = vmatprep.subr.mxu1 %v7348_v6 }
  0x70   : > { %1749 = vmatpush1.msra.mxu0 %v7352_v7  ;;  %1826 = vmatpush1.msra.mxu1 %v7354_v8 }
  0x71   : > { %1750 = vmatprep.subr.mxu0 %v7356_v9  ;;  %1827 = vmatprep.subr.mxu1 %v7360_v10 }
  0x72   : > { %6212 = vset.pattern.permute.xlu1 %v10332_v57  ;;  %6213 = vset.pattern.permute.xlu0 %v10326_v61  ;;  %v10796_v57 = vld [vmem:[#allocation59_spill] sm:$0xff] }
  0x73   : > { %747 = vperm.xlu1 %6212, %v469_v60   ;;  %1173 = vperm.xlu0 %6213, %v468_v62   ;;  %v10792_v62 = vld [vmem:[#allocation54_spill] sm:$0xff] }
  0x74   : > { %1751 = vmatpush1.msra.mxu0 %v7362_v11  ;;  %1828 = vmatpush1.msra.mxu1 %v7364_v12 }
  0x75   : > { %1752 = vmatprep.subr.mxu0 %v7368_v13  ;;  %1829 = vmatprep.subr.mxu1 %v7370_v14 }
  0x76   : > { %1753 = vmatpush1.msra.mxu0 %v7374_v15  ;;  %1830 = vmatpush1.msra.mxu1 %v7376_v16 }
  0x77   : > { %6214 = vset.pattern.permute.xlu1 %v10328_v56  ;;  %1754 = vmatprep.subr.mxu0 %v7380_v17  ;;  %v10794_v56 = vld [vmem:[#allocation57_spill] sm:$0xff] }
  0x78   : > { %962 = vperm.xlu1 %6214, %v469_v60   ;;  %1831 = vmatprep.subr.mxu1 %v7382_v18 }
  0x79   : > { %1755 = vmatpush1.msra.mxu0 %v7386_v19  ;;  %1832 = vmatpush1.msra.mxu1 %v7388_v20 }
  0x7a   : > { %1756 = vmatprep.subr.mxu0 %v7392_v21  ;;  %1833 = vmatprep.subr.mxu1 %v7394_v22 }
  0x7b   : > { %1757 = vmatpush1.msra.mxu0 %v7398_v23  ;;  %1834 = vmatpush1.msra.mxu1 %v7400_v24 }
  0x7c   : > { %6215 = vset.pattern.permute.xlu1 %v10326_v61  ;;  %1758 = vmatprep.subr.mxu0 %v7404_v25  ;;  %v10793_v61 = vld [vmem:[#allocation56_spill] sm:$0xff] }
  0x7d   : > { %1177 = vperm.xlu1 %6215, %v469_v60   ;;  %1835 = vmatprep.subr.mxu1 %v7406_v26  ;;  %v10791_v60 = vld [vmem:[#allocation53_spill] sm:$0xff] }
  0x7e   : > { %1759 = vmatpush1.msra.mxu0 %v7410_v27  ;;  %1836 = vmatpush1.msra.mxu1 %v7412_v28 }
  0x7f   : > { %1760 = vmatprep.subr.mxu0 %v7416_v29  ;;  %1837 = vmatprep.subr.mxu1 %v7418_v30 }
  0x80   : > { %1761 = vmatpush1.msra.mxu0 %v7422_v31  ;;  %1838 = vmatpush1.msra.mxu1 %v7424_v32 }
  0x81   : > { %1762 = vmatprep.subr.mxu0 %v7428_v33  ;;  %1839 = vmatprep.subr.mxu1 %v7430_v34 }
  0x82   : > { %1763 = vmatpush1.msra.mxu0 %v7434_v35  ;;  %1840 = vmatpush1.msra.mxu1 %v7436_v36 }
  0x83   : > { %1764 = vmatprep.subr.mxu0 %v7440_v37  ;;  %1841 = vmatprep.subr.mxu1 %v7442_v38 }
  0x84   : > { %1765 = vmatpush1.msra.mxu0 %v7446_v39  ;;  %1842 = vmatpush1.msra.mxu1 %v7448_v40  ;;  %v5925_v40 = vld [vmem:[%s10301_s1 + $0x3] ss:$4 sm:$0xf] }
  0x85   : > { %1766 = vmatprep.subr.mxu0 %v7452_v41  ;;  %1843 = vmatprep.subr.mxu1 %v7454_v42 }
  0x86   : > { %1767 = vmatpush1.msra.mxu0 %v7458_v43  ;;  %1844 = vmatpush1.msra.mxu1 %v7460_v44 }
  0x87   : > { %1768 = vmatprep.subr.mxu0 %v7464_v45  ;;  %1845 = vmatprep.subr.mxu1 %v7466_v46 }
  0x88   : > { %1769 = vmatpush1.msra.mxu0 %v7470_v47  ;;  %1846 = vmatpush1.msra.mxu1 %v7472_v48 }
  0x89   : > { %1770 = vmatprep.subr.mxu0 %v7476_v49  ;;  %1847 = vmatprep.subr.mxu1 %v7478_v50 }
  0x8a   : > { %1771 = vmatpush1.msra.mxu0 %v7482_v51  ;;  %1848 = vmatpush1.msra.mxu1 %v7484_v52  ;;  %v5924_v51 = vld [vmem:[%s10301_s1 + $0x2] ss:$4 sm:$0xf] }
  0x8b   : > { %1772 = vmatprep.subr.mxu0 %v7488_v53  ;;  %1849 = vmatprep.subr.mxu1 %v7490_v54  ;;  %v10797_v54 = vmov 0.0  }
  0x8c   : > { %1773 = vmatpush1.msra.mxu0 %v7494_v55  ;;  %1850 = vmatpush1.msra.mxu1 %v10791_v60 }
  0x8d   : > { %1774 = vmatprep.subr.mxu0 %v10792_v62  ;;  %1851 = vmatprep.subr.mxu1 %v7502_v58  ;;  %v10798_v62 = vmov 1   ;;  %v10799_v58 = vmov 0  }
  0x8e   : > { %1775 = vmatpush1.msra.mxu0 %v10793_v61  ;;  %1852 = vmatpush1.msra.mxu1 %v10794_v56  ;;  %v470_v56 = vld [vmem:[%s7333_s15 + $0x10] sm:$0xff] }
  0x8f   : > { %1776 = vmatprep.subr.mxu0 %v10795_v59  ;;  %1853 = vmatprep.subr.mxu1 %v10796_v57  ;;  %v471_v57 = vld [vmem:[%s7333_s15 + $0x18] sm:$0xff] }
  0x90   : > { %1777 = vmatpush1.msra.mxu0 %v7518_v63  ;;  %1810 = vmatprep.mubr.f32.mxu0 %v10797_v54  ;;  %v10800_v63 = vmov 2  }
  0x91   : > { %1854 = vmatpush1.msra.mxu1 %v7522_v0  ;;  %1887 = vmatprep.mubr.f32.mxu1 %v10797_v54  ;;  %v10801_v0 = vmov 3  }
  0x92   : > { %6217 = vset.pattern.permute.xlu1 %v10798_v62  ;;  %6216 = vset.pattern.permute.xlu0 %v10799_v58 }
  0x93   : > { %1968 = vmatprep.subr.mxu0 %v7336_v1  ;;  %2045 = vmatprep.subr.mxu1 %v7338_v2  ;;  %v486_v2 = vlaneseq }
  0x94   : > { %751 = vperm.xlu1 %6217, %v470_v56   ;;  %523 = vperm.xlu0 %6216, %v470_v56  }
  0x95   : > { %v487_v1 = vshrl.u32 %v486_v2, 7  ;;  %v484_v2 = vld [vmem:[%s10303_s3] sm:$0xf] }
  0x97   : > { %v7622_v61 = vsub.s32 0, %v487_v1  ;;  %v7627_v60 = vsub.s32 1, %v487_v1  ;;  %v7664_v45 = vsub.s32 2, %v487_v1  ;;  %v7685_v36 = vsub.s32 3, %v487_v1 }
  0x98   : > { %6218 = vset.pattern.permute.xlu1 %v10799_v58  ;;  %6219 = vset.pattern.permute.xlu0 %v10800_v63  ;;  %v510_v63 = vld [vmem:[%s10301_s1] ss:$4 sm:$0xf] }
  0x99   : > { %528 = vperm.xlu1 %6218, %v471_v57   ;;  %966 = vperm.xlu0 %6219, %v470_v56   ;;  %10802 = vst [vmem:[#allocation62_spill] sm:$0xff] %v7622_v61  ;;  %10803 = vst [vmem:[#allocation63_spill] sm:$0xff] %v7627_v60  ;;  %v7658_v48 = vrot.slane %v484_v2, %v7627_v60  ;;  %v7669_v43 = vrot.slane %v5924_v51, %v7622_v61 }
  0x9a   : > { %10810 = vst [vmem:[#allocation70_spill] sm:$0xff] %v7664_v45  ;;  %v7680_v38 = vrot.slane %v5924_v51, %v7627_v60  ;;  %10813 = vst [vmem:[#allocation73_spill] sm:$0xff] %v7685_v36  ;;  %v7693_v34 = vrot.slane %v5925_v40, %v7622_v61  ;;  %v7703_v1 = vrot.slane %v5925_v40, %v7627_v60 }
  0x9b   : > { %10808 = vst [vmem:[#allocation68_spill] sm:$0xff] %v7658_v48  ;;  %10811 = vst [vmem:[#allocation71_spill] sm:$0xff] %v7669_v43  ;;  %v7711_v29 = vrot.slane %v484_v2, %v7664_v45 }
  0x9c   : > { %10812 = vst [vmem:[#allocation72_spill] sm:$0xff] %v7680_v38  ;;  %10815 = vst [vmem:[#allocation75_spill] sm:$0xff] %v7693_v34 }
  0x9d   : > { %6220 = vset.pattern.permute.xlu1 %v10798_v62  ;;  %970 = vperm.xlu0 %6219, %v471_v57   ;;  %10816 = vst [vmem:[#allocation76_spill] sm:$0xff] %v7711_v29 }
  0x9e   : > { %755 = vperm.xlu1 %6220, %v471_v57  }
  0xa1   : > { %6222 = vset.pattern.permute.xlu0 %v10799_v58  ;;  %v7644_v58 = vrot.slane %v484_v2, %v7622_v61 }
  0xa2   : > { %6221 = vset.pattern.permute.xlu1 %v10801_v0  ;;  %v7632_v0 = vrot.slane %v510_v63, %v7622_v61 }
  0xa3   : > { %1181 = vperm.xlu1 %6221, %v470_v56   ;;  %10806 = vst [vmem:[#allocation66_spill] sm:$0xff] %v7644_v58 }
  0xa4   : > { %10804 = vst [vmem:[#allocation64_spill] sm:$0xff] %v7632_v0 }
  0xa7   : > { %1185 = vperm.xlu1 %6221, %v471_v57   ;;  %v5923_v57 = vld [vmem:[%s10301_s1 + $0x1] ss:$4 sm:$0xf] }
  0xa8   : > { %v7647_v53 = vrot.slane %v5923_v57, %v7622_v61  ;;  %v7661_v47 = vrot.slane %v5923_v57, %v7627_v60 }
  0xaa   : > { %10807 = vst [vmem:[#allocation67_spill] sm:$0xff] %v7647_v53  ;;  %10809 = vst [vmem:[#allocation69_spill] sm:$0xff] %v7661_v47 }
  0xab   : > { %6223 = vset.pattern.permute.xlu1 %v10798_v62  ;;  %v7641_v62 = vrot.slane %v510_v63, %v7627_v60 }
  0xad   : > { %10805 = vst [vmem:[#allocation65_spill] sm:$0xff] %v7641_v62 }
  0xe4   : > { %v7620_v59 = vpop.permute.xlu1 %518  ;;  %v514_v56 = vpop.permute.xlu0 %513 }
  0xe5   : > { %v612_v52 = vmul.f32 %v7632_v0, %v514_v56  ;;  %v613_v46 = vmul.f32 %v7641_v62, %v514_v56  ;;  %v616_v44 = vmul.f32 %v7632_v0, %v7620_v59  ;;  %v617_v39 = vmul.f32 %v7641_v62, %v7620_v59 }
  0xe7   : > { %v676_v42 = vadd.f32 %v612_v52, %v7644_v58  ;;  %v677_v0 = vadd.f32 %v613_v46, %v7658_v48  ;;  %v7688_v52 = vrot.slane %v510_v63, %v7664_v45  ;;  %v680_v62 = vadd.f32 %v616_v44, %v7644_v58 }
  0xe8   : > { %v681_v30 = vadd.f32 %v617_v39, %v7658_v48 }
  0xe9   : > { %v7629_v55 = vpop.permute.xlu1 %958  ;;  %v7655_v49 = vpop.permute.xlu0 %743  ;;  %10814 = vst [vmem:[#allocation74_spill] sm:$0xff] %v7688_v52 }
  0xea   : > { %v827_v41 = vmul.f32 %v7647_v53, %v7655_v49  ;;  %v828_v37 = vmul.f32 %v7661_v47, %v7655_v49  ;;  %v1042_v33 = vmul.f32 %v7669_v43, %v7629_v55  ;;  %v1043_v61 = vmul.f32 %v7680_v38, %v7629_v55 }
  0xec   : > { %v891_v32 = vadd.f32 %v827_v41, %v676_v42  ;;  %v892_v58 = vadd.f32 %v828_v37, %v677_v0  ;;  %v7717_v41 = vrot.slane %v5923_v57, %v7664_v45  ;;  %v614_v42 = vmul.f32 %v7688_v52, %v514_v56 }
  0xed   : > { %v7725_v37 = vrot.slane %v484_v2, %v7685_v36 }
  0xee   : > { %v7653_v50 = vpop.permute.xlu1 %747  ;;  %v7700_v31 = vpop.permute.xlu0 %1173  ;;  %v1106_v60 = vadd.f32 %v1042_v33, %v891_v32  ;;  %v1107_v27 = vadd.f32 %v1043_v61, %v892_v58  ;;  %v7736_v33 = vrot.slane %v5924_v51, %v7664_v45  ;;  %v678_v2 = vadd.f32 %v614_v42, %v7711_v29 }
  0xef   : > { %v831_v46 = vmul.f32 %v7647_v53, %v7653_v50  ;;  %v832_v44 = vmul.f32 %v7661_v47, %v7653_v50  ;;  %v7714_v53 = vrot.slane %v510_v63, %v7685_v36  ;;  %v1257_v48 = vmul.f32 %v7693_v34, %v7700_v31 }
  0xf0   : > { %v618_v63 = vmul.f32 %v7688_v52, %v7620_v59  ;;  %v7743_v52 = vrot.slane %v5923_v57, %v7685_v36  ;;  %v7749_v61 = vrot.slane %v5924_v51, %v7685_v36 }
  0xf1   : > { %v895_v47 = vadd.f32 %v831_v46, %v680_v62  ;;  %v896_v32 = vadd.f32 %v832_v44, %v681_v30  ;;  %v615_v62 = vmul.f32 %v7714_v53, %v514_v56  ;;  %v829_v46 = vmul.f32 %v7717_v41, %v7655_v49 }
  0xf2   : > { %v1321_v26 = vadd.f32 %v1257_v48, %v1106_v60  ;;  %v682_v30 = vadd.f32 %v618_v63, %v7711_v29  ;;  %v7752_v56 = vrot.slane %v5925_v40, %v7664_v45  ;;  %v833_v48 = vmul.f32 %v7717_v41, %v7653_v50 }
  0xf3   : > { %v7690_v35 = vpop.permute.xlu1 %962  ;;  %v679_v60 = vadd.f32 %v615_v62, %v7725_v37  ;;  %v893_v51 = vadd.f32 %v829_v46, %v678_v2  ;;  %v830_v63 = vmul.f32 %v7743_v52, %v7655_v49 }
  0xf4   : > { %v1046_v39 = vmul.f32 %v7669_v43, %v7690_v35  ;;  %v1047_v28 = vmul.f32 %v7680_v38, %v7690_v35  ;;  %v1258_v43 = vmul.f32 %v7703_v1, %v7700_v31  ;;  %v1048_v49 = vmul.f32 %v7736_v33, %v7690_v35 }
  0xf6   : > { %v1110_v38 = vadd.f32 %v1046_v39, %v895_v47  ;;  %v1322_v25 = vadd.f32 %v1258_v43, %v1107_v27  ;;  %v1111_v24 = vadd.f32 %v1047_v28, %v896_v32  ;;  %v1044_v47 = vmul.f32 %v7736_v33, %v7629_v55 }
  0xf7   : > { %v619_v28 = vmul.f32 %v7714_v53, %v7620_v59  ;;  %v1045_v43 = vmul.f32 %v7749_v61, %v7629_v55  ;;  %v7768_v32 = vrot.slane %v5925_v40, %v7685_v36  ;;  %v897_v59 = vadd.f32 %v833_v48, %v682_v30  ;;  %v8053_v36 = vld [vmem:[#allocation9 + $0xe0] sm:$0xff] }
  0xf8   : > { %v7729_v0 = vpop.permute.xlu1 %1177  ;;  %v894_v55 = vadd.f32 %v830_v63, %v679_v60 }
  0xf9   : > { %v1261_v58 = vmul.f32 %v7693_v34, %v7729_v0  ;;  %v1262_v57 = vmul.f32 %v7703_v1, %v7729_v0  ;;  %v1260_v30 = vmul.f32 %v7768_v32, %v7700_v31 }
  0xfb   : > { %v1325_v27 = vadd.f32 %v1261_v58, %v1110_v38  ;;  %v1326_v29 = vadd.f32 %v1262_v57, %v1111_v24  ;;  %v1259_v38 = vmul.f32 %v7752_v56, %v7700_v31 }
 0x126   : > { %v1591_v44 = vpop.f32.mrf.mxu0  ;;  %v1668_v62 = vpop.f32.mrf.mxu1 }
 0x127   : > { %v1679_v42 = vadd.f32 %v1591_v44, %v1321_v26 }
 0x128   : > { %v1593_v39 = vpop.f32.mrf.mxu0 }
 0x129   : > { %v5926_v45 = vmul.f32 -1.442695, %v1679_v42  ;;  %v1680_v26 = vadd.f32 %v1593_v39, %v1322_v25  ;;  %v1108_v25 = vadd.f32 %v1044_v47, %v893_v51  ;;  %v683_v39 = vadd.f32 %v619_v28, %v7725_v37 }
 0x12a   : > { %v1597_v44 = vpop.f32.mrf.mxu0  ;;  %v1263_v47 = vmul.f32 %v7752_v56, %v7729_v0  ;;  %v1109_v51 = vadd.f32 %v1045_v43, %v894_v55 }
 0x12b   : > { %6259 = vpow2.f32 %v5926_v45  ;;  %v5927_v2 = vmul.f32 -1.442695, %v1680_v26  ;;  %v1683_v46 = vadd.f32 %v1597_v44, %v1325_v27  ;;  %v834_v45 = vmul.f32 %v7743_v52, %v7653_v50  ;;  %v1670_v26 = vpop.f32.mrf.mxu1 }
 0x12c   : > { %v1599_v58 = vpop.f32.mrf.mxu0  ;;  %v1323_v57 = vadd.f32 %v1259_v38, %v1108_v25  ;;  %v1112_v27 = vadd.f32 %v1048_v49, %v897_v59  ;;  %v1324_v28 = vadd.f32 %v1260_v30, %v1109_v51  ;;  %v1264_v49 = vmul.f32 %v7768_v32, %v7729_v0 }
 0x12d   : > { %6261 = vpow2.f32 %v5927_v2  ;;  %v5929_v42 = vmul.f32 -1.442695, %v1683_v46  ;;  %v1684_v40 = vadd.f32 %v1599_v58, %v1326_v29  ;;  %v1049_v29 = vmul.f32 %v7749_v61, %v7690_v35  ;;  %v1674_v63 = vpop.f32.mrf.mxu1 }
 0x12e   : > { %v1681_v48 = vadd.f32 %v1668_v62, %v1323_v57  ;;  %v898_v60 = vadd.f32 %v834_v45, %v683_v39  ;;  %v1327_v50 = vadd.f32 %v1263_v47, %v1112_v27  ;;  %v1682_v43 = vadd.f32 %v1670_v26, %v1324_v28 }
 0x12f   : > { %6263 = vpow2.f32 %v5929_v42  ;;  %v5930_v24 = vmul.f32 -1.442695, %v1684_v40  ;;  %v1676_v59 = vpop.f32.mrf.mxu1 }
 0x130   : > { %v5928_v44 = vmul.f32 -1.442695, %v1681_v48  ;;  %v1685_v2 = vadd.f32 %v1674_v63, %v1327_v50  ;;  %v1113_v46 = vadd.f32 %v1049_v29, %v898_v60  ;;  %v1516_v60 = vld [vmem:[#allocation6] sm:$0xff] }
 0x131   : > { %6265 = vpow2.f32 %v5930_v24  ;;  %v1515_v24 = vld [vmem:[#allocation6 + $0x8] sm:$0xff] }
 0x132   : > { %6267 = vpow2.f32 %v5928_v44  ;;  %v5931_v58 = vmul.f32 -1.442695, %v1685_v2  ;;  %v1328_v55 = vadd.f32 %v1264_v49, %v1113_v46 }
 0x134   : > { %v1686_v42 = vadd.f32 %v1676_v59, %v1328_v55  ;;  %v10840_v55 = vld [vmem:[#allocation42_spill] sm:$0xff] }
 0x138   : > { %v6260_v25 = vpop.eup %6259 }
 0x139   : > { %v1705_v38 = vadd.f32 1.0, %v6260_v25 }
 0x13a   : > { %v6262_v31 = vpop.eup %6261 }
 0x13b   : > { %6269 = vrcp.f32 %v1705_v38  ;;  %v1706_v35 = vadd.f32 1.0, %v6262_v31 }
 0x13c   : > { %v6264_v62 = vpop.eup %6263  ;;  %6271 = vtanh.f32 %v1682_v43 }
 0x13d   : > { %6273 = vrcp.f32 %v1706_v35  ;;  %v1708_v40 = vadd.f32 1.0, %v6264_v62  ;;  %v10841_v35 = vld [vmem:[#allocation43_spill] sm:$0xff]  ;;  %v10842_v62 = vld [vmem:[#allocation44_spill] sm:$0xff] }
 0x13e   : > { %v6266_v39 = vpop.eup %6265  ;;  %6275 = vpow2.f32 %v5931_v58 }
 0x13f   : > { %6277 = vrcp.f32 %v1708_v40  ;;  %v1709_v45 = vadd.f32 1.0, %v6266_v39  ;;  %v6268_v0 = vpop.eup %6267  ;;  %v10844_v40 = vld [vmem:[#allocation46_spill] sm:$0xff]  ;;  %v10845_v39 = vld [vmem:[#allocation47_spill] sm:$0xff] }
 0x140   : > { %6279 = vtanh.f32 %v1686_v42  ;;  %v1707_v47 = vadd.f32 1.0, %v6268_v0  ;;  %v10843_v42 = vld [vmem:[#allocation45_spill] sm:$0xff] }
 0x141   : > { %6281 = vrcp.f32 %v1709_v45  ;;  %v10846_v45 = vld [vmem:[#allocation48_spill] sm:$0xff]  ;;  %v10847_v0 = vld [vmem:[#allocation49_spill] sm:$0xff] }
 0x142   : > { %6283 = vrcp.f32 %v1707_v47  ;;  %v10852_v47 = vld [vmem:[#allocation54_spill] sm:$0xff] }
 0x148   : > { %v6270_v26 = vpop.eup %6269 }
 0x149   : > { %v6272_v57 = vpop.eup %6271 }
 0x14a   : > { %v6274_v27 = vpop.eup %6273  ;;  %v1727_v29 = vmul.f32 %v6272_v57, %v6270_v26  ;;  %v10848_v26 = vld [vmem:[#allocation50_spill] sm:$0xff]  ;;  %v10850_v57 = vld [vmem:[#allocation52_spill] sm:$0xff] }
 0x14b   : > { %v6276_v51 = vpop.eup %6275  ;;  %v1725_v30 = vmul.f32 %v6274_v27, %v1515_v24  ;;  %v10849_v24 = vld [vmem:[#allocation51_spill] sm:$0xff]  ;;  %v10851_v27 = vld [vmem:[#allocation53_spill] sm:$0xff] }
 0x14c   : > { %v6278_v48 = vpop.eup %6277  ;;  %v1710_v44 = vadd.f32 1.0, %v6276_v51  ;;  %v10853_v51 = vld [vmem:[#allocation55_spill] sm:$0xff] }
 0x14d   : > { %v6280_v63 = vpop.eup %6279  ;;  %v7785_v50 = vadd.f32 %v1727_v29, %v1725_v30  ;;  %v10854_v30 = vld [vmem:[#allocation56_spill] sm:$0xff]  ;;  %v10855_v29 = vld [vmem:[#allocation57_spill] sm:$0xff] }
 0x14e   : > { %v6282_v28 = vpop.eup %6281  ;;  %v1728_v46 = vmul.f32 %v6280_v63, %v6278_v48  ;;  %v10856_v48 = vld [vmem:[#allocation58_spill] sm:$0xff]  ;;  %v10858_v63 = vld [vmem:[#allocation60_spill] sm:$0xff] }
 0x14f   : > { %6285 = vtanh.f32 %v7785_v50  ;;  %v1726_v2 = vmul.f32 %v6282_v28, %v1516_v60  ;;  %v6284_v25 = vpop.eup %6283  ;;  %v10857_v60 = vld [vmem:[#allocation59_spill] sm:$0xff]  ;;  %v10859_v28 = vld [vmem:[#allocation61_spill] sm:$0xff] }
 0x150   : > { %6287 = vrcp.f32 %v1710_v44  ;;  %v10860_v44 = vld [vmem:[#allocation19_spill] sm:$0xff] }
 0x151   : > { %v7788_v49 = vadd.f32 %v1728_v46, %v1726_v2  ;;  %v10861_v2 = vld [vmem:[#allocation20_spill] sm:$0xff]  ;;  %v472_v46 = vld [vmem:[%s7333_s15 + $0x20] sm:$0xff] }
 0x152   : > { %759 = vperm.xlu1 %6223, %v472_v46   ;;  %533 = vperm.xlu0 %6222, %v472_v46  }
 0x153   : > { %6289 = vtanh.f32 %v7788_v49 }
 0x15c   : > { %v6286_v43 = vpop.eup %6285 }
 0x15d   : > { %v7791_v38 = vmul.f32 %v6286_v43, %v6284_v25  ;;  %v6288_v59 = vpop.eup %6287  ;;  %v473_v25 = vld [vmem:[%s7333_s15 + $0x28] sm:$0xff]  ;;  %v10862_v43 = vmov 0  }
 0x15e   : > { %6224 = vset.pattern.permute.xlu1 %v10862_v43 }
 0x15f   : > { %10817 = vst [vmem:[#allocation77_spill] sm:$0xff] %v7791_v38  ;;  %1811 = vmatmul.mubr.f32.vlgmr.msra.gmra.mxu0 %v7791_v38  ;;  %1888 = vmatmul.mubr.f32.vlgmr.msra.gmra.mxu1 %v7791_v38  ;;  %v8065_v38 = vld [vmem:[#allocation9 + $0xc0] sm:$0xff] }
 0x160   : > { %v6290_v31 = vpop.eup %6289  ;;  %1816 = vmatprep.mubr.f32.mxu0 %v10797_v54  ;;  %1893 = vmatprep.mubr.f32.mxu1 %v10797_v54 }
 0x161   : > { %v7797_v58 = vmul.f32 %v6290_v31, %v6288_v59  ;;  %1969 = vmatpush1.msra.mxu0 %v7340_v3  ;;  %2046 = vmatpush1.msra.mxu1 %v7344_v4  ;;  %v10819_v3 = vld [vmem:[#allocation21_spill] sm:$0xff]  ;;  %v10820_v4 = vld [vmem:[#allocation22_spill] sm:$0xff]  ;;  %v10863_v59 = vmov 2   ;;  %v10864_v31 = vmov 1  }
 0x162   : > { %1970 = vmatprep.subr.mxu0 %v7346_v5  ;;  %2047 = vmatprep.subr.mxu1 %v7348_v6  ;;  %v10821_v5 = vld [vmem:[#allocation23_spill] sm:$0xff]  ;;  %v10822_v6 = vld [vmem:[#allocation24_spill] sm:$0xff] }
 0x163   : > { %10818 = vst [vmem:[#allocation78_spill] sm:$0xff] %v7797_v58  ;;  %1817 = vmatmul.mubr.f32.gmra.mxu0 %v7797_v58  ;;  %1894 = vmatmul.mubr.f32.gmra.mxu1 %v7797_v58  ;;  %v8062_v58 = vld [vmem:[#allocation9 + $0xd8] sm:$0xff] }
 0x164   : > { %1971 = vmatpush1.msra.mxu0 %v7352_v7  ;;  %2048 = vmatpush1.msra.mxu1 %v7354_v8  ;;  %v10823_v7 = vld [vmem:[#allocation25_spill] sm:$0xff]  ;;  %v10824_v8 = vld [vmem:[#allocation26_spill] sm:$0xff] }
 0x165   : > { %1972 = vmatprep.subr.mxu0 %v7356_v9  ;;  %2049 = vmatprep.subr.mxu1 %v7360_v10  ;;  %v10825_v9 = vld [vmem:[#allocation27_spill] sm:$0xff]  ;;  %v10826_v10 = vld [vmem:[#allocation28_spill] sm:$0xff] }
 0x166   : > { %1973 = vmatpush1.msra.mxu0 %v7362_v11  ;;  %2050 = vmatpush1.msra.mxu1 %v7364_v12  ;;  %v10827_v11 = vld [vmem:[#allocation29_spill] sm:$0xff]  ;;  %v10828_v12 = vld [vmem:[#allocation30_spill] sm:$0xff] }
 0x167   : > { %1974 = vmatprep.subr.mxu0 %v7368_v13  ;;  %2051 = vmatprep.subr.mxu1 %v7370_v14  ;;  %v10829_v13 = vld [vmem:[#allocation31_spill] sm:$0xff]  ;;  %v10830_v14 = vld [vmem:[#allocation32_spill] sm:$0xff] }
 0x168   : > { %1975 = vmatpush1.msra.mxu0 %v7374_v15  ;;  %2052 = vmatpush1.msra.mxu1 %v7376_v16  ;;  %v10831_v15 = vld [vmem:[#allocation33_spill] sm:$0xff]  ;;  %v10832_v16 = vld [vmem:[#allocation34_spill] sm:$0xff] }
 0x169   : > { %1976 = vmatprep.subr.mxu0 %v7380_v17  ;;  %2053 = vmatprep.subr.mxu1 %v7382_v18  ;;  %v10833_v17 = vld [vmem:[#allocation35_spill] sm:$0xff]  ;;  %v10834_v18 = vld [vmem:[#allocation36_spill] sm:$0xff] }
 0x16a   : > { %1977 = vmatpush1.msra.mxu0 %v7386_v19  ;;  %2054 = vmatpush1.msra.mxu1 %v7388_v20  ;;  %v10835_v19 = vld [vmem:[#allocation37_spill] sm:$0xff]  ;;  %v10836_v20 = vld [vmem:[#allocation38_spill] sm:$0xff] }
 0x16b   : > { %1978 = vmatprep.subr.mxu0 %v7392_v21  ;;  %2055 = vmatprep.subr.mxu1 %v7394_v22  ;;  %v10837_v21 = vld [vmem:[#allocation39_spill] sm:$0xff]  ;;  %v10838_v22 = vld [vmem:[#allocation40_spill] sm:$0xff]  ;;  %10892 = vst [vmem:[#allocation37_spill] sm:$0xff] %v8053_v36 }
 0x16c   : > { %1979 = vmatpush1.msra.mxu0 %v7398_v23  ;;  %2056 = vmatpush1.msra.mxu1 %v10819_v3  ;;  %v10839_v23 = vld [vmem:[#allocation41_spill] sm:$0xff]  ;;  %v10865_v3 = vmov 3   ;;  %10895 = vst [vmem:[#allocation40_spill] sm:$0xff] %v8062_v58 }
 0x16d   : > { %1980 = vmatprep.subr.mxu0 %v10820_v4  ;;  %2057 = vmatprep.subr.mxu1 %v10821_v5  ;;  %v752_v4 = vpop.permute.xlu1 %751  ;;  %10896 = vst [vmem:[#allocation41_spill] sm:$0xff] %v8065_v38 }
 0x16e   : > { %1981 = vmatpush1.msra.mxu0 %v10822_v6  ;;  %2058 = vmatpush1.msra.mxu1 %v10823_v7  ;;  %v524_v6 = vpop.permute.xlu0 %523  ;;  %v10866_v7 = vld [vmem:[#allocation64_spill] sm:$0xff] }
 0x16f   : > { %1982 = vmatprep.subr.mxu0 %v10824_v8  ;;  %2059 = vmatprep.subr.mxu1 %v10825_v9  ;;  %v620_v8 = vmul.f32 %v10866_v7, %v524_v6  ;;  %v10867_v9 = vld [vmem:[#allocation65_spill] sm:$0xff] }
 0x170   : > { %1983 = vmatpush1.msra.mxu0 %v10826_v10  ;;  %2060 = vmatpush1.msra.mxu1 %v10827_v11  ;;  %v621_v10 = vmul.f32 %v10867_v9, %v524_v6 }
 0x171   : > { %1984 = vmatprep.subr.mxu0 %v10828_v12  ;;  %2061 = vmatprep.subr.mxu1 %v10829_v13  ;;  %v529_v5 = vpop.permute.xlu1 %528  ;;  %v10868_v12 = vld [vmem:[#allocation67_spill] sm:$0xff] }
 0x172   : > { %1985 = vmatpush1.msra.mxu0 %v10830_v14  ;;  %2062 = vmatpush1.msra.mxu1 %v10831_v15  ;;  %v835_v13 = vmul.f32 %v10868_v12, %v752_v4  ;;  %v624_v14 = vmul.f32 %v10866_v7, %v529_v5  ;;  %v10869_v15 = vld [vmem:[#allocation66_spill] sm:$0xff] }
 0x173   : > { %1986 = vmatprep.subr.mxu0 %v10832_v16  ;;  %2063 = vmatprep.subr.mxu1 %v10833_v17  ;;  %v684_v16 = vadd.f32 %v620_v8, %v10869_v15  ;;  %v967_v17 = vpop.permute.xlu0 %966  ;;  %v10875_v8 = vld [vmem:[#allocation76_spill] sm:$0xff] }
 0x174   : > { %1987 = vmatpush1.msra.mxu0 %v10834_v18  ;;  %2064 = vmatpush1.msra.mxu1 %v10835_v19  ;;  %v10870_v18 = vld [vmem:[#allocation69_spill] sm:$0xff] }
 0x175   : > { %1988 = vmatprep.subr.mxu0 %v10836_v20  ;;  %2065 = vmatprep.subr.mxu1 %v10837_v21  ;;  %v7877_v11 = vpop.permute.xlu1 %755  ;;  %v836_v19 = vmul.f32 %v10870_v18, %v752_v4  ;;  %v625_v20 = vmul.f32 %v10867_v9, %v529_v5  ;;  %v10871_v21 = vld [vmem:[#allocation68_spill] sm:$0xff] }
 0x176   : > { %1989 = vmatpush1.msra.mxu0 %v10838_v22  ;;  %2066 = vmatpush1.msra.mxu1 %v10839_v23  ;;  %v685_v22 = vadd.f32 %v621_v10, %v10871_v21  ;;  %v688_v23 = vadd.f32 %v624_v14, %v10869_v15 }
 0x177   : > { %1990 = vmatprep.subr.mxu0 %v10840_v55  ;;  %2067 = vmatprep.subr.mxu1 %v10841_v35  ;;  %v839_v55 = vmul.f32 %v10868_v12, %v7877_v11  ;;  %v10872_v35 = vld [vmem:[#allocation71_spill] sm:$0xff] }
 0x178   : > { %1991 = vmatpush1.msra.mxu0 %v10842_v62  ;;  %2068 = vmatpush1.msra.mxu1 %v10843_v42  ;;  %v1050_v62 = vmul.f32 %v10872_v35, %v967_v17  ;;  %v899_v42 = vadd.f32 %v835_v13, %v684_v16  ;;  %v623_v13 = vmul.f32 %v7714_v53, %v524_v6 }
 0x179   : > { %1992 = vmatprep.subr.mxu0 %v10844_v40  ;;  %2069 = vmatprep.subr.mxu1 %v10845_v39  ;;  %v7889_v40 = vpop.permute.xlu1 %1181  ;;  %v7891_v39 = vpop.permute.xlu0 %970 }
 0x17a   : > { %1993 = vmatpush1.msra.mxu0 %v10846_v45  ;;  %2070 = vmatpush1.msra.mxu1 %v10847_v0  ;;  %v689_v45 = vadd.f32 %v625_v20, %v10871_v21  ;;  %v840_v0 = vmul.f32 %v10870_v18, %v7877_v11  ;;  %v838_v20 = vmul.f32 %v7743_v52, %v752_v4 }
 0x17b   : > { %1994 = vmatprep.subr.mxu0 %v10848_v26  ;;  %2071 = vmatprep.subr.mxu1 %v10849_v24  ;;  %v10873_v26 = vld [vmem:[#allocation72_spill] sm:$0xff] }
 0x17c   : > { %1995 = vmatpush1.msra.mxu0 %v10850_v57  ;;  %2072 = vmatpush1.msra.mxu1 %v10851_v27  ;;  %v1051_v24 = vmul.f32 %v10873_v26, %v967_v17  ;;  %v900_v57 = vadd.f32 %v836_v19, %v685_v22  ;;  %v10874_v27 = vld [vmem:[#allocation74_spill] sm:$0xff] }
 0x17d   : > { %1996 = vmatprep.subr.mxu0 %v10852_v47  ;;  %2073 = vmatprep.subr.mxu1 %v10853_v51  ;;  %v622_v47 = vmul.f32 %v10874_v27, %v524_v6  ;;  %v1054_v51 = vmul.f32 %v10872_v35, %v7891_v39  ;;  %v1052_v6 = vmul.f32 %v7736_v33, %v967_v17 }
 0x17e   : > { %1997 = vmatpush1.msra.mxu0 %v10854_v30  ;;  %2074 = vmatpush1.msra.mxu1 %v10855_v29  ;;  %v1114_v30 = vadd.f32 %v1050_v62, %v899_v42  ;;  %v1265_v29 = vmul.f32 %v7693_v34, %v7889_v40 }
 0x17f   : > { %1998 = vmatprep.subr.mxu0 %v10856_v48  ;;  %2075 = vmatprep.subr.mxu1 %v10857_v60  ;;  %v903_v48 = vadd.f32 %v839_v55, %v688_v23  ;;  %v7902_v60 = vpop.permute.xlu1 %1185  ;;  %v686_v10 = vadd.f32 %v622_v47, %v10875_v8  ;;  %v687_v47 = vadd.f32 %v623_v13, %v7725_v37 }
 0x180   : > { %1999 = vmatpush1.msra.mxu0 %v10858_v63  ;;  %2032 = vmatprep.mubr.f32.mxu0 %v10797_v54  ;;  %v1055_v63 = vmul.f32 %v10873_v26, %v7891_v39  ;;  %v1329_v14 = vadd.f32 %v1265_v29, %v1114_v30  ;;  %v1269_v19 = vmul.f32 %v7693_v34, %v7902_v60 }
 0x181   : > { %2076 = vmatpush1.msra.mxu1 %v10859_v28  ;;  %2109 = vmatprep.mubr.f32.mxu1 %v10797_v54  ;;  %v1115_v28 = vadd.f32 %v1051_v24, %v900_v57  ;;  %v1118_v16 = vadd.f32 %v1054_v51, %v903_v48  ;;  %v1270_v42 = vmul.f32 %v7703_v1, %v7902_v60 }
 0x182   : > { %2190 = vmatprep.subr.mxu0 %v10860_v44  ;;  %2267 = vmatprep.subr.mxu1 %v10861_v2  ;;  %v1266_v44 = vmul.f32 %v7703_v1, %v7889_v40  ;;  %v904_v2 = vadd.f32 %v840_v0, %v689_v45  ;;  %v841_v0 = vmul.f32 %v7717_v41, %v7877_v11 }
 0x183   : > { %6225 = vset.pattern.permute.xlu0 %v10863_v59  ;;  %538 = vperm.xlu1 %6224, %v473_v25   ;;  %v1333_v30 = vadd.f32 %v1269_v19, %v1118_v16  ;;  %v627_v29 = vmul.f32 %v7714_v53, %v529_v5  ;;  %v1053_v48 = vmul.f32 %v7749_v61, %v967_v17 }
 0x184   : > { %974 = vperm.xlu0 %6225, %v472_v46   ;;  %v1330_v55 = vadd.f32 %v1266_v44, %v1115_v28  ;;  %v1119_v62 = vadd.f32 %v1055_v63, %v904_v2  ;;  %v902_v16 = vadd.f32 %v838_v20, %v687_v47  ;;  %v1057_v20 = vmul.f32 %v7749_v61, %v7891_v39 }
 0x185   : > { %v691_v17 = vadd.f32 %v627_v29, %v7725_v37 }
 0x187   : > { %6226 = vset.pattern.permute.xlu1 %v10864_v31 }
 0x188   : > { %978 = vperm.xlu0 %6225, %v473_v25   ;;  %763 = vperm.xlu1 %6226, %v473_v25  }
 0x18c   : > { %6228 = vset.pattern.permute.xlu0 %v10862_v43  ;;  %6227 = vset.pattern.permute.xlu1 %v10865_v3 }
 0x18d   : > { %1189 = vperm.xlu1 %6227, %v472_v46   ;;  %v837_v46 = vmul.f32 %v7717_v41, %v752_v4 }
 0x18f   : > { %v901_v24 = vadd.f32 %v837_v46, %v686_v10  ;;  %v1267_v10 = vmul.f32 %v7752_v56, %v7889_v40 }
 0x191   : > { %1193 = vperm.xlu1 %6227, %v473_v25   ;;  %v626_v25 = vmul.f32 %v10874_v27, %v529_v5  ;;  %v1116_v46 = vadd.f32 %v1052_v6, %v901_v24  ;;  %v1271_v6 = vmul.f32 %v7752_v56, %v7902_v60  ;;  %v1117_v24 = vadd.f32 %v1053_v48, %v902_v16 }
 0x193   : > { %v690_v45 = vadd.f32 %v626_v25, %v10875_v8  ;;  %v1334_v25 = vadd.f32 %v1270_v42, %v1119_v62  ;;  %v1331_v42 = vadd.f32 %v1267_v10, %v1116_v46 }
 0x195   : > { %6229 = vset.pattern.permute.xlu1 %v10864_v31  ;;  %v905_v13 = vadd.f32 %v841_v0, %v690_v45  ;;  %v1268_v45 = vmul.f32 %v7768_v32, %v7889_v40 }
 0x21f   : > { %v1812_v22 = vpop.f32.mrf.mxu0  ;;  %v1889_v28 = vpop.f32.mrf.mxu1 }
 0x220   : > { %v1900_v23 = vadd.f32 %v1812_v22, %v1329_v14  ;;  %v1056_v14 = vmul.f32 %v7736_v33, %v7891_v39  ;;  %v1902_v0 = vadd.f32 %v1889_v28, %v1331_v42 }
 0x221   : > { %v1814_v57 = vpop.f32.mrf.mxu0 }
 0x222   : > { %v5932_v51 = vmul.f32 -1.442695, %v1900_v23  ;;  %v1901_v4 = vadd.f32 %v1814_v57, %v1330_v55  ;;  %v842_v23 = vmul.f32 %v7743_v52, %v7877_v11  ;;  %v1891_v55 = vpop.f32.mrf.mxu1  ;;  %v1120_v57 = vadd.f32 %v1056_v14, %v905_v13 }
 0x223   : > { %v1818_v63 = vpop.f32.mrf.mxu0 }
 0x224   : > { %6291 = vpow2.f32 %v5932_v51  ;;  %v5933_v44 = vmul.f32 -1.442695, %v1901_v4  ;;  %v1904_v2 = vadd.f32 %v1818_v63, %v1333_v30  ;;  %v906_v47 = vadd.f32 %v842_v23, %v691_v17  ;;  %v1895_v51 = vpop.f32.mrf.mxu1 }
 0x225   : > { %v1820_v22 = vpop.f32.mrf.mxu0  ;;  %v1335_v11 = vadd.f32 %v1271_v6, %v1120_v57  ;;  %v1332_v4 = vadd.f32 %v1268_v45, %v1117_v24  ;;  %v5934_v30 = vmul.f32 -1.442695, %v1902_v0 }
 0x226   : > { %6293 = vpow2.f32 %v5933_v44  ;;  %v5935_v5 = vmul.f32 -1.442695, %v1904_v2  ;;  %v1905_v19 = vadd.f32 %v1820_v22, %v1334_v25  ;;  %v1121_v63 = vadd.f32 %v1057_v20, %v906_v47  ;;  %v1897_v14 = vpop.f32.mrf.mxu1 }
 0x227   : > { %v1906_v29 = vadd.f32 %v1895_v51, %v1335_v11  ;;  %v1272_v44 = vmul.f32 %v7768_v32, %v7902_v60  ;;  %v1903_v48 = vadd.f32 %v1891_v55, %v1332_v4 }
 0x228   : > { %6295 = vpow2.f32 %v5935_v5  ;;  %v5936_v62 = vmul.f32 -1.442695, %v1905_v19 }
 0x229   : > { %v5937_v46 = vmul.f32 -1.442695, %v1906_v29  ;;  %v1336_v10 = vadd.f32 %v1272_v44, %v1121_v63  ;;  %v7955_v44 = vld [vmem:[#allocation9 + $0x1e0] sm:$0xff] }
 0x22a   : > { %6297 = vpow2.f32 %v5936_v62 }
 0x22b   : > { %6299 = vpow2.f32 %v5934_v30  ;;  %v1907_v13 = vadd.f32 %v1897_v14, %v1336_v10  ;;  %v7969_v14 = vld [vmem:[#allocation9 + $0x1c0] sm:$0xff]  ;;  %v7978_v10 = vld [vmem:[#allocation9 + $0x1b8] sm:$0xff] }
 0x231   : > { %v6292_v2 = vpop.eup %6291 }
 0x232   : > { %v1926_v25 = vadd.f32 1.0, %v6292_v2  ;;  %v7958_v2 = vld [vmem:[#allocation9 + $0x1f0] sm:$0xff] }
 0x233   : > { %v6294_v40 = vpop.eup %6293 }
 0x234   : > { %6301 = vrcp.f32 %v1926_v25  ;;  %v1927_v39 = vadd.f32 1.0, %v6294_v40  ;;  %v7966_v25 = vld [vmem:[#allocation9 + $0x1d8] sm:$0xff]  ;;  %v7972_v40 = vld [vmem:[#allocation9 + $0x1d0] sm:$0xff] }
 0x235   : > { %v6296_v28 = vpop.eup %6295  ;;  %6303 = vtanh.f32 %v1903_v48  ;;  %v7961_v48 = vld [vmem:[#allocation9 + $0x1c8] sm:$0xff] }
 0x236   : > { %6305 = vrcp.f32 %v1927_v39  ;;  %v1929_v22 = vadd.f32 1.0, %v6296_v28  ;;  %v7981_v39 = vld [vmem:[#allocation9 + $0x1a0] sm:$0xff]  ;;  %v7984_v28 = vld [vmem:[#allocation9 + $0x1b0] sm:$0xff] }
 0x237   : > { %v6298_v16 = vpop.eup %6297  ;;  %6307 = vpow2.f32 %v5937_v46  ;;  %v7975_v46 = vld [vmem:[#allocation9 + $0x1a8] sm:$0xff] }
 0x238   : > { %6309 = vrcp.f32 %v1929_v22  ;;  %v1930_v5 = vadd.f32 1.0, %v6298_v16  ;;  %v6300_v60 = vpop.eup %6299  ;;  %v7990_v22 = vld [vmem:[#allocation9 + $0x198] sm:$0xff]  ;;  %v7993_v16 = vld [vmem:[#allocation9 + $0x180] sm:$0xff] }
 0x239   : > { %6311 = vtanh.f32 %v1907_v13  ;;  %v1928_v55 = vadd.f32 1.0, %v6300_v60  ;;  %v7987_v13 = vld [vmem:[#allocation9 + $0x188] sm:$0xff] }
 0x23a   : > { %6313 = vrcp.f32 %v1930_v5  ;;  %v7996_v5 = vld [vmem:[#allocation9 + $0x190] sm:$0xff]  ;;  %v7999_v60 = vld [vmem:[#allocation9 + $0x168] sm:$0xff] }
 0x23b   : > { %6315 = vrcp.f32 %v1928_v55  ;;  %v8011_v55 = vld [vmem:[#allocation9 + $0x148] sm:$0xff] }
 0x23c   : > { %10878 = vst [vmem:[#allocation23_spill] sm:$0xff] %v8011_v55 }
 0x241   : > { %v6302_v19 = vpop.eup %6301 }
 0x242   : > { %v6304_v17 = vpop.eup %6303 }
 0x243   : > { %v6306_v23 = vpop.eup %6305  ;;  %v1948_v57 = vmul.f32 %v6304_v17, %v6302_v19  ;;  %v8002_v19 = vld [vmem:[#allocation9 + $0x178] sm:$0xff]  ;;  %v8005_v17 = vld [vmem:[#allocation9 + $0x160] sm:$0xff] }
 0x244   : > { %v6308_v62 = vpop.eup %6307  ;;  %v1946_v42 = vmul.f32 %v6306_v23, %v7785_v50  ;;  %v8008_v23 = vld [vmem:[#allocation9 + $0x170] sm:$0xff] }
 0x245   : > { %v6310_v6 = vpop.eup %6309  ;;  %v1931_v0 = vadd.f32 1.0, %v6308_v62  ;;  %v8014_v62 = vld [vmem:[#allocation9 + $0x158] sm:$0xff] }
 0x246   : > { %v6312_v24 = vpop.eup %6311  ;;  %v7940_v45 = vadd.f32 %v1948_v57, %v1946_v42  ;;  %10879 = vst [vmem:[#allocation24_spill] sm:$0xff] %v8014_v62  ;;  %v8017_v42 = vld [vmem:[#allocation9 + $0x140] sm:$0xff]  ;;  %v8020_v57 = vld [vmem:[#allocation9 + $0x150] sm:$0xff] }
 0x247   : > { %v6314_v20 = vpop.eup %6313  ;;  %v1949_v51 = vmul.f32 %v6312_v24, %v6310_v6  ;;  %10880 = vst [vmem:[#allocation25_spill] sm:$0xff] %v8017_v42  ;;  %10881 = vst [vmem:[#allocation26_spill] sm:$0xff] %v8020_v57  ;;  %v8023_v6 = vld [vmem:[#allocation9 + $0x128] sm:$0xff]  ;;  %v8026_v24 = vld [vmem:[#allocation9 + $0x138] sm:$0xff] }
 0x248   : > { %6317 = vtanh.f32 %v7940_v45  ;;  %v1947_v47 = vmul.f32 %v6314_v20, %v7788_v49  ;;  %v6316_v4 = vpop.eup %6315  ;;  %10882 = vst [vmem:[#allocation27_spill] sm:$0xff] %v8023_v6  ;;  %10883 = vst [vmem:[#allocation28_spill] sm:$0xff] %v8026_v24  ;;  %v8029_v20 = vld [vmem:[#allocation9 + $0x120] sm:$0xff] }
 0x249   : > { %6319 = vrcp.f32 %v1931_v0  ;;  %10884 = vst [vmem:[#allocation29_spill] sm:$0xff] %v8029_v20  ;;  %v8032_v0 = vld [vmem:[#allocation9 + $0x130] sm:$0xff] }
 0x24a   : > { %v7944_v11 = vadd.f32 %v1949_v51, %v1947_v47  ;;  %10885 = vst [vmem:[#allocation30_spill] sm:$0xff] %v8032_v0  ;;  %v8035_v47 = vld [vmem:[#allocation9 + $0x108] sm:$0xff]  ;;  %v8038_v51 = vld [vmem:[#allocation9 + $0x118] sm:$0xff] }
 0x24b   : > { %10886 = vst [vmem:[#allocation31_spill] sm:$0xff] %v8035_v47  ;;  %10887 = vst [vmem:[#allocation32_spill] sm:$0xff] %v8038_v51 }
 0x24c   : > { %6321 = vtanh.f32 %v7944_v11 }
 0x255   : > { %v6318_v50 = vpop.eup %6317 }
 0x256   : > { %v7947_v30 = vmul.f32 %v6318_v50, %v6316_v4  ;;  %v6320_v29 = vpop.eup %6319  ;;  %v8041_v4 = vld [vmem:[#allocation9 + $0x100] sm:$0xff]  ;;  %v8044_v50 = vld [vmem:[#allocation9 + $0x110] sm:$0xff] }
 0x257   : > { %10888 = vst [vmem:[#allocation33_spill] sm:$0xff] %v8041_v4  ;;  %10889 = vst [vmem:[#allocation34_spill] sm:$0xff] %v8044_v50 }
 0x258   : > { %10876 = vst [vmem:[#allocation21_spill] sm:$0xff] %v7947_v30  ;;  %2033 = vmatmul.mubr.f32.vlgmr.msra.gmra.mxu0 %v7947_v30  ;;  %2110 = vmatmul.mubr.f32.vlgmr.msra.gmra.mxu1 %v7947_v30  ;;  %v8059_v30 = vld [vmem:[#allocation9 + $0xc8] sm:$0xff] }
 0x259   : > { %v6322_v63 = vpop.eup %6321  ;;  %2038 = vmatprep.mubr.f32.mxu0 %v10797_v54  ;;  %2115 = vmatprep.mubr.f32.mxu1 %v10797_v54  ;;  %10894 = vst [vmem:[#allocation39_spill] sm:$0xff] %v8059_v30 }
 0x25a   : > { %v7953_v49 = vmul.f32 %v6322_v63, %v6320_v29  ;;  %2191 = vmatpush1.msra.mxu0 %v7955_v44  ;;  %2268 = vmatpush1.msra.mxu1 %v7958_v2  ;;  %v8047_v29 = vld [vmem:[#allocation9 + $0xe8] sm:$0xff]  ;;  %v8050_v63 = vld [vmem:[#allocation9 + $0xf8] sm:$0xff] }
 0x25b   : > { %2192 = vmatprep.subr.mxu0 %v7961_v48  ;;  %2269 = vmatprep.subr.mxu1 %v7966_v25  ;;  %10890 = vst [vmem:[#allocation35_spill] sm:$0xff] %v8047_v29  ;;  %10891 = vst [vmem:[#allocation36_spill] sm:$0xff] %v8050_v63 }
 0x25c   : > { %10877 = vst [vmem:[#allocation22_spill] sm:$0xff] %v7953_v49  ;;  %2039 = vmatmul.mubr.f32.gmra.mxu0 %v7953_v49  ;;  %2116 = vmatmul.mubr.f32.gmra.mxu1 %v7953_v49  ;;  %v8056_v49 = vld [vmem:[#allocation9 + $0xf0] sm:$0xff] }
 0x25d   : > { %2193 = vmatpush1.msra.mxu0 %v7969_v14  ;;  %2270 = vmatpush1.msra.mxu1 %v7972_v40  ;;  %10893 = vst [vmem:[#allocation38_spill] sm:$0xff] %v8056_v49 }
 0x25e   : > { %2194 = vmatprep.subr.mxu0 %v7975_v46  ;;  %2271 = vmatprep.subr.mxu1 %v7978_v10 }
 0x25f   : > { %2195 = vmatpush1.msra.mxu0 %v7981_v39  ;;  %2272 = vmatpush1.msra.mxu1 %v7984_v28 }
 0x260   : > { %2196 = vmatprep.subr.mxu0 %v7987_v13  ;;  %2273 = vmatprep.subr.mxu1 %v7990_v22 }
 0x261   : > { %2197 = vmatpush1.msra.mxu0 %v7993_v16  ;;  %2274 = vmatpush1.msra.mxu1 %v7996_v5 }
 0x262   : > { %2198 = vmatprep.subr.mxu0 %v7999_v60  ;;  %2275 = vmatprep.subr.mxu1 %v8002_v19 }
 0x263   : > { %2199 = vmatpush1.msra.mxu0 %v8005_v17  ;;  %2276 = vmatpush1.msra.mxu1 %v8008_v23 }
 0x264   : > { %2200 = vmatprep.subr.mxu0 %v8011_v55  ;;  %2277 = vmatprep.subr.mxu1 %v8014_v62 }
 0x265   : > { %2201 = vmatpush1.msra.mxu0 %v8017_v42  ;;  %2278 = vmatpush1.msra.mxu1 %v8020_v57 }
 0x266   : > { %2202 = vmatprep.subr.mxu0 %v8023_v6  ;;  %2279 = vmatprep.subr.mxu1 %v8026_v24 }
 0x267   : > { %2203 = vmatpush1.msra.mxu0 %v8029_v20  ;;  %2280 = vmatpush1.msra.mxu1 %v8032_v0 }
 0x268   : > { %2204 = vmatprep.subr.mxu0 %v8035_v47  ;;  %2281 = vmatprep.subr.mxu1 %v8038_v51 }
 0x269   : > { %2205 = vmatpush1.msra.mxu0 %v8041_v4  ;;  %2282 = vmatpush1.msra.mxu1 %v8044_v50 }
 0x26a   : > { %2206 = vmatprep.subr.mxu0 %v8047_v29  ;;  %2283 = vmatprep.subr.mxu1 %v8050_v63  ;;  %v8068_v63 = vld [vmem:[#allocation9 + $0xd0] sm:$0xff] }
 0x26b   : > { %2207 = vmatpush1.msra.mxu0 %v8053_v36  ;;  %2284 = vmatpush1.msra.mxu1 %v8056_v49  ;;  %10897 = vst [vmem:[#allocation42_spill] sm:$0xff] %v8068_v63  ;;  %v8071_v36 = vld [vmem:[#allocation9 + $0xa8] sm:$0xff]  ;;  %v8074_v49 = vld [vmem:[#allocation9 + $0xb8] sm:$0xff] }
 0x26c   : > { %2208 = vmatprep.subr.mxu0 %v8059_v30  ;;  %2285 = vmatprep.subr.mxu1 %v8062_v58  ;;  %10898 = vst [vmem:[#allocation43_spill] sm:$0xff] %v8071_v36  ;;  %10899 = vst [vmem:[#allocation44_spill] sm:$0xff] %v8074_v49  ;;  %v8077_v30 = vld [vmem:[#allocation9 + $0xa0] sm:$0xff]  ;;  %v8080_v58 = vld [vmem:[#allocation9 + $0xb0] sm:$0xff] }
 0x26d   : > { %2209 = vmatpush1.msra.mxu0 %v8065_v38  ;;  %2286 = vmatpush1.msra.mxu1 %v8068_v63  ;;  %10900 = vst [vmem:[#allocation45_spill] sm:$0xff] %v8077_v30  ;;  %10901 = vst [vmem:[#allocation46_spill] sm:$0xff] %v8080_v58  ;;  %v8083_v38 = vld [vmem:[#allocation9 + $0x88] sm:$0xff]  ;;  %v8086_v63 = vld [vmem:[#allocation9 + $0x98] sm:$0xff] }
 0x26e   : > { %2210 = vmatprep.subr.mxu0 %v8071_v36  ;;  %2287 = vmatprep.subr.mxu1 %v8074_v49  ;;  %10902 = vst [vmem:[#allocation47_spill] sm:$0xff] %v8083_v38  ;;  %10903 = vst [vmem:[#allocation48_spill] sm:$0xff] %v8086_v63  ;;  %v8089_v36 = vld [vmem:[#allocation9 + $0x80] sm:$0xff]  ;;  %v8092_v49 = vld [vmem:[#allocation9 + $0x90] sm:$0xff] }
 0x26f   : > { %2211 = vmatpush1.msra.mxu0 %v8077_v30  ;;  %2288 = vmatpush1.msra.mxu1 %v8080_v58  ;;  %10904 = vst [vmem:[#allocation49_spill] sm:$0xff] %v8089_v36  ;;  %10905 = vst [vmem:[#allocation50_spill] sm:$0xff] %v8092_v49  ;;  %v8095_v30 = vld [vmem:[#allocation9 + $0x68] sm:$0xff]  ;;  %v8098_v58 = vld [vmem:[#allocation9 + $0x78] sm:$0xff] }
 0x270   : > { %2212 = vmatprep.subr.mxu0 %v8083_v38  ;;  %2289 = vmatprep.subr.mxu1 %v8086_v63  ;;  %10906 = vst [vmem:[#allocation51_spill] sm:$0xff] %v8095_v30  ;;  %10907 = vst [vmem:[#allocation52_spill] sm:$0xff] %v8098_v58  ;;  %v8101_v38 = vld [vmem:[#allocation9 + $0x60] sm:$0xff]  ;;  %v8104_v63 = vld [vmem:[#allocation9 + $0x70] sm:$0xff] }
 0x271   : > { %2213 = vmatpush1.msra.mxu0 %v8089_v36  ;;  %2290 = vmatpush1.msra.mxu1 %v8092_v49  ;;  %10908 = vst [vmem:[#allocation53_spill] sm:$0xff] %v8101_v38  ;;  %10909 = vst [vmem:[#allocation54_spill] sm:$0xff] %v8104_v63  ;;  %v8107_v36 = vld [vmem:[#allocation9 + $0x48] sm:$0xff]  ;;  %v8110_v49 = vld [vmem:[#allocation9 + $0x58] sm:$0xff] }
 0x272   : > { %2214 = vmatprep.subr.mxu0 %v8095_v30  ;;  %2291 = vmatprep.subr.mxu1 %v8098_v58  ;;  %10910 = vst [vmem:[#allocation55_spill] sm:$0xff] %v8107_v36  ;;  %10911 = vst [vmem:[#allocation56_spill] sm:$0xff] %v8110_v49  ;;  %v8113_v30 = vld [vmem:[#allocation9 + $0x40] sm:$0xff]  ;;  %v8116_v58 = vld [vmem:[#allocation9 + $0x50] sm:$0xff] }
 0x273   : > { %2215 = vmatpush1.msra.mxu0 %v8101_v38  ;;  %2292 = vmatpush1.msra.mxu1 %v8104_v63  ;;  %10912 = vst [vmem:[#allocation57_spill] sm:$0xff] %v8113_v30  ;;  %10913 = vst [vmem:[#allocation58_spill] sm:$0xff] %v8116_v58  ;;  %v8119_v38 = vld [vmem:[#allocation9 + $0x28] sm:$0xff]  ;;  %v8122_v63 = vld [vmem:[#allocation9 + $0x38] sm:$0xff] }
 0x274   : > { %2216 = vmatprep.subr.mxu0 %v8107_v36  ;;  %2293 = vmatprep.subr.mxu1 %v8110_v49  ;;  %10914 = vst [vmem:[#allocation59_spill] sm:$0xff] %v8119_v38  ;;  %10915 = vst [vmem:[#allocation60_spill] sm:$0xff] %v8122_v63  ;;  %v8125_v36 = vld [vmem:[#allocation9 + $0x20] sm:$0xff]  ;;  %v8128_v49 = vld [vmem:[#allocation9 + $0x30] sm:$0xff] }
 0x275   : > { %2217 = vmatpush1.msra.mxu0 %v8113_v30  ;;  %2294 = vmatpush1.msra.mxu1 %v8116_v58  ;;  %10916 = vst [vmem:[#allocation61_spill] sm:$0xff] %v8125_v36  ;;  %10917 = vst [vmem:[#allocation19_spill] sm:$0xff] %v8128_v49  ;;  %v8131_v30 = vld [vmem:[#allocation9 + $0x8] sm:$0xff]  ;;  %v8134_v58 = vld [vmem:[#allocation9 + $0x18] sm:$0xff] }
 0x276   : > { %2218 = vmatprep.subr.mxu0 %v8119_v38  ;;  %2295 = vmatprep.subr.mxu1 %v8122_v63  ;;  %10918 = vst [vmem:[#allocation20_spill] sm:$0xff] %v8131_v30  ;;  %10919 = vst [vmem:[#allocation74_spill] sm:$0xff] %v8134_v58  ;;  %v8137_v38 = vld [vmem:[#allocation9] sm:$0xff] }
 0x277   : > { %2219 = vmatpush1.msra.mxu0 %v8125_v36  ;;  %2296 = vmatpush1.msra.mxu1 %v8128_v49  ;;  %10920 = vst [vmem:[#allocation79_spill] sm:$0xff] %v8137_v38  ;;  %v8141_v36 = vld [vmem:[#allocation9 + $0x10] sm:$0xff]  ;;  %v8145_v49 = vld [vmem:[#allocation9 + $0x1e8] sm:$0xff] }
 0x278   : > { %2220 = vmatprep.subr.mxu0 %v8131_v30  ;;  %2297 = vmatprep.subr.mxu1 %v8134_v58  ;;  %10921 = vst [vmem:[#allocation80_spill] sm:$0xff] %v8141_v36  ;;  %10922 = vst [vmem:[#allocation81_spill] sm:$0xff] %v8145_v49  ;;  %v8148_v30 = vld [vmem:[#allocation9 + $0x1f8] sm:$0xff]  ;;  %v474_v58 = vld [vmem:[%s7333_s15 + $0x30] sm:$0xff] }
 0x279   : > { %2221 = vmatpush1.msra.mxu0 %v8137_v38  ;;  %2254 = vmatprep.mubr.f32.mxu0 %v10797_v54  ;;  %10923 = vst [vmem:[#allocation82_spill] sm:$0xff] %v8148_v30  ;;  %v475_v38 = vld [vmem:[%s7333_s15 + $0x38] sm:$0xff] }
 0x27a   : > { %2298 = vmatpush1.msra.mxu1 %v8141_v36  ;;  %2331 = vmatprep.mubr.f32.mxu1 %v10797_v54  ;;  %v534_v36 = vpop.permute.xlu0 %533 }
 0x27b   : > { %2412 = vmatprep.subr.mxu0 %v8145_v49  ;;  %2489 = vmatprep.subr.mxu1 %v8148_v30  ;;  %v760_v30 = vpop.permute.xlu1 %759  ;;  %v628_v63 = vmul.f32 %v10866_v7, %v534_v36 }
 0x27c   : > { %767 = vperm.xlu1 %6229, %v474_v58   ;;  %543 = vperm.xlu0 %6228, %v474_v58   ;;  %v843_v50 = vmul.f32 %v10868_v12, %v760_v30 }
 0x27f   : > { %v539_v49 = vpop.permute.xlu1 %538 }
 0x280   : > { %6230 = vset.pattern.permute.xlu1 %v10862_v43  ;;  %6231 = vset.pattern.permute.xlu0 %v10863_v59  ;;  %v629_v59 = vmul.f32 %v10867_v9, %v534_v36  ;;  %v632_v4 = vmul.f32 %v10866_v7, %v539_v49  ;;  %v634_v42 = vmul.f32 %v10874_v27, %v539_v49 }
 0x281   : > { %548 = vperm.xlu1 %6230, %v475_v38   ;;  %982 = vperm.xlu0 %6231, %v474_v58  }
 0x282   : > { %v696_v51 = vadd.f32 %v632_v4, %v10869_v15  ;;  %v630_v4 = vmul.f32 %v10874_v27, %v534_v36 }
 0x283   : > { %v8161_v29 = vpop.permute.xlu1 %763 }
 0x284   : > { %v847_v47 = vmul.f32 %v10868_v12, %v8161_v29  ;;  %v848_v6 = vmul.f32 %v10870_v18, %v8161_v29 }
 0x285   : > { %6232 = vset.pattern.permute.xlu1 %v10864_v31  ;;  %986 = vperm.xlu0 %6231, %v475_v38  }
 0x286   : > { %771 = vperm.xlu1 %6232, %v475_v38  }
 0x287   : > { %v8173_v24 = vpop.permute.xlu1 %1189 }
 0x289   : > { %6234 = vset.pattern.permute.xlu0 %v10862_v43  ;;  %v692_v43 = vadd.f32 %v628_v63, %v10869_v15 }
 0x28a   : > { %6233 = vset.pattern.permute.xlu1 %v10865_v3  ;;  %v975_v3 = vpop.permute.xlu0 %974 }
 0x28b   : > { %1197 = vperm.xlu1 %6233, %v474_v58   ;;  %v633_v58 = vmul.f32 %v10867_v9, %v539_v49  ;;  %v1058_v0 = vmul.f32 %v10872_v35, %v975_v3  ;;  %v907_v20 = vadd.f32 %v843_v50, %v692_v43  ;;  %v1059_v9 = vmul.f32 %v10873_v26, %v975_v3  ;;  %v8186_v57 = vpop.permute.xlu1 %1193 }
 0x28c   : > { %v1273_v43 = vmul.f32 %v7693_v34, %v8173_v24  ;;  %v911_v50 = vadd.f32 %v847_v47, %v696_v51  ;;  %v1277_v51 = vmul.f32 %v7693_v34, %v8186_v57 }
 0x28d   : > { %v697_v63 = vadd.f32 %v633_v58, %v10871_v21  ;;  %v1122_v12 = vadd.f32 %v1058_v0, %v907_v20  ;;  %v694_v20 = vadd.f32 %v630_v4, %v10875_v8  ;;  %v631_v0 = vmul.f32 %v7714_v53, %v534_v36 }
 0x28e   : > { %v8175_v7 = vpop.permute.xlu0 %978  ;;  %v849_v4 = vmul.f32 %v7717_v41, %v8161_v29  ;;  %v1060_v36 = vmul.f32 %v7736_v33, %v975_v3 }
 0x28f   : > { %1201 = vperm.xlu1 %6233, %v475_v38   ;;  %v844_v38 = vmul.f32 %v10870_v18, %v760_v30  ;;  %v1062_v15 = vmul.f32 %v10872_v35, %v8175_v7  ;;  %v1063_v58 = vmul.f32 %v10873_v26, %v8175_v7  ;;  %v1274_v18 = vmul.f32 %v7703_v1, %v8173_v24 }
 0x290   : > { %v1337_v35 = vadd.f32 %v1273_v43, %v1122_v12  ;;  %v846_v26 = vmul.f32 %v7743_v52, %v760_v30  ;;  %v695_v43 = vadd.f32 %v631_v0, %v7725_v37 }
 0x291   : > { %v1126_v47 = vadd.f32 %v1062_v15, %v911_v50 }
 0x293   : > { %6235 = vset.pattern.permute.xlu1 %v10864_v31  ;;  %v693_v31 = vadd.f32 %v629_v59, %v10871_v21  ;;  %v1341_v34 = vadd.f32 %v1277_v51, %v1126_v47  ;;  %v910_v47 = vadd.f32 %v846_v26, %v695_v43  ;;  %v1065_v26 = vmul.f32 %v7749_v61, %v8175_v7 }
 0x295   : > { %v908_v59 = vadd.f32 %v844_v38, %v693_v31  ;;  %v912_v31 = vadd.f32 %v848_v6, %v697_v63  ;;  %v845_v38 = vmul.f32 %v7717_v41, %v760_v30  ;;  %v1278_v6 = vmul.f32 %v7703_v1, %v8186_v57 }
 0x296   : > { %v698_v63 = vadd.f32 %v634_v42, %v10875_v8  ;;  %v1064_v8 = vmul.f32 %v7736_v33, %v8175_v7 }
 0x297   : > { %v1123_v21 = vadd.f32 %v1059_v9, %v908_v59  ;;  %v1127_v55 = vadd.f32 %v1063_v58, %v912_v31  ;;  %v909_v12 = vadd.f32 %v845_v38, %v694_v20  ;;  %v1275_v20 = vmul.f32 %v7752_v56, %v8173_v24 }
 0x298   : > { %v913_v0 = vadd.f32 %v849_v4, %v698_v63  ;;  %v1276_v63 = vmul.f32 %v7768_v32, %v8173_v24 }
 0x299   : > { %v1338_v62 = vadd.f32 %v1274_v18, %v1123_v21  ;;  %v635_v18 = vmul.f32 %v7714_v53, %v539_v49  ;;  %v1061_v21 = vmul.f32 %v7749_v61, %v975_v3  ;;  %v1124_v38 = vadd.f32 %v1060_v36, %v909_v12 }
 0x29a   : > { %v1279_v36 = vmul.f32 %v7752_v56, %v8186_v57 }
 0x29b   : > { %v699_v3 = vadd.f32 %v635_v18, %v7725_v37  ;;  %v1125_v12 = vadd.f32 %v1061_v21, %v910_v47 }
 0x318   : > { %v2034_v9 = vpop.f32.mrf.mxu0  ;;  %v2111_v58 = vpop.f32.mrf.mxu1 }
 0x319   : > { %v2122_v59 = vadd.f32 %v2034_v9, %v1337_v35  ;;  %v1342_v9 = vadd.f32 %v1278_v6, %v1127_v55  ;;  %v1339_v6 = vadd.f32 %v1275_v20, %v1124_v38 }
 0x31a   : > { %v2036_v15 = vpop.f32.mrf.mxu0 }
 0x31b   : > { %v5938_v50 = vmul.f32 -1.442695, %v2122_v59  ;;  %v2123_v30 = vadd.f32 %v2036_v15, %v1338_v62  ;;  %v850_v59 = vmul.f32 %v7743_v52, %v8161_v29  ;;  %v1128_v15 = vadd.f32 %v1064_v8, %v913_v0 }
 0x31c   : > { %v2040_v35 = vpop.f32.mrf.mxu0  ;;  %v2124_v4 = vadd.f32 %v2111_v58, %v1339_v6  ;;  %v1280_v8 = vmul.f32 %v7768_v32, %v8186_v57 }
 0x31d   : > { %6323 = vpow2.f32 %v5938_v50  ;;  %v5939_v42 = vmul.f32 -1.442695, %v2123_v30  ;;  %v2126_v31 = vadd.f32 %v2040_v35, %v1341_v34  ;;  %v2113_v34 = vpop.f32.mrf.mxu1  ;;  %v914_v43 = vadd.f32 %v850_v59, %v699_v3 }
 0x31e   : > { %v2042_v62 = vpop.f32.mrf.mxu0  ;;  %v1343_v29 = vadd.f32 %v1279_v36, %v1128_v15  ;;  %v1340_v30 = vadd.f32 %v1276_v63, %v1125_v12  ;;  %v5940_v18 = vmul.f32 -1.442695, %v2124_v4 }
 0x31f   : > { %6325 = vpow2.f32 %v5939_v42  ;;  %v5941_v49 = vmul.f32 -1.442695, %v2126_v31  ;;  %v2127_v51 = vadd.f32 %v2042_v62, %v1342_v9  ;;  %v2117_v50 = vpop.f32.mrf.mxu1  ;;  %v1129_v42 = vadd.f32 %v1065_v26, %v914_v43 }
 0x320   : > { %v2128_v35 = vadd.f32 %v2117_v50, %v1343_v29  ;;  %v2125_v21 = vadd.f32 %v2113_v34, %v1340_v30 }
 0x321   : > { %6327 = vpow2.f32 %v5941_v49  ;;  %v5942_v55 = vmul.f32 -1.442695, %v2127_v51  ;;  %v2119_v38 = vpop.f32.mrf.mxu1  ;;  %v1344_v0 = vadd.f32 %v1280_v8, %v1129_v42 }
 0x322   : > { %v5943_v20 = vmul.f32 -1.442695, %v2128_v35 }
 0x323   : > { %6329 = vpow2.f32 %v5942_v55  ;;  %v2129_v62 = vadd.f32 %v2119_v38, %v1344_v0  ;;  %v10929_v38 = vld [vmem:[#allocation26_spill] sm:$0xff]  ;;  %v10932_v0 = vld [vmem:[#allocation29_spill] sm:$0xff] }
 0x324   : > { %6331 = vpow2.f32 %v5940_v18 }
 0x32a   : > { %v6324_v31 = vpop.eup %6323 }
 0x32b   : > { %v2148_v9 = vadd.f32 1.0, %v6324_v31  ;;  %v10926_v31 = vld [vmem:[#allocation23_spill] sm:$0xff] }
 0x32c   : > { %v6326_v24 = vpop.eup %6325 }
 0x32d   : > { %6333 = vrcp.f32 %v2148_v9  ;;  %v2149_v7 = vadd.f32 1.0, %v6326_v24  ;;  %v10928_v9 = vld [vmem:[#allocation25_spill] sm:$0xff]  ;;  %v10930_v24 = vld [vmem:[#allocation27_spill] sm:$0xff] }
 0x32e   : > { %v6328_v58 = vpop.eup %6327  ;;  %6335 = vtanh.f32 %v2125_v21  ;;  %v10927_v21 = vld [vmem:[#allocation24_spill] sm:$0xff] }
 0x32f   : > { %6337 = vrcp.f32 %v2149_v7  ;;  %v2151_v47 = vadd.f32 1.0, %v6328_v58  ;;  %v10933_v7 = vld [vmem:[#allocation30_spill] sm:$0xff]  ;;  %v10934_v58 = vld [vmem:[#allocation31_spill] sm:$0xff] }
 0x330   : > { %v6330_v49 = vpop.eup %6329  ;;  %6339 = vpow2.f32 %v5943_v20  ;;  %v10931_v20 = vld [vmem:[#allocation28_spill] sm:$0xff] }
 0x331   : > { %6341 = vrcp.f32 %v2151_v47  ;;  %v2152_v51 = vadd.f32 1.0, %v6330_v49  ;;  %v6332_v57 = vpop.eup %6331  ;;  %v10936_v47 = vld [vmem:[#allocation33_spill] sm:$0xff]  ;;  %v10937_v49 = vld [vmem:[#allocation34_spill] sm:$0xff] }
 0x332   : > { %6343 = vtanh.f32 %v2129_v62  ;;  %v2150_v55 = vadd.f32 1.0, %v6332_v57  ;;  %v10935_v62 = vld [vmem:[#allocation32_spill] sm:$0xff] }
 0x333   : > { %6345 = vrcp.f32 %v2152_v51  ;;  %v10938_v51 = vld [vmem:[#allocation35_spill] sm:$0xff]  ;;  %v10939_v57 = vld [vmem:[#allocation36_spill] sm:$0xff] }
 0x334   : > { %6347 = vrcp.f32 %v2150_v55  ;;  %v10943_v55 = vld [vmem:[#allocation40_spill] sm:$0xff] }
 0x33a   : > { %v6334_v3 = vpop.eup %6333 }
 0x33b   : > { %v6336_v59 = vpop.eup %6335 }
 0x33c   : > { %v6338_v34 = vpop.eup %6337  ;;  %v2170_v36 = vmul.f32 %v6336_v59, %v6334_v3  ;;  %v10940_v3 = vld [vmem:[#allocation37_spill] sm:$0xff]  ;;  %v10941_v59 = vld [vmem:[#allocation38_spill] sm:$0xff] }
 0x33d   : > { %v6340_v6 = vpop.eup %6339  ;;  %v2168_v15 = vmul.f32 %v6338_v34, %v7940_v45  ;;  %v10942_v34 = vld [vmem:[#allocation39_spill] sm:$0xff] }
 0x33e   : > { %v6342_v12 = vpop.eup %6341  ;;  %v2153_v43 = vadd.f32 1.0, %v6340_v6  ;;  %v10944_v6 = vld [vmem:[#allocation41_spill] sm:$0xff] }
 0x33f   : > { %v6344_v63 = vpop.eup %6343  ;;  %v8224_v26 = vadd.f32 %v2170_v36, %v2168_v15  ;;  %v10945_v15 = vld [vmem:[#allocation42_spill] sm:$0xff]  ;;  %v10946_v36 = vld [vmem:[#allocation43_spill] sm:$0xff] }
 0x340   : > { %v6346_v4 = vpop.eup %6345  ;;  %v2171_v29 = vmul.f32 %v6344_v63, %v6342_v12  ;;  %v10947_v12 = vld [vmem:[#allocation44_spill] sm:$0xff]  ;;  %v10948_v63 = vld [vmem:[#allocation45_spill] sm:$0xff] }
 0x341   : > { %6349 = vtanh.f32 %v8224_v26  ;;  %v2169_v50 = vmul.f32 %v6346_v4, %v7944_v11  ;;  %v6348_v18 = vpop.eup %6347  ;;  %v10949_v4 = vld [vmem:[#allocation46_spill] sm:$0xff] }
 0x342   : > { %6351 = vrcp.f32 %v2153_v43  ;;  %v10950_v43 = vld [vmem:[#allocation47_spill] sm:$0xff] }
 0x343   : > { %v8228_v30 = vadd.f32 %v2171_v29, %v2169_v50  ;;  %v10951_v50 = vld [vmem:[#allocation48_spill] sm:$0xff]  ;;  %v10952_v29 = vld [vmem:[#allocation49_spill] sm:$0xff] }
 0x345   : > { %6353 = vtanh.f32 %v8228_v30 }
 0x34e   : > { %v6350_v45 = vpop.eup %6349 }
 0x34f   : > { %v8231_v35 = vmul.f32 %v6350_v45, %v6348_v18  ;;  %v6352_v42 = vpop.eup %6351  ;;  %v10953_v18 = vld [vmem:[#allocation50_spill] sm:$0xff]  ;;  %v10954_v45 = vld [vmem:[#allocation51_spill] sm:$0xff] }
 0x351   : > { %10924 = vst [vmem:[#allocation83_spill] sm:$0xff] %v8231_v35  ;;  %2255 = vmatmul.mubr.f32.vlgmr.msra.gmra.mxu0 %v8231_v35  ;;  %2332 = vmatmul.mubr.f32.vlgmr.msra.gmra.mxu1 %v8231_v35  ;;  %v10958_v35 = vld [vmem:[#allocation55_spill] sm:$0xff] }
 0x352   : > { %v6354_v8 = vpop.eup %6353  ;;  %2260 = vmatprep.mubr.f32.mxu0 %v10797_v54  ;;  %2337 = vmatprep.mubr.f32.mxu1 %v10797_v54 }
 0x353   : > { %v8237_v11 = vmul.f32 %v6354_v8, %v6352_v42  ;;  %2413 = vmatpush1.msra.mxu0 %v7955_v44  ;;  %2490 = vmatpush1.msra.mxu1 %v7958_v2  ;;  %v10955_v42 = vld [vmem:[#allocation52_spill] sm:$0xff]  ;;  %v10956_v8 = vld [vmem:[#allocation53_spill] sm:$0xff] }
 0x354   : > { %2414 = vmatprep.subr.mxu0 %v7961_v48  ;;  %2491 = vmatprep.subr.mxu1 %v7966_v25 }
 0x355   : > { %10925 = vst [vmem:[#allocation84_spill] sm:$0xff] %v8237_v11  ;;  %2261 = vmatmul.mubr.f32.gmra.mxu0 %v8237_v11  ;;  %2338 = vmatmul.mubr.f32.gmra.mxu1 %v8237_v11  ;;  %v10957_v11 = vld [vmem:[#allocation54_spill] sm:$0xff] }
 0x356   : > { %2415 = vmatpush1.msra.mxu0 %v7969_v14  ;;  %2492 = vmatpush1.msra.mxu1 %v7972_v40 }
 0x357   : > { %2416 = vmatprep.subr.mxu0 %v7975_v46  ;;  %2493 = vmatprep.subr.mxu1 %v7978_v10 }
 0x358   : > { %2417 = vmatpush1.msra.mxu0 %v7981_v39  ;;  %2494 = vmatpush1.msra.mxu1 %v7984_v28 }
 0x359   : > { %2418 = vmatprep.subr.mxu0 %v7987_v13  ;;  %2495 = vmatprep.subr.mxu1 %v7990_v22 }
 0x35a   : > { %2419 = vmatpush1.msra.mxu0 %v7993_v16  ;;  %2496 = vmatpush1.msra.mxu1 %v7996_v5 }
 0x35b   : > { %2420 = vmatprep.subr.mxu0 %v7999_v60  ;;  %2497 = vmatprep.subr.mxu1 %v8002_v19 }
 0x35c   : > { %2421 = vmatpush1.msra.mxu0 %v8005_v17  ;;  %2498 = vmatpush1.msra.mxu1 %v8008_v23 }
 0x35d   : > { %2422 = vmatprep.subr.mxu0 %v10926_v31  ;;  %2499 = vmatprep.subr.mxu1 %v10927_v21 }
 0x35e   : > { %2423 = vmatpush1.msra.mxu0 %v10928_v9  ;;  %2500 = vmatpush1.msra.mxu1 %v10929_v38 }
 0x35f   : > { %2424 = vmatprep.subr.mxu0 %v10930_v24  ;;  %2501 = vmatprep.subr.mxu1 %v10931_v20 }
 0x360   : > { %2425 = vmatpush1.msra.mxu0 %v10932_v0  ;;  %2502 = vmatpush1.msra.mxu1 %v10933_v7 }
 0x361   : > { %2426 = vmatprep.subr.mxu0 %v10934_v58  ;;  %2503 = vmatprep.subr.mxu1 %v10935_v62 }
 0x362   : > { %2427 = vmatpush1.msra.mxu0 %v10936_v47  ;;  %2504 = vmatpush1.msra.mxu1 %v10937_v49  ;;  %v10982_v49 = vld [vmem:[#allocation71_spill] sm:$0xff] }
 0x363   : > { %2428 = vmatprep.subr.mxu0 %v10938_v51  ;;  %2505 = vmatprep.subr.mxu1 %v10939_v57 }
 0x364   : > { %2429 = vmatpush1.msra.mxu0 %v10940_v3  ;;  %2506 = vmatpush1.msra.mxu1 %v10941_v59  ;;  %v10981_v59 = vld [vmem:[#allocation68_spill] sm:$0xff] }
 0x365   : > { %2430 = vmatprep.subr.mxu0 %v10942_v34  ;;  %2507 = vmatprep.subr.mxu1 %v10943_v55 }
 0x366   : > { %2431 = vmatpush1.msra.mxu0 %v10944_v6  ;;  %2508 = vmatpush1.msra.mxu1 %v10945_v15  ;;  %v10978_v15 = vld [vmem:[#allocation67_spill] sm:$0xff] }
 0x367   : > { %2432 = vmatprep.subr.mxu0 %v10946_v36  ;;  %2509 = vmatprep.subr.mxu1 %v10947_v12 }
 0x368   : > { %2433 = vmatpush1.msra.mxu0 %v10948_v63  ;;  %2510 = vmatpush1.msra.mxu1 %v10949_v4  ;;  %v10959_v63 = vld [vmem:[#allocation56_spill] sm:$0xff] }
 0x369   : > { %2434 = vmatprep.subr.mxu0 %v10950_v43  ;;  %2511 = vmatprep.subr.mxu1 %v10951_v50  ;;  %v10960_v43 = vld [vmem:[#allocation57_spill] sm:$0xff]  ;;  %v10961_v50 = vld [vmem:[#allocation58_spill] sm:$0xff] }
 0x36a   : > { %2435 = vmatpush1.msra.mxu0 %v10952_v29  ;;  %2512 = vmatpush1.msra.mxu1 %v10953_v18  ;;  %v10962_v29 = vld [vmem:[#allocation59_spill] sm:$0xff]  ;;  %v10963_v18 = vld [vmem:[#allocation60_spill] sm:$0xff] }
 0x36b   : > { %2436 = vmatprep.subr.mxu0 %v10954_v45  ;;  %2513 = vmatprep.subr.mxu1 %v10955_v42  ;;  %v10964_v45 = vld [vmem:[#allocation61_spill] sm:$0xff]  ;;  %v10965_v42 = vld [vmem:[#allocation19_spill] sm:$0xff] }
 0x36c   : > { %2437 = vmatpush1.msra.mxu0 %v10956_v8  ;;  %2514 = vmatpush1.msra.mxu1 %v10957_v11  ;;  %v10966_v8 = vld [vmem:[#allocation20_spill] sm:$0xff]  ;;  %v10967_v11 = vld [vmem:[#allocation74_spill] sm:$0xff] }
 0x36d   : > { %2438 = vmatprep.subr.mxu0 %v10958_v35  ;;  %2515 = vmatprep.subr.mxu1 %v10959_v63  ;;  %v10968_v35 = vld [vmem:[#allocation79_spill] sm:$0xff]  ;;  %v10976_v63 = vld [vmem:[#allocation64_spill] sm:$0xff] }
 0x36e   : > { %2439 = vmatpush1.msra.mxu0 %v10960_v43  ;;  %2516 = vmatpush1.msra.mxu1 %v10961_v50  ;;  %v10969_v43 = vld [vmem:[#allocation80_spill] sm:$0xff]  ;;  %v10970_v50 = vld [vmem:[#allocation81_spill] sm:$0xff] }
 0x36f   : > { %2440 = vmatprep.subr.mxu0 %v10962_v29  ;;  %2517 = vmatprep.subr.mxu1 %v10963_v18  ;;  %v10971_v29 = vld [vmem:[#allocation82_spill] sm:$0xff]  ;;  %v476_v18 = vld [vmem:[%s7333_s15 + $0x40] sm:$0xff] }
 0x370   : > { %2441 = vmatpush1.msra.mxu0 %v10964_v45  ;;  %2518 = vmatpush1.msra.mxu1 %v10965_v42  ;;  %v477_v42 = vld [vmem:[%s7333_s15 + $0x48] sm:$0xff]  ;;  %v10972_v45 = vmov 0  }
 0x371   : > { %2442 = vmatprep.subr.mxu0 %v10966_v8  ;;  %2519 = vmatprep.subr.mxu1 %v10967_v11  ;;  %v10973_v8 = vmov 2   ;;  %v544_v11 = vpop.permute.xlu0 %543 }
 0x372   : > { %2443 = vmatpush1.msra.mxu0 %v10968_v35  ;;  %2476 = vmatprep.mubr.f32.mxu0 %v10797_v54  ;;  %v10974_v35 = vmov 1   ;;  %v636_v4 = vmul.f32 %v10976_v63, %v544_v11 }
 0x373   : > { %2520 = vmatpush1.msra.mxu1 %v10969_v43  ;;  %2553 = vmatprep.mubr.f32.mxu1 %v10797_v54  ;;  %v10975_v43 = vmov 3  }
 0x374   : > { %2634 = vmatprep.subr.mxu0 %v10970_v50  ;;  %2711 = vmatprep.subr.mxu1 %v10971_v29  ;;  %v768_v29 = vpop.permute.xlu1 %767 }
 0x375   : > { %775 = vperm.xlu1 %6235, %v476_v18   ;;  %553 = vperm.xlu0 %6234, %v476_v18   ;;  %v851_v6 = vmul.f32 %v10978_v15, %v768_v29 }
 0x378   : > { %v549_v50 = vpop.permute.xlu1 %548 }
 0x379   : > { %6236 = vset.pattern.permute.xlu1 %v10972_v45  ;;  %6237 = vset.pattern.permute.xlu0 %v10973_v8  ;;  %v10977_v8 = vld [vmem:[#allocation65_spill] sm:$0xff]  ;;  %v640_v55 = vmul.f32 %v10976_v63, %v549_v50  ;;  %v642_v38 = vmul.f32 %v10874_v27, %v549_v50 }
 0x37a   : > { %558 = vperm.xlu1 %6236, %v477_v42   ;;  %990 = vperm.xlu0 %6237, %v476_v18   ;;  %v637_v12 = vmul.f32 %v10977_v8, %v544_v11 }
 0x37c   : > { %v8317_v36 = vpop.permute.xlu1 %771  ;;  %v701_v3 = vadd.f32 %v637_v12, %v10981_v59 }
 0x37d   : > { %v855_v51 = vmul.f32 %v10978_v15, %v8317_v36 }
 0x37e   : > { %6238 = vset.pattern.permute.xlu1 %v10974_v35  ;;  %994 = vperm.xlu0 %6237, %v477_v42  }
 0x37f   : > { %779 = vperm.xlu1 %6238, %v477_v42  }
 0x380   : > { %v8329_v58 = vpop.permute.xlu1 %1197 }
 0x382   : > { %6240 = vset.pattern.permute.xlu0 %v10972_v45  ;;  %v10979_v45 = vld [vmem:[#allocation66_spill] sm:$0xff] }
 0x383   : > { %6239 = vset.pattern.permute.xlu1 %v10975_v43  ;;  %v700_v34 = vadd.f32 %v636_v4, %v10979_v45  ;;  %v983_v43 = vpop.permute.xlu0 %982  ;;  %v704_v57 = vadd.f32 %v640_v55, %v10979_v45  ;;  %v638_v55 = vmul.f32 %v10874_v27, %v544_v11 }
 0x384   : > { %1205 = vperm.xlu1 %6239, %v476_v18   ;;  %v10980_v18 = vld [vmem:[#allocation69_spill] sm:$0xff]  ;;  %v1066_v47 = vmul.f32 %v10982_v49, %v983_v43  ;;  %v8342_v24 = vpop.permute.xlu1 %1201 }
 0x385   : > { %v915_v62 = vadd.f32 %v851_v6, %v700_v34  ;;  %v856_v7 = vmul.f32 %v10980_v18, %v8317_v36  ;;  %v10984_v34 = vld [vmem:[#allocation75_spill] sm:$0xff]  ;;  %v919_v20 = vadd.f32 %v855_v51, %v704_v57 }
 0x386   : > { %v1281_v6 = vmul.f32 %v10984_v34, %v8329_v58  ;;  %v1285_v57 = vmul.f32 %v10984_v34, %v8342_v24 }
 0x387   : > { %v8331_v63 = vpop.permute.xlu0 %986  ;;  %v1130_v15 = vadd.f32 %v1066_v47, %v915_v62  ;;  %v639_v47 = vmul.f32 %v7714_v53, %v544_v11  ;;  %v1068_v11 = vmul.f32 %v7736_v33, %v983_v43 }
 0x388   : > { %1209 = vperm.xlu1 %6239, %v477_v42   ;;  %v852_v42 = vmul.f32 %v10980_v18, %v768_v29  ;;  %v1070_v45 = vmul.f32 %v10982_v49, %v8331_v63  ;;  %v1282_v18 = vmul.f32 %v7703_v1, %v8329_v58  ;;  %v10985_v49 = vld [vmem:[#allocation76_spill] sm:$0xff] }
 0x389   : > { %v702_v62 = vadd.f32 %v638_v55, %v10985_v49  ;;  %v1345_v9 = vadd.f32 %v1281_v6, %v1130_v15  ;;  %v857_v55 = vmul.f32 %v7717_v41, %v8317_v36 }
 0x38a   : > { %v916_v12 = vadd.f32 %v852_v42, %v701_v3  ;;  %v853_v42 = vmul.f32 %v7717_v41, %v768_v29  ;;  %v1134_v51 = vadd.f32 %v1070_v45, %v919_v20  ;;  %v703_v45 = vadd.f32 %v639_v47, %v7725_v37 }
 0x38c   : > { %6241 = vset.pattern.permute.xlu1 %v10974_v35  ;;  %v641_v35 = vmul.f32 %v10977_v8, %v549_v50  ;;  %v10983_v8 = vld [vmem:[#allocation72_spill] sm:$0xff]  ;;  %v917_v20 = vadd.f32 %v853_v42, %v702_v62  ;;  %v1349_v34 = vadd.f32 %v1285_v57, %v1134_v51  ;;  %v1283_v62 = vmul.f32 %v7752_v56, %v8329_v58 }
 0x38d   : > { %v1067_v0 = vmul.f32 %v10983_v8, %v983_v43 }
 0x38e   : > { %v705_v4 = vadd.f32 %v641_v35, %v10981_v59  ;;  %v1071_v35 = vmul.f32 %v10983_v8, %v8331_v63  ;;  %v854_v8 = vmul.f32 %v7743_v52, %v768_v29  ;;  %v1132_v42 = vadd.f32 %v1068_v11, %v917_v20 }
 0x38f   : > { %v1131_v59 = vadd.f32 %v1067_v0, %v916_v12  ;;  %v1287_v11 = vmul.f32 %v7752_v56, %v8342_v24 }
 0x390   : > { %v920_v3 = vadd.f32 %v856_v7, %v705_v4  ;;  %v1286_v7 = vmul.f32 %v7703_v1, %v8342_v24  ;;  %v706_v4 = vadd.f32 %v642_v38, %v10985_v49  ;;  %v1072_v49 = vmul.f32 %v7736_v33, %v8331_v63 }
 0x391   : > { %v1346_v21 = vadd.f32 %v1282_v18, %v1131_v59  ;;  %v1069_v59 = vmul.f32 %v7749_v61, %v983_v43  ;;  %v918_v51 = vadd.f32 %v854_v8, %v703_v45  ;;  %v1073_v8 = vmul.f32 %v7749_v61, %v8331_v63 }
 0x392   : > { %v1135_v31 = vadd.f32 %v1071_v35, %v920_v3  ;;  %v921_v47 = vadd.f32 %v857_v55, %v706_v4  ;;  %v1284_v4 = vmul.f32 %v7768_v32, %v8329_v58 }
 0x393   : > { %v1133_v20 = vadd.f32 %v1069_v59, %v918_v51 }
 0x411   : > { %v2256_v0 = vpop.f32.mrf.mxu0  ;;  %v2333_v35 = vpop.f32.mrf.mxu1 }
 0x412   : > { %v2344_v12 = vadd.f32 %v2256_v0, %v1345_v9  ;;  %v643_v9 = vmul.f32 %v7714_v53, %v549_v50  ;;  %v1350_v0 = vadd.f32 %v1286_v7, %v1135_v31  ;;  %v1347_v7 = vadd.f32 %v1283_v62, %v1132_v42 }
 0x413   : > { %v2258_v15 = vpop.f32.mrf.mxu0 }
 0x414   : > { %v5944_v6 = vmul.f32 -1.442695, %v2344_v12  ;;  %v2345_v29 = vadd.f32 %v2258_v15, %v1346_v21  ;;  %v707_v43 = vadd.f32 %v643_v9, %v7725_v37  ;;  %v858_v12 = vmul.f32 %v7743_v52, %v8317_v36 }
 0x415   : > { %v2262_v18 = vpop.f32.mrf.mxu0  ;;  %v1136_v15 = vadd.f32 %v1072_v49, %v921_v47  ;;  %v2346_v55 = vadd.f32 %v2333_v35, %v1347_v7  ;;  %v1288_v49 = vmul.f32 %v7768_v32, %v8342_v24 }
 0x416   : > { %6355 = vpow2.f32 %v5944_v6  ;;  %v5945_v38 = vmul.f32 -1.442695, %v2345_v29  ;;  %v2348_v3 = vadd.f32 %v2262_v18, %v1349_v34  ;;  %v2335_v34 = vpop.f32.mrf.mxu1  ;;  %v922_v45 = vadd.f32 %v858_v12, %v707_v43 }
 0x417   : > { %v2264_v21 = vpop.f32.mrf.mxu0  ;;  %v1351_v36 = vadd.f32 %v1287_v11, %v1136_v15  ;;  %v1348_v29 = vadd.f32 %v1284_v4, %v1133_v20  ;;  %v5946_v9 = vmul.f32 -1.442695, %v2346_v55 }
 0x418   : > { %6357 = vpow2.f32 %v5945_v38  ;;  %v5947_v50 = vmul.f32 -1.442695, %v2348_v3  ;;  %v2349_v57 = vadd.f32 %v2264_v21, %v1350_v0  ;;  %v2339_v6 = vpop.f32.mrf.mxu1  ;;  %v1137_v38 = vadd.f32 %v1073_v8, %v922_v45 }
 0x419   : > { %v2350_v18 = vadd.f32 %v2339_v6, %v1351_v36  ;;  %v2347_v59 = vadd.f32 %v2335_v34, %v1348_v29 }
 0x41a   : > { %6359 = vpow2.f32 %v5947_v50  ;;  %v5948_v31 = vmul.f32 -1.442695, %v2349_v57  ;;  %v2341_v42 = vpop.f32.mrf.mxu1  ;;  %v1352_v47 = vadd.f32 %v1288_v49, %v1137_v38 }
 0x41b   : > { %v5949_v62 = vmul.f32 -1.442695, %v2350_v18 }
 0x41c   : > { %6361 = vpow2.f32 %v5948_v31  ;;  %v2351_v21 = vadd.f32 %v2341_v42, %v1352_v47  ;;  %v11009_v42 = vld [vmem:[#allocation44_spill] sm:$0xff]  ;;  %v11012_v47 = vld [vmem:[#allocation47_spill] sm:$0xff] }
 0x41d   : > { %6363 = vpow2.f32 %v5946_v9 }
 0x423   : > { %v6356_v3 = vpop.eup %6355 }
 0x424   : > { %v2370_v0 = vadd.f32 1.0, %v6356_v3  ;;  %v11006_v3 = vld [vmem:[#allocation41_spill] sm:$0xff] }
 0x425   : > { %v6358_v58 = vpop.eup %6357 }
 0x426   : > { %6365 = vrcp.f32 %v2370_v0  ;;  %v2371_v63 = vadd.f32 1.0, %v6358_v58  ;;  %v11008_v0 = vld [vmem:[#allocation43_spill] sm:$0xff]  ;;  %v11010_v58 = vld [vmem:[#allocation45_spill] sm:$0xff] }
 0x427   : > { %v6360_v35 = vpop.eup %6359  ;;  %6367 = vtanh.f32 %v2347_v59  ;;  %v11007_v59 = vld [vmem:[#allocation42_spill] sm:$0xff] }
 0x428   : > { %6369 = vrcp.f32 %v2371_v63  ;;  %v2373_v51 = vadd.f32 1.0, %v6360_v35  ;;  %v11013_v63 = vld [vmem:[#allocation48_spill] sm:$0xff]  ;;  %v11014_v35 = vld [vmem:[#allocation49_spill] sm:$0xff] }
 0x429   : > { %v6362_v50 = vpop.eup %6361  ;;  %6371 = vpow2.f32 %v5949_v62  ;;  %v11011_v62 = vld [vmem:[#allocation46_spill] sm:$0xff] }
 0x42a   : > { %6373 = vrcp.f32 %v2373_v51  ;;  %v2374_v57 = vadd.f32 1.0, %v6362_v50  ;;  %v6364_v24 = vpop.eup %6363  ;;  %v11016_v51 = vld [vmem:[#allocation51_spill] sm:$0xff]  ;;  %v11017_v50 = vld [vmem:[#allocation52_spill] sm:$0xff] }
 0x42b   : > { %6375 = vtanh.f32 %v2351_v21  ;;  %v2372_v31 = vadd.f32 1.0, %v6364_v24  ;;  %v11015_v21 = vld [vmem:[#allocation50_spill] sm:$0xff] }
 0x42c   : > { %6377 = vrcp.f32 %v2374_v57  ;;  %v11018_v57 = vld [vmem:[#allocation53_spill] sm:$0xff]  ;;  %v11019_v24 = vld [vmem:[#allocation54_spill] sm:$0xff] }
 0x42d   : > { %6379 = vrcp.f32 %v2372_v31  ;;  %v11023_v31 = vld [vmem:[#allocation58_spill] sm:$0xff] }
 0x433   : > { %v6366_v43 = vpop.eup %6365 }
 0x434   : > { %v6368_v12 = vpop.eup %6367 }
 0x435   : > { %v6370_v34 = vpop.eup %6369  ;;  %v2392_v11 = vmul.f32 %v6368_v12, %v6366_v43  ;;  %v11020_v43 = vld [vmem:[#allocation55_spill] sm:$0xff]  ;;  %v11021_v12 = vld [vmem:[#allocation56_spill] sm:$0xff] }
 0x436   : > { %v6372_v7 = vpop.eup %6371  ;;  %v2390_v15 = vmul.f32 %v6370_v34, %v8224_v26  ;;  %v11022_v34 = vld [vmem:[#allocation57_spill] sm:$0xff] }
 0x437   : > { %v6374_v20 = vpop.eup %6373  ;;  %v2375_v45 = vadd.f32 1.0, %v6372_v7  ;;  %v11024_v7 = vld [vmem:[#allocation59_spill] sm:$0xff] }
 0x438   : > { %v6376_v4 = vpop.eup %6375  ;;  %v8380_v8 = vadd.f32 %v2392_v11, %v2390_v15  ;;  %v11025_v15 = vld [vmem:[#allocation60_spill] sm:$0xff]  ;;  %v11026_v11 = vld [vmem:[#allocation61_spill] sm:$0xff] }
 0x439   : > { %v6378_v55 = vpop.eup %6377  ;;  %v2393_v36 = vmul.f32 %v6376_v4, %v6374_v20  ;;  %v11027_v20 = vld [vmem:[#allocation19_spill] sm:$0xff]  ;;  %v11028_v4 = vld [vmem:[#allocation20_spill] sm:$0xff] }
 0x43a   : > { %6381 = vtanh.f32 %v8380_v8  ;;  %v2391_v6 = vmul.f32 %v6378_v55, %v8228_v30  ;;  %v6380_v9 = vpop.eup %6379  ;;  %v11029_v55 = vld [vmem:[#allocation74_spill] sm:$0xff] }
 0x43b   : > { %6383 = vrcp.f32 %v2375_v45  ;;  %v11030_v45 = vld [vmem:[#allocation79_spill] sm:$0xff] }
 0x43c   : > { %v8384_v29 = vadd.f32 %v2393_v36, %v2391_v6  ;;  %v11031_v6 = vld [vmem:[#allocation80_spill] sm:$0xff]  ;;  %v11032_v36 = vld [vmem:[#allocation81_spill] sm:$0xff] }
 0x43e   : > { %6385 = vtanh.f32 %v8384_v29 }
 0x447   : > { %v6382_v26 = vpop.eup %6381 }
 0x448   : > { %v8387_v18 = vmul.f32 %v6382_v26, %v6380_v9  ;;  %v6384_v38 = vpop.eup %6383  ;;  %v11033_v9 = vld [vmem:[#allocation82_spill] sm:$0xff]  ;;  %v478_v26 = vld [vmem:[%s7333_s15 + $0x50] sm:$0xff] }
 0x449   : > { %783 = vperm.xlu1 %6241, %v478_v26   ;;  %563 = vperm.xlu0 %6240, %v478_v26  }
 0x44a   : > { %10986 = vst [vmem:[#allocation85_spill] sm:$0xff] %v8387_v18  ;;  %2477 = vmatmul.mubr.f32.vlgmr.msra.gmra.mxu0 %v8387_v18  ;;  %2554 = vmatmul.mubr.f32.vlgmr.msra.gmra.mxu1 %v8387_v18  ;;  %v8661_v18 = vld [vmem:[#allocation9 + $0xc0] sm:$0xff] }
 0x44b   : > { %v6386_v49 = vpop.eup %6385  ;;  %2482 = vmatprep.mubr.f32.mxu0 %v10797_v54  ;;  %2559 = vmatprep.mubr.f32.mxu1 %v10797_v54  ;;  %11068 = vst [vmem:[#allocation43_spill] sm:$0xff] %v8661_v18 }
 0x44c   : > { %v8393_v30 = vmul.f32 %v6386_v49, %v6384_v38  ;;  %2635 = vmatpush1.msra.mxu0 %v7955_v44  ;;  %2712 = vmatpush1.msra.mxu1 %v7958_v2  ;;  %v10988_v44 = vld [vmem:[#allocation23_spill] sm:$0xff]  ;;  %v10989_v2 = vld [vmem:[#allocation24_spill] sm:$0xff]  ;;  %v11034_v49 = vmov 0  }
 0x44d   : > { %2636 = vmatprep.subr.mxu0 %v7961_v48  ;;  %2713 = vmatprep.subr.mxu1 %v7966_v25  ;;  %v10990_v48 = vld [vmem:[#allocation25_spill] sm:$0xff]  ;;  %v10991_v25 = vld [vmem:[#allocation26_spill] sm:$0xff]  ;;  %v479_v38 = vld [vmem:[%s7333_s15 + $0x58] sm:$0xff] }
 0x44e   : > { %10987 = vst [vmem:[#allocation86_spill] sm:$0xff] %v8393_v30  ;;  %2483 = vmatmul.mubr.f32.gmra.mxu0 %v8393_v30  ;;  %2560 = vmatmul.mubr.f32.gmra.mxu1 %v8393_v30  ;;  %v8658_v30 = vld [vmem:[#allocation9 + $0xd8] sm:$0xff] }
 0x44f   : > { %2637 = vmatpush1.msra.mxu0 %v7969_v14  ;;  %2714 = vmatpush1.msra.mxu1 %v7972_v40  ;;  %v10992_v14 = vld [vmem:[#allocation27_spill] sm:$0xff]  ;;  %v10993_v40 = vld [vmem:[#allocation28_spill] sm:$0xff]  ;;  %11067 = vst [vmem:[#allocation42_spill] sm:$0xff] %v8658_v30 }
 0x450   : > { %2638 = vmatprep.subr.mxu0 %v7975_v46  ;;  %2715 = vmatprep.subr.mxu1 %v7978_v10  ;;  %v10994_v46 = vld [vmem:[#allocation29_spill] sm:$0xff]  ;;  %v10995_v10 = vld [vmem:[#allocation30_spill] sm:$0xff] }
 0x451   : > { %2639 = vmatpush1.msra.mxu0 %v7981_v39  ;;  %2716 = vmatpush1.msra.mxu1 %v7984_v28  ;;  %v10996_v39 = vld [vmem:[#allocation31_spill] sm:$0xff]  ;;  %v10997_v28 = vld [vmem:[#allocation32_spill] sm:$0xff] }
 0x452   : > { %2640 = vmatprep.subr.mxu0 %v7987_v13  ;;  %2717 = vmatprep.subr.mxu1 %v7990_v22  ;;  %v10998_v13 = vld [vmem:[#allocation33_spill] sm:$0xff]  ;;  %v10999_v22 = vld [vmem:[#allocation34_spill] sm:$0xff] }
 0x453   : > { %2641 = vmatpush1.msra.mxu0 %v7993_v16  ;;  %2718 = vmatpush1.msra.mxu1 %v7996_v5  ;;  %v11000_v16 = vld [vmem:[#allocation35_spill] sm:$0xff]  ;;  %v11001_v5 = vld [vmem:[#allocation36_spill] sm:$0xff] }
 0x454   : > { %2642 = vmatprep.subr.mxu0 %v7999_v60  ;;  %2719 = vmatprep.subr.mxu1 %v8002_v19  ;;  %v11002_v60 = vld [vmem:[#allocation37_spill] sm:$0xff]  ;;  %v11003_v19 = vld [vmem:[#allocation38_spill] sm:$0xff] }
 0x455   : > { %2643 = vmatpush1.msra.mxu0 %v8005_v17  ;;  %2720 = vmatpush1.msra.mxu1 %v8008_v23  ;;  %v11004_v17 = vld [vmem:[#allocation39_spill] sm:$0xff]  ;;  %v11005_v23 = vld [vmem:[#allocation40_spill] sm:$0xff] }
 0x456   : > { %2644 = vmatprep.subr.mxu0 %v10988_v44  ;;  %2721 = vmatprep.subr.mxu1 %v10989_v2  ;;  %v11035_v44 = vmov 2   ;;  %v11036_v2 = vmov 1  }
 0x457   : > { %2645 = vmatpush1.msra.mxu0 %v10990_v48  ;;  %2722 = vmatpush1.msra.mxu1 %v10991_v25  ;;  %v11037_v48 = vmov 3   ;;  %v776_v25 = vpop.permute.xlu1 %775 }
 0x458   : > { %2646 = vmatprep.subr.mxu0 %v10992_v14  ;;  %2723 = vmatprep.subr.mxu1 %v10993_v40  ;;  %v554_v40 = vpop.permute.xlu0 %553 }
 0x459   : > { %2647 = vmatpush1.msra.mxu0 %v10994_v46  ;;  %2724 = vmatpush1.msra.mxu1 %v10995_v10  ;;  %v11038_v46 = vld [vmem:[#allocation64_spill] sm:$0xff] }
 0x45a   : > { %2648 = vmatprep.subr.mxu0 %v10996_v39  ;;  %2725 = vmatprep.subr.mxu1 %v10997_v28  ;;  %v644_v10 = vmul.f32 %v11038_v46, %v554_v40  ;;  %v11039_v39 = vld [vmem:[#allocation65_spill] sm:$0xff] }
 0x45b   : > { %2649 = vmatpush1.msra.mxu0 %v10998_v13  ;;  %2726 = vmatpush1.msra.mxu1 %v10999_v22  ;;  %v559_v14 = vpop.permute.xlu1 %558  ;;  %v645_v28 = vmul.f32 %v11039_v39, %v554_v40  ;;  %v11040_v22 = vld [vmem:[#allocation67_spill] sm:$0xff] }
 0x45c   : > { %2650 = vmatprep.subr.mxu0 %v11000_v16  ;;  %2727 = vmatprep.subr.mxu1 %v11001_v5  ;;  %v859_v16 = vmul.f32 %v11040_v22, %v776_v25  ;;  %v648_v5 = vmul.f32 %v11038_v46, %v559_v14 }
 0x45d   : > { %2651 = vmatpush1.msra.mxu0 %v11002_v60  ;;  %2728 = vmatpush1.msra.mxu1 %v11003_v19  ;;  %v11041_v60 = vld [vmem:[#allocation66_spill] sm:$0xff] }
 0x45e   : > { %2652 = vmatprep.subr.mxu0 %v11004_v17  ;;  %2729 = vmatprep.subr.mxu1 %v11005_v23  ;;  %v708_v19 = vadd.f32 %v644_v10, %v11041_v60  ;;  %v991_v17 = vpop.permute.xlu0 %990  ;;  %v11042_v23 = vld [vmem:[#allocation69_spill] sm:$0xff] }
 0x45f   : > { %2653 = vmatpush1.msra.mxu0 %v11006_v3  ;;  %2730 = vmatpush1.msra.mxu1 %v11007_v59  ;;  %v8473_v13 = vpop.permute.xlu1 %779  ;;  %v860_v3 = vmul.f32 %v11042_v23, %v776_v25  ;;  %v649_v59 = vmul.f32 %v11039_v39, %v559_v14 }
 0x460   : > { %2654 = vmatprep.subr.mxu0 %v11008_v0  ;;  %2731 = vmatprep.subr.mxu1 %v11009_v42  ;;  %v11043_v0 = vld [vmem:[#allocation68_spill] sm:$0xff] }
 0x461   : > { %2655 = vmatpush1.msra.mxu0 %v11010_v58  ;;  %2732 = vmatpush1.msra.mxu1 %v11011_v62  ;;  %v709_v42 = vadd.f32 %v645_v28, %v11043_v0  ;;  %v712_v58 = vadd.f32 %v648_v5, %v11041_v60  ;;  %v863_v62 = vmul.f32 %v11040_v22, %v8473_v13 }
 0x462   : > { %2656 = vmatprep.subr.mxu0 %v11012_v47  ;;  %2733 = vmatprep.subr.mxu1 %v11013_v63  ;;  %v11044_v47 = vld [vmem:[#allocation71_spill] sm:$0xff]  ;;  %v647_v28 = vmul.f32 %v7714_v53, %v554_v40 }
 0x463   : > { %2657 = vmatpush1.msra.mxu0 %v11014_v35  ;;  %2734 = vmatpush1.msra.mxu1 %v11015_v21  ;;  %v1074_v63 = vmul.f32 %v11044_v47, %v991_v17  ;;  %v923_v35 = vadd.f32 %v859_v16, %v708_v19  ;;  %v8485_v21 = vpop.permute.xlu1 %1205 }
 0x464   : > { %2658 = vmatprep.subr.mxu0 %v11016_v51  ;;  %2735 = vmatprep.subr.mxu1 %v11017_v50  ;;  %v8487_v51 = vpop.permute.xlu0 %994  ;;  %v713_v50 = vadd.f32 %v649_v59, %v11043_v0 }
 0x465   : > { %2659 = vmatpush1.msra.mxu0 %v11018_v57  ;;  %2736 = vmatpush1.msra.mxu1 %v11019_v24  ;;  %v864_v57 = vmul.f32 %v11042_v23, %v8473_v13  ;;  %v11045_v24 = vld [vmem:[#allocation72_spill] sm:$0xff] }
 0x466   : > { %2660 = vmatprep.subr.mxu0 %v11020_v43  ;;  %2737 = vmatprep.subr.mxu1 %v11021_v12  ;;  %v1075_v43 = vmul.f32 %v11045_v24, %v991_v17  ;;  %v924_v12 = vadd.f32 %v860_v3, %v709_v42  ;;  %v862_v3 = vmul.f32 %v7743_v52, %v776_v25 }
 0x467   : > { %2661 = vmatpush1.msra.mxu0 %v11022_v34  ;;  %2738 = vmatpush1.msra.mxu1 %v11023_v31  ;;  %v646_v34 = vmul.f32 %v10874_v27, %v554_v40  ;;  %v1078_v31 = vmul.f32 %v11044_v47, %v8487_v51  ;;  %v1076_v40 = vmul.f32 %v7736_v33, %v991_v17 }
 0x468   : > { %2662 = vmatprep.subr.mxu0 %v11024_v7  ;;  %2739 = vmatprep.subr.mxu1 %v11025_v15  ;;  %v1138_v7 = vadd.f32 %v1074_v63, %v923_v35  ;;  %v11046_v15 = vld [vmem:[#allocation75_spill] sm:$0xff] }
 0x469   : > { %2663 = vmatpush1.msra.mxu0 %v11026_v11  ;;  %2740 = vmatpush1.msra.mxu1 %v11027_v20  ;;  %v1289_v11 = vmul.f32 %v11046_v15, %v8485_v21  ;;  %v927_v20 = vadd.f32 %v863_v62, %v712_v58 }
 0x46a   : > { %2664 = vmatprep.subr.mxu0 %v11028_v4  ;;  %2741 = vmatprep.subr.mxu1 %v11029_v55  ;;  %v8498_v4 = vpop.permute.xlu1 %1209  ;;  %v1079_v55 = vmul.f32 %v11045_v24, %v8487_v51 }
 0x46b   : > { %2665 = vmatpush1.msra.mxu0 %v11030_v45  ;;  %2698 = vmatprep.mubr.f32.mxu0 %v10797_v54  ;;  %v1139_v45 = vadd.f32 %v1075_v43, %v924_v12  ;;  %v1353_v16 = vadd.f32 %v1289_v11, %v1138_v7  ;;  %v1142_v5 = vadd.f32 %v1078_v31, %v927_v20 }
 0x46c   : > { %2742 = vmatpush1.msra.mxu1 %v11031_v6  ;;  %2775 = vmatprep.mubr.f32.mxu1 %v10797_v54  ;;  %v1290_v6 = vmul.f32 %v7703_v1, %v8485_v21  ;;  %v1293_v19 = vmul.f32 %v11046_v15, %v8498_v4  ;;  %v1294_v63 = vmul.f32 %v7703_v1, %v8498_v4 }
 0x46d   : > { %2856 = vmatprep.subr.mxu0 %v11032_v36  ;;  %2933 = vmatprep.subr.mxu1 %v11033_v9  ;;  %v928_v36 = vadd.f32 %v864_v57, %v713_v50  ;;  %v861_v9 = vmul.f32 %v7717_v41, %v776_v25  ;;  %v865_v50 = vmul.f32 %v7717_v41, %v8473_v13 }
 0x46e   : > { %6242 = vset.pattern.permute.xlu1 %v11034_v49  ;;  %6243 = vset.pattern.permute.xlu0 %v11035_v44  ;;  %v1354_v58 = vadd.f32 %v1290_v6, %v1139_v45  ;;  %v711_v12 = vadd.f32 %v647_v28, %v7725_v37  ;;  %v1357_v31 = vadd.f32 %v1293_v19, %v1142_v5 }
 0x46f   : > { %568 = vperm.xlu1 %6242, %v479_v38   ;;  %998 = vperm.xlu0 %6243, %v478_v26   ;;  %v1143_v62 = vadd.f32 %v1079_v55, %v928_v36  ;;  %v651_v7 = vmul.f32 %v7714_v53, %v559_v14  ;;  %v1077_v11 = vmul.f32 %v7749_v61, %v991_v17 }
 0x470   : > { %v926_v5 = vadd.f32 %v862_v3, %v711_v12  ;;  %v1081_v3 = vmul.f32 %v7749_v61, %v8487_v51 }
 0x471   : > { %v1358_v36 = vadd.f32 %v1294_v63, %v1143_v62  ;;  %v715_v17 = vadd.f32 %v651_v7, %v7725_v37 }
 0x473   : > { %6244 = vset.pattern.permute.xlu1 %v11036_v2  ;;  %1002 = vperm.xlu0 %6243, %v479_v38  }
 0x474   : > { %787 = vperm.xlu1 %6244, %v479_v38  }
 0x477   : > { %6246 = vset.pattern.permute.xlu0 %v11034_v49 }
 0x478   : > { %6245 = vset.pattern.permute.xlu1 %v11037_v48 }
 0x479   : > { %1213 = vperm.xlu1 %6245, %v478_v26   ;;  %v650_v26 = vmul.f32 %v10874_v27, %v559_v14 }
 0x47d   : > { %1217 = vperm.xlu1 %6245, %v479_v38   ;;  %v11047_v38 = vld [vmem:[#allocation76_spill] sm:$0xff] }
 0x47e   : > { %v710_v10 = vadd.f32 %v646_v34, %v11047_v38  ;;  %v714_v35 = vadd.f32 %v650_v26, %v11047_v38  ;;  %v1080_v26 = vmul.f32 %v7736_v33, %v8487_v51 }
 0x480   : > { %v925_v57 = vadd.f32 %v861_v9, %v710_v10  ;;  %v1291_v10 = vmul.f32 %v7752_v56, %v8485_v21  ;;  %v929_v28 = vadd.f32 %v865_v50, %v714_v35  ;;  %v1292_v35 = vmul.f32 %v7768_v32, %v8485_v21 }
 0x481   : > { %6247 = vset.pattern.permute.xlu1 %v11036_v2 }
 0x482   : > { %v1140_v9 = vadd.f32 %v1076_v40, %v925_v57  ;;  %v1144_v63 = vadd.f32 %v1080_v26, %v929_v28  ;;  %v1295_v40 = vmul.f32 %v7752_v56, %v8498_v4  ;;  %v1141_v57 = vadd.f32 %v1077_v11, %v926_v5 }
 0x484   : > { %v1355_v62 = vadd.f32 %v1291_v10, %v1140_v9 }
 0x50a   : > { %v2478_v59 = vpop.f32.mrf.mxu0  ;;  %v2555_v55 = vpop.f32.mrf.mxu1 }
 0x50b   : > { %v2566_v42 = vadd.f32 %v2478_v59, %v1353_v16  ;;  %v866_v59 = vmul.f32 %v7743_v52, %v8473_v13  ;;  %v2568_v50 = vadd.f32 %v2555_v55, %v1355_v62  ;;  %v1359_v13 = vadd.f32 %v1295_v40, %v1144_v63 }
 0x50c   : > { %v2480_v43 = vpop.f32.mrf.mxu0 }
 0x50d   : > { %v5950_v34 = vmul.f32 -1.442695, %v2566_v42  ;;  %v2567_v25 = vadd.f32 %v2480_v43, %v1354_v58  ;;  %v2557_v42 = vpop.f32.mrf.mxu1  ;;  %v930_v43 = vadd.f32 %v866_v59, %v715_v17 }
 0x50e   : > { %v2484_v20 = vpop.f32.mrf.mxu0 }
 0x50f   : > { %6387 = vpow2.f32 %v5950_v34  ;;  %v5951_v45 = vmul.f32 -1.442695, %v2567_v25  ;;  %v2570_v6 = vadd.f32 %v2484_v20, %v1357_v31  ;;  %v2561_v12 = vpop.f32.mrf.mxu1  ;;  %v1356_v34 = vadd.f32 %v1292_v35, %v1141_v57 }
 0x510   : > { %v2486_v16 = vpop.f32.mrf.mxu0  ;;  %v5952_v25 = vmul.f32 -1.442695, %v2568_v50  ;;  %v2572_v31 = vadd.f32 %v2561_v12, %v1359_v13  ;;  %v1145_v7 = vadd.f32 %v1081_v3, %v930_v43  ;;  %v1296_v20 = vmul.f32 %v7768_v32, %v8498_v4 }
 0x511   : > { %6389 = vpow2.f32 %v5951_v45  ;;  %v5953_v14 = vmul.f32 -1.442695, %v2570_v6  ;;  %v2571_v19 = vadd.f32 %v2486_v16, %v1358_v36  ;;  %v2569_v11 = vadd.f32 %v2557_v42, %v1356_v34  ;;  %v2563_v36 = vpop.f32.mrf.mxu1 }
 0x512   : > { %v5955_v26 = vmul.f32 -1.442695, %v2572_v31  ;;  %v1360_v9 = vadd.f32 %v1296_v20, %v1145_v7  ;;  %v8551_v7 = vld [vmem:[#allocation9 + $0x1e0] sm:$0xff]  ;;  %v8554_v20 = vld [vmem:[#allocation9 + $0x1f0] sm:$0xff] }
 0x513   : > { %6391 = vpow2.f32 %v5953_v14  ;;  %v5954_v58 = vmul.f32 -1.442695, %v2571_v19 }
 0x514   : > { %v2573_v10 = vadd.f32 %v2563_v36, %v1360_v9  ;;  %v8568_v36 = vld [vmem:[#allocation9 + $0x1d0] sm:$0xff]  ;;  %v8577_v9 = vld [vmem:[#allocation9 + $0x1a0] sm:$0xff] }
 0x515   : > { %6393 = vpow2.f32 %v5954_v58 }
 0x516   : > { %6395 = vpow2.f32 %v5952_v25 }
 0x51c   : > { %v6388_v45 = vpop.eup %6387 }
 0x51d   : > { %v2592_v6 = vadd.f32 1.0, %v6388_v45  ;;  %v8557_v45 = vld [vmem:[#allocation9 + $0x1c8] sm:$0xff] }
 0x51e   : > { %v6390_v21 = vpop.eup %6389 }
 0x51f   : > { %6397 = vrcp.f32 %v2592_v6  ;;  %v2593_v51 = vadd.f32 1.0, %v6390_v21  ;;  %v8565_v6 = vld [vmem:[#allocation9 + $0x1c0] sm:$0xff]  ;;  %v8571_v21 = vld [vmem:[#allocation9 + $0x1a8] sm:$0xff] }
 0x520   : > { %v6392_v55 = vpop.eup %6391  ;;  %6399 = vtanh.f32 %v2569_v11  ;;  %v8562_v11 = vld [vmem:[#allocation9 + $0x1d8] sm:$0xff] }
 0x521   : > { %6401 = vrcp.f32 %v2593_v51  ;;  %v2595_v28 = vadd.f32 1.0, %v6392_v55  ;;  %v8580_v51 = vld [vmem:[#allocation9 + $0x1b0] sm:$0xff]  ;;  %v8583_v55 = vld [vmem:[#allocation9 + $0x188] sm:$0xff] }
 0x522   : > { %v6394_v16 = vpop.eup %6393  ;;  %6403 = vpow2.f32 %v5955_v26  ;;  %v8574_v26 = vld [vmem:[#allocation9 + $0x1b8] sm:$0xff] }
 0x523   : > { %6405 = vrcp.f32 %v2595_v28  ;;  %v2596_v5 = vadd.f32 1.0, %v6394_v16  ;;  %v6396_v4 = vpop.eup %6395  ;;  %v8589_v28 = vld [vmem:[#allocation9 + $0x180] sm:$0xff]  ;;  %v8592_v16 = vld [vmem:[#allocation9 + $0x190] sm:$0xff] }
 0x524   : > { %6407 = vtanh.f32 %v2573_v10  ;;  %v2594_v59 = vadd.f32 1.0, %v6396_v4  ;;  %v8586_v10 = vld [vmem:[#allocation9 + $0x198] sm:$0xff] }
 0x525   : > { %6409 = vrcp.f32 %v2596_v5  ;;  %v8595_v5 = vld [vmem:[#allocation9 + $0x168] sm:$0xff]  ;;  %v8598_v4 = vld [vmem:[#allocation9 + $0x178] sm:$0xff] }
 0x526   : > { %6411 = vrcp.f32 %v2594_v59  ;;  %v8610_v59 = vld [vmem:[#allocation9 + $0x158] sm:$0xff] }
 0x527   : > { %11051 = vst [vmem:[#allocation26_spill] sm:$0xff] %v8610_v59 }
 0x52c   : > { %v6398_v14 = vpop.eup %6397 }
 0x52d   : > { %v6400_v19 = vpop.eup %6399 }
 0x52e   : > { %v6402_v17 = vpop.eup %6401  ;;  %v2614_v62 = vmul.f32 %v6400_v19, %v6398_v14  ;;  %v8601_v14 = vld [vmem:[#allocation9 + $0x160] sm:$0xff]  ;;  %v8604_v19 = vld [vmem:[#allocation9 + $0x170] sm:$0xff] }
 0x52f   : > { %v6404_v42 = vpop.eup %6403  ;;  %v2612_v58 = vmul.f32 %v6402_v17, %v8380_v8  ;;  %v8607_v17 = vld [vmem:[#allocation9 + $0x148] sm:$0xff] }
 0x530   : > { %v6406_v63 = vpop.eup %6405  ;;  %v2597_v3 = vadd.f32 1.0, %v6404_v42  ;;  %11050 = vst [vmem:[#allocation25_spill] sm:$0xff] %v8607_v17  ;;  %v8613_v42 = vld [vmem:[#allocation9 + $0x140] sm:$0xff] }
 0x531   : > { %v6408_v40 = vpop.eup %6407  ;;  %v8536_v57 = vadd.f32 %v2614_v62, %v2612_v58  ;;  %11052 = vst [vmem:[#allocation27_spill] sm:$0xff] %v8613_v42  ;;  %v8616_v58 = vld [vmem:[#allocation9 + $0x150] sm:$0xff]  ;;  %v8619_v62 = vld [vmem:[#allocation9 + $0x128] sm:$0xff] }
 0x532   : > { %v6410_v35 = vpop.eup %6409  ;;  %v2615_v43 = vmul.f32 %v6408_v40, %v6406_v63  ;;  %11053 = vst [vmem:[#allocation28_spill] sm:$0xff] %v8616_v58  ;;  %11054 = vst [vmem:[#allocation29_spill] sm:$0xff] %v8619_v62  ;;  %v8622_v63 = vld [vmem:[#allocation9 + $0x138] sm:$0xff]  ;;  %v8625_v40 = vld [vmem:[#allocation9 + $0x120] sm:$0xff] }
 0x533   : > { %6413 = vtanh.f32 %v8536_v57  ;;  %v2613_v50 = vmul.f32 %v6410_v35, %v8384_v29  ;;  %v6412_v13 = vpop.eup %6411  ;;  %11055 = vst [vmem:[#allocation30_spill] sm:$0xff] %v8622_v63  ;;  %11056 = vst [vmem:[#allocation31_spill] sm:$0xff] %v8625_v40  ;;  %v8628_v35 = vld [vmem:[#allocation9 + $0x130] sm:$0xff] }
 0x534   : > { %6415 = vrcp.f32 %v2597_v3  ;;  %11057 = vst [vmem:[#allocation32_spill] sm:$0xff] %v8628_v35  ;;  %v8631_v3 = vld [vmem:[#allocation9 + $0x108] sm:$0xff] }
 0x535   : > { %v8540_v12 = vadd.f32 %v2615_v43, %v2613_v50  ;;  %11058 = vst [vmem:[#allocation33_spill] sm:$0xff] %v8631_v3  ;;  %v8634_v50 = vld [vmem:[#allocation9 + $0x118] sm:$0xff]  ;;  %v8637_v43 = vld [vmem:[#allocation9 + $0x100] sm:$0xff] }
 0x536   : > { %11059 = vst [vmem:[#allocation34_spill] sm:$0xff] %v8634_v50  ;;  %11060 = vst [vmem:[#allocation35_spill] sm:$0xff] %v8637_v43 }
 0x537   : > { %6417 = vtanh.f32 %v8540_v12 }
 0x540   : > { %v6414_v8 = vpop.eup %6413 }
 0x541   : > { %v8543_v34 = vmul.f32 %v6414_v8, %v6412_v13  ;;  %v6416_v25 = vpop.eup %6415  ;;  %v8640_v13 = vld [vmem:[#allocation9 + $0x110] sm:$0xff]  ;;  %v8643_v8 = vld [vmem:[#allocation9 + $0xe8] sm:$0xff] }
 0x542   : > { %11061 = vst [vmem:[#allocation36_spill] sm:$0xff] %v8640_v13  ;;  %11062 = vst [vmem:[#allocation37_spill] sm:$0xff] %v8643_v8 }
 0x543   : > { %11048 = vst [vmem:[#allocation23_spill] sm:$0xff] %v8543_v34  ;;  %2699 = vmatmul.mubr.f32.vlgmr.msra.gmra.mxu0 %v8543_v34  ;;  %2776 = vmatmul.mubr.f32.vlgmr.msra.gmra.mxu1 %v8543_v34  ;;  %v8655_v34 = vld [vmem:[#allocation9 + $0xc8] sm:$0xff] }
 0x544   : > { %v6418_v31 = vpop.eup %6417  ;;  %2704 = vmatprep.mubr.f32.mxu0 %v10797_v54  ;;  %2781 = vmatprep.mubr.f32.mxu1 %v10797_v54  ;;  %11066 = vst [vmem:[#allocation41_spill] sm:$0xff] %v8655_v34 }
 0x545   : > { %v8549_v29 = vmul.f32 %v6418_v31, %v6416_v25  ;;  %2857 = vmatpush1.msra.mxu0 %v8551_v7  ;;  %2934 = vmatpush1.msra.mxu1 %v8554_v20  ;;  %v8646_v25 = vld [vmem:[#allocation9 + $0xf8] sm:$0xff]  ;;  %v8649_v31 = vld [vmem:[#allocation9 + $0xe0] sm:$0xff] }
 0x546   : > { %2858 = vmatprep.subr.mxu0 %v8557_v45  ;;  %2935 = vmatprep.subr.mxu1 %v8562_v11  ;;  %11063 = vst [vmem:[#allocation38_spill] sm:$0xff] %v8646_v25  ;;  %11064 = vst [vmem:[#allocation39_spill] sm:$0xff] %v8649_v31 }
 0x547   : > { %11049 = vst [vmem:[#allocation24_spill] sm:$0xff] %v8549_v29  ;;  %2705 = vmatmul.mubr.f32.gmra.mxu0 %v8549_v29  ;;  %2782 = vmatmul.mubr.f32.gmra.mxu1 %v8549_v29  ;;  %v8652_v29 = vld [vmem:[#allocation9 + $0xf0] sm:$0xff] }
 0x548   : > { %2859 = vmatpush1.msra.mxu0 %v8565_v6  ;;  %2936 = vmatpush1.msra.mxu1 %v8568_v36  ;;  %11065 = vst [vmem:[#allocation40_spill] sm:$0xff] %v8652_v29 }
 0x549   : > { %2860 = vmatprep.subr.mxu0 %v8571_v21  ;;  %2937 = vmatprep.subr.mxu1 %v8574_v26 }
 0x54a   : > { %2861 = vmatpush1.msra.mxu0 %v8577_v9  ;;  %2938 = vmatpush1.msra.mxu1 %v8580_v51 }
 0x54b   : > { %2862 = vmatprep.subr.mxu0 %v8583_v55  ;;  %2939 = vmatprep.subr.mxu1 %v8586_v10 }
 0x54c   : > { %2863 = vmatpush1.msra.mxu0 %v8589_v28  ;;  %2940 = vmatpush1.msra.mxu1 %v8592_v16 }
 0x54d   : > { %2864 = vmatprep.subr.mxu0 %v8595_v5  ;;  %2941 = vmatprep.subr.mxu1 %v8598_v4 }
 0x54e   : > { %2865 = vmatpush1.msra.mxu0 %v8601_v14  ;;  %2942 = vmatpush1.msra.mxu1 %v8604_v19 }
 0x54f   : > { %2866 = vmatprep.subr.mxu0 %v8607_v17  ;;  %2943 = vmatprep.subr.mxu1 %v8610_v59 }
 0x550   : > { %2867 = vmatpush1.msra.mxu0 %v8613_v42  ;;  %2944 = vmatpush1.msra.mxu1 %v8616_v58 }
 0x551   : > { %2868 = vmatprep.subr.mxu0 %v8619_v62  ;;  %2945 = vmatprep.subr.mxu1 %v8622_v63 }
 0x552   : > { %2869 = vmatpush1.msra.mxu0 %v8625_v40  ;;  %2946 = vmatpush1.msra.mxu1 %v8628_v35 }
 0x553   : > { %2870 = vmatprep.subr.mxu0 %v8631_v3  ;;  %2947 = vmatprep.subr.mxu1 %v8634_v50 }
 0x554   : > { %2871 = vmatpush1.msra.mxu0 %v8637_v43  ;;  %2948 = vmatpush1.msra.mxu1 %v8640_v13 }
 0x555   : > { %2872 = vmatprep.subr.mxu0 %v8643_v8  ;;  %2949 = vmatprep.subr.mxu1 %v8646_v25  ;;  %v8664_v25 = vld [vmem:[#allocation9 + $0xd0] sm:$0xff] }
 0x556   : > { %2873 = vmatpush1.msra.mxu0 %v8649_v31  ;;  %2950 = vmatpush1.msra.mxu1 %v8652_v29  ;;  %11069 = vst [vmem:[#allocation44_spill] sm:$0xff] %v8664_v25  ;;  %v8667_v31 = vld [vmem:[#allocation9 + $0xa8] sm:$0xff]  ;;  %v8670_v29 = vld [vmem:[#allocation9 + $0xb8] sm:$0xff] }
 0x557   : > { %2874 = vmatprep.subr.mxu0 %v8655_v34  ;;  %2951 = vmatprep.subr.mxu1 %v8658_v30  ;;  %11070 = vst [vmem:[#allocation45_spill] sm:$0xff] %v8667_v31  ;;  %11071 = vst [vmem:[#allocation46_spill] sm:$0xff] %v8670_v29  ;;  %v8673_v34 = vld [vmem:[#allocation9 + $0xa0] sm:$0xff]  ;;  %v8676_v30 = vld [vmem:[#allocation9 + $0xb0] sm:$0xff] }
 0x558   : > { %2875 = vmatpush1.msra.mxu0 %v8661_v18  ;;  %2952 = vmatpush1.msra.mxu1 %v8664_v25  ;;  %11072 = vst [vmem:[#allocation47_spill] sm:$0xff] %v8673_v34  ;;  %11073 = vst [vmem:[#allocation48_spill] sm:$0xff] %v8676_v30  ;;  %v8679_v18 = vld [vmem:[#allocation9 + $0x88] sm:$0xff]  ;;  %v8682_v25 = vld [vmem:[#allocation9 + $0x98] sm:$0xff] }
 0x559   : > { %2876 = vmatprep.subr.mxu0 %v8667_v31  ;;  %2953 = vmatprep.subr.mxu1 %v8670_v29  ;;  %11074 = vst [vmem:[#allocation49_spill] sm:$0xff] %v8679_v18  ;;  %11075 = vst [vmem:[#allocation50_spill] sm:$0xff] %v8682_v25  ;;  %v8685_v31 = vld [vmem:[#allocation9 + $0x80] sm:$0xff]  ;;  %v8688_v29 = vld [vmem:[#allocation9 + $0x90] sm:$0xff] }
 0x55a   : > { %2877 = vmatpush1.msra.mxu0 %v8673_v34  ;;  %2954 = vmatpush1.msra.mxu1 %v8676_v30  ;;  %11076 = vst [vmem:[#allocation51_spill] sm:$0xff] %v8685_v31  ;;  %11077 = vst [vmem:[#allocation52_spill] sm:$0xff] %v8688_v29  ;;  %v8691_v34 = vld [vmem:[#allocation9 + $0x68] sm:$0xff]  ;;  %v8694_v30 = vld [vmem:[#allocation9 + $0x78] sm:$0xff] }
 0x55b   : > { %2878 = vmatprep.subr.mxu0 %v8679_v18  ;;  %2955 = vmatprep.subr.mxu1 %v8682_v25  ;;  %11078 = vst [vmem:[#allocation53_spill] sm:$0xff] %v8691_v34  ;;  %11079 = vst [vmem:[#allocation54_spill] sm:$0xff] %v8694_v30  ;;  %v8697_v18 = vld [vmem:[#allocation9 + $0x60] sm:$0xff]  ;;  %v8700_v25 = vld [vmem:[#allocation9 + $0x70] sm:$0xff] }
 0x55c   : > { %2879 = vmatpush1.msra.mxu0 %v8685_v31  ;;  %2956 = vmatpush1.msra.mxu1 %v8688_v29  ;;  %11080 = vst [vmem:[#allocation55_spill] sm:$0xff] %v8697_v18  ;;  %11081 = vst [vmem:[#allocation56_spill] sm:$0xff] %v8700_v25  ;;  %v8703_v31 = vld [vmem:[#allocation9 + $0x48] sm:$0xff]  ;;  %v8706_v29 = vld [vmem:[#allocation9 + $0x58] sm:$0xff] }
 0x55d   : > { %2880 = vmatprep.subr.mxu0 %v8691_v34  ;;  %2957 = vmatprep.subr.mxu1 %v8694_v30  ;;  %11082 = vst [vmem:[#allocation57_spill] sm:$0xff] %v8703_v31  ;;  %11083 = vst [vmem:[#allocation58_spill] sm:$0xff] %v8706_v29  ;;  %v8709_v34 = vld [vmem:[#allocation9 + $0x40] sm:$0xff]  ;;  %v8712_v30 = vld [vmem:[#allocation9 + $0x50] sm:$0xff] }
 0x55e   : > { %2881 = vmatpush1.msra.mxu0 %v8697_v18  ;;  %2958 = vmatpush1.msra.mxu1 %v8700_v25  ;;  %11084 = vst [vmem:[#allocation59_spill] sm:$0xff] %v8709_v34  ;;  %11085 = vst [vmem:[#allocation60_spill] sm:$0xff] %v8712_v30  ;;  %v8715_v18 = vld [vmem:[#allocation9 + $0x28] sm:$0xff]  ;;  %v8718_v25 = vld [vmem:[#allocation9 + $0x38] sm:$0xff] }
 0x55f   : > { %2882 = vmatprep.subr.mxu0 %v8703_v31  ;;  %2959 = vmatprep.subr.mxu1 %v8706_v29  ;;  %11086 = vst [vmem:[#allocation61_spill] sm:$0xff] %v8715_v18  ;;  %11087 = vst [vmem:[#allocation19_spill] sm:$0xff] %v8718_v25  ;;  %v8721_v31 = vld [vmem:[#allocation9 + $0x20] sm:$0xff]  ;;  %v8724_v29 = vld [vmem:[#allocation9 + $0x30] sm:$0xff] }
 0x560   : > { %2883 = vmatpush1.msra.mxu0 %v8709_v34  ;;  %2960 = vmatpush1.msra.mxu1 %v8712_v30  ;;  %11088 = vst [vmem:[#allocation20_spill] sm:$0xff] %v8721_v31  ;;  %11089 = vst [vmem:[#allocation74_spill] sm:$0xff] %v8724_v29  ;;  %v8727_v34 = vld [vmem:[#allocation9 + $0x8] sm:$0xff]  ;;  %v8730_v30 = vld [vmem:[#allocation9 + $0x18] sm:$0xff] }
 0x561   : > { %2884 = vmatprep.subr.mxu0 %v8715_v18  ;;  %2961 = vmatprep.subr.mxu1 %v8718_v25  ;;  %11090 = vst [vmem:[#allocation79_spill] sm:$0xff] %v8727_v34  ;;  %11091 = vst [vmem:[#allocation80_spill] sm:$0xff] %v8730_v30  ;;  %v8733_v18 = vld [vmem:[#allocation9] sm:$0xff] }
 0x562   : > { %2885 = vmatpush1.msra.mxu0 %v8721_v31  ;;  %2962 = vmatpush1.msra.mxu1 %v8724_v29  ;;  %11092 = vst [vmem:[#allocation81_spill] sm:$0xff] %v8733_v18  ;;  %v8737_v31 = vld [vmem:[#allocation9 + $0x10] sm:$0xff]  ;;  %v6897_v29 = vld [vmem:[#allocation9 + $0x1e8] sm:$0xff]  ;;  %v480_v25 = vld [vmem:[%s7333_s15 + $0x60] sm:$0xff] }
 0x563   : > { %2886 = vmatprep.subr.mxu0 %v8727_v34  ;;  %2963 = vmatprep.subr.mxu1 %v8730_v30  ;;  %11093 = vst [vmem:[#allocation82_spill] sm:$0xff] %v8737_v31  ;;  %v6898_v34 = vld [vmem:[#allocation9 + $0x1f8] sm:$0xff]  ;;  %v481_v30 = vld [vmem:[%s7333_s15 + $0x68] sm:$0xff] }
 0x564   : > { %2887 = vmatpush1.msra.mxu0 %v8733_v18  ;;  %2920 = vmatprep.mubr.f32.mxu0 %v10797_v54 }
 0x565   : > { %2964 = vmatpush1.msra.mxu1 %v8737_v31  ;;  %2997 = vmatprep.mubr.f32.mxu1 %v10797_v54  ;;  %v564_v31 = vpop.permute.xlu0 %563 }
 0x566   : > { %3078 = vmatprep.subr.mxu0 %v6897_v29  ;;  %3155 = vmatprep.subr.mxu1 %v6898_v34  ;;  %v784_v34 = vpop.permute.xlu1 %783  ;;  %v652_v18 = vmul.f32 %v11038_v46, %v564_v31 }
 0x567   : > { %791 = vperm.xlu1 %6247, %v480_v25   ;;  %573 = vperm.xlu0 %6246, %v480_v25   ;;  %v867_v13 = vmul.f32 %v11040_v22, %v784_v34 }
 0x56a   : > { %v569_v29 = vpop.permute.xlu1 %568 }
 0x56b   : > { %6248 = vset.pattern.permute.xlu1 %v11034_v49  ;;  %6249 = vset.pattern.permute.xlu0 %v11035_v44  ;;  %v653_v44 = vmul.f32 %v11039_v39, %v564_v31  ;;  %v656_v43 = vmul.f32 %v11038_v46, %v569_v29  ;;  %v658_v42 = vmul.f32 %v10874_v27, %v569_v29 }
 0x56c   : > { %578 = vperm.xlu1 %6248, %v481_v30   ;;  %1006 = vperm.xlu0 %6249, %v480_v25  }
 0x56d   : > { %v720_v50 = vadd.f32 %v656_v43, %v11041_v60  ;;  %v654_v43 = vmul.f32 %v10874_v27, %v564_v31 }
 0x56e   : > { %v8751_v8 = vpop.permute.xlu1 %787 }
 0x56f   : > { %v871_v3 = vmul.f32 %v11040_v22, %v8751_v8  ;;  %v872_v62 = vmul.f32 %v11042_v23, %v8751_v8 }
 0x570   : > { %6250 = vset.pattern.permute.xlu1 %v11036_v2  ;;  %1010 = vperm.xlu0 %6249, %v481_v30  }
 0x571   : > { %795 = vperm.xlu1 %6250, %v481_v30  }
 0x572   : > { %v8763_v63 = vpop.permute.xlu1 %1213 }
 0x574   : > { %6252 = vset.pattern.permute.xlu0 %v11034_v49  ;;  %v716_v49 = vadd.f32 %v652_v18, %v11041_v60 }
 0x575   : > { %6251 = vset.pattern.permute.xlu1 %v11037_v48  ;;  %v999_v48 = vpop.permute.xlu0 %998 }
 0x576   : > { %1221 = vperm.xlu1 %6251, %v480_v25   ;;  %v657_v25 = vmul.f32 %v11039_v39, %v569_v29  ;;  %v1082_v35 = vmul.f32 %v11044_v47, %v999_v48  ;;  %v931_v40 = vadd.f32 %v867_v13, %v716_v49  ;;  %v1083_v39 = vmul.f32 %v11045_v24, %v999_v48  ;;  %v8776_v58 = vpop.permute.xlu1 %1217 }
 0x577   : > { %v1297_v49 = vmul.f32 %v11046_v15, %v8763_v63  ;;  %v935_v13 = vadd.f32 %v871_v3, %v720_v50  ;;  %v1301_v50 = vmul.f32 %v11046_v15, %v8776_v58 }
 0x578   : > { %v721_v18 = vadd.f32 %v657_v25, %v11043_v0  ;;  %v1146_v22 = vadd.f32 %v1082_v35, %v931_v40  ;;  %v718_v40 = vadd.f32 %v654_v43, %v11047_v38  ;;  %v655_v35 = vmul.f32 %v7714_v53, %v564_v31 }
 0x579   : > { %v8765_v46 = vpop.permute.xlu0 %1002  ;;  %v873_v43 = vmul.f32 %v7717_v41, %v8751_v8 }
 0x57a   : > { %1225 = vperm.xlu1 %6251, %v481_v30   ;;  %v868_v30 = vmul.f32 %v11042_v23, %v784_v34  ;;  %v1086_v60 = vmul.f32 %v11044_v47, %v8765_v46  ;;  %v1087_v25 = vmul.f32 %v11045_v24, %v8765_v46  ;;  %v1298_v23 = vmul.f32 %v7703_v1, %v8763_v63 }
 0x57b   : > { %v1361_v47 = vadd.f32 %v1297_v49, %v1146_v22  ;;  %v870_v24 = vmul.f32 %v7743_v52, %v784_v34  ;;  %v1084_v22 = vmul.f32 %v7736_v33, %v999_v48  ;;  %v719_v49 = vadd.f32 %v655_v35, %v7725_v37 }
 0x57c   : > { %v1150_v3 = vadd.f32 %v1086_v60, %v935_v13 }
 0x57e   : > { %6253 = vset.pattern.permute.xlu1 %v11036_v2  ;;  %v717_v2 = vadd.f32 %v653_v44, %v11043_v0  ;;  %v1365_v15 = vadd.f32 %v1301_v50, %v1150_v3  ;;  %v934_v3 = vadd.f32 %v870_v24, %v719_v49  ;;  %v1089_v24 = vmul.f32 %v7749_v61, %v8765_v46 }
 0x580   : > { %v932_v44 = vadd.f32 %v868_v30, %v717_v2  ;;  %v936_v2 = vadd.f32 %v872_v62, %v721_v18  ;;  %v869_v30 = vmul.f32 %v7717_v41, %v784_v34  ;;  %v1302_v62 = vmul.f32 %v7703_v1, %v8776_v58 }
 0x581   : > { %v722_v18 = vadd.f32 %v658_v42, %v11047_v38  ;;  %v1088_v38 = vmul.f32 %v7736_v33, %v8765_v46 }
 0x582   : > { %v1147_v0 = vadd.f32 %v1083_v39, %v932_v44  ;;  %v1151_v17 = vadd.f32 %v1087_v25, %v936_v2  ;;  %v933_v60 = vadd.f32 %v869_v30, %v718_v40  ;;  %v1299_v40 = vmul.f32 %v7752_v56, %v8763_v63 }
 0x583   : > { %v937_v35 = vadd.f32 %v873_v43, %v722_v18  ;;  %v1300_v18 = vmul.f32 %v7768_v32, %v8763_v63 }
 0x584   : > { %v1362_v59 = vadd.f32 %v1298_v23, %v1147_v0  ;;  %v659_v23 = vmul.f32 %v7714_v53, %v569_v29  ;;  %v1085_v0 = vmul.f32 %v7749_v61, %v999_v48  ;;  %v1148_v30 = vadd.f32 %v1084_v22, %v933_v60 }
 0x585   : > { %v1303_v22 = vmul.f32 %v7752_v56, %v8776_v58 }
 0x586   : > { %v723_v48 = vadd.f32 %v659_v23, %v7725_v37  ;;  %v1149_v60 = vadd.f32 %v1085_v0, %v934_v3 }
 0x603   : > { %v2700_v39 = vpop.f32.mrf.mxu0  ;;  %v2777_v25 = vpop.f32.mrf.mxu1 }
 0x604   : > { %v2788_v44 = vadd.f32 %v2700_v39, %v1361_v47  ;;  %v1366_v39 = vadd.f32 %v1302_v62, %v1151_v17  ;;  %v1363_v62 = vadd.f32 %v1299_v40, %v1148_v30 }
 0x605   : > { %v2702_v31 = vpop.f32.mrf.mxu0 }
 0x606   : > { %v5956_v13 = vmul.f32 -1.442695, %v2788_v44  ;;  %v2789_v34 = vadd.f32 %v2702_v31, %v1362_v59  ;;  %v874_v44 = vmul.f32 %v7743_v52, %v8751_v8  ;;  %v1152_v31 = vadd.f32 %v1088_v38, %v937_v35 }
 0x607   : > { %v2706_v47 = vpop.f32.mrf.mxu0  ;;  %v2790_v43 = vadd.f32 %v2777_v25, %v1363_v62  ;;  %v1304_v38 = vmul.f32 %v7768_v32, %v8776_v58 }
 0x608   : > { %6419 = vpow2.f32 %v5956_v13  ;;  %v5957_v42 = vmul.f32 -1.442695, %v2789_v34  ;;  %v2792_v2 = vadd.f32 %v2706_v47, %v1365_v15  ;;  %v2779_v15 = vpop.f32.mrf.mxu1  ;;  %v938_v49 = vadd.f32 %v874_v44, %v723_v48 }
 0x609   : > { %v2708_v59 = vpop.f32.mrf.mxu0  ;;  %v1367_v8 = vadd.f32 %v1303_v22, %v1152_v31  ;;  %v1364_v34 = vadd.f32 %v1300_v18, %v1149_v60  ;;  %v5958_v23 = vmul.f32 -1.442695, %v2790_v43 }
 0x60a   : > { %6421 = vpow2.f32 %v5957_v42  ;;  %v5959_v29 = vmul.f32 -1.442695, %v2792_v2  ;;  %v2793_v50 = vadd.f32 %v2708_v59, %v1366_v39  ;;  %v2783_v13 = vpop.f32.mrf.mxu1  ;;  %v1153_v42 = vadd.f32 %v1089_v24, %v938_v49 }
 0x60b   : > { %v2794_v47 = vadd.f32 %v2783_v13, %v1367_v8  ;;  %v2791_v0 = vadd.f32 %v2779_v15, %v1364_v34 }
 0x60c   : > { %6423 = vpow2.f32 %v5959_v29  ;;  %v5960_v17 = vmul.f32 -1.442695, %v2793_v50  ;;  %v2785_v30 = vpop.f32.mrf.mxu1  ;;  %v1368_v35 = vadd.f32 %v1304_v38, %v1153_v42 }
 0x60d   : > { %v5961_v40 = vmul.f32 -1.442695, %v2794_v47 }
 0x60e   : > { %6425 = vpow2.f32 %v5960_v17  ;;  %v2795_v59 = vadd.f32 %v2785_v30, %v1368_v35  ;;  %v11115_v30 = vld [vmem:[#allocation46_spill] sm:$0xff]  ;;  %v11118_v35 = vld [vmem:[#allocation49_spill] sm:$0xff] }
 0x60f   : > { %6427 = vpow2.f32 %v5958_v23 }
 0x615   : > { %v6420_v2 = vpop.eup %6419 }
 0x616   : > { %v2814_v39 = vadd.f32 1.0, %v6420_v2  ;;  %v11112_v2 = vld [vmem:[#allocation43_spill] sm:$0xff] }
 0x617   : > { %v6422_v63 = vpop.eup %6421 }
 0x618   : > { %6429 = vrcp.f32 %v2814_v39  ;;  %v2815_v46 = vadd.f32 1.0, %v6422_v63  ;;  %v11114_v39 = vld [vmem:[#allocation45_spill] sm:$0xff]  ;;  %v11116_v63 = vld [vmem:[#allocation47_spill] sm:$0xff] }
 0x619   : > { %v6424_v25 = vpop.eup %6423  ;;  %6431 = vtanh.f32 %v2791_v0  ;;  %v11113_v0 = vld [vmem:[#allocation44_spill] sm:$0xff] }
 0x61a   : > { %6433 = vrcp.f32 %v2815_v46  ;;  %v2817_v3 = vadd.f32 1.0, %v6424_v25  ;;  %v11119_v46 = vld [vmem:[#allocation50_spill] sm:$0xff]  ;;  %v11120_v25 = vld [vmem:[#allocation51_spill] sm:$0xff] }
 0x61b   : > { %v6426_v29 = vpop.eup %6425  ;;  %6435 = vpow2.f32 %v5961_v40  ;;  %v11117_v40 = vld [vmem:[#allocation48_spill] sm:$0xff] }
 0x61c   : > { %6437 = vrcp.f32 %v2817_v3  ;;  %v2818_v50 = vadd.f32 1.0, %v6426_v29  ;;  %v6428_v58 = vpop.eup %6427  ;;  %v11122_v3 = vld [vmem:[#allocation53_spill] sm:$0xff]  ;;  %v11123_v29 = vld [vmem:[#allocation54_spill] sm:$0xff] }
 0x61d   : > { %6439 = vtanh.f32 %v2795_v59  ;;  %v2816_v17 = vadd.f32 1.0, %v6428_v58  ;;  %v11121_v59 = vld [vmem:[#allocation52_spill] sm:$0xff] }
 0x61e   : > { %6441 = vrcp.f32 %v2818_v50  ;;  %v11124_v50 = vld [vmem:[#allocation55_spill] sm:$0xff]  ;;  %v11125_v58 = vld [vmem:[#allocation56_spill] sm:$0xff] }
 0x61f   : > { %6443 = vrcp.f32 %v2816_v17  ;;  %v11129_v17 = vld [vmem:[#allocation60_spill] sm:$0xff] }
 0x625   : > { %v6430_v48 = vpop.eup %6429 }
 0x626   : > { %v6432_v44 = vpop.eup %6431 }
 0x627   : > { %v6434_v15 = vpop.eup %6433  ;;  %v2836_v22 = vmul.f32 %v6432_v44, %v6430_v48  ;;  %v11126_v48 = vld [vmem:[#allocation57_spill] sm:$0xff]  ;;  %v11127_v44 = vld [vmem:[#allocation58_spill] sm:$0xff] }
 0x628   : > { %v6436_v62 = vpop.eup %6435  ;;  %v2834_v31 = vmul.f32 %v6434_v15, %v8536_v57  ;;  %v11128_v15 = vld [vmem:[#allocation59_spill] sm:$0xff] }
 0x629   : > { %v6438_v60 = vpop.eup %6437  ;;  %v2819_v49 = vadd.f32 1.0, %v6436_v62  ;;  %v11130_v62 = vld [vmem:[#allocation61_spill] sm:$0xff] }
 0x62a   : > { %v6440_v18 = vpop.eup %6439  ;;  %v8814_v24 = vadd.f32 %v2836_v22, %v2834_v31  ;;  %v11131_v31 = vld [vmem:[#allocation19_spill] sm:$0xff]  ;;  %v11132_v22 = vld [vmem:[#allocation20_spill] sm:$0xff] }
 0x62b   : > { %v6442_v43 = vpop.eup %6441  ;;  %v2837_v8 = vmul.f32 %v6440_v18, %v6438_v60  ;;  %v11133_v60 = vld [vmem:[#allocation74_spill] sm:$0xff]  ;;  %v11134_v18 = vld [vmem:[#allocation79_spill] sm:$0xff] }
 0x62c   : > { %6445 = vtanh.f32 %v8814_v24  ;;  %v2835_v13 = vmul.f32 %v6442_v43, %v8540_v12  ;;  %v6444_v23 = vpop.eup %6443  ;;  %v11135_v43 = vld [vmem:[#allocation80_spill] sm:$0xff] }
 0x62d   : > { %6447 = vrcp.f32 %v2819_v49  ;;  %v11136_v49 = vld [vmem:[#allocation81_spill] sm:$0xff] }
 0x62e   : > { %v8818_v34 = vadd.f32 %v2837_v8, %v2835_v13  ;;  %v11137_v13 = vld [vmem:[#allocation82_spill] sm:$0xff] }
 0x62f   : > { %v3372_v8 = vld [vmem:[#allocation12 + $0x1e8] sm:$0xff] }
 0x630   : > { %6449 = vtanh.f32 %v8818_v34 }
 0x639   : > { %v6446_v57 = vpop.eup %6445 }
 0x63a   : > { %v8821_v47 = vmul.f32 %v6446_v57, %v6444_v23  ;;  %v6448_v42 = vpop.eup %6447  ;;  %v3374_v23 = vld [vmem:[#allocation12 + $0x1f8] sm:$0xff]  ;;  %v482_v57 = vld [vmem:[%s7333_s15 + $0x70] sm:$0xff] }
 0x63b   : > { %799 = vperm.xlu1 %6253, %v482_v57   ;;  %583 = vperm.xlu0 %6252, %v482_v57  }
 0x63c   : > { %2921 = vmatmul.mubr.f32.vlgmr.msra.gmra.mxu0 %v8821_v47  ;;  %2998 = vmatmul.mubr.f32.vlgmr.msra.gmra.mxu1 %v8821_v47 }
 0x63d   : > { %v6450_v38 = vpop.eup %6449  ;;  %2926 = vmatprep.mubr.f32.mxu0 %v10797_v54  ;;  %3003 = vmatprep.mubr.f32.mxu1 %v10797_v54 }
 0x63e   : > { %v8827_v12 = vmul.f32 %v6450_v38, %v6448_v42  ;;  %3079 = vmatpush1.msra.mxu0 %v8551_v7  ;;  %3156 = vmatpush1.msra.mxu1 %v8554_v20  ;;  %v11094_v7 = vld [vmem:[#allocation25_spill] sm:$0xff]  ;;  %v11095_v20 = vld [vmem:[#allocation26_spill] sm:$0xff]  ;;  %v792_v42 = vpop.permute.xlu1 %791  ;;  %v483_v38 = vld [vmem:[%s7333_s15 + $0x78] sm:$0xff] }
 0x63f   : > { %3080 = vmatprep.subr.mxu0 %v8557_v45  ;;  %3157 = vmatprep.subr.mxu1 %v8562_v11  ;;  %v11096_v45 = vld [vmem:[#allocation27_spill] sm:$0xff]  ;;  %v11097_v11 = vld [vmem:[#allocation28_spill] sm:$0xff] }
 0x640   : > { %2927 = vmatmul.mubr.f32.gmra.mxu0 %v8827_v12  ;;  %3004 = vmatmul.mubr.f32.gmra.mxu1 %v8827_v12 }
 0x641   : > { %3081 = vmatpush1.msra.mxu0 %v8565_v6  ;;  %3158 = vmatpush1.msra.mxu1 %v8568_v36  ;;  %v11098_v6 = vld [vmem:[#allocation29_spill] sm:$0xff]  ;;  %v11099_v36 = vld [vmem:[#allocation30_spill] sm:$0xff] }
 0x642   : > { %3082 = vmatprep.subr.mxu0 %v8571_v21  ;;  %3159 = vmatprep.subr.mxu1 %v8574_v26  ;;  %v11100_v21 = vld [vmem:[#allocation31_spill] sm:$0xff]  ;;  %v11101_v26 = vld [vmem:[#allocation32_spill] sm:$0xff] }
 0x643   : > { %3083 = vmatpush1.msra.mxu0 %v8577_v9  ;;  %3160 = vmatpush1.msra.mxu1 %v8580_v51  ;;  %v11102_v9 = vld [vmem:[#allocation33_spill] sm:$0xff]  ;;  %v11103_v51 = vld [vmem:[#allocation34_spill] sm:$0xff] }
 0x644   : > { %3084 = vmatprep.subr.mxu0 %v8583_v55  ;;  %3161 = vmatprep.subr.mxu1 %v8586_v10  ;;  %v11104_v55 = vld [vmem:[#allocation35_spill] sm:$0xff]  ;;  %v11105_v10 = vld [vmem:[#allocation36_spill] sm:$0xff] }
 0x645   : > { %3085 = vmatpush1.msra.mxu0 %v8589_v28  ;;  %3162 = vmatpush1.msra.mxu1 %v8592_v16  ;;  %v11106_v28 = vld [vmem:[#allocation37_spill] sm:$0xff]  ;;  %v11107_v16 = vld [vmem:[#allocation38_spill] sm:$0xff] }
 0x646   : > { %3086 = vmatprep.subr.mxu0 %v8595_v5  ;;  %3163 = vmatprep.subr.mxu1 %v8598_v4  ;;  %v11108_v5 = vld [vmem:[#allocation39_spill] sm:$0xff]  ;;  %v11109_v4 = vld [vmem:[#allocation40_spill] sm:$0xff] }
 0x647   : > { %3087 = vmatpush1.msra.mxu0 %v8601_v14  ;;  %3164 = vmatpush1.msra.mxu1 %v8604_v19  ;;  %v11110_v14 = vld [vmem:[#allocation41_spill] sm:$0xff]  ;;  %v11111_v19 = vld [vmem:[#allocation42_spill] sm:$0xff] }
 0x648   : > { %3088 = vmatprep.subr.mxu0 %v11094_v7  ;;  %3165 = vmatprep.subr.mxu1 %v11095_v20  ;;  %v11138_v7 = vmov 0   ;;  %v11139_v20 = vmov 2  }
 0x649   : > { %3089 = vmatpush1.msra.mxu0 %v11096_v45  ;;  %3166 = vmatpush1.msra.mxu1 %v11097_v11  ;;  %v579_v45 = vpop.permute.xlu1 %578  ;;  %v574_v11 = vpop.permute.xlu0 %573 }
 0x64a   : > { %3090 = vmatprep.subr.mxu0 %v11098_v6  ;;  %3167 = vmatprep.subr.mxu1 %v11099_v36  ;;  %v11140_v6 = vmov 1   ;;  %v11141_v36 = vld [vmem:[#allocation64_spill] sm:$0xff] }
 0x64b   : > { %3091 = vmatpush1.msra.mxu0 %v11100_v21  ;;  %3168 = vmatpush1.msra.mxu1 %v11101_v26  ;;  %v660_v21 = vmul.f32 %v11141_v36, %v574_v11  ;;  %v11142_v26 = vld [vmem:[#allocation65_spill] sm:$0xff] }
 0x64c   : > { %3092 = vmatprep.subr.mxu0 %v11102_v9  ;;  %3169 = vmatprep.subr.mxu1 %v11103_v51  ;;  %v661_v9 = vmul.f32 %v11142_v26, %v574_v11 }
 0x64d   : > { %3093 = vmatpush1.msra.mxu0 %v11104_v55  ;;  %3170 = vmatpush1.msra.mxu1 %v11105_v10  ;;  %v8902_v51 = vpop.permute.xlu1 %795  ;;  %v11143_v55 = vmov 3   ;;  %v11144_v10 = vld [vmem:[#allocation67_spill] sm:$0xff] }
 0x64e   : > { %3094 = vmatprep.subr.mxu0 %v11106_v28  ;;  %3171 = vmatprep.subr.mxu1 %v11107_v16  ;;  %v875_v28 = vmul.f32 %v11144_v10, %v792_v42  ;;  %v664_v16 = vmul.f32 %v11141_v36, %v579_v45 }
 0x64f   : > { %3095 = vmatpush1.msra.mxu0 %v11108_v5  ;;  %3172 = vmatpush1.msra.mxu1 %v11109_v4  ;;  %v11145_v5 = vld [vmem:[#allocation66_spill] sm:$0xff] }
 0x650   : > { %3096 = vmatprep.subr.mxu0 %v11110_v14  ;;  %3173 = vmatprep.subr.mxu1 %v11111_v19  ;;  %v724_v4 = vadd.f32 %v660_v21, %v11145_v5  ;;  %v1007_v14 = vpop.permute.xlu0 %1006  ;;  %v11146_v19 = vld [vmem:[#allocation69_spill] sm:$0xff] }
 0x651   : > { %3097 = vmatpush1.msra.mxu0 %v11112_v2  ;;  %3174 = vmatpush1.msra.mxu1 %v11113_v0  ;;  %v876_v2 = vmul.f32 %v11146_v19, %v792_v42  ;;  %v665_v0 = vmul.f32 %v11142_v26, %v579_v45 }
 0x652   : > { %3098 = vmatprep.subr.mxu0 %v11114_v39  ;;  %3175 = vmatprep.subr.mxu1 %v11115_v30  ;;  %v11147_v39 = vld [vmem:[#allocation68_spill] sm:$0xff] }
 0x653   : > { %3099 = vmatpush1.msra.mxu0 %v11116_v63  ;;  %3176 = vmatpush1.msra.mxu1 %v11117_v40  ;;  %v725_v30 = vadd.f32 %v661_v9, %v11147_v39  ;;  %v728_v63 = vadd.f32 %v664_v16, %v11145_v5  ;;  %v879_v40 = vmul.f32 %v11144_v10, %v8902_v51 }
 0x654   : > { %3100 = vmatprep.subr.mxu0 %v11118_v35  ;;  %3177 = vmatprep.subr.mxu1 %v11119_v46  ;;  %v11148_v35 = vld [vmem:[#allocation71_spill] sm:$0xff] }
 0x655   : > { %3101 = vmatpush1.msra.mxu0 %v11120_v25  ;;  %3178 = vmatpush1.msra.mxu1 %v11121_v59  ;;  %v1090_v46 = vmul.f32 %v11148_v35, %v1007_v14  ;;  %v939_v25 = vadd.f32 %v875_v28, %v724_v4  ;;  %v8916_v59 = vpop.permute.xlu1 %1221 }
 0x656   : > { %3102 = vmatprep.subr.mxu0 %v11122_v3  ;;  %3179 = vmatprep.subr.mxu1 %v11123_v29  ;;  %v8918_v3 = vpop.permute.xlu0 %1010  ;;  %v729_v29 = vadd.f32 %v665_v0, %v11147_v39 }
 0x657   : > { %3103 = vmatpush1.msra.mxu0 %v11124_v50  ;;  %3180 = vmatpush1.msra.mxu1 %v11125_v58  ;;  %v880_v50 = vmul.f32 %v11146_v19, %v8902_v51  ;;  %v11149_v58 = vld [vmem:[#allocation72_spill] sm:$0xff] }
 0x658   : > { %3104 = vmatprep.subr.mxu0 %v11126_v48  ;;  %3181 = vmatprep.subr.mxu1 %v11127_v44  ;;  %v1091_v48 = vmul.f32 %v11149_v58, %v1007_v14  ;;  %v940_v44 = vadd.f32 %v876_v2, %v725_v30 }
 0x659   : > { %3105 = vmatpush1.msra.mxu0 %v11128_v15  ;;  %3182 = vmatpush1.msra.mxu1 %v11129_v17  ;;  %v662_v15 = vmul.f32 %v10874_v27, %v574_v11  ;;  %v1094_v17 = vmul.f32 %v11148_v35, %v8918_v3 }
 0x65a   : > { %3106 = vmatprep.subr.mxu0 %v11130_v62  ;;  %3183 = vmatprep.subr.mxu1 %v11131_v31  ;;  %v1154_v62 = vadd.f32 %v1090_v46, %v939_v25  ;;  %v11150_v31 = vld [vmem:[#allocation75_spill] sm:$0xff] }
 0x65b   : > { %3107 = vmatpush1.msra.mxu0 %v11132_v22  ;;  %3184 = vmatpush1.msra.mxu1 %v11133_v60  ;;  %v1305_v22 = vmul.f32 %v11150_v31, %v8916_v59  ;;  %v943_v60 = vadd.f32 %v879_v40, %v728_v63  ;;  %v881_v63 = vmul.f32 %v7717_v41, %v8902_v51 }
 0x65c   : > { %3108 = vmatprep.subr.mxu0 %v11134_v18  ;;  %3185 = vmatprep.subr.mxu1 %v11135_v43  ;;  %v8929_v18 = vpop.permute.xlu1 %1225  ;;  %v1095_v43 = vmul.f32 %v11149_v58, %v8918_v3 }
 0x65d   : > { %3109 = vmatpush1.msra.mxu0 %v11136_v49  ;;  %3186 = vmatpush1.msra.mxu1 %v11137_v13  ;;  %v1155_v49 = vadd.f32 %v1091_v48, %v940_v44  ;;  %v1306_v13 = vmul.f32 %v7703_v1, %v8916_v59  ;;  %v1158_v21 = vadd.f32 %v1094_v17, %v943_v60 }
 0x65e   : > { %3142 = vmatprep.mubr.f32.mxu0 %v10797_v54  ;;  %3219 = vmatprep.mubr.f32.mxu1 %v10797_v54  ;;  %v1309_v9 = vmul.f32 %v11150_v31, %v8929_v18  ;;  %v1310_v0 = vmul.f32 %v7703_v1, %v8929_v18  ;;  %v667_v48 = vmul.f32 %v7714_v53, %v579_v45 }
 0x65f   : > { %3397 = vmatprep.subr.mxu0 %v3372_v8  ;;  %3558 = vmatprep.subr.mxu1 %v3374_v23  ;;  %v944_v8 = vadd.f32 %v880_v50, %v729_v29  ;;  %v877_v23 = vmul.f32 %v7717_v41, %v792_v42  ;;  %v1370_v4 = vadd.f32 %v1306_v13, %v1155_v49 }
 0x660   : > { %6254 = vset.pattern.permute.xlu1 %v11138_v7  ;;  %6255 = vset.pattern.permute.xlu0 %v11139_v20  ;;  %v663_v20 = vmul.f32 %v7714_v53, %v574_v11  ;;  %v1092_v11 = vmul.f32 %v7736_v33, %v1007_v14  ;;  %v1373_v50 = vadd.f32 %v1309_v9, %v1158_v21 }
 0x661   : > { %588 = vperm.xlu1 %6254, %v483_v38   ;;  %1014 = vperm.xlu0 %6255, %v482_v57   ;;  %v1159_v2 = vadd.f32 %v1095_v43, %v944_v8  ;;  %v1093_v44 = vmul.f32 %v7749_v61, %v1007_v14  ;;  %v1096_v43 = vmul.f32 %v7736_v33, %v8918_v3 }
 0x662   : > { %v727_v25 = vadd.f32 %v663_v20, %v7725_v37  ;;  %v1307_v13 = vmul.f32 %v7752_v56, %v8916_v59  ;;  %v731_v14 = vadd.f32 %v667_v48, %v7725_v37  ;;  %v882_v20 = vmul.f32 %v7743_v52, %v8902_v51 }
 0x663   : > { %v1374_v60 = vadd.f32 %v1310_v0, %v1159_v2  ;;  %v1308_v2 = vmul.f32 %v7768_v32, %v8916_v59 }
 0x665   : > { %6256 = vset.pattern.permute.xlu1 %v11140_v6  ;;  %1018 = vperm.xlu0 %6255, %v483_v38   ;;  %v1369_v6 = vadd.f32 %v1305_v22, %v1154_v62 }
 0x666   : > { %803 = vperm.xlu1 %6256, %v483_v38  }
 0x669   : > { %6258 = vset.pattern.permute.xlu0 %v11143_v55 }
 0x66a   : > { %6257 = vset.pattern.permute.xlu1 %v11143_v55  ;;  %v878_v55 = vmul.f32 %v7743_v52, %v792_v42 }
 0x66b   : > { %1229 = vperm.xlu1 %6257, %v482_v57   ;;  %v666_v57 = vmul.f32 %v10874_v27, %v579_v45 }
 0x66f   : > { %1233 = vperm.xlu1 %6257, %v483_v38   ;;  %v11151_v38 = vld [vmem:[#allocation76_spill] sm:$0xff] }
 0x670   : > { %v726_v7 = vadd.f32 %v662_v15, %v11151_v38  ;;  %v730_v30 = vadd.f32 %v666_v57, %v11151_v38  ;;  %v942_v57 = vadd.f32 %v878_v55, %v727_v25  ;;  %v1097_v55 = vmul.f32 %v7749_v61, %v8918_v3 }
 0x672   : > { %v941_v40 = vadd.f32 %v877_v23, %v726_v7  ;;  %v945_v8 = vadd.f32 %v881_v63, %v730_v30  ;;  %v946_v30 = vadd.f32 %v882_v20, %v731_v14 }
 0x674   : > { %v1156_v49 = vadd.f32 %v1092_v11, %v941_v40  ;;  %v1161_v25 = vadd.f32 %v1097_v55, %v946_v30  ;;  %v3371_v30 = vld [vmem:[#allocation12 + $0x1e0] sm:$0xff] }
 0x676   : > { %v1371_v9 = vadd.f32 %v1307_v13, %v1156_v49 }
 0x6fc   : > { %v2922_v28 = vpop.f32.mrf.mxu0  ;;  %v2999_v17 = vpop.f32.mrf.mxu1 }
 0x6fd   : > { %v3010_v16 = vadd.f32 %v2922_v28, %v1369_v6  ;;  %v1160_v28 = vadd.f32 %v1096_v43, %v945_v8  ;;  %v3012_v0 = vadd.f32 %v2999_v17, %v1371_v9 }
 0x6fe   : > { %v2924_v46 = vpop.f32.mrf.mxu0  ;;  %v3001_v6 = vpop.f32.mrf.mxu1 }
 0x6ff   : > { %v5962_v29 = vmul.f32 -1.442695, %v3010_v16  ;;  %v3011_v42 = vadd.f32 %v2924_v46, %v1370_v4  ;;  %v1311_v16 = vmul.f32 %v7752_v56, %v8929_v18  ;;  %v1157_v4 = vadd.f32 %v1093_v44, %v942_v57 }
 0x700   : > { %v2928_v15 = vpop.f32.mrf.mxu0  ;;  %v3005_v63 = vpop.f32.mrf.mxu1  ;;  %v5964_v40 = vmul.f32 -1.442695, %v3012_v0 }
 0x701   : > { %6451 = vpow2.f32 %v5962_v29  ;;  %v5963_v62 = vmul.f32 -1.442695, %v3011_v42  ;;  %v3014_v22 = vadd.f32 %v2928_v15, %v1373_v50  ;;  %v1375_v51 = vadd.f32 %v1311_v16, %v1160_v28 }
 0x702   : > { %v2930_v23 = vpop.f32.mrf.mxu0  ;;  %v1372_v11 = vadd.f32 %v1308_v2, %v1157_v4  ;;  %v1312_v29 = vmul.f32 %v7768_v32, %v8929_v18  ;;  %v3007_v44 = vpop.f32.mrf.mxu1 }
 0x703   : > { %6453 = vpow2.f32 %v5963_v62  ;;  %v5965_v45 = vmul.f32 -1.442695, %v3014_v22  ;;  %v3015_v7 = vadd.f32 %v2930_v23, %v1374_v60  ;;  %v3016_v46 = vadd.f32 %v3005_v63, %v1375_v51  ;;  %v3373_v63 = vld [vmem:[#allocation12 + $0x1f0] sm:$0xff]  ;;  %v3368_v51 = vld [vmem:[#allocation12 + $0x1c8] sm:$0xff] }
 0x704   : > { %v3013_v50 = vadd.f32 %v3001_v6, %v1372_v11  ;;  %v1376_v62 = vadd.f32 %v1312_v29, %v1161_v25  ;;  %v3370_v11 = vld [vmem:[#allocation12 + $0x1d8] sm:$0xff]  ;;  %v3364_v29 = vld [vmem:[#allocation12 + $0x1a8] sm:$0xff] }
 0x705   : > { %6455 = vpow2.f32 %v5965_v45  ;;  %v5966_v21 = vmul.f32 -1.442695, %v3015_v7  ;;  %v5967_v15 = vmul.f32 -1.442695, %v3016_v46  ;;  %v3369_v46 = vld [vmem:[#allocation12 + $0x1d0] sm:$0xff] }
 0x706   : > { %v3017_v22 = vadd.f32 %v3007_v44, %v1376_v62  ;;  %v3365_v44 = vld [vmem:[#allocation12 + $0x1b0] sm:$0xff]  ;;  %v3359_v62 = vld [vmem:[#allocation12 + $0x180] sm:$0xff] }
 0x707   : > { %6457 = vpow2.f32 %v5966_v21 }
 0x708   : > { %6459 = vpow2.f32 %v5964_v40 }
 0x70e   : > { %v6452_v42 = vpop.eup %6451 }
 0x70f   : > { %v3036_v48 = vadd.f32 1.0, %v6452_v42  ;;  %v3366_v42 = vld [vmem:[#allocation12 + $0x1b8] sm:$0xff] }
 0x710   : > { %v6454_v59 = vpop.eup %6453 }
 0x711   : > { %6461 = vrcp.f32 %v3036_v48  ;;  %v3037_v3 = vadd.f32 1.0, %v6454_v59  ;;  %v3363_v48 = vld [vmem:[#allocation12 + $0x1a0] sm:$0xff]  ;;  %v3360_v59 = vld [vmem:[#allocation12 + $0x188] sm:$0xff] }
 0x712   : > { %v6456_v17 = vpop.eup %6455  ;;  %6463 = vtanh.f32 %v3013_v50 }
 0x713   : > { %6465 = vrcp.f32 %v3037_v3  ;;  %v3039_v60 = vadd.f32 1.0, %v6456_v17  ;;  %v3361_v3 = vld [vmem:[#allocation12 + $0x190] sm:$0xff]  ;;  %v3356_v17 = vld [vmem:[#allocation12 + $0x168] sm:$0xff] }
 0x714   : > { %v6458_v43 = vpop.eup %6457  ;;  %6467 = vpow2.f32 %v5967_v15  ;;  %v3362_v15 = vld [vmem:[#allocation12 + $0x198] sm:$0xff] }
 0x715   : > { %6469 = vrcp.f32 %v3039_v60  ;;  %v3040_v49 = vadd.f32 1.0, %v6458_v43  ;;  %v6460_v18 = vpop.eup %6459  ;;  %v3355_v60 = vld [vmem:[#allocation12 + $0x160] sm:$0xff]  ;;  %v3357_v43 = vld [vmem:[#allocation12 + $0x170] sm:$0xff] }
 0x716   : > { %6471 = vtanh.f32 %v3017_v22  ;;  %v3038_v57 = vadd.f32 1.0, %v6460_v18  ;;  %v3358_v22 = vld [vmem:[#allocation12 + $0x178] sm:$0xff] }
 0x717   : > { %6473 = vrcp.f32 %v3040_v49  ;;  %v3352_v49 = vld [vmem:[#allocation12 + $0x148] sm:$0xff]  ;;  %v3354_v18 = vld [vmem:[#allocation12 + $0x158] sm:$0xff] }
 0x718   : > { %6475 = vrcp.f32 %v3038_v57  ;;  %v3350_v57 = vld [vmem:[#allocation12 + $0x138] sm:$0xff] }
 0x71e   : > { %v6462_v13 = vpop.eup %6461 }
 0x71f   : > { %v6464_v8 = vpop.eup %6463 }
 0x720   : > { %v6466_v23 = vpop.eup %6465  ;;  %v3058_v14 = vmul.f32 %v6464_v8, %v6462_v13  ;;  %v3351_v13 = vld [vmem:[#allocation12 + $0x140] sm:$0xff]  ;;  %v3353_v8 = vld [vmem:[#allocation12 + $0x150] sm:$0xff] }
 0x721   : > { %v6468_v45 = vpop.eup %6467  ;;  %v3056_v7 = vmul.f32 %v6466_v23, %v8814_v24  ;;  %v3348_v23 = vld [vmem:[#allocation12 + $0x128] sm:$0xff] }
 0x722   : > { %v6470_v20 = vpop.eup %6469  ;;  %v3041_v28 = vadd.f32 1.0, %v6468_v45  ;;  %v3347_v45 = vld [vmem:[#allocation12 + $0x120] sm:$0xff] }
 0x723   : > { %v6472_v6 = vpop.eup %6471  ;;  %v8967_v21 = vadd.f32 %v3058_v14, %v3056_v7  ;;  %v3349_v7 = vld [vmem:[#allocation12 + $0x130] sm:$0xff]  ;;  %v3344_v14 = vld [vmem:[#allocation12 + $0x108] sm:$0xff] }
 0x724   : > { %v6474_v9 = vpop.eup %6473  ;;  %v3059_v4 = vmul.f32 %v6472_v6, %v6470_v20  ;;  %v3346_v20 = vld [vmem:[#allocation12 + $0x118] sm:$0xff]  ;;  %v3343_v6 = vld [vmem:[#allocation12 + $0x100] sm:$0xff] }
 0x725   : > { %6477 = vtanh.f32 %v8967_v21  ;;  %v3057_v16 = vmul.f32 %v6474_v9, %v8818_v34  ;;  %v6476_v55 = vpop.eup %6475  ;;  %v3367_v34 = vld [vmem:[#allocation12 + $0x1c0] sm:$0xff]  ;;  %v3345_v9 = vld [vmem:[#allocation12 + $0x110] sm:$0xff] }
 0x726   : > { %6479 = vrcp.f32 %v3041_v28  ;;  %v3340_v28 = vld [vmem:[#allocation12 + $0xe8] sm:$0xff] }
 0x727   : > { %v8971_v2 = vadd.f32 %v3059_v4, %v3057_v16  ;;  %v3342_v16 = vld [vmem:[#allocation12 + $0xf8] sm:$0xff]  ;;  %v3339_v4 = vld [vmem:[#allocation12 + $0xe0] sm:$0xff] }
 0x729   : > { %6481 = vtanh.f32 %v8971_v2 }
 0x732   : > { %v6478_v24 = vpop.eup %6477 }
 0x733   : > { %v8974_v0 = vmul.f32 %v6478_v24, %v6476_v55  ;;  %v6480_v40 = vpop.eup %6479  ;;  %v3341_v55 = vld [vmem:[#allocation12 + $0xf0] sm:$0xff]  ;;  %v3336_v24 = vld [vmem:[#allocation12 + $0xc8] sm:$0xff] }
 0x735   : > { %3143 = vmatmul.mubr.f32.vlgmr.msra.gmra.mxu0 %v8974_v0  ;;  %3220 = vmatmul.mubr.f32.vlgmr.msra.gmra.mxu1 %v8974_v0 }
 0x736   : > { %v6482_v25 = vpop.eup %6481  ;;  %3398 = vmatpush1.msra.mxu0 %v3371_v30  ;;  %3559 = vmatpush1.msra.mxu1 %v3373_v63  ;;  %v3338_v30 = vld [vmem:[#allocation12 + $0xd8] sm:$0xff]  ;;  %v3335_v63 = vld [vmem:[#allocation12 + $0xc0] sm:$0xff] }
 0x737   : > { %3399 = vmatprep.subr.mxu0 %v3368_v51  ;;  %3560 = vmatprep.subr.mxu1 %v3370_v11  ;;  %v8978_v50 = vmul.f32 %v6482_v25, %v6480_v40  ;;  %v3337_v51 = vld [vmem:[#allocation12 + $0xd0] sm:$0xff]  ;;  %v3332_v11 = vld [vmem:[#allocation12 + $0xa8] sm:$0xff]  ;;  %v3334_v40 = vld [vmem:[#allocation12 + $0xb8] sm:$0xff] }
 0x738   : > { %3400 = vmatpush1.msra.mxu0 %v3367_v34  ;;  %3561 = vmatpush1.msra.mxu1 %v3369_v46  ;;  %v3331_v34 = vld [vmem:[#allocation12 + $0xa0] sm:$0xff]  ;;  %v3333_v46 = vld [vmem:[#allocation12 + $0xb0] sm:$0xff]  ;;  %v3328_v25 = vld [vmem:[#allocation12 + $0x88] sm:$0xff] }
 0x739   : > { %3148 = vmatprep.mubr.f32.mxu0 %v10797_v54  ;;  %3225 = vmatprep.mubr.f32.mxu1 %v10797_v54 }
 0x73a   : > { %3401 = vmatprep.subr.mxu0 %v3364_v29  ;;  %3562 = vmatprep.subr.mxu1 %v3366_v42  ;;  %v3330_v29 = vld [vmem:[#allocation12 + $0x98] sm:$0xff]  ;;  %v3327_v42 = vld [vmem:[#allocation12 + $0x80] sm:$0xff] }
 0x73b   : > { %3149 = vmatmul.mubr.f32.gmra.mxu0 %v8978_v50  ;;  %3226 = vmatmul.mubr.f32.gmra.mxu1 %v8978_v50 }
 0x73c   : > { %3402 = vmatpush1.msra.mxu0 %v3363_v48  ;;  %3563 = vmatpush1.msra.mxu1 %v3365_v44  ;;  %v3329_v48 = vld [vmem:[#allocation12 + $0x90] sm:$0xff]  ;;  %v3324_v44 = vld [vmem:[#allocation12 + $0x68] sm:$0xff] }
 0x73d   : > { %3403 = vmatprep.subr.mxu0 %v3360_v59  ;;  %3564 = vmatprep.subr.mxu1 %v3362_v15  ;;  %v3326_v59 = vld [vmem:[#allocation12 + $0x78] sm:$0xff]  ;;  %v3323_v15 = vld [vmem:[#allocation12 + $0x60] sm:$0xff] }
 0x73e   : > { %3404 = vmatpush1.msra.mxu0 %v3359_v62  ;;  %3565 = vmatpush1.msra.mxu1 %v3361_v3  ;;  %v3325_v62 = vld [vmem:[#allocation12 + $0x70] sm:$0xff]  ;;  %v3320_v3 = vld [vmem:[#allocation12 + $0x48] sm:$0xff] }
 0x73f   : > { %3405 = vmatprep.subr.mxu0 %v3356_v17  ;;  %3566 = vmatprep.subr.mxu1 %v3358_v22  ;;  %v3322_v17 = vld [vmem:[#allocation12 + $0x58] sm:$0xff]  ;;  %v3319_v22 = vld [vmem:[#allocation12 + $0x40] sm:$0xff] }
 0x740   : > { %3406 = vmatpush1.msra.mxu0 %v3355_v60  ;;  %3567 = vmatpush1.msra.mxu1 %v3357_v43  ;;  %v3321_v60 = vld [vmem:[#allocation12 + $0x50] sm:$0xff]  ;;  %v3316_v43 = vld [vmem:[#allocation12 + $0x28] sm:$0xff] }
 0x741   : > { %3407 = vmatprep.subr.mxu0 %v3352_v49  ;;  %3568 = vmatprep.subr.mxu1 %v3354_v18  ;;  %v3318_v49 = vld [vmem:[#allocation12 + $0x38] sm:$0xff]  ;;  %v3315_v18 = vld [vmem:[#allocation12 + $0x20] sm:$0xff] }
 0x742   : > { %3408 = vmatpush1.msra.mxu0 %v3351_v13  ;;  %3569 = vmatpush1.msra.mxu1 %v3353_v8  ;;  %v3317_v13 = vld [vmem:[#allocation12 + $0x30] sm:$0xff]  ;;  %v3312_v8 = vld [vmem:[#allocation12 + $0x8] sm:$0xff] }
 0x743   : > { %3409 = vmatprep.subr.mxu0 %v3348_v23  ;;  %3570 = vmatprep.subr.mxu1 %v3350_v57  ;;  %v3314_v23 = vld [vmem:[#allocation12 + $0x18] sm:$0xff]  ;;  %v3311_v57 = vld [vmem:[#allocation12] sm:$0xff] }
 0x744   : > { %3410 = vmatpush1.msra.mxu0 %v3347_v45  ;;  %3571 = vmatpush1.msra.mxu1 %v3349_v7  ;;  %v3313_v45 = vld [vmem:[#allocation12 + $0x10] sm:$0xff]  ;;  %v11152_v7 = vld [vmem:[#allocation77_spill] sm:$0xff] }
 0x745   : > { %3411 = vmatprep.subr.mxu0 %v3344_v14  ;;  %3572 = vmatprep.subr.mxu1 %v3346_v20  ;;  %v11153_v14 = vld [vmem:[#allocation78_spill] sm:$0xff]  ;;  %v11154_v20 = vld [vmem:[#allocation21_spill] sm:$0xff] }
 0x746   : > { %3412 = vmatpush1.msra.mxu0 %v3343_v6  ;;  %3573 = vmatpush1.msra.mxu1 %v3345_v9  ;;  %v11155_v6 = vld [vmem:[#allocation22_spill] sm:$0xff]  ;;  %v11156_v9 = vld [vmem:[#allocation83_spill] sm:$0xff] }
 0x747   : > { %3413 = vmatprep.subr.mxu0 %v3340_v28  ;;  %3574 = vmatprep.subr.mxu1 %v3342_v16  ;;  %v11157_v28 = vld [vmem:[#allocation84_spill] sm:$0xff]  ;;  %v11158_v16 = vld [vmem:[#allocation85_spill] sm:$0xff] }
 0x748   : > { %3414 = vmatpush1.msra.mxu0 %v3339_v4  ;;  %3575 = vmatpush1.msra.mxu1 %v3341_v55  ;;  %v11159_v4 = vld [vmem:[#allocation86_spill] sm:$0xff]  ;;  %v11160_v55 = vld [vmem:[#allocation23_spill] sm:$0xff] }
 0x749   : > { %3415 = vmatprep.subr.mxu0 %v3336_v24  ;;  %3576 = vmatprep.subr.mxu1 %v3338_v30  ;;  %v11161_v24 = vld [vmem:[#allocation24_spill] sm:$0xff]  ;;  %v9040_v30 = vld [vmem:[#allocation14 + $0x1e0] sm:$0xff] }
 0x74a   : > { %3416 = vmatpush1.msra.mxu0 %v3335_v63  ;;  %3577 = vmatpush1.msra.mxu1 %v3337_v51  ;;  %v9053_v63 = vld [vmem:[#allocation14 + $0x1f0] sm:$0xff]  ;;  %v9056_v51 = vld [vmem:[#allocation14 + $0x1c0] sm:$0xff] }
 0x74b   : > { %3417 = vmatprep.subr.mxu0 %v3332_v11  ;;  %3578 = vmatprep.subr.mxu1 %v3334_v40  ;;  %v9063_v11 = vld [vmem:[#allocation14 + $0x1d0] sm:$0xff]  ;;  %v9065_v40 = vld [vmem:[#allocation14 + $0x1a8] sm:$0xff] }
 0x74c   : > { %3418 = vmatpush1.msra.mxu0 %v3331_v34  ;;  %3579 = vmatpush1.msra.mxu1 %v3333_v46  ;;  %v9068_v34 = vld [vmem:[#allocation14 + $0x1b8] sm:$0xff]  ;;  %v9071_v46 = vld [vmem:[#allocation14 + $0x1a0] sm:$0xff] }
 0x74d   : > { %3419 = vmatprep.subr.mxu0 %v3328_v25  ;;  %3580 = vmatprep.subr.mxu1 %v3330_v29  ;;  %v9074_v25 = vld [vmem:[#allocation14 + $0x1b0] sm:$0xff]  ;;  %v9077_v29 = vld [vmem:[#allocation14 + $0x188] sm:$0xff] }
 0x74e   : > { %3420 = vmatpush1.msra.mxu0 %v3327_v42  ;;  %3581 = vmatpush1.msra.mxu1 %v3329_v48  ;;  %v9080_v42 = vld [vmem:[#allocation14 + $0x198] sm:$0xff]  ;;  %v9083_v48 = vld [vmem:[#allocation14 + $0x180] sm:$0xff] }
 0x74f   : > { %3421 = vmatprep.subr.mxu0 %v3324_v44  ;;  %3582 = vmatprep.subr.mxu1 %v3326_v59  ;;  %v9086_v44 = vld [vmem:[#allocation14 + $0x190] sm:$0xff]  ;;  %v9089_v59 = vld [vmem:[#allocation14 + $0x168] sm:$0xff] }
 0x750   : > { %3422 = vmatpush1.msra.mxu0 %v3323_v15  ;;  %3583 = vmatpush1.msra.mxu1 %v3325_v62  ;;  %v9092_v15 = vld [vmem:[#allocation14 + $0x178] sm:$0xff]  ;;  %v9095_v62 = vld [vmem:[#allocation14 + $0x160] sm:$0xff] }
 0x751   : > { %3423 = vmatprep.subr.mxu0 %v3320_v3  ;;  %3584 = vmatprep.subr.mxu1 %v3322_v17  ;;  %11164 = vst [vmem:[#allocation27_spill] sm:$0xff] %v9095_v62  ;;  %v9098_v3 = vld [vmem:[#allocation14 + $0x170] sm:$0xff]  ;;  %v9101_v17 = vld [vmem:[#allocation14 + $0x148] sm:$0xff] }
 0x752   : > { %3424 = vmatpush1.msra.mxu0 %v3319_v22  ;;  %3585 = vmatpush1.msra.mxu1 %v3321_v60  ;;  %11165 = vst [vmem:[#allocation28_spill] sm:$0xff] %v9098_v3  ;;  %11166 = vst [vmem:[#allocation29_spill] sm:$0xff] %v9101_v17  ;;  %v9103_v22 = vld [vmem:[#allocation14 + $0x140] sm:$0xff]  ;;  %v9105_v60 = vld [vmem:[#allocation14 + $0x128] sm:$0xff] }
 0x753   : > { %3425 = vmatprep.subr.mxu0 %v3316_v43  ;;  %3586 = vmatprep.subr.mxu1 %v3318_v49  ;;  %11167 = vst [vmem:[#allocation30_spill] sm:$0xff] %v9103_v22  ;;  %11168 = vst [vmem:[#allocation31_spill] sm:$0xff] %v9105_v60  ;;  %v9109_v43 = vld [vmem:[#allocation14 + $0x120] sm:$0xff]  ;;  %v9112_v49 = vld [vmem:[#allocation14 + $0x108] sm:$0xff] }
 0x754   : > { %3426 = vmatpush1.msra.mxu0 %v3315_v18  ;;  %3587 = vmatpush1.msra.mxu1 %v3317_v13  ;;  %11169 = vst [vmem:[#allocation32_spill] sm:$0xff] %v9109_v43  ;;  %11170 = vst [vmem:[#allocation33_spill] sm:$0xff] %v9112_v49  ;;  %v9115_v18 = vld [vmem:[#allocation14 + $0x100] sm:$0xff]  ;;  %v9117_v13 = vld [vmem:[#allocation14 + $0x158] sm:$0xff] }
 0x755   : > { %3427 = vmatprep.subr.mxu0 %v3312_v8  ;;  %3588 = vmatprep.subr.mxu1 %v3314_v23  ;;  %11171 = vst [vmem:[#allocation34_spill] sm:$0xff] %v9115_v18  ;;  %11172 = vst [vmem:[#allocation35_spill] sm:$0xff] %v9117_v13  ;;  %v9119_v8 = vld [vmem:[#allocation14 + $0x150] sm:$0xff]  ;;  %v9122_v23 = vld [vmem:[#allocation14 + $0xe8] sm:$0xff] }
 0x756   : > { %3428 = vmatpush1.msra.mxu0 %v3311_v57  ;;  %3461 = vmatprep.mubr.f32.mxu0 %v10797_v54  ;;  %11173 = vst [vmem:[#allocation36_spill] sm:$0xff] %v9119_v8  ;;  %11174 = vst [vmem:[#allocation37_spill] sm:$0xff] %v9122_v23  ;;  %v9125_v57 = vld [vmem:[#allocation14 + $0x138] sm:$0xff] }
 0x757   : > { %3589 = vmatpush1.msra.mxu1 %v3313_v45  ;;  %3622 = vmatprep.mubr.f32.mxu1 %v10797_v54  ;;  %11175 = vst [vmem:[#allocation38_spill] sm:$0xff] %v9125_v57  ;;  %v9128_v45 = vld [vmem:[#allocation14 + $0xe0] sm:$0xff] }
 0x758   : > { %3462 = vmatmul.mubr.f32.vlgmr.msra.gmra.mxu0 %v11152_v7  ;;  %3623 = vmatmul.mubr.f32.vlgmr.msra.gmra.mxu1 %v11152_v7  ;;  %11176 = vst [vmem:[#allocation39_spill] sm:$0xff] %v9128_v45  ;;  %v9131_v7 = vld [vmem:[#allocation14 + $0x130] sm:$0xff] }
 0x759   : > { %3467 = vmatprep.mubr.f32.mxu0 %v10797_v54  ;;  %3628 = vmatprep.mubr.f32.mxu1 %v10797_v54  ;;  %11177 = vst [vmem:[#allocation40_spill] sm:$0xff] %v9131_v7 }
 0x75c   : > { %3468 = vmatmul.mubr.f32.gmra.mxu0 %v11153_v14  ;;  %3629 = vmatmul.mubr.f32.gmra.mxu1 %v11153_v14  ;;  %v9134_v14 = vld [vmem:[#allocation14 + $0xc8] sm:$0xff] }
 0x75d   : > { %3473 = vmatprep.mubr.f32.mxu0 %v10797_v54  ;;  %3634 = vmatprep.mubr.f32.mxu1 %v10797_v54  ;;  %11178 = vst [vmem:[#allocation41_spill] sm:$0xff] %v9134_v14 }
 0x760   : > { %3474 = vmatmul.mubr.f32.gmra.mxu0 %v11154_v20  ;;  %3635 = vmatmul.mubr.f32.gmra.mxu1 %v11154_v20  ;;  %v9137_v20 = vld [vmem:[#allocation14 + $0x118] sm:$0xff] }
 0x761   : > { %3479 = vmatprep.mubr.f32.mxu0 %v10797_v54  ;;  %3640 = vmatprep.mubr.f32.mxu1 %v10797_v54  ;;  %11179 = vst [vmem:[#allocation42_spill] sm:$0xff] %v9137_v20 }
 0x764   : > { %3480 = vmatmul.mubr.f32.gmra.mxu0 %v11155_v6  ;;  %3641 = vmatmul.mubr.f32.gmra.mxu1 %v11155_v6  ;;  %v9139_v6 = vld [vmem:[#allocation14 + $0x110] sm:$0xff] }
 0x765   : > { %3485 = vmatprep.mubr.f32.mxu0 %v10797_v54  ;;  %3646 = vmatprep.mubr.f32.mxu1 %v10797_v54  ;;  %11180 = vst [vmem:[#allocation43_spill] sm:$0xff] %v9139_v6 }
 0x768   : > { %3486 = vmatmul.mubr.f32.gmra.mxu0 %v11156_v9  ;;  %3647 = vmatmul.mubr.f32.gmra.mxu1 %v11156_v9  ;;  %v9142_v9 = vld [vmem:[#allocation14 + $0xc0] sm:$0xff] }
 0x769   : > { %3491 = vmatprep.mubr.f32.mxu0 %v10797_v54  ;;  %3652 = vmatprep.mubr.f32.mxu1 %v10797_v54  ;;  %11181 = vst [vmem:[#allocation44_spill] sm:$0xff] %v9142_v9 }
 0x76c   : > { %3492 = vmatmul.mubr.f32.gmra.mxu0 %v11157_v28  ;;  %3653 = vmatmul.mubr.f32.gmra.mxu1 %v11157_v28  ;;  %v9145_v28 = vld [vmem:[#allocation14 + $0xf8] sm:$0xff] }
 0x76d   : > { %3497 = vmatprep.mubr.f32.mxu0 %v10797_v54  ;;  %3658 = vmatprep.mubr.f32.mxu1 %v10797_v54  ;;  %11182 = vst [vmem:[#allocation45_spill] sm:$0xff] %v9145_v28 }
 0x770   : > { %3498 = vmatmul.mubr.f32.gmra.mxu0 %v11158_v16  ;;  %3659 = vmatmul.mubr.f32.gmra.mxu1 %v11158_v16  ;;  %v9148_v16 = vld [vmem:[#allocation14 + $0xa8] sm:$0xff] }
 0x771   : > { %3503 = vmatprep.mubr.f32.mxu0 %v10797_v54  ;;  %3664 = vmatprep.mubr.f32.mxu1 %v10797_v54  ;;  %11183 = vst [vmem:[#allocation46_spill] sm:$0xff] %v9148_v16 }
 0x774   : > { %3504 = vmatmul.mubr.f32.gmra.mxu0 %v11159_v4  ;;  %3665 = vmatmul.mubr.f32.gmra.mxu1 %v11159_v4  ;;  %v9151_v4 = vld [vmem:[#allocation14 + $0xf0] sm:$0xff] }
 0x775   : > { %3509 = vmatprep.mubr.f32.mxu0 %v10797_v54  ;;  %3670 = vmatprep.mubr.f32.mxu1 %v10797_v54  ;;  %11184 = vst [vmem:[#allocation47_spill] sm:$0xff] %v9151_v4 }
 0x778   : > { %3510 = vmatmul.mubr.f32.gmra.mxu0 %v11160_v55  ;;  %3671 = vmatmul.mubr.f32.gmra.mxu1 %v11160_v55  ;;  %v9154_v55 = vld [vmem:[#allocation14 + $0xa0] sm:$0xff] }
 0x779   : > { %3515 = vmatprep.mubr.f32.mxu0 %v10797_v54  ;;  %3676 = vmatprep.mubr.f32.mxu1 %v10797_v54  ;;  %11185 = vst [vmem:[#allocation48_spill] sm:$0xff] %v9154_v55 }
 0x77c   : > { %3516 = vmatmul.mubr.f32.gmra.mxu0 %v11161_v24  ;;  %3677 = vmatmul.mubr.f32.gmra.mxu1 %v11161_v24  ;;  %v9157_v24 = vld [vmem:[#allocation14 + $0xd8] sm:$0xff] }
 0x77d   : > { %3521 = vmatprep.mubr.f32.mxu0 %v10797_v54  ;;  %3682 = vmatprep.mubr.f32.mxu1 %v10797_v54  ;;  %11186 = vst [vmem:[#allocation49_spill] sm:$0xff] %v9157_v24 }
 0x780   : > { %3522 = vmatmul.mubr.f32.gmra.mxu0 %v8821_v47  ;;  %3683 = vmatmul.mubr.f32.gmra.mxu1 %v8821_v47  ;;  %v9038_v47 = vld [vmem:[#allocation14 + $0x1e8] sm:$0xff] }
 0x781   : > { %3527 = vmatprep.mubr.f32.mxu0 %v10797_v54  ;;  %3688 = vmatprep.mubr.f32.mxu1 %v10797_v54  ;;  %11162 = vst [vmem:[#allocation25_spill] sm:$0xff] %v9038_v47 }
 0x782   : > { %3859 = vmatprep.subr.mxu0 %v9038_v47 }
 0x783   : > { %3860 = vmatpush1.msra.mxu0 %v9040_v30 }
 0x784   : > { %3528 = vmatmul.mubr.f32.gmra.mxu0 %v8827_v12  ;;  %3689 = vmatmul.mubr.f32.gmra.mxu1 %v8827_v12  ;;  %v9048_v12 = vld [vmem:[#allocation14 + $0x1f8] sm:$0xff] }
 0x785   : > { %3533 = vmatprep.mubr.f32.mxu0 %v10797_v54  ;;  %3694 = vmatprep.mubr.f32.mxu1 %v10797_v54  ;;  %11163 = vst [vmem:[#allocation26_spill] sm:$0xff] %v9048_v12 }
 0x786   : > { %3936 = vmatprep.subr.mxu1 %v9048_v12 }
 0x787   : > { %3937 = vmatpush1.msra.mxu1 %v9053_v63 }
 0x788   : > { %3534 = vmatmul.mubr.f32.gmra.mxu0 %v8974_v0  ;;  %3695 = vmatmul.mubr.f32.gmra.mxu1 %v8974_v0  ;;  %v9050_v0 = vld [vmem:[#allocation14 + $0x1c8] sm:$0xff] }
 0x789   : > { %3539 = vmatprep.mubr.f32.mxu0 %v10797_v54  ;;  %3700 = vmatprep.mubr.f32.mxu1 %v10797_v54 }
 0x78a   : > { %3861 = vmatprep.subr.mxu0 %v9050_v0 }
 0x78b   : > { %3862 = vmatpush1.msra.mxu0 %v9056_v51 }
 0x78c   : > { %3540 = vmatmul.mubr.f32.gmra.mxu0 %v8978_v50  ;;  %3701 = vmatmul.mubr.f32.gmra.mxu1 %v8978_v50  ;;  %v9059_v50 = vld [vmem:[#allocation14 + $0x1d8] sm:$0xff] }
 0x78d   : > { %3545 = vmatprep.mubr.f32.mxu0 %v10797_v54  ;;  %3706 = vmatprep.mubr.f32.mxu1 %v10797_v54 }
 0x78e   : > { %3938 = vmatprep.subr.mxu1 %v9059_v50  ;;  %3863 = vmatprep.subr.mxu0 %v9065_v40 }
 0x78f   : > { %3939 = vmatpush1.msra.mxu1 %v9063_v11  ;;  %3864 = vmatpush1.msra.mxu0 %v9071_v46 }
 0x790   : > { %3940 = vmatprep.subr.mxu1 %v9068_v34  ;;  %3865 = vmatprep.subr.mxu0 %v9077_v29 }
 0x791   : > { %3941 = vmatpush1.msra.mxu1 %v9074_v25  ;;  %3866 = vmatpush1.msra.mxu0 %v9083_v48 }
 0x792   : > { %3942 = vmatprep.subr.mxu1 %v9080_v42  ;;  %3867 = vmatprep.subr.mxu0 %v9089_v59 }
 0x793   : > { %3943 = vmatpush1.msra.mxu1 %v9086_v44  ;;  %3868 = vmatpush1.msra.mxu0 %v9095_v62 }
 0x794   : > { %3944 = vmatprep.subr.mxu1 %v9092_v15  ;;  %3869 = vmatprep.subr.mxu0 %v9101_v17 }
 0x795   : > { %3945 = vmatpush1.msra.mxu1 %v9098_v3  ;;  %3870 = vmatpush1.msra.mxu0 %v9103_v22 }
 0x796   : > { %3871 = vmatprep.subr.mxu0 %v9105_v60  ;;  %3946 = vmatprep.subr.mxu1 %v9117_v13 }
 0x797   : > { %3872 = vmatpush1.msra.mxu0 %v9109_v43  ;;  %3947 = vmatpush1.msra.mxu1 %v9119_v8 }
 0x798   : > { %3873 = vmatprep.subr.mxu0 %v9112_v49  ;;  %3948 = vmatprep.subr.mxu1 %v9125_v57 }
 0x799   : > { %3874 = vmatpush1.msra.mxu0 %v9115_v18  ;;  %3949 = vmatpush1.msra.mxu1 %v9131_v7  ;;  %v9166_v18 = vld [vmem:[#allocation14 + $0x80] sm:$0xff] }
 0x79a   : > { %3875 = vmatprep.subr.mxu0 %v9122_v23  ;;  %3950 = vmatprep.subr.mxu1 %v9137_v20  ;;  %v9160_v23 = vld [vmem:[#allocation14 + $0x88] sm:$0xff]  ;;  %11189 = vst [vmem:[#allocation52_spill] sm:$0xff] %v9166_v18 }
 0x79b   : > { %3876 = vmatpush1.msra.mxu0 %v9128_v45  ;;  %3951 = vmatpush1.msra.mxu1 %v9139_v6  ;;  %11187 = vst [vmem:[#allocation50_spill] sm:$0xff] %v9160_v23  ;;  %v9163_v45 = vld [vmem:[#allocation14 + $0xd0] sm:$0xff]  ;;  %v9172_v6 = vld [vmem:[#allocation14 + $0x68] sm:$0xff] }
 0x79c   : > { %3877 = vmatprep.subr.mxu0 %v9134_v14  ;;  %3952 = vmatprep.subr.mxu1 %v9145_v28  ;;  %11188 = vst [vmem:[#allocation51_spill] sm:$0xff] %v9163_v45  ;;  %v9169_v14 = vld [vmem:[#allocation14 + $0xb8] sm:$0xff]  ;;  %11191 = vst [vmem:[#allocation54_spill] sm:$0xff] %v9172_v6  ;;  %v9178_v28 = vld [vmem:[#allocation14 + $0x60] sm:$0xff] }
 0x79d   : > { %3878 = vmatpush1.msra.mxu0 %v9142_v9  ;;  %3953 = vmatpush1.msra.mxu1 %v9151_v4  ;;  %11190 = vst [vmem:[#allocation53_spill] sm:$0xff] %v9169_v14  ;;  %v9175_v9 = vld [vmem:[#allocation14 + $0xb0] sm:$0xff]  ;;  %11193 = vst [vmem:[#allocation56_spill] sm:$0xff] %v9178_v28  ;;  %v9184_v4 = vld [vmem:[#allocation14 + $0x48] sm:$0xff] }
 0x79e   : > { %3879 = vmatprep.subr.mxu0 %v9148_v16  ;;  %3954 = vmatprep.subr.mxu1 %v9157_v24  ;;  %11192 = vst [vmem:[#allocation55_spill] sm:$0xff] %v9175_v9  ;;  %v9181_v16 = vld [vmem:[#allocation14 + $0x98] sm:$0xff]  ;;  %11195 = vst [vmem:[#allocation58_spill] sm:$0xff] %v9184_v4  ;;  %v9190_v24 = vld [vmem:[#allocation14 + $0x40] sm:$0xff] }
 0x79f   : > { %3880 = vmatpush1.msra.mxu0 %v9154_v55  ;;  %3955 = vmatpush1.msra.mxu1 %v9163_v45  ;;  %11194 = vst [vmem:[#allocation57_spill] sm:$0xff] %v9181_v16  ;;  %v9187_v55 = vld [vmem:[#allocation14 + $0x90] sm:$0xff]  ;;  %11197 = vst [vmem:[#allocation60_spill] sm:$0xff] %v9190_v24  ;;  %v9197_v45 = vld [vmem:[#allocation14 + $0x28] sm:$0xff] }
 0x7a0   : > { %3881 = vmatprep.subr.mxu0 %v9160_v23  ;;  %3956 = vmatprep.subr.mxu1 %v9169_v14  ;;  %11196 = vst [vmem:[#allocation59_spill] sm:$0xff] %v9187_v55  ;;  %v9193_v23 = vld [vmem:[#allocation14 + $0x78] sm:$0xff]  ;;  %11199 = vst [vmem:[#allocation19_spill] sm:$0xff] %v9197_v45  ;;  %v9203_v14 = vld [vmem:[#allocation14 + $0x20] sm:$0xff] }
 0x7a1   : > { %3882 = vmatpush1.msra.mxu0 %v9166_v18  ;;  %3957 = vmatpush1.msra.mxu1 %v9175_v9  ;;  %11198 = vst [vmem:[#allocation61_spill] sm:$0xff] %v9193_v23  ;;  %v9199_v18 = vld [vmem:[#allocation14 + $0x70] sm:$0xff]  ;;  %11201 = vst [vmem:[#allocation74_spill] sm:$0xff] %v9203_v14  ;;  %v9209_v9 = vld [vmem:[#allocation14 + $0x8] sm:$0xff] }
 0x7a2   : > { %3883 = vmatprep.subr.mxu0 %v9172_v6  ;;  %3958 = vmatprep.subr.mxu1 %v9181_v16  ;;  %11200 = vst [vmem:[#allocation20_spill] sm:$0xff] %v9199_v18  ;;  %v9205_v6 = vld [vmem:[#allocation14 + $0x58] sm:$0xff]  ;;  %11203 = vst [vmem:[#allocation80_spill] sm:$0xff] %v9209_v9  ;;  %v9215_v16 = vld [vmem:[#allocation14] sm:$0xff] }
 0x7a3   : > { %3884 = vmatpush1.msra.mxu0 %v9178_v28  ;;  %3959 = vmatpush1.msra.mxu1 %v9187_v55  ;;  %11202 = vst [vmem:[#allocation79_spill] sm:$0xff] %v9205_v6  ;;  %v9211_v28 = vld [vmem:[#allocation14 + $0x50] sm:$0xff]  ;;  %11205 = vst [vmem:[#allocation82_spill] sm:$0xff] %v9215_v16 }
 0x7a4   : > { %3885 = vmatprep.subr.mxu0 %v9184_v4  ;;  %3960 = vmatprep.subr.mxu1 %v9193_v23  ;;  %11204 = vst [vmem:[#allocation81_spill] sm:$0xff] %v9211_v28  ;;  %v9217_v4 = vld [vmem:[#allocation14 + $0x38] sm:$0xff]  ;;  %v9221_v55 = vld [vmem:[#allocation14 + $0x30] sm:$0xff] }
 0x7a5   : > { %3886 = vmatpush1.msra.mxu0 %v9190_v24  ;;  %3961 = vmatpush1.msra.mxu1 %v9199_v18  ;;  %11206 = vst [vmem:[#allocation64_spill] sm:$0xff] %v9217_v4  ;;  %11207 = vst [vmem:[#allocation65_spill] sm:$0xff] %v9221_v55  ;;  %v9225_v24 = vld [vmem:[#allocation14 + $0x18] sm:$0xff] }
 0x7a6   : > { %3887 = vmatprep.subr.mxu0 %v9197_v45  ;;  %3962 = vmatprep.subr.mxu1 %v9205_v6  ;;  %11208 = vst [vmem:[#allocation67_spill] sm:$0xff] %v9225_v24  ;;  %v9229_v45 = vld [vmem:[#allocation14 + $0x10] sm:$0xff] }
 0x7a7   : > { %3888 = vmatpush1.msra.mxu0 %v9203_v14  ;;  %3963 = vmatpush1.msra.mxu1 %v9211_v28  ;;  %11209 = vst [vmem:[#allocation66_spill] sm:$0xff] %v9229_v45  ;;  %v584_v28 = vpop.permute.xlu0 %583 }
 0x7a8   : > { %3889 = vmatprep.subr.mxu0 %v9209_v9  ;;  %3964 = vmatprep.subr.mxu1 %v9217_v4  ;;  %v800_v9 = vpop.permute.xlu1 %799  ;;  %v668_v6 = vmul.f32 %v11141_v36, %v584_v28  ;;  %v670_v8 = vmul.f32 %v10874_v27, %v584_v28  ;;  %v671_v22 = vmul.f32 %v7714_v53, %v584_v28 }
 0x7a9   : > { %3890 = vmatpush1.msra.mxu0 %v9215_v16  ;;  %3965 = vmatpush1.msra.mxu1 %v9221_v55  ;;  %v669_v16 = vmul.f32 %v11142_v26, %v584_v28  ;;  %v883_v18 = vmul.f32 %v11144_v10, %v800_v9 }
 0x7aa   : > { %4078 = vmatprep.subr.mxu0 %v9038_v47  ;;  %3966 = vmatprep.subr.mxu1 %v9225_v24  ;;  %v732_v55 = vadd.f32 %v668_v6, %v11145_v5  ;;  %v884_v24 = vmul.f32 %v11146_v19, %v800_v9  ;;  %v735_v28 = vadd.f32 %v671_v22, %v7725_v37 }
 0x7ab   : > { %3967 = vmatpush1.msra.mxu1 %v9229_v45  ;;  %v1015_v47 = vpop.permute.xlu0 %1014 }
 0x7ac   : > { %4155 = vmatprep.subr.mxu1 %v9048_v12  ;;  %v589_v14 = vpop.permute.xlu1 %588  ;;  %v733_v12 = vadd.f32 %v669_v16, %v11147_v39  ;;  %v1098_v20 = vmul.f32 %v11148_v35, %v1015_v47  ;;  %v947_v49 = vadd.f32 %v883_v18, %v732_v55  ;;  %v1099_v6 = vmul.f32 %v11149_v58, %v1015_v47 }
 0x7ad   : > { %v672_v45 = vmul.f32 %v11141_v36, %v589_v14  ;;  %v673_v23 = vmul.f32 %v11142_v26, %v589_v14  ;;  %v674_v13 = vmul.f32 %v10874_v27, %v589_v14  ;;  %v1101_v22 = vmul.f32 %v7749_v61, %v1015_v47 }
 0x7ae   : > { %v948_v60 = vadd.f32 %v884_v24, %v733_v12  ;;  %v1162_v18 = vadd.f32 %v1098_v20, %v947_v49  ;;  %v885_v24 = vmul.f32 %v7717_v41, %v800_v9 }
 0x7af   : > { %v736_v43 = vadd.f32 %v672_v45, %v11145_v5  ;;  %v9254_v36 = vpop.permute.xlu0 %1018  ;;  %v737_v16 = vadd.f32 %v673_v23, %v11147_v39  ;;  %v734_v39 = vadd.f32 %v670_v8, %v11151_v38  ;;  %v1100_v8 = vmul.f32 %v7736_v33, %v1015_v47 }
 0x7b0   : > { %v9238_v4 = vpop.permute.xlu1 %803  ;;  %v1102_v5 = vmul.f32 %v11148_v35, %v9254_v36  ;;  %v738_v27 = vadd.f32 %v674_v13, %v11151_v38 }
 0x7b1   : > { %v887_v57 = vmul.f32 %v11144_v10, %v9238_v4  ;;  %v888_v26 = vmul.f32 %v11146_v19, %v9238_v4  ;;  %v1163_v10 = vadd.f32 %v1099_v6, %v948_v60  ;;  %v1103_v19 = vmul.f32 %v11149_v58, %v9254_v36 }
 0x7b2   : > { %v949_v3 = vadd.f32 %v885_v24, %v734_v39  ;;  %v890_v47 = vmul.f32 %v7743_v52, %v9238_v4 }
 0x7b3   : > { %v951_v45 = vadd.f32 %v887_v57, %v736_v43  ;;  %v952_v20 = vadd.f32 %v888_v26, %v737_v16  ;;  %v886_v57 = vmul.f32 %v7743_v52, %v800_v9  ;;  %v675_v9 = vmul.f32 %v7714_v53, %v589_v14 }
 0x7b4   : > { %v9247_v7 = vpop.permute.xlu1 %1229 }
 0x7b5   : > { %v1313_v55 = vmul.f32 %v11150_v31, %v9247_v7  ;;  %v1314_v12 = vmul.f32 %v7703_v1, %v9247_v7  ;;  %v1166_v43 = vadd.f32 %v1102_v5, %v951_v45  ;;  %v1167_v26 = vadd.f32 %v1103_v19, %v952_v20 }
 0x7b6   : > { %v739_v53 = vadd.f32 %v675_v9, %v7725_v37 }
 0x7b7   : > { %v1377_v49 = vadd.f32 %v1313_v55, %v1162_v18  ;;  %v1378_v17 = vadd.f32 %v1314_v12, %v1163_v10  ;;  %v1164_v10 = vadd.f32 %v1100_v8, %v949_v3  ;;  %v1315_v12 = vmul.f32 %v7752_v56, %v9247_v7 }
 0x7b8   : > { %v1234_v23 = vpop.permute.xlu1 %1233  ;;  %v954_v37 = vadd.f32 %v890_v47, %v739_v53 }
 0x7b9   : > { %v1317_v60 = vmul.f32 %v11150_v31, %v1234_v23  ;;  %v1318_v58 = vmul.f32 %v7703_v1, %v1234_v23  ;;  %v889_v31 = vmul.f32 %v7717_v41, %v9238_v4  ;;  %v1104_v41 = vmul.f32 %v7736_v33, %v9254_v36 }
 0x7ba   : > { %v1379_v3 = vadd.f32 %v1315_v12, %v1164_v10  ;;  %v1316_v33 = vmul.f32 %v7768_v32, %v9247_v7 }
 0x7bb   : > { %v1381_v5 = vadd.f32 %v1317_v60, %v1166_v43  ;;  %v1382_v38 = vadd.f32 %v1318_v58, %v1167_v26  ;;  %v953_v13 = vadd.f32 %v889_v31, %v738_v27  ;;  %v1105_v43 = vmul.f32 %v7749_v61, %v9254_v36 }
 0x7bc   : > { %v1320_v58 = vmul.f32 %v7768_v32, %v1234_v23 }
 0x7f5   : > { %v3144_v35 = vpop.f32.mrf.mxu0  ;;  %v3221_v45 = vpop.f32.mrf.mxu1 }
 0x7f6   : > { %v3232_v6 = vadd.f32 %v3144_v35, %v1377_v49  ;;  %v1319_v35 = vmul.f32 %v7752_v56, %v1234_v23  ;;  %v3234_v60 = vadd.f32 %v3221_v45, %v1379_v3  ;;  %v1169_v56 = vadd.f32 %v1105_v43, %v954_v37  ;;  %v11211_v43 = vld [vmem:[#allocation28_spill] sm:$0xff]  ;;  %v11212_v37 = vld [vmem:[#allocation29_spill] sm:$0xff] }
 0x7f7   : > { %v3146_v62 = vpop.f32.mrf.mxu0  ;;  %v3223_v49 = vpop.f32.mrf.mxu1 }
 0x7f8   : > { %v5968_v18 = vmul.f32 -1.442695, %v3232_v6  ;;  %v3233_v16 = vadd.f32 %v3146_v62, %v1378_v17  ;;  %v950_v62 = vadd.f32 %v886_v57, %v735_v28  ;;  %v1168_v6 = vadd.f32 %v1104_v41, %v953_v13 }
 0x7f9   : > { %v5970_v28 = vmul.f32 -1.442695, %v3234_v60  ;;  %v1384_v61 = vadd.f32 %v1320_v58, %v1169_v56  ;;  %v11218_v58 = vld [vmem:[#allocation32_spill] sm:$0xff]  ;;  %v11221_v56 = vld [vmem:[#allocation42_spill] sm:$0xff] }
 0x7fa   : > { %6483 = vpow2.f32 %v5968_v18  ;;  %v5969_v55 = vmul.f32 -1.442695, %v3233_v16  ;;  %v1165_v14 = vadd.f32 %v1101_v22, %v950_v62  ;;  %v1383_v4 = vadd.f32 %v1319_v35, %v1168_v6  ;;  %v11210_v6 = vld [vmem:[#allocation27_spill] sm:$0xff] }
 0x7fb   : > { %v3150_v1 = vpop.f32.mrf.mxu0  ;;  %v3227_v57 = vpop.f32.mrf.mxu1 }
 0x7fc   : > { %6485 = vpow2.f32 %v5969_v55  ;;  %v3236_v17 = vadd.f32 %v3150_v1, %v1381_v5  ;;  %v1380_v52 = vadd.f32 %v1316_v33, %v1165_v14  ;;  %v3238_v16 = vadd.f32 %v3227_v57, %v1383_v4  ;;  %v3848_v33 = vld [vmem:[#allocation7] sm:$0xff]  ;;  %v11213_v57 = vld [vmem:[#allocation35_spill] sm:$0xff] }
 0x7fd   : > { %v3152_v24 = vpop.f32.mrf.mxu0  ;;  %v3229_v31 = vpop.f32.mrf.mxu1  ;;  %v11216_v4 = vld [vmem:[#allocation31_spill] sm:$0xff] }
 0x7fe   : > { %v5971_v39 = vmul.f32 -1.442695, %v3236_v17  ;;  %v3237_v19 = vadd.f32 %v3152_v24, %v1382_v38  ;;  %v3235_v18 = vadd.f32 %v3223_v49, %v1380_v52  ;;  %v5973_v55 = vmul.f32 -1.442695, %v3238_v16  ;;  %v11215_v52 = vld [vmem:[#allocation36_spill] sm:$0xff]  ;;  %v11220_v16 = vld [vmem:[#allocation33_spill] sm:$0xff] }
 0x7ff   : > { %v3239_v5 = vadd.f32 %v3229_v31, %v1384_v61  ;;  %v11225_v31 = vld [vmem:[#allocation45_spill] sm:$0xff]  ;;  %v11227_v61 = vld [vmem:[#allocation47_spill] sm:$0xff] }
 0x800   : > { %6487 = vpow2.f32 %v5971_v39  ;;  %v5972_v20 = vmul.f32 -1.442695, %v3237_v19 }
 0x802   : > { %6489 = vpow2.f32 %v5972_v20 }
 0x803   : > { %6491 = vpow2.f32 %v5970_v28  ;;  %v11214_v28 = vld [vmem:[#allocation30_spill] sm:$0xff] }
 0x807   : > { %v6484_v8 = vpop.eup %6483 }
 0x808   : > { %v3258_v26 = vadd.f32 1.0, %v6484_v8  ;;  %v11217_v8 = vld [vmem:[#allocation38_spill] sm:$0xff] }
 0x809   : > { %v6486_v27 = vpop.eup %6485 }
 0x80a   : > { %6493 = vrcp.f32 %v3258_v26  ;;  %v3259_v7 = vadd.f32 1.0, %v6486_v27  ;;  %v11222_v26 = vld [vmem:[#allocation34_spill] sm:$0xff]  ;;  %v11223_v27 = vld [vmem:[#allocation43_spill] sm:$0xff] }
 0x80b   : > { %6495 = vtanh.f32 %v3235_v18  ;;  %v11219_v18 = vld [vmem:[#allocation40_spill] sm:$0xff] }
 0x80c   : > { %6497 = vrcp.f32 %v3259_v7  ;;  %v11224_v7 = vld [vmem:[#allocation37_spill] sm:$0xff] }
 0x80d   : > { %v6488_v36 = vpop.eup %6487  ;;  %6499 = vpow2.f32 %v5973_v55  ;;  %v11226_v55 = vld [vmem:[#allocation39_spill] sm:$0xff] }
 0x80e   : > { %v3261_v9 = vadd.f32 1.0, %v6488_v36  ;;  %v11228_v36 = vld [vmem:[#allocation41_spill] sm:$0xff] }
 0x80f   : > { %v6490_v22 = vpop.eup %6489 }
 0x810   : > { %6501 = vrcp.f32 %v3261_v9  ;;  %v3262_v32 = vadd.f32 1.0, %v6490_v22  ;;  %v6492_v23 = vpop.eup %6491  ;;  %v11230_v9 = vld [vmem:[#allocation44_spill] sm:$0xff]  ;;  %v11231_v22 = vld [vmem:[#allocation51_spill] sm:$0xff] }
 0x811   : > { %6503 = vtanh.f32 %v3239_v5  ;;  %v3260_v45 = vadd.f32 1.0, %v6492_v23  ;;  %v11229_v5 = vld [vmem:[#allocation49_spill] sm:$0xff] }
 0x812   : > { %6505 = vrcp.f32 %v3262_v32  ;;  %v11232_v32 = vld [vmem:[#allocation46_spill] sm:$0xff]  ;;  %v11233_v23 = vld [vmem:[#allocation53_spill] sm:$0xff] }
 0x813   : > { %6507 = vrcp.f32 %v3260_v45  ;;  %v11237_v45 = vld [vmem:[#allocation57_spill] sm:$0xff] }
 0x817   : > { %v6494_v10 = vpop.eup %6493 }
 0x818   : > { %v6496_v12 = vpop.eup %6495 }
 0x819   : > { %v6498_v1 = vpop.eup %6497  ;;  %v3280_v17 = vmul.f32 %v6496_v12, %v6494_v10  ;;  %v11234_v10 = vld [vmem:[#allocation48_spill] sm:$0xff]  ;;  %v11235_v12 = vld [vmem:[#allocation55_spill] sm:$0xff] }
 0x81a   : > { %v3278_v62 = vmul.f32 %v6498_v1, %v8967_v21  ;;  %v6500_v38 = vpop.eup %6499  ;;  %v11236_v1 = vld [vmem:[#allocation50_spill] sm:$0xff] }
 0x81b   : > { %v3263_v19 = vadd.f32 1.0, %v6500_v38  ;;  %v11240_v38 = vld [vmem:[#allocation54_spill] sm:$0xff] }
 0x81c   : > { %v3282_v41 = vadd.f32 %v3280_v17, %v3278_v62  ;;  %v11238_v62 = vld [vmem:[#allocation52_spill] sm:$0xff]  ;;  %v11239_v17 = vld [vmem:[#allocation59_spill] sm:$0xff] }
 0x81d   : > { %v6502_v13 = vpop.eup %6501 }
 0x81e   : > { %v6504_v24 = vpop.eup %6503  ;;  %3293 = vst [vmem:[#allocation6 + $0x8] sm:$0xff] %v3282_v41  ;;  %6509 = vtanh.f32 %v3282_v41  ;;  %v11241_v41 = vld [vmem:[#allocation61_spill] sm:$0xff] }
 0x81f   : > { %v6506_v39 = vpop.eup %6505  ;;  %v3281_v47 = vmul.f32 %v6504_v24, %v6502_v13  ;;  %6511 = vrcp.f32 %v3263_v19  ;;  %v11242_v13 = vld [vmem:[#allocation56_spill] sm:$0xff]  ;;  %v11245_v19 = vld [vmem:[#allocation79_spill] sm:$0xff] }
 0x820   : > { %v3279_v53 = vmul.f32 %v6506_v39, %v8971_v2  ;;  %v6508_v14 = vpop.eup %6507  ;;  %v3847_v2 = vld [vmem:[#allocation7 + $0x8] sm:$0xff]  ;;  %v11243_v24 = vld [vmem:[#allocation20_spill] sm:$0xff] }
 0x821   : > { %v11244_v39 = vld [vmem:[#allocation58_spill] sm:$0xff] }
 0x822   : > { %v3283_v3 = vadd.f32 %v3281_v47, %v3279_v53  ;;  %v11246_v53 = vld [vmem:[#allocation60_spill] sm:$0xff]  ;;  %v11247_v47 = vld [vmem:[#allocation81_spill] sm:$0xff] }
 0x824   : > { %3294 = vst [vmem:[#allocation6] sm:$0xff] %v3283_v3  ;;  %6513 = vtanh.f32 %v3283_v3  ;;  %v11248_v3 = vld [vmem:[#allocation19_spill] sm:$0xff] }
 0x82b   : > { %v6510_v49 = vpop.eup %6509 }
 0x82c   : > { %v3286_v21 = vmul.f32 %v6510_v49, %v6508_v14  ;;  %v6512_v20 = vpop.eup %6511  ;;  %v11249_v14 = vld [vmem:[#allocation64_spill] sm:$0xff]  ;;  %v11250_v49 = vld [vmem:[#allocation74_spill] sm:$0xff] }
 0x82e   : > { %3291 = vst [vmem:[#allocation5] sm:$0xff] %v3286_v21  ;;  %3546 = vmatmul.mubr.f32.gmra.mxu0 %v3286_v21  ;;  %3707 = vmatmul.mubr.f32.gmra.mxu1 %v3286_v21  ;;  %v11251_v21 = vld [vmem:[#allocation65_spill] sm:$0xff] }
 0x82f   : > { %3551 = vmatprep.mubr.f32.mxu0 %v10797_v54  ;;  %3712 = vmatprep.mubr.f32.mxu1 %v10797_v54 }
 0x831   : > { %v6514_v35 = vpop.eup %6513 }
 0x832   : > { %v3287_v60 = vmul.f32 %v6514_v35, %v6512_v20  ;;  %v11252_v20 = vld [vmem:[#allocation80_spill] sm:$0xff]  ;;  %v11253_v35 = vld [vmem:[#allocation67_spill] sm:$0xff] }
 0x834   : > { %3292 = vst [vmem:[#allocation5 + $0x8] sm:$0xff] %v3287_v60  ;;  %3552 = vmatmul.mubr.f32.gmra.mxu0 %v3287_v60  ;;  %3713 = vmatmul.mubr.f32.gmra.mxu1 %v3287_v60  ;;  %v11254_v60 = vld [vmem:[#allocation82_spill] sm:$0xff] }
 0x835   : > { %3923 = vmatprep.mubr.f32.mxu0 %v10797_v54  ;;  %4000 = vmatprep.mubr.f32.mxu1 %v10797_v54 }
 0x838   : > { %3924 = vmatmul.mubr.f32.vlgmr.msra.gmra.mxu0 %v3847_v2  ;;  %4001 = vmatmul.mubr.f32.vlgmr.msra.gmra.mxu1 %v3847_v2  ;;  %v11255_v2 = vld [vmem:[#allocation66_spill] sm:$0xff] }
 0x839   : > { %3929 = vmatprep.mubr.f32.mxu0 %v10797_v54  ;;  %4006 = vmatprep.mubr.f32.mxu1 %v10797_v54 }
 0x83a   : > { %4079 = vmatpush1.msra.mxu0 %v9040_v30  ;;  %4156 = vmatpush1.msra.mxu1 %v9053_v63 }
 0x83b   : > { %4080 = vmatprep.subr.mxu0 %v9050_v0  ;;  %4157 = vmatprep.subr.mxu1 %v9059_v50 }
 0x83c   : > { %3930 = vmatmul.mubr.f32.gmra.mxu0 %v3848_v33  ;;  %4007 = vmatmul.mubr.f32.gmra.mxu1 %v3848_v33  ;;  %v11256_v33 = vld [vmem:[#allocation25_spill] sm:$0xff] }
 0x83d   : > { %4081 = vmatpush1.msra.mxu0 %v9056_v51  ;;  %4158 = vmatpush1.msra.mxu1 %v9063_v11 }
 0x83e   : > { %4082 = vmatprep.subr.mxu0 %v9065_v40  ;;  %4159 = vmatprep.subr.mxu1 %v9068_v34 }
 0x83f   : > { %4083 = vmatpush1.msra.mxu0 %v9071_v46  ;;  %4160 = vmatpush1.msra.mxu1 %v9074_v25 }
 0x840   : > { %4084 = vmatprep.subr.mxu0 %v9077_v29  ;;  %4161 = vmatprep.subr.mxu1 %v9080_v42 }
 0x841   : > { %4085 = vmatpush1.msra.mxu0 %v9083_v48  ;;  %4162 = vmatpush1.msra.mxu1 %v9086_v44 }
 0x842   : > { %4086 = vmatprep.subr.mxu0 %v9089_v59  ;;  %4163 = vmatprep.subr.mxu1 %v9092_v15 }
 0x843   : > { %4087 = vmatpush1.msra.mxu0 %v11210_v6  ;;  %4164 = vmatpush1.msra.mxu1 %v11211_v43 }
 0x844   : > { %4088 = vmatprep.subr.mxu0 %v11212_v37  ;;  %4165 = vmatprep.subr.mxu1 %v11213_v57 }
 0x845   : > { %4089 = vmatpush1.msra.mxu0 %v11214_v28  ;;  %4166 = vmatpush1.msra.mxu1 %v11215_v52 }
 0x846   : > { %4090 = vmatprep.subr.mxu0 %v11216_v4  ;;  %4167 = vmatprep.subr.mxu1 %v11217_v8 }
 0x847   : > { %4091 = vmatpush1.msra.mxu0 %v11218_v58  ;;  %4168 = vmatpush1.msra.mxu1 %v11219_v18 }
 0x848   : > { %4092 = vmatprep.subr.mxu0 %v11220_v16  ;;  %4169 = vmatprep.subr.mxu1 %v11221_v56 }
 0x849   : > { %4093 = vmatpush1.msra.mxu0 %v11222_v26  ;;  %4170 = vmatpush1.msra.mxu1 %v11223_v27 }
 0x84a   : > { %4094 = vmatprep.subr.mxu0 %v11224_v7  ;;  %4171 = vmatprep.subr.mxu1 %v11225_v31 }
 0x84b   : > { %4095 = vmatpush1.msra.mxu0 %v11226_v55  ;;  %4172 = vmatpush1.msra.mxu1 %v11227_v61 }
 0x84c   : > { %4096 = vmatprep.subr.mxu0 %v11228_v36  ;;  %4173 = vmatprep.subr.mxu1 %v11229_v5 }
 0x84d   : > { %4097 = vmatpush1.msra.mxu0 %v11230_v9  ;;  %4174 = vmatpush1.msra.mxu1 %v11231_v22 }
 0x84e   : > { %4098 = vmatprep.subr.mxu0 %v11232_v32  ;;  %4175 = vmatprep.subr.mxu1 %v11233_v23  ;;  %v11317_v32 = vld [vmem:[#allocation70_spill] sm:$0xff] }
 0x84f   : > { %4099 = vmatpush1.msra.mxu0 %v11234_v10  ;;  %4176 = vmatpush1.msra.mxu1 %v11235_v12 }
 0x850   : > { %4100 = vmatprep.subr.mxu0 %v11236_v1  ;;  %4177 = vmatprep.subr.mxu1 %v11237_v45 }
 0x851   : > { %4101 = vmatpush1.msra.mxu0 %v11238_v62  ;;  %4178 = vmatpush1.msra.mxu1 %v11239_v17 }
 0x852   : > { %4102 = vmatprep.subr.mxu0 %v11240_v38  ;;  %4179 = vmatprep.subr.mxu1 %v11241_v41 }
 0x853   : > { %4103 = vmatpush1.msra.mxu0 %v11242_v13  ;;  %4180 = vmatpush1.msra.mxu1 %v11243_v24 }
 0x854   : > { %4104 = vmatprep.subr.mxu0 %v11244_v39  ;;  %4181 = vmatprep.subr.mxu1 %v11245_v19 }
 0x855   : > { %4105 = vmatpush1.msra.mxu0 %v11246_v53  ;;  %4182 = vmatpush1.msra.mxu1 %v11247_v47 }
 0x856   : > { %4106 = vmatprep.subr.mxu0 %v11248_v3  ;;  %4183 = vmatprep.subr.mxu1 %v11249_v14  ;;  %v11257_v3 = vld [vmem:[#allocation26_spill] sm:$0xff]  ;;  %v9368_v14 = vpop.f32.mrf.mxu0 }
 0x857   : > { %4107 = vmatpush1.msra.mxu0 %v11250_v49  ;;  %4184 = vmatpush1.msra.mxu1 %v11251_v21  ;;  %v9370_v49 = vpop.f32.mrf.mxu1 }
 0x858   : > { %4108 = vmatprep.subr.mxu0 %v11252_v20  ;;  %4185 = vmatprep.subr.mxu1 %v11253_v35  ;;  %v9372_v21 = vpop.f32.mrf.mxu0 }
 0x859   : > { %4109 = vmatpush1.msra.mxu0 %v11254_v60  ;;  %4142 = vmatprep.mubr.f32.mxu0 %v10797_v54  ;;  %v9374_v20 = vpop.f32.mrf.mxu1 }
 0x85a   : > { %4186 = vmatpush1.msra.mxu1 %v11255_v2  ;;  %4219 = vmatprep.mubr.f32.mxu1 %v10797_v54  ;;  %v9376_v35 = vpop.f32.mrf.mxu0 }
 0x85b   : > { %4297 = vmatprep.subr.mxu0 %v11256_v33  ;;  %4374 = vmatprep.subr.mxu1 %v11257_v3  ;;  %v9378_v60 = vpop.f32.mrf.mxu1 }
 0x85c   : > { %v9380_v47 = vpop.f32.mrf.mxu0 }
 0x85d   : > { %v9382_v2 = vpop.f32.mrf.mxu1 }
 0x85e   : > { %v9384_v53 = vpop.f32.mrf.mxu0 }
 0x85f   : > { %11258 = vst [vmem:[#allocation69_spill] sm:$0xff] %v9384_v53  ;;  %v9386_v33 = vpop.f32.mrf.mxu1 }
 0x860   : > { %11259 = vst [vmem:[#allocation68_spill] sm:$0xff] %v9386_v33  ;;  %v9388_v3 = vpop.f32.mrf.mxu0 }
 0x861   : > { %11260 = vst [vmem:[#allocation71_spill] sm:$0xff] %v9388_v3  ;;  %v9390_v19 = vpop.f32.mrf.mxu1 }
 0x862   : > { %11261 = vst [vmem:[#allocation72_spill] sm:$0xff] %v9390_v19  ;;  %v9392_v39 = vpop.f32.mrf.mxu0 }
 0x863   : > { %11262 = vst [vmem:[#allocation75_spill] sm:$0xff] %v9392_v39  ;;  %v9394_v24 = vpop.f32.mrf.mxu1 }
 0x864   : > { %11263 = vst [vmem:[#allocation76_spill] sm:$0xff] %v9394_v24  ;;  %v9396_v13 = vpop.f32.mrf.mxu0 }
 0x865   : > { %11264 = vst [vmem:[#allocation77_spill] sm:$0xff] %v9396_v13  ;;  %v9398_v41 = vpop.f32.mrf.mxu1 }
 0x866   : > { %11265 = vst [vmem:[#allocation78_spill] sm:$0xff] %v9398_v41  ;;  %v9400_v38 = vpop.f32.mrf.mxu0 }
 0x867   : > { %11266 = vst [vmem:[#allocation21_spill] sm:$0xff] %v9400_v38  ;;  %v9402_v17 = vpop.f32.mrf.mxu1 }
 0x868   : > { %11267 = vst [vmem:[#allocation22_spill] sm:$0xff] %v9402_v17  ;;  %v9404_v62 = vpop.f32.mrf.mxu0 }
 0x869   : > { %11268 = vst [vmem:[#allocation83_spill] sm:$0xff] %v9404_v62  ;;  %v9406_v53 = vpop.f32.mrf.mxu1 }
 0x86a   : > { %11269 = vst [vmem:[#allocation84_spill] sm:$0xff] %v9406_v53  ;;  %v9408_v33 = vpop.f32.mrf.mxu0 }
 0x86b   : > { %11270 = vst [vmem:[#allocation85_spill] sm:$0xff] %v9408_v33  ;;  %v9410_v3 = vpop.f32.mrf.mxu1 }
 0x86c   : > { %11271 = vst [vmem:[#allocation86_spill] sm:$0xff] %v9410_v3  ;;  %v9412_v19 = vpop.f32.mrf.mxu0 }
 0x86d   : > { %11272 = vst [vmem:[#allocation23_spill] sm:$0xff] %v9412_v19  ;;  %v9414_v39 = vpop.f32.mrf.mxu1 }
 0x86e   : > { %11273 = vst [vmem:[#allocation24_spill] sm:$0xff] %v9414_v39  ;;  %v9416_v24 = vpop.f32.mrf.mxu0 }
 0x86f   : > { %11274 = vst [vmem:[#allocation27_spill] sm:$0xff] %v9416_v24  ;;  %v9418_v13 = vpop.f32.mrf.mxu1 }
 0x870   : > { %11275 = vst [vmem:[#allocation28_spill] sm:$0xff] %v9418_v13  ;;  %v9420_v41 = vpop.f32.mrf.mxu0 }
 0x871   : > { %11276 = vst [vmem:[#allocation29_spill] sm:$0xff] %v9420_v41  ;;  %v9422_v38 = vpop.f32.mrf.mxu1 }
 0x872   : > { %11277 = vst [vmem:[#allocation35_spill] sm:$0xff] %v9422_v38  ;;  %v9424_v17 = vpop.f32.mrf.mxu0 }
 0x873   : > { %11278 = vst [vmem:[#allocation30_spill] sm:$0xff] %v9424_v17  ;;  %v9426_v62 = vpop.f32.mrf.mxu1 }
 0x874   : > { %11279 = vst [vmem:[#allocation36_spill] sm:$0xff] %v9426_v62  ;;  %v9428_v53 = vpop.f32.mrf.mxu0 }
 0x875   : > { %11280 = vst [vmem:[#allocation31_spill] sm:$0xff] %v9428_v53  ;;  %v9430_v33 = vpop.f32.mrf.mxu1 }
 0x876   : > { %11281 = vst [vmem:[#allocation38_spill] sm:$0xff] %v9430_v33  ;;  %v9432_v3 = vpop.f32.mrf.mxu0 }
 0x877   : > { %11282 = vst [vmem:[#allocation32_spill] sm:$0xff] %v9432_v3  ;;  %v9434_v19 = vpop.f32.mrf.mxu1 }
 0x878   : > { %11283 = vst [vmem:[#allocation40_spill] sm:$0xff] %v9434_v19  ;;  %v9436_v39 = vpop.f32.mrf.mxu0 }
 0x879   : > { %11284 = vst [vmem:[#allocation33_spill] sm:$0xff] %v9436_v39  ;;  %v9438_v24 = vpop.f32.mrf.mxu1 }
 0x87a   : > { %11285 = vst [vmem:[#allocation42_spill] sm:$0xff] %v9438_v24  ;;  %v9440_v13 = vpop.f32.mrf.mxu0 }
 0x87b   : > { %11286 = vst [vmem:[#allocation34_spill] sm:$0xff] %v9440_v13  ;;  %v9442_v41 = vpop.f32.mrf.mxu1 }
 0x87c   : > { %11287 = vst [vmem:[#allocation43_spill] sm:$0xff] %v9442_v41  ;;  %v9444_v38 = vpop.f32.mrf.mxu0 }
 0x87d   : > { %11288 = vst [vmem:[#allocation37_spill] sm:$0xff] %v9444_v38  ;;  %v9446_v17 = vpop.f32.mrf.mxu1 }
 0x87e   : > { %11289 = vst [vmem:[#allocation45_spill] sm:$0xff] %v9446_v17  ;;  %v9448_v62 = vpop.f32.mrf.mxu0 }
 0x87f   : > { %11290 = vst [vmem:[#allocation39_spill] sm:$0xff] %v9448_v62  ;;  %v9450_v53 = vpop.f32.mrf.mxu1 }
 0x880   : > { %11291 = vst [vmem:[#allocation47_spill] sm:$0xff] %v9450_v53  ;;  %v9452_v33 = vpop.f32.mrf.mxu0 }
 0x881   : > { %11292 = vst [vmem:[#allocation41_spill] sm:$0xff] %v9452_v33  ;;  %v9454_v3 = vpop.f32.mrf.mxu1 }
 0x882   : > { %11293 = vst [vmem:[#allocation49_spill] sm:$0xff] %v9454_v3  ;;  %v9456_v19 = vpop.f32.mrf.mxu0 }
 0x883   : > { %11294 = vst [vmem:[#allocation44_spill] sm:$0xff] %v9456_v19  ;;  %v9458_v39 = vpop.f32.mrf.mxu1 }
 0x884   : > { %11295 = vst [vmem:[#allocation25_spill] sm:$0xff] %v9458_v39  ;;  %v9460_v24 = vpop.f32.mrf.mxu0 }
 0x885   : > { %11296 = vst [vmem:[#allocation26_spill] sm:$0xff] %v9460_v24  ;;  %v9462_v13 = vpop.f32.mrf.mxu1 }
 0x886   : > { %11297 = vst [vmem:[#allocation87_spill] sm:$0xff] %v9462_v13  ;;  %v9464_v41 = vpop.f32.mrf.mxu0 }
 0x887   : > { %11298 = vst [vmem:[#allocation88_spill] sm:$0xff] %v9464_v41  ;;  %v9466_v38 = vpop.f32.mrf.mxu1 }
 0x888   : > { %11299 = vst [vmem:[#allocation89_spill] sm:$0xff] %v9466_v38  ;;  %v9468_v17 = vpop.f32.mrf.mxu0  ;;  %v3375_v38 = vld [vmem:[%s10306_s6] sm:$0xf] }
 0x889   : > { %11300 = vst [vmem:[#allocation90_spill] sm:$0xff] %v9468_v17  ;;  %v9470_v62 = vpop.f32.mrf.mxu1  ;;  %v9514_v22 = vrot.slane %v3375_v38, %v11317_v32 }
 0x88a   : > { %11301 = vst [vmem:[#allocation91_spill] sm:$0xff] %v9470_v62  ;;  %v9472_v53 = vpop.f32.mrf.mxu0  ;;  %v11310_v62 = vld [vmem:[#allocation62_spill] sm:$0xff] }
 0x88b   : > { %11302 = vst [vmem:[#allocation92_spill] sm:$0xff] %v9472_v53  ;;  %v9474_v33 = vpop.f32.mrf.mxu1  ;;  %v9492_v53 = vrot.slane %v3375_v38, %v11310_v62  ;;  %v3631_v32 = vadd.f32 %v9378_v60, %v9514_v22 }
 0x88c   : > { %11303 = vst [vmem:[#allocation93_spill] sm:$0xff] %v9474_v33  ;;  %v9476_v3 = vpop.f32.mrf.mxu0 }
 0x88d   : > { %11304 = vst [vmem:[#allocation94_spill] sm:$0xff] %v9476_v3  ;;  %v9478_v19 = vpop.f32.mrf.mxu1  ;;  %11311 = vst [vmem:[#allocation62_spill] sm:$0xff] %v9492_v53  ;;  %v11313_v3 = vld [vmem:[#allocation63_spill] sm:$0xff] }
 0x88e   : > { %11305 = vst [vmem:[#allocation95_spill] sm:$0xff] %v9478_v19  ;;  %v9497_v13 = vrot.slane %v3375_v38, %v11313_v3 }
 0x8ee   : > { %v9480_v39 = vpop.f32.mrf.mxu0  ;;  %v9482_v24 = vpop.f32.mrf.mxu1 }
 0x8ef   : > { %11306 = vst [vmem:[#allocation96_spill] sm:$0xff] %v9480_v39  ;;  %11307 = vst [vmem:[#allocation97_spill] sm:$0xff] %v9482_v24  ;;  %v3464_v24 = vadd.f32 %v9368_v14, %v9492_v53 }
 0x8f0   : > { %v9487_v41 = vpop.f32.mrf.mxu0  ;;  %v9489_v17 = vpop.f32.mrf.mxu1 }
 0x8f1   : > { %11308 = vst [vmem:[#allocation98_spill] sm:$0xff] %v9487_v41  ;;  %11309 = vst [vmem:[#allocation99_spill] sm:$0xff] %v9489_v17  ;;  %v3466_v41 = vadd.f32 %v9372_v21, %v9497_v13 }
 0x8f4   : > { %v9494_v33 = vpop.f32.mrf.mxu0  ;;  %v9499_v19 = vpop.f32.mrf.mxu1 }
 0x8f5   : > { %11312 = vst [vmem:[#allocation100_spill] sm:$0xff] %v9494_v33  ;;  %11314 = vst [vmem:[#allocation63_spill] sm:$0xff] %v9499_v19  ;;  %v3470_v33 = vadd.f32 %v9376_v35, %v9492_v53  ;;  %v3472_v19 = vadd.f32 %v9380_v47, %v9497_v13 }
 0x8f6   : > { %v9501_v39 = vpop.f32.mrf.mxu0  ;;  %v9507_v17 = vpop.f32.mrf.mxu1 }
 0x8f7   : > { %11315 = vst [vmem:[#allocation101_spill] sm:$0xff] %v9501_v39  ;;  %11316 = vst [vmem:[#allocation102_spill] sm:$0xff] %v9507_v17 }
 0x8f8   : > { %v3925_v45 = vpop.f32.mrf.mxu0  ;;  %v4002_v39 = vpop.f32.mrf.mxu1 }
 0x8f9   : > { %v4013_v62 = vadd.f32 %v3925_v45, %v3464_v24 }
 0x8fa   : > { %v3927_v1 = vpop.f32.mrf.mxu0  ;;  %v4004_v17 = vpop.f32.mrf.mxu1 }
 0x8fb   : > { %v5974_v3 = vmul.f32 -1.442695, %v4013_v62  ;;  %v4014_v12 = vadd.f32 %v3927_v1, %v3466_v41  ;;  %v3625_v1 = vadd.f32 %v9370_v49, %v9514_v22  ;;  %v11318_v41 = vld [vmem:[#allocation73_spill] sm:$0xff] }
 0x8fc   : > { %v3931_v10 = vpop.f32.mrf.mxu0  ;;  %v9519_v47 = vrot.slane %v3375_v38, %v11318_v41 }
 0x8fd   : > { %6515 = vpow2.f32 %v5974_v3  ;;  %v5975_v14 = vmul.f32 -1.442695, %v4014_v12  ;;  %v4017_v23 = vadd.f32 %v3931_v10, %v3470_v33  ;;  %v4015_v62 = vadd.f32 %v4002_v39, %v3625_v1  ;;  %v4008_v12 = vpop.f32.mrf.mxu1 }
 0x8fe   : > { %v3933_v21 = vpop.f32.mrf.mxu0  ;;  %v3627_v10 = vadd.f32 %v9374_v20, %v9519_v47  ;;  %v3633_v49 = vadd.f32 %v9382_v2, %v9519_v47 }
 0x8ff   : > { %6517 = vpow2.f32 %v5975_v14  ;;  %v5977_v45 = vmul.f32 -1.442695, %v4017_v23  ;;  %v4018_v24 = vadd.f32 %v3933_v21, %v3472_v19  ;;  %v5976_v23 = vmul.f32 -1.442695, %v4015_v62  ;;  %v4010_v21 = vpop.f32.mrf.mxu1  ;;  %v3849_v62 = vld [vmem:[#allocation8] sm:$0xff] }
 0x900   : > { %v4019_v19 = vadd.f32 %v4008_v12, %v3631_v32  ;;  %v4016_v3 = vadd.f32 %v4004_v17, %v3627_v10  ;;  %v4020_v60 = vadd.f32 %v4010_v21, %v3633_v49 }
 0x901   : > { %6519 = vpow2.f32 %v5977_v45  ;;  %v5978_v35 = vmul.f32 -1.442695, %v4018_v24 }
 0x902   : > { %v5979_v38 = vmul.f32 -1.442695, %v4019_v19 }
 0x903   : > { %6521 = vpow2.f32 %v5978_v35 }
 0x904   : > { %6523 = vpow2.f32 %v5976_v23 }
 0x90a   : > { %v6516_v33 = vpop.eup %6515 }
 0x90b   : > { %v4039_v14 = vadd.f32 1.0, %v6516_v33 }
 0x90c   : > { %v6518_v45 = vpop.eup %6517 }
 0x90d   : > { %6525 = vrcp.f32 %v4039_v14  ;;  %v4040_v39 = vadd.f32 1.0, %v6518_v45 }
 0x90e   : > { %v6520_v24 = vpop.eup %6519  ;;  %6527 = vtanh.f32 %v4016_v3  ;;  %v3850_v3 = vld [vmem:[#allocation8 + $0x8] sm:$0xff] }
 0x90f   : > { %6529 = vrcp.f32 %v4040_v39  ;;  %v4042_v35 = vadd.f32 1.0, %v6520_v24 }
 0x910   : > { %v6522_v20 = vpop.eup %6521  ;;  %6531 = vpow2.f32 %v5979_v38 }
 0x911   : > { %6533 = vrcp.f32 %v4042_v35  ;;  %v4043_v1 = vadd.f32 1.0, %v6522_v20  ;;  %v6524_v17 = vpop.eup %6523 }
 0x912   : > { %6535 = vtanh.f32 %v4020_v60  ;;  %v4041_v32 = vadd.f32 1.0, %v6524_v17 }
 0x913   : > { %6537 = vrcp.f32 %v4043_v1 }
 0x914   : > { %6539 = vrcp.f32 %v4041_v32  ;;  %v11349_v32 = vld [vmem:[#allocation77_spill] sm:$0xff] }
 0x91a   : > { %v6526_v41 = vpop.eup %6525 }
 0x91b   : > { %v6528_v12 = vpop.eup %6527 }
 0x91c   : > { %v6530_v2 = vpop.eup %6529  ;;  %v4061_v19 = vmul.f32 %v6528_v12, %v6526_v41 }
 0x91d   : > { %v6532_v10 = vpop.eup %6531  ;;  %v4059_v23 = vmul.f32 %v6530_v2, %v3849_v62 }
 0x91e   : > { %v6534_v33 = vpop.eup %6533  ;;  %v4044_v49 = vadd.f32 1.0, %v6532_v10  ;;  %v3484_v10 = vadd.f32 %v11349_v32, %v9497_v13  ;;  %v9637_v32 = vld [vmem:[#allocation14 + $0x1c8] sm:$0xff] }
 0x91f   : > { %v6536_v14 = vpop.eup %6535  ;;  %v9527_v21 = vadd.f32 %v4061_v19, %v4059_v23 }
 0x920   : > { %v6538_v45 = vpop.eup %6537  ;;  %v4062_v39 = vmul.f32 %v6536_v14, %v6534_v33 }
 0x921   : > { %6541 = vtanh.f32 %v9527_v21  ;;  %v4060_v38 = vmul.f32 %v6538_v45, %v3850_v3  ;;  %v6540_v60 = vpop.eup %6539 }
 0x922   : > { %6543 = vrcp.f32 %v4044_v49  ;;  %v11350_v49 = vld [vmem:[#allocation68_spill] sm:$0xff] }
 0x923   : > { %v9530_v24 = vadd.f32 %v4062_v39, %v4060_v38  ;;  %v3637_v38 = vadd.f32 %v11350_v49, %v9514_v22  ;;  %v9661_v49 = vld [vmem:[#allocation14 + $0x188] sm:$0xff] }
 0x925   : > { %6545 = vtanh.f32 %v9530_v24 }
 0x92e   : > { %v6542_v35 = vpop.eup %6541 }
 0x92f   : > { %v4067_v20 = vmul.f32 %v6542_v35, %v6540_v60  ;;  %v6544_v1 = vpop.eup %6543 }
 0x931   : > { %4143 = vmatmul.mubr.f32.vlgmr.msra.gmra.mxu0 %v4067_v20  ;;  %4220 = vmatmul.mubr.f32.vlgmr.msra.gmra.mxu1 %v4067_v20  ;;  %v11351_v20 = vld [vmem:[#allocation76_spill] sm:$0xff] }
 0x932   : > { %v6546_v17 = vpop.eup %6545  ;;  %4148 = vmatprep.mubr.f32.mxu0 %v10797_v54  ;;  %4225 = vmatprep.mubr.f32.mxu1 %v10797_v54 }
 0x933   : > { %v4068_v41 = vmul.f32 %v6546_v17, %v6544_v1  ;;  %4298 = vmatpush1.msra.mxu0 %v9040_v30  ;;  %4375 = vmatpush1.msra.mxu1 %v9053_v63  ;;  %v11319_v30 = vld [vmem:[#allocation51_spill] sm:$0xff]  ;;  %v11321_v63 = vld [vmem:[#allocation53_spill] sm:$0xff]  ;;  %v3643_v1 = vadd.f32 %v11351_v20, %v9514_v22  ;;  %v11352_v17 = vld [vmem:[#allocation72_spill] sm:$0xff] }
 0x934   : > { %4299 = vmatprep.subr.mxu0 %v9050_v0  ;;  %4376 = vmatprep.subr.mxu1 %v9059_v50  ;;  %v11320_v0 = vld [vmem:[#allocation46_spill] sm:$0xff]  ;;  %v11323_v50 = vld [vmem:[#allocation55_spill] sm:$0xff]  ;;  %v9676_v20 = vld [vmem:[#allocation14 + $0x178] sm:$0xff] }
 0x935   : > { %4149 = vmatmul.mubr.f32.gmra.mxu0 %v4068_v41  ;;  %4226 = vmatmul.mubr.f32.gmra.mxu1 %v4068_v41  ;;  %v3639_v41 = vadd.f32 %v11352_v17, %v9519_v47  ;;  %v9682_v17 = vld [vmem:[#allocation14 + $0x170] sm:$0xff] }
 0x936   : > { %4300 = vmatpush1.msra.mxu0 %v9056_v51  ;;  %4377 = vmatpush1.msra.mxu1 %v9063_v11  ;;  %v11322_v51 = vld [vmem:[#allocation48_spill] sm:$0xff]  ;;  %v11324_v11 = vld [vmem:[#allocation50_spill] sm:$0xff] }
 0x937   : > { %4301 = vmatprep.subr.mxu0 %v9065_v40  ;;  %4378 = vmatprep.subr.mxu1 %v9068_v34  ;;  %v11325_v40 = vld [vmem:[#allocation57_spill] sm:$0xff]  ;;  %v11326_v34 = vld [vmem:[#allocation52_spill] sm:$0xff] }
 0x938   : > { %4302 = vmatpush1.msra.mxu0 %v9071_v46  ;;  %4379 = vmatpush1.msra.mxu1 %v9074_v25  ;;  %v11327_v46 = vld [vmem:[#allocation59_spill] sm:$0xff]  ;;  %v11328_v25 = vld [vmem:[#allocation54_spill] sm:$0xff] }
 0x939   : > { %4303 = vmatprep.subr.mxu0 %v9077_v29  ;;  %4380 = vmatprep.subr.mxu1 %v9080_v42  ;;  %v11329_v29 = vld [vmem:[#allocation61_spill] sm:$0xff]  ;;  %v11330_v42 = vld [vmem:[#allocation56_spill] sm:$0xff] }
 0x93a   : > { %4304 = vmatpush1.msra.mxu0 %v9083_v48  ;;  %4381 = vmatpush1.msra.mxu1 %v9086_v44  ;;  %v11331_v48 = vld [vmem:[#allocation20_spill] sm:$0xff]  ;;  %v11332_v44 = vld [vmem:[#allocation58_spill] sm:$0xff] }
 0x93b   : > { %4305 = vmatprep.subr.mxu0 %v9089_v59  ;;  %4382 = vmatprep.subr.mxu1 %v9092_v15  ;;  %v11333_v59 = vld [vmem:[#allocation79_spill] sm:$0xff]  ;;  %v11334_v15 = vld [vmem:[#allocation60_spill] sm:$0xff] }
 0x93c   : > { %4306 = vmatpush1.msra.mxu0 %v11210_v6  ;;  %4383 = vmatpush1.msra.mxu1 %v11211_v43  ;;  %v11335_v6 = vld [vmem:[#allocation81_spill] sm:$0xff]  ;;  %v11336_v43 = vld [vmem:[#allocation19_spill] sm:$0xff] }
 0x93d   : > { %4307 = vmatprep.subr.mxu0 %v11212_v37  ;;  %4384 = vmatprep.subr.mxu1 %v11213_v57  ;;  %v11337_v37 = vld [vmem:[#allocation64_spill] sm:$0xff]  ;;  %v11338_v57 = vld [vmem:[#allocation74_spill] sm:$0xff] }
 0x93e   : > { %4308 = vmatpush1.msra.mxu0 %v11214_v28  ;;  %4385 = vmatpush1.msra.mxu1 %v11215_v52  ;;  %v11339_v28 = vld [vmem:[#allocation65_spill] sm:$0xff]  ;;  %v11340_v52 = vld [vmem:[#allocation80_spill] sm:$0xff] }
 0x93f   : > { %4309 = vmatprep.subr.mxu0 %v11216_v4  ;;  %4386 = vmatprep.subr.mxu1 %v11217_v8  ;;  %v11341_v4 = vld [vmem:[#allocation67_spill] sm:$0xff]  ;;  %v11342_v8 = vld [vmem:[#allocation82_spill] sm:$0xff] }
 0x940   : > { %4310 = vmatpush1.msra.mxu0 %v11218_v58  ;;  %4387 = vmatpush1.msra.mxu1 %v11219_v18  ;;  %v11343_v58 = vld [vmem:[#allocation66_spill] sm:$0xff] }
 0x941   : > { %4311 = vmatprep.subr.mxu0 %v11220_v16  ;;  %4388 = vmatprep.subr.mxu1 %v11221_v56  ;;  %v9599_v18 = vld [vmem:[#allocation14 + $0x1e8] sm:$0xff]  ;;  %v9602_v16 = vld [vmem:[#allocation14 + $0x1f8] sm:$0xff]  ;;  %v11346_v56 = vld [vmem:[#allocation69_spill] sm:$0xff] }
 0x942   : > { %4312 = vmatpush1.msra.mxu0 %v11222_v26  ;;  %4389 = vmatpush1.msra.mxu1 %v11223_v27  ;;  %11344 = vst [vmem:[#allocation70_spill] sm:$0xff] %v9599_v18  ;;  %11345 = vst [vmem:[#allocation73_spill] sm:$0xff] %v9602_v16  ;;  %v3476_v26 = vadd.f32 %v11346_v56, %v9492_v53 }
 0x943   : > { %4313 = vmatprep.subr.mxu0 %v11224_v7  ;;  %4390 = vmatprep.subr.mxu1 %v11225_v31  ;;  %v11347_v7 = vld [vmem:[#allocation71_spill] sm:$0xff] }
 0x944   : > { %4314 = vmatpush1.msra.mxu0 %v11226_v55  ;;  %4391 = vmatpush1.msra.mxu1 %v11227_v61  ;;  %v3478_v31 = vadd.f32 %v11347_v7, %v9497_v13 }
 0x945   : > { %4315 = vmatprep.subr.mxu0 %v11228_v36  ;;  %4392 = vmatprep.subr.mxu1 %v11229_v5  ;;  %v11348_v36 = vld [vmem:[#allocation75_spill] sm:$0xff] }
 0x946   : > { %4316 = vmatpush1.msra.mxu0 %v11230_v9  ;;  %4393 = vmatpush1.msra.mxu1 %v11319_v30  ;;  %v3482_v5 = vadd.f32 %v11348_v36, %v9492_v53 }
 0x947   : > { %4317 = vmatprep.subr.mxu0 %v11320_v0  ;;  %4394 = vmatprep.subr.mxu1 %v11321_v63 }
 0x948   : > { %4318 = vmatpush1.msra.mxu0 %v11322_v51  ;;  %4395 = vmatpush1.msra.mxu1 %v11323_v50 }
 0x949   : > { %4319 = vmatprep.subr.mxu0 %v11324_v11  ;;  %4396 = vmatprep.subr.mxu1 %v11325_v40  ;;  %v11353_v11 = vld [vmem:[#allocation78_spill] sm:$0xff] }
 0x94a   : > { %4320 = vmatpush1.msra.mxu0 %v11326_v34  ;;  %4397 = vmatpush1.msra.mxu1 %v11327_v46  ;;  %v3645_v40 = vadd.f32 %v11353_v11, %v9519_v47  ;;  %v9703_v11 = vld [vmem:[#allocation14 + $0x120] sm:$0xff] }
 0x94b   : > { %4321 = vmatprep.subr.mxu0 %v11328_v25  ;;  %4398 = vmatprep.subr.mxu1 %v11329_v29 }
 0x94c   : > { %4322 = vmatpush1.msra.mxu0 %v11330_v42  ;;  %4399 = vmatpush1.msra.mxu1 %v11331_v48 }
 0x94d   : > { %4323 = vmatprep.subr.mxu0 %v11332_v44  ;;  %4400 = vmatprep.subr.mxu1 %v11333_v59 }
 0x94e   : > { %4324 = vmatpush1.msra.mxu0 %v11334_v15  ;;  %4401 = vmatpush1.msra.mxu1 %v11335_v6 }
 0x94f   : > { %4325 = vmatprep.subr.mxu0 %v11336_v43  ;;  %4402 = vmatprep.subr.mxu1 %v11337_v37 }
 0x950   : > { %4326 = vmatpush1.msra.mxu0 %v11338_v57  ;;  %4403 = vmatpush1.msra.mxu1 %v11339_v28 }
 0x951   : > { %4327 = vmatprep.subr.mxu0 %v11340_v52  ;;  %4404 = vmatprep.subr.mxu1 %v11341_v4 }
 0x952   : > { %4328 = vmatpush1.msra.mxu0 %v11342_v8  ;;  %4361 = vmatprep.mubr.f32.mxu0 %v10797_v54 }
 0x953   : > { %4405 = vmatpush1.msra.mxu1 %v11343_v58  ;;  %4438 = vmatprep.mubr.f32.mxu1 %v10797_v54 }
 0x954   : > { %4516 = vmatprep.subr.mxu0 %v9599_v18  ;;  %4593 = vmatprep.subr.mxu1 %v9602_v16 }
 0x9f1   : > { %v4144_v27 = vpop.f32.mrf.mxu0  ;;  %v4221_v62 = vpop.f32.mrf.mxu1 }
 0x9f2   : > { %v4232_v55 = vadd.f32 %v4144_v27, %v3476_v26  ;;  %v4234_v60 = vadd.f32 %v4221_v62, %v3637_v38  ;;  %v9664_v38 = vld [vmem:[#allocation14 + $0x198] sm:$0xff] }
 0x9f3   : > { %v4146_v61 = vpop.f32.mrf.mxu0  ;;  %v4223_v3 = vpop.f32.mrf.mxu1 }
 0x9f4   : > { %v5980_v9 = vmul.f32 -1.442695, %v4232_v55  ;;  %v4233_v12 = vadd.f32 %v4146_v61, %v3478_v31  ;;  %v5982_v0 = vmul.f32 -1.442695, %v4234_v60  ;;  %v4235_v63 = vadd.f32 %v4223_v3, %v3639_v41  ;;  %v9652_v3 = vld [vmem:[#allocation14 + $0x1b8] sm:$0xff]  ;;  %v9670_v60 = vld [vmem:[#allocation14 + $0x190] sm:$0xff] }
 0x9f5   : > { %v4150_v2 = vpop.f32.mrf.mxu0  ;;  %v4227_v35 = vpop.f32.mrf.mxu1  ;;  %v9685_v41 = vld [vmem:[#allocation14 + $0x148] sm:$0xff] }
 0x9f6   : > { %6547 = vpow2.f32 %v5980_v9  ;;  %v5981_v23 = vmul.f32 -1.442695, %v4233_v12  ;;  %v4236_v19 = vadd.f32 %v4150_v2, %v3482_v5  ;;  %v4238_v30 = vadd.f32 %v4227_v35, %v3643_v1  ;;  %v9631_v2 = vld [vmem:[#allocation14 + $0x1e0] sm:$0xff]  ;;  %v9673_v35 = vld [vmem:[#allocation14 + $0x168] sm:$0xff] }
 0x9f7   : > { %v4152_v33 = vpop.f32.mrf.mxu0  ;;  %v4229_v51 = vpop.f32.mrf.mxu1  ;;  %v9679_v1 = vld [vmem:[#allocation14 + $0x160] sm:$0xff] }
 0x9f8   : > { %6549 = vpow2.f32 %v5981_v23  ;;  %v5983_v14 = vmul.f32 -1.442695, %v4236_v19  ;;  %v4237_v45 = vadd.f32 %v4152_v33, %v3484_v10  ;;  %v5985_v34 = vmul.f32 -1.442695, %v4238_v30  ;;  %v9640_v10 = vld [vmem:[#allocation14 + $0x1d8] sm:$0xff]  ;;  %v9643_v23 = vld [vmem:[#allocation14 + $0x1c0] sm:$0xff] }
 0x9f9   : > { %v4239_v29 = vadd.f32 %v4229_v51, %v3645_v40  ;;  %v9646_v19 = vld [vmem:[#allocation14 + $0x1d0] sm:$0xff]  ;;  %v9649_v33 = vld [vmem:[#allocation14 + $0x1a8] sm:$0xff]  ;;  %v9688_v30 = vld [vmem:[#allocation14 + $0x158] sm:$0xff] }
 0x9fa   : > { %6551 = vpow2.f32 %v5983_v14  ;;  %v5984_v39 = vmul.f32 -1.442695, %v4237_v45  ;;  %v9655_v14 = vld [vmem:[#allocation14 + $0x1a0] sm:$0xff]  ;;  %v9658_v45 = vld [vmem:[#allocation14 + $0x1b0] sm:$0xff]  ;;  %v9697_v51 = vld [vmem:[#allocation14 + $0x128] sm:$0xff] }
 0x9fb   : > { %v9706_v40 = vld [vmem:[#allocation14 + $0x130] sm:$0xff] }
 0x9fc   : > { %6553 = vpow2.f32 %v5984_v39  ;;  %v9667_v39 = vld [vmem:[#allocation14 + $0x180] sm:$0xff] }
 0x9fd   : > { %6555 = vpow2.f32 %v5982_v0  ;;  %v9691_v0 = vld [vmem:[#allocation14 + $0x140] sm:$0xff] }
 0x9fe   : > { %6557 = vtanh.f32 %v4235_v63  ;;  %v9694_v63 = vld [vmem:[#allocation14 + $0x150] sm:$0xff] }
 0xa03   : > { %v6548_v50 = vpop.eup %6547 }
 0xa04   : > { %v4258_v46 = vadd.f32 1.0, %v6548_v50  ;;  %v9700_v50 = vld [vmem:[#allocation14 + $0x138] sm:$0xff] }
 0xa05   : > { %v6550_v25 = vpop.eup %6549 }
 0xa06   : > { %6559 = vrcp.f32 %v4258_v46  ;;  %v4259_v42 = vadd.f32 1.0, %v6550_v25  ;;  %v9712_v46 = vld [vmem:[#allocation14 + $0x118] sm:$0xff]  ;;  %v9715_v25 = vld [vmem:[#allocation14 + $0x100] sm:$0xff] }
 0xa07   : > { %v6552_v48 = vpop.eup %6551  ;;  %6561 = vpow2.f32 %v5985_v34  ;;  %v9709_v34 = vld [vmem:[#allocation14 + $0x108] sm:$0xff] }
 0xa08   : > { %6563 = vrcp.f32 %v4259_v42  ;;  %v4261_v44 = vadd.f32 1.0, %v6552_v48  ;;  %v9721_v42 = vld [vmem:[#allocation14 + $0xe8] sm:$0xff]  ;;  %v9724_v48 = vld [vmem:[#allocation14 + $0xf8] sm:$0xff] }
 0xa09   : > { %v6554_v59 = vpop.eup %6553  ;;  %6565 = vtanh.f32 %v4239_v29  ;;  %v9718_v29 = vld [vmem:[#allocation14 + $0x110] sm:$0xff] }
 0xa0a   : > { %6567 = vrcp.f32 %v4261_v44  ;;  %v4262_v15 = vadd.f32 1.0, %v6554_v59  ;;  %v6556_v6 = vpop.eup %6555  ;;  %v9727_v44 = vld [vmem:[#allocation14 + $0xe0] sm:$0xff]  ;;  %v9730_v59 = vld [vmem:[#allocation14 + $0xf0] sm:$0xff] }
 0xa0b   : > { %v6558_v43 = vpop.eup %6557  ;;  %v4260_v4 = vadd.f32 1.0, %v6556_v6  ;;  %v9736_v6 = vld [vmem:[#allocation14 + $0xd8] sm:$0xff] }
 0xa0c   : > { %6569 = vrcp.f32 %v4262_v15  ;;  %v9733_v15 = vld [vmem:[#allocation14 + $0xc8] sm:$0xff] }
 0xa0d   : > { %6571 = vrcp.f32 %v4260_v4  ;;  %v9754_v4 = vld [vmem:[#allocation14 + $0xb0] sm:$0xff] }
 0xa0e   : > { %11357 = vst [vmem:[#allocation48_spill] sm:$0xff] %v9754_v4 }
 0xa13   : > { %v6560_v37 = vpop.eup %6559 }
 0xa14   : > { %v6562_v57 = vpop.eup %6561  ;;  %v4280_v28 = vmul.f32 %v6560_v37, %v6558_v43  ;;  %v9739_v43 = vld [vmem:[#allocation14 + $0xc0] sm:$0xff]  ;;  %v9742_v37 = vld [vmem:[#allocation14 + $0xd0] sm:$0xff] }
 0xa15   : > { %v6564_v52 = vpop.eup %6563  ;;  %v4263_v31 = vadd.f32 1.0, %v6562_v57  ;;  %v9745_v57 = vld [vmem:[#allocation14 + $0xa8] sm:$0xff] }
 0xa16   : > { %v6566_v8 = vpop.eup %6565  ;;  %v4278_v58 = vmul.f32 %v6564_v52, %v9527_v21  ;;  %11354 = vst [vmem:[#allocation51_spill] sm:$0xff] %v9745_v57  ;;  %v9751_v52 = vld [vmem:[#allocation14 + $0xa0] sm:$0xff] }
 0xa17   : > { %v6568_v56 = vpop.eup %6567  ;;  %11356 = vst [vmem:[#allocation53_spill] sm:$0xff] %v9751_v52 }
 0xa18   : > { %v9622_v26 = vadd.f32 %v4280_v28, %v4278_v58  ;;  %v4281_v27 = vmul.f32 %v6568_v56, %v6566_v8  ;;  %v9748_v28 = vld [vmem:[#allocation14 + $0xb8] sm:$0xff]  ;;  %v9757_v8 = vld [vmem:[#allocation14 + $0x88] sm:$0xff]  ;;  %v9763_v56 = vld [vmem:[#allocation14 + $0x80] sm:$0xff] }
 0xa19   : > { %v6570_v7 = vpop.eup %6569  ;;  %11355 = vst [vmem:[#allocation46_spill] sm:$0xff] %v9748_v28  ;;  %11358 = vst [vmem:[#allocation55_spill] sm:$0xff] %v9757_v8  ;;  %v9760_v58 = vld [vmem:[#allocation14 + $0x98] sm:$0xff] }
 0xa1a   : > { %6573 = vtanh.f32 %v9622_v26  ;;  %v4279_v55 = vmul.f32 %v6570_v7, %v9530_v24  ;;  %v6572_v36 = vpop.eup %6571  ;;  %v9634_v24 = vld [vmem:[#allocation14 + $0x1f0] sm:$0xff]  ;;  %11359 = vst [vmem:[#allocation50_spill] sm:$0xff] %v9760_v58  ;;  %11360 = vst [vmem:[#allocation57_spill] sm:$0xff] %v9763_v56  ;;  %v9769_v7 = vld [vmem:[#allocation14 + $0x68] sm:$0xff] }
 0xa1b   : > { %6575 = vrcp.f32 %v4263_v31  ;;  %11362 = vst [vmem:[#allocation59_spill] sm:$0xff] %v9769_v7  ;;  %v9772_v31 = vld [vmem:[#allocation14 + $0x78] sm:$0xff] }
 0xa1c   : > { %v9626_v61 = vadd.f32 %v4281_v27, %v4279_v55  ;;  %v9766_v27 = vld [vmem:[#allocation14 + $0x90] sm:$0xff]  ;;  %11363 = vst [vmem:[#allocation54_spill] sm:$0xff] %v9772_v31  ;;  %v9775_v55 = vld [vmem:[#allocation14 + $0x60] sm:$0xff] }
 0xa1d   : > { %11361 = vst [vmem:[#allocation52_spill] sm:$0xff] %v9766_v27  ;;  %11364 = vst [vmem:[#allocation61_spill] sm:$0xff] %v9775_v55 }
 0xa1e   : > { %6577 = vtanh.f32 %v9626_v61 }
 0xa27   : > { %v6574_v5 = vpop.eup %6573 }
 0xa28   : > { %v4286_v9 = vmul.f32 %v6574_v5, %v6572_v36  ;;  %v6576_v21 = vpop.eup %6575  ;;  %v9778_v36 = vld [vmem:[#allocation14 + $0x70] sm:$0xff]  ;;  %v9781_v5 = vld [vmem:[#allocation14 + $0x48] sm:$0xff] }
 0xa29   : > { %11365 = vst [vmem:[#allocation56_spill] sm:$0xff] %v9778_v36  ;;  %11366 = vst [vmem:[#allocation20_spill] sm:$0xff] %v9781_v5 }
 0xa2a   : > { %4362 = vmatmul.mubr.f32.vlgmr.msra.gmra.mxu0 %v4286_v9  ;;  %4439 = vmatmul.mubr.f32.vlgmr.msra.gmra.mxu1 %v4286_v9  ;;  %v9784_v9 = vld [vmem:[#allocation14 + $0x58] sm:$0xff] }
 0xa2b   : > { %v6578_v62 = vpop.eup %6577  ;;  %4367 = vmatprep.mubr.f32.mxu0 %v10797_v54  ;;  %4444 = vmatprep.mubr.f32.mxu1 %v10797_v54  ;;  %11367 = vst [vmem:[#allocation58_spill] sm:$0xff] %v9784_v9 }
 0xa2c   : > { %v4287_v12 = vmul.f32 %v6578_v62, %v6576_v21  ;;  %4517 = vmatpush1.msra.mxu0 %v9631_v2  ;;  %4594 = vmatpush1.msra.mxu1 %v9634_v24  ;;  %v9787_v21 = vld [vmem:[#allocation14 + $0x40] sm:$0xff]  ;;  %v9790_v62 = vld [vmem:[#allocation14 + $0x50] sm:$0xff] }
 0xa2d   : > { %4518 = vmatprep.subr.mxu0 %v9637_v32  ;;  %4595 = vmatprep.subr.mxu1 %v9640_v10  ;;  %11368 = vst [vmem:[#allocation79_spill] sm:$0xff] %v9787_v21  ;;  %11369 = vst [vmem:[#allocation60_spill] sm:$0xff] %v9790_v62 }
 0xa2e   : > { %4368 = vmatmul.mubr.f32.gmra.mxu0 %v4287_v12  ;;  %4445 = vmatmul.mubr.f32.gmra.mxu1 %v4287_v12  ;;  %v9793_v12 = vld [vmem:[#allocation14 + $0x28] sm:$0xff] }
 0xa2f   : > { %4519 = vmatpush1.msra.mxu0 %v9643_v23  ;;  %4596 = vmatpush1.msra.mxu1 %v9646_v19  ;;  %11370 = vst [vmem:[#allocation81_spill] sm:$0xff] %v9793_v12 }
 0xa30   : > { %4520 = vmatprep.subr.mxu0 %v9649_v33  ;;  %4597 = vmatprep.subr.mxu1 %v9652_v3 }
 0xa31   : > { %4521 = vmatpush1.msra.mxu0 %v9655_v14  ;;  %4598 = vmatpush1.msra.mxu1 %v9658_v45 }
 0xa32   : > { %4522 = vmatprep.subr.mxu0 %v9661_v49  ;;  %4599 = vmatprep.subr.mxu1 %v9664_v38 }
 0xa33   : > { %4523 = vmatpush1.msra.mxu0 %v9667_v39  ;;  %4600 = vmatpush1.msra.mxu1 %v9670_v60 }
 0xa34   : > { %4524 = vmatprep.subr.mxu0 %v9673_v35  ;;  %4601 = vmatprep.subr.mxu1 %v9676_v20 }
 0xa35   : > { %4525 = vmatpush1.msra.mxu0 %v9679_v1  ;;  %4602 = vmatpush1.msra.mxu1 %v9682_v17 }
 0xa36   : > { %4526 = vmatprep.subr.mxu0 %v9685_v41  ;;  %4603 = vmatprep.subr.mxu1 %v9688_v30 }
 0xa37   : > { %4527 = vmatpush1.msra.mxu0 %v9691_v0  ;;  %4604 = vmatpush1.msra.mxu1 %v9694_v63 }
 0xa38   : > { %4528 = vmatprep.subr.mxu0 %v9697_v51  ;;  %4605 = vmatprep.subr.mxu1 %v9700_v50 }
 0xa39   : > { %4529 = vmatpush1.msra.mxu0 %v9703_v11  ;;  %4606 = vmatpush1.msra.mxu1 %v9706_v40 }
 0xa3a   : > { %4530 = vmatprep.subr.mxu0 %v9709_v34  ;;  %4607 = vmatprep.subr.mxu1 %v9712_v46 }
 0xa3b   : > { %4531 = vmatpush1.msra.mxu0 %v9715_v25  ;;  %4608 = vmatpush1.msra.mxu1 %v9718_v29 }
 0xa3c   : > { %4532 = vmatprep.subr.mxu0 %v9721_v42  ;;  %4609 = vmatprep.subr.mxu1 %v9724_v48 }
 0xa3d   : > { %4533 = vmatpush1.msra.mxu0 %v9727_v44  ;;  %4610 = vmatpush1.msra.mxu1 %v9730_v59 }
 0xa3e   : > { %4534 = vmatprep.subr.mxu0 %v9733_v15  ;;  %4611 = vmatprep.subr.mxu1 %v9736_v6 }
 0xa3f   : > { %4535 = vmatpush1.msra.mxu0 %v9739_v43  ;;  %4612 = vmatpush1.msra.mxu1 %v9742_v37 }
 0xa40   : > { %4536 = vmatprep.subr.mxu0 %v9745_v57  ;;  %4613 = vmatprep.subr.mxu1 %v9748_v28 }
 0xa41   : > { %4537 = vmatpush1.msra.mxu0 %v9751_v52  ;;  %4614 = vmatpush1.msra.mxu1 %v9754_v4 }
 0xa42   : > { %4538 = vmatprep.subr.mxu0 %v9757_v8  ;;  %4615 = vmatprep.subr.mxu1 %v9760_v58 }
 0xa43   : > { %4539 = vmatpush1.msra.mxu0 %v9763_v56  ;;  %4616 = vmatpush1.msra.mxu1 %v9766_v27 }
 0xa44   : > { %4540 = vmatprep.subr.mxu0 %v9769_v7  ;;  %4617 = vmatprep.subr.mxu1 %v9772_v31  ;;  %v11380_v7 = vld [vmem:[#allocation85_spill] sm:$0xff] }
 0xa45   : > { %4541 = vmatpush1.msra.mxu0 %v9775_v55  ;;  %4618 = vmatpush1.msra.mxu1 %v9778_v36  ;;  %v9796_v36 = vld [vmem:[#allocation14 + $0x38] sm:$0xff]  ;;  %v3494_v27 = vadd.f32 %v11380_v7, %v9492_v53 }
 0xa46   : > { %4542 = vmatprep.subr.mxu0 %v9781_v5  ;;  %4619 = vmatprep.subr.mxu1 %v9784_v9  ;;  %11371 = vst [vmem:[#allocation19_spill] sm:$0xff] %v9796_v36  ;;  %v9799_v5 = vld [vmem:[#allocation14 + $0x20] sm:$0xff]  ;;  %v9802_v9 = vld [vmem:[#allocation14 + $0x30] sm:$0xff] }
 0xa47   : > { %4543 = vmatpush1.msra.mxu0 %v9787_v21  ;;  %4620 = vmatpush1.msra.mxu1 %v9790_v62  ;;  %11372 = vst [vmem:[#allocation64_spill] sm:$0xff] %v9799_v5  ;;  %11373 = vst [vmem:[#allocation74_spill] sm:$0xff] %v9802_v9  ;;  %v9805_v21 = vld [vmem:[#allocation14 + $0x8] sm:$0xff]  ;;  %v9808_v62 = vld [vmem:[#allocation14 + $0x18] sm:$0xff] }
 0xa48   : > { %4544 = vmatprep.subr.mxu0 %v9793_v12  ;;  %4621 = vmatprep.subr.mxu1 %v9796_v36  ;;  %11374 = vst [vmem:[#allocation65_spill] sm:$0xff] %v9805_v21  ;;  %11375 = vst [vmem:[#allocation80_spill] sm:$0xff] %v9808_v62  ;;  %v9811_v12 = vld [vmem:[#allocation14] sm:$0xff]  ;;  %v9815_v36 = vld [vmem:[#allocation14 + $0x10] sm:$0xff] }
 0xa49   : > { %4545 = vmatpush1.msra.mxu0 %v9799_v5  ;;  %4622 = vmatpush1.msra.mxu1 %v9802_v9  ;;  %11376 = vst [vmem:[#allocation67_spill] sm:$0xff] %v9811_v12  ;;  %11377 = vst [vmem:[#allocation82_spill] sm:$0xff] %v9815_v36  ;;  %v11379_v5 = vld [vmem:[#allocation83_spill] sm:$0xff] }
 0xa4a   : > { %4546 = vmatprep.subr.mxu0 %v9805_v21  ;;  %4623 = vmatprep.subr.mxu1 %v9808_v62  ;;  %v11378_v21 = vld [vmem:[#allocation21_spill] sm:$0xff]  ;;  %v3490_v55 = vadd.f32 %v11379_v5, %v9497_v13 }
 0xa4b   : > { %4547 = vmatpush1.msra.mxu0 %v9811_v12  ;;  %4580 = vmatprep.mubr.f32.mxu0 %v10797_v54  ;;  %v3488_v9 = vadd.f32 %v11378_v21, %v9492_v53 }
 0xa4c   : > { %4624 = vmatpush1.msra.mxu1 %v9815_v36  ;;  %4657 = vmatprep.mubr.f32.mxu1 %v10797_v54 }
 0xa4d   : > { %4735 = vmatprep.subr.mxu0 %v9599_v18  ;;  %4812 = vmatprep.subr.mxu1 %v9602_v16  ;;  %v11381_v18 = vld [vmem:[#allocation23_spill] sm:$0xff] }
 0xa4e   : > { %v3496_v4 = vadd.f32 %v11381_v18, %v9497_v13  ;;  %v11384_v18 = vld [vmem:[#allocation84_spill] sm:$0xff] }
 0xaea   : > { %v4363_v62 = vpop.f32.mrf.mxu0  ;;  %v4440_v36 = vpop.f32.mrf.mxu1 }
 0xaeb   : > { %v4451_v12 = vadd.f32 %v4363_v62, %v3488_v9  ;;  %v11382_v9 = vld [vmem:[#allocation22_spill] sm:$0xff] }
 0xaec   : > { %v4365_v31 = vpop.f32.mrf.mxu0  ;;  %v4442_v28 = vpop.f32.mrf.mxu1  ;;  %v3649_v62 = vadd.f32 %v11382_v9, %v9514_v22 }
 0xaed   : > { %v5986_v56 = vmul.f32 -1.442695, %v4451_v12  ;;  %v4452_v58 = vadd.f32 %v4365_v31, %v3490_v55  ;;  %v11383_v31 = vld [vmem:[#allocation86_spill] sm:$0xff] }
 0xaee   : > { %v4369_v8 = vpop.f32.mrf.mxu0  ;;  %v4453_v12 = vadd.f32 %v4440_v36, %v3649_v62  ;;  %v4446_v53 = vpop.f32.mrf.mxu1  ;;  %v3655_v55 = vadd.f32 %v11383_v31, %v9514_v22 }
 0xaef   : > { %6579 = vpow2.f32 %v5986_v56  ;;  %v5987_v16 = vmul.f32 -1.442695, %v4452_v58  ;;  %v4455_v52 = vadd.f32 %v4369_v8, %v3494_v27  ;;  %v3651_v58 = vadd.f32 %v11384_v18, %v9519_v47 }
 0xaf0   : > { %v4371_v21 = vpop.f32.mrf.mxu0  ;;  %v4457_v8 = vadd.f32 %v4446_v53, %v3655_v55  ;;  %v5988_v56 = vmul.f32 -1.442695, %v4453_v12  ;;  %v4448_v27 = vpop.f32.mrf.mxu1 }
 0xaf1   : > { %6581 = vpow2.f32 %v5987_v16  ;;  %v5989_v57 = vmul.f32 -1.442695, %v4455_v52  ;;  %v4456_v5 = vadd.f32 %v4371_v21, %v3496_v4  ;;  %v4454_v16 = vadd.f32 %v4442_v28, %v3651_v58  ;;  %v11385_v4 = vld [vmem:[#allocation24_spill] sm:$0xff] }
 0xaf2   : > { %v3657_v21 = vadd.f32 %v11385_v4, %v9519_v47  ;;  %v5991_v9 = vmul.f32 -1.442695, %v4457_v8 }
 0xaf3   : > { %6583 = vpow2.f32 %v5989_v57  ;;  %v5990_v7 = vmul.f32 -1.442695, %v4456_v5 }
 0xaf4   : > { %v4458_v5 = vadd.f32 %v4448_v27, %v3657_v21 }
 0xaf5   : > { %6585 = vpow2.f32 %v5990_v7 }
 0xaf6   : > { %6587 = vpow2.f32 %v5988_v56 }
 0xaf7   : > { %6589 = vtanh.f32 %v4454_v16 }
 0xafc   : > { %v6580_v52 = vpop.eup %6579 }
 0xafd   : > { %v4477_v57 = vadd.f32 1.0, %v6580_v52 }
 0xafe   : > { %v6582_v36 = vpop.eup %6581 }
 0xaff   : > { %6591 = vrcp.f32 %v4477_v57  ;;  %v4478_v62 = vadd.f32 1.0, %v6582_v36 }
 0xb00   : > { %v6584_v7 = vpop.eup %6583  ;;  %6593 = vpow2.f32 %v5991_v9 }
 0xb01   : > { %6595 = vrcp.f32 %v4478_v62  ;;  %v4480_v31 = vadd.f32 1.0, %v6584_v7 }
 0xb02   : > { %v6586_v53 = vpop.eup %6585  ;;  %6597 = vtanh.f32 %v4458_v5 }
 0xb03   : > { %6599 = vrcp.f32 %v4480_v31  ;;  %v4481_v28 = vadd.f32 1.0, %v6586_v53  ;;  %v6588_v12 = vpop.eup %6587 }
 0xb04   : > { %v6590_v55 = vpop.eup %6589  ;;  %v4479_v52 = vadd.f32 1.0, %v6588_v12 }
 0xb05   : > { %6601 = vrcp.f32 %v4481_v28 }
 0xb06   : > { %6603 = vrcp.f32 %v4479_v52  ;;  %v11392_v52 = vld [vmem:[#allocation57_spill] sm:$0xff] }
 0xb0c   : > { %v6592_v18 = vpop.eup %6591 }
 0xb0d   : > { %v6594_v58 = vpop.eup %6593  ;;  %v4499_v8 = vmul.f32 %v6592_v18, %v6590_v55  ;;  %v11387_v55 = vld [vmem:[#allocation46_spill] sm:$0xff]  ;;  %v11388_v18 = vld [vmem:[#allocation53_spill] sm:$0xff] }
 0xb0e   : > { %v6596_v56 = vpop.eup %6595  ;;  %v4482_v36 = vadd.f32 1.0, %v6594_v58  ;;  %v11389_v58 = vld [vmem:[#allocation48_spill] sm:$0xff] }
 0xb0f   : > { %v6598_v16 = vpop.eup %6597  ;;  %v4497_v27 = vmul.f32 %v6596_v56, %v9622_v26  ;;  %v11391_v56 = vld [vmem:[#allocation50_spill] sm:$0xff] }
 0xb10   : > { %v6600_v4 = vpop.eup %6599 }
 0xb11   : > { %v9838_v21 = vadd.f32 %v4499_v8, %v4497_v27  ;;  %v4500_v9 = vmul.f32 %v6600_v4, %v6598_v16  ;;  %v11390_v8 = vld [vmem:[#allocation55_spill] sm:$0xff]  ;;  %v11393_v16 = vld [vmem:[#allocation52_spill] sm:$0xff]  ;;  %v11395_v4 = vld [vmem:[#allocation54_spill] sm:$0xff] }
 0xb12   : > { %v6602_v57 = vpop.eup %6601  ;;  %v11394_v27 = vld [vmem:[#allocation59_spill] sm:$0xff] }
 0xb13   : > { %6605 = vtanh.f32 %v9838_v21  ;;  %v4498_v5 = vmul.f32 %v6602_v57, %v9626_v61  ;;  %v6604_v7 = vpop.eup %6603  ;;  %v11386_v61 = vld [vmem:[#allocation51_spill] sm:$0xff]  ;;  %v11397_v57 = vld [vmem:[#allocation56_spill] sm:$0xff] }
 0xb14   : > { %6607 = vrcp.f32 %v4482_v36  ;;  %v11398_v36 = vld [vmem:[#allocation20_spill] sm:$0xff] }
 0xb15   : > { %v9842_v62 = vadd.f32 %v4500_v9, %v4498_v5  ;;  %v11396_v9 = vld [vmem:[#allocation61_spill] sm:$0xff]  ;;  %v11399_v5 = vld [vmem:[#allocation58_spill] sm:$0xff] }
 0xb17   : > { %6609 = vtanh.f32 %v9842_v62 }
 0xb20   : > { %v6606_v31 = vpop.eup %6605 }
 0xb21   : > { %v4505_v53 = vmul.f32 %v6606_v31, %v6604_v7  ;;  %v6608_v26 = vpop.eup %6607  ;;  %v11400_v7 = vld [vmem:[#allocation79_spill] sm:$0xff]  ;;  %v11401_v31 = vld [vmem:[#allocation60_spill] sm:$0xff] }
 0xb23   : > { %4581 = vmatmul.mubr.f32.vlgmr.msra.gmra.mxu0 %v4505_v53  ;;  %4658 = vmatmul.mubr.f32.vlgmr.msra.gmra.mxu1 %v4505_v53  ;;  %v11402_v53 = vld [vmem:[#allocation81_spill] sm:$0xff] }
 0xb24   : > { %v6610_v28 = vpop.eup %6609  ;;  %4586 = vmatprep.mubr.f32.mxu0 %v10797_v54  ;;  %4663 = vmatprep.mubr.f32.mxu1 %v10797_v54 }
 0xb25   : > { %v4506_v12 = vmul.f32 %v6610_v28, %v6608_v26  ;;  %4736 = vmatpush1.msra.mxu0 %v9631_v2  ;;  %4813 = vmatpush1.msra.mxu1 %v9634_v24  ;;  %v11403_v26 = vld [vmem:[#allocation19_spill] sm:$0xff]  ;;  %v11404_v28 = vld [vmem:[#allocation64_spill] sm:$0xff] }
 0xb26   : > { %4737 = vmatprep.subr.mxu0 %v9637_v32  ;;  %4814 = vmatprep.subr.mxu1 %v9640_v10 }
 0xb27   : > { %4587 = vmatmul.mubr.f32.gmra.mxu0 %v4506_v12  ;;  %4664 = vmatmul.mubr.f32.gmra.mxu1 %v4506_v12  ;;  %v11405_v12 = vld [vmem:[#allocation74_spill] sm:$0xff] }
 0xb28   : > { %4738 = vmatpush1.msra.mxu0 %v9643_v23  ;;  %4815 = vmatpush1.msra.mxu1 %v9646_v19 }
 0xb29   : > { %4739 = vmatprep.subr.mxu0 %v9649_v33  ;;  %4816 = vmatprep.subr.mxu1 %v9652_v3 }
 0xb2a   : > { %4740 = vmatpush1.msra.mxu0 %v9655_v14  ;;  %4817 = vmatpush1.msra.mxu1 %v9658_v45 }
 0xb2b   : > { %4741 = vmatprep.subr.mxu0 %v9661_v49  ;;  %4818 = vmatprep.subr.mxu1 %v9664_v38 }
 0xb2c   : > { %4742 = vmatpush1.msra.mxu0 %v9667_v39  ;;  %4819 = vmatpush1.msra.mxu1 %v9670_v60 }
 0xb2d   : > { %4743 = vmatprep.subr.mxu0 %v9673_v35  ;;  %4820 = vmatprep.subr.mxu1 %v9676_v20 }
 0xb2e   : > { %4744 = vmatpush1.msra.mxu0 %v9679_v1  ;;  %4821 = vmatpush1.msra.mxu1 %v9682_v17 }
 0xb2f   : > { %4745 = vmatprep.subr.mxu0 %v9685_v41  ;;  %4822 = vmatprep.subr.mxu1 %v9688_v30 }
 0xb30   : > { %4746 = vmatpush1.msra.mxu0 %v9691_v0  ;;  %4823 = vmatpush1.msra.mxu1 %v9694_v63 }
 0xb31   : > { %4747 = vmatprep.subr.mxu0 %v9697_v51  ;;  %4824 = vmatprep.subr.mxu1 %v9700_v50 }
 0xb32   : > { %4748 = vmatpush1.msra.mxu0 %v9703_v11  ;;  %4825 = vmatpush1.msra.mxu1 %v9706_v40 }
 0xb33   : > { %4749 = vmatprep.subr.mxu0 %v9709_v34  ;;  %4826 = vmatprep.subr.mxu1 %v9712_v46 }
 0xb34   : > { %4750 = vmatpush1.msra.mxu0 %v9715_v25  ;;  %4827 = vmatpush1.msra.mxu1 %v9718_v29 }
 0xb35   : > { %4751 = vmatprep.subr.mxu0 %v9721_v42  ;;  %4828 = vmatprep.subr.mxu1 %v9724_v48 }
 0xb36   : > { %4752 = vmatpush1.msra.mxu0 %v9727_v44  ;;  %4829 = vmatpush1.msra.mxu1 %v9730_v59 }
 0xb37   : > { %4753 = vmatprep.subr.mxu0 %v9733_v15  ;;  %4830 = vmatprep.subr.mxu1 %v9736_v6 }
 0xb38   : > { %4754 = vmatpush1.msra.mxu0 %v9739_v43  ;;  %4831 = vmatpush1.msra.mxu1 %v9742_v37 }
 0xb39   : > { %4755 = vmatprep.subr.mxu0 %v11386_v61  ;;  %4832 = vmatprep.subr.mxu1 %v11387_v55 }
 0xb3a   : > { %4756 = vmatpush1.msra.mxu0 %v11388_v18  ;;  %4833 = vmatpush1.msra.mxu1 %v11389_v58 }
 0xb3b   : > { %4757 = vmatprep.subr.mxu0 %v11390_v8  ;;  %4834 = vmatprep.subr.mxu1 %v11391_v56 }
 0xb3c   : > { %4758 = vmatpush1.msra.mxu0 %v11392_v52  ;;  %4835 = vmatpush1.msra.mxu1 %v11393_v16 }
 0xb3d   : > { %4759 = vmatprep.subr.mxu0 %v11394_v27  ;;  %4836 = vmatprep.subr.mxu1 %v11395_v4  ;;  %v11406_v4 = vld [vmem:[#allocation65_spill] sm:$0xff] }
 0xb3e   : > { %4760 = vmatpush1.msra.mxu0 %v11396_v9  ;;  %4837 = vmatpush1.msra.mxu1 %v11397_v57  ;;  %v11407_v9 = vld [vmem:[#allocation80_spill] sm:$0xff]  ;;  %v11408_v57 = vld [vmem:[#allocation67_spill] sm:$0xff] }
 0xb3f   : > { %4761 = vmatprep.subr.mxu0 %v11398_v36  ;;  %4838 = vmatprep.subr.mxu1 %v11399_v5  ;;  %v11409_v5 = vld [vmem:[#allocation82_spill] sm:$0xff] }
 0xb40   : > { %4762 = vmatpush1.msra.mxu0 %v11400_v7  ;;  %4839 = vmatpush1.msra.mxu1 %v11401_v31  ;;  %v11410_v31 = vld [vmem:[#allocation70_spill] sm:$0xff] }
 0xb41   : > { %4763 = vmatprep.subr.mxu0 %v11402_v53  ;;  %4840 = vmatprep.subr.mxu1 %v11403_v26  ;;  %v11411_v53 = vld [vmem:[#allocation73_spill] sm:$0xff]  ;;  %v11412_v26 = vld [vmem:[#allocation62_spill] sm:$0xff] }
 0xb42   : > { %4764 = vmatpush1.msra.mxu0 %v11404_v28  ;;  %4841 = vmatpush1.msra.mxu1 %v11405_v12  ;;  %v11413_v28 = vld [vmem:[#allocation27_spill] sm:$0xff] }
 0xb43   : > { %4765 = vmatprep.subr.mxu0 %v11406_v4  ;;  %4842 = vmatprep.subr.mxu1 %v11407_v9  ;;  %v3500_v7 = vadd.f32 %v11413_v28, %v11412_v26  ;;  %v11414_v4 = vld [vmem:[#allocation29_spill] sm:$0xff] }
 0xb44   : > { %4766 = vmatpush1.msra.mxu0 %v11408_v57  ;;  %4799 = vmatprep.mubr.f32.mxu0 %v10797_v54  ;;  %v3502_v36 = vadd.f32 %v11414_v4, %v9497_v13  ;;  %v11415_v57 = vld [vmem:[#allocation30_spill] sm:$0xff] }
 0xb45   : > { %4843 = vmatpush1.msra.mxu1 %v11409_v5  ;;  %4876 = vmatprep.mubr.f32.mxu1 %v10797_v54  ;;  %v3506_v16 = vadd.f32 %v11415_v57, %v11412_v26 }
 0xb46   : > { %4954 = vmatprep.subr.mxu0 %v11410_v31  ;;  %5031 = vmatprep.subr.mxu1 %v11411_v53  ;;  %v11416_v31 = vld [vmem:[#allocation31_spill] sm:$0xff] }
 0xb47   : > { %v3508_v58 = vadd.f32 %v11416_v31, %v9497_v13 }
 0xbe3   : > { %v4582_v12 = vpop.f32.mrf.mxu0  ;;  %v4659_v5 = vpop.f32.mrf.mxu1 }
 0xbe4   : > { %v4670_v9 = vadd.f32 %v4582_v12, %v3500_v7  ;;  %v11417_v7 = vld [vmem:[#allocation28_spill] sm:$0xff] }
 0xbe5   : > { %v4584_v27 = vpop.f32.mrf.mxu0  ;;  %v4661_v55 = vpop.f32.mrf.mxu1  ;;  %v3661_v12 = vadd.f32 %v11417_v7, %v9514_v22 }
 0xbe6   : > { %v5992_v52 = vmul.f32 -1.442695, %v4670_v9  ;;  %v4671_v56 = vadd.f32 %v4584_v27, %v3502_v36  ;;  %v11418_v27 = vld [vmem:[#allocation36_spill] sm:$0xff] }
 0xbe7   : > { %v4588_v8 = vpop.f32.mrf.mxu0  ;;  %v4672_v9 = vadd.f32 %v4659_v5, %v3661_v12  ;;  %v4665_v26 = vpop.f32.mrf.mxu1  ;;  %v3667_v36 = vadd.f32 %v11418_v27, %v9514_v22 }
 0xbe8   : > { %6611 = vpow2.f32 %v5992_v52  ;;  %v5993_v53 = vmul.f32 -1.442695, %v4671_v56  ;;  %v4674_v18 = vadd.f32 %v4588_v8, %v3506_v16  ;;  %v11419_v52 = vld [vmem:[#allocation35_spill] sm:$0xff] }
 0xbe9   : > { %v4590_v28 = vpop.f32.mrf.mxu0  ;;  %v3663_v56 = vadd.f32 %v11419_v52, %v9519_v47  ;;  %v4676_v8 = vadd.f32 %v4665_v26, %v3667_v36  ;;  %v5994_v16 = vmul.f32 -1.442695, %v4672_v9 }
 0xbea   : > { %6613 = vpow2.f32 %v5993_v53  ;;  %v5995_v61 = vmul.f32 -1.442695, %v4674_v18  ;;  %v4675_v4 = vadd.f32 %v4590_v28, %v3508_v58  ;;  %v4667_v53 = vpop.f32.mrf.mxu1  ;;  %v11420_v58 = vld [vmem:[#allocation38_spill] sm:$0xff] }
 0xbeb   : > { %v4673_v31 = vadd.f32 %v4661_v55, %v3663_v56  ;;  %v3669_v28 = vadd.f32 %v11420_v58, %v9519_v47  ;;  %v5997_v7 = vmul.f32 -1.442695, %v4676_v8 }
 0xbec   : > { %6615 = vpow2.f32 %v5995_v61  ;;  %v5996_v57 = vmul.f32 -1.442695, %v4675_v4 }
 0xbed   : > { %v4677_v4 = vadd.f32 %v4667_v53, %v3669_v28 }
 0xbee   : > { %6617 = vpow2.f32 %v5996_v57 }
 0xbef   : > { %6619 = vpow2.f32 %v5994_v16 }
 0xbf0   : > { %6621 = vtanh.f32 %v4673_v31 }
 0xbf5   : > { %v6612_v18 = vpop.eup %6611 }
 0xbf6   : > { %v4696_v61 = vadd.f32 1.0, %v6612_v18 }
 0xbf7   : > { %v6614_v5 = vpop.eup %6613 }
 0xbf8   : > { %6623 = vrcp.f32 %v4696_v61  ;;  %v4697_v12 = vadd.f32 1.0, %v6614_v5 }
 0xbf9   : > { %v6616_v57 = vpop.eup %6615  ;;  %6625 = vpow2.f32 %v5997_v7 }
 0xbfa   : > { %6627 = vrcp.f32 %v4697_v12  ;;  %v4699_v27 = vadd.f32 1.0, %v6616_v57 }
 0xbfb   : > { %v6618_v26 = vpop.eup %6617  ;;  %6629 = vtanh.f32 %v4677_v4 }
 0xbfc   : > { %6631 = vrcp.f32 %v4699_v27  ;;  %v4700_v55 = vadd.f32 1.0, %v6618_v26  ;;  %v6620_v9 = vpop.eup %6619 }
 0xbfd   : > { %v6622_v36 = vpop.eup %6621  ;;  %v4698_v18 = vadd.f32 1.0, %v6620_v9 }
 0xbfe   : > { %6633 = vrcp.f32 %v4700_v55 }
 0xbff   : > { %6635 = vrcp.f32 %v4698_v18  ;;  %v11427_v18 = vld [vmem:[#allocation57_spill] sm:$0xff] }
 0xc05   : > { %v6624_v52 = vpop.eup %6623 }
 0xc06   : > { %v6626_v56 = vpop.eup %6625  ;;  %v4718_v8 = vmul.f32 %v6624_v52, %v6622_v36  ;;  %v11422_v36 = vld [vmem:[#allocation46_spill] sm:$0xff]  ;;  %v11423_v52 = vld [vmem:[#allocation53_spill] sm:$0xff] }
 0xc07   : > { %v6628_v16 = vpop.eup %6627  ;;  %v4701_v5 = vadd.f32 1.0, %v6626_v56  ;;  %v11424_v56 = vld [vmem:[#allocation48_spill] sm:$0xff] }
 0xc08   : > { %v6630_v31 = vpop.eup %6629  ;;  %v4716_v53 = vmul.f32 %v6628_v16, %v9838_v21  ;;  %v11426_v16 = vld [vmem:[#allocation50_spill] sm:$0xff] }
 0xc09   : > { %v6632_v58 = vpop.eup %6631 }
 0xc0a   : > { %v9930_v28 = vadd.f32 %v4718_v8, %v4716_v53  ;;  %v4719_v7 = vmul.f32 %v6632_v58, %v6630_v31  ;;  %v11425_v8 = vld [vmem:[#allocation55_spill] sm:$0xff]  ;;  %v11428_v31 = vld [vmem:[#allocation52_spill] sm:$0xff]  ;;  %v11430_v58 = vld [vmem:[#allocation54_spill] sm:$0xff] }
 0xc0b   : > { %v6634_v61 = vpop.eup %6633  ;;  %v11429_v53 = vld [vmem:[#allocation59_spill] sm:$0xff] }
 0xc0c   : > { %6637 = vtanh.f32 %v9930_v28  ;;  %v4717_v4 = vmul.f32 %v6634_v61, %v9842_v62  ;;  %v6636_v57 = vpop.eup %6635  ;;  %v11421_v62 = vld [vmem:[#allocation51_spill] sm:$0xff]  ;;  %v11432_v61 = vld [vmem:[#allocation56_spill] sm:$0xff] }
 0xc0d   : > { %6639 = vrcp.f32 %v4701_v5  ;;  %v11433_v5 = vld [vmem:[#allocation20_spill] sm:$0xff] }
 0xc0e   : > { %v9934_v12 = vadd.f32 %v4719_v7, %v4717_v4  ;;  %v11431_v7 = vld [vmem:[#allocation61_spill] sm:$0xff]  ;;  %v11434_v4 = vld [vmem:[#allocation58_spill] sm:$0xff] }
 0xc10   : > { %6641 = vtanh.f32 %v9934_v12 }
 0xc19   : > { %v6638_v27 = vpop.eup %6637 }
 0xc1a   : > { %v4724_v26 = vmul.f32 %v6638_v27, %v6636_v57  ;;  %v6640_v21 = vpop.eup %6639  ;;  %v11435_v57 = vld [vmem:[#allocation79_spill] sm:$0xff]  ;;  %v11436_v27 = vld [vmem:[#allocation60_spill] sm:$0xff] }
 0xc1c   : > { %4800 = vmatmul.mubr.f32.vlgmr.msra.gmra.mxu0 %v4724_v26  ;;  %4877 = vmatmul.mubr.f32.vlgmr.msra.gmra.mxu1 %v4724_v26  ;;  %v11437_v26 = vld [vmem:[#allocation81_spill] sm:$0xff] }
 0xc1d   : > { %v6642_v55 = vpop.eup %6641  ;;  %4805 = vmatprep.mubr.f32.mxu0 %v10797_v54  ;;  %4882 = vmatprep.mubr.f32.mxu1 %v10797_v54 }
 0xc1e   : > { %v4725_v9 = vmul.f32 %v6642_v55, %v6640_v21  ;;  %4955 = vmatpush1.msra.mxu0 %v9631_v2  ;;  %5032 = vmatpush1.msra.mxu1 %v9634_v24  ;;  %v11438_v21 = vld [vmem:[#allocation19_spill] sm:$0xff]  ;;  %v11439_v55 = vld [vmem:[#allocation64_spill] sm:$0xff] }
 0xc1f   : > { %4956 = vmatprep.subr.mxu0 %v9637_v32  ;;  %5033 = vmatprep.subr.mxu1 %v9640_v10 }
 0xc20   : > { %4806 = vmatmul.mubr.f32.gmra.mxu0 %v4725_v9  ;;  %4883 = vmatmul.mubr.f32.gmra.mxu1 %v4725_v9  ;;  %v11440_v9 = vld [vmem:[#allocation74_spill] sm:$0xff] }
 0xc21   : > { %4957 = vmatpush1.msra.mxu0 %v9643_v23  ;;  %5034 = vmatpush1.msra.mxu1 %v9646_v19 }
 0xc22   : > { %4958 = vmatprep.subr.mxu0 %v9649_v33  ;;  %5035 = vmatprep.subr.mxu1 %v9652_v3 }
 0xc23   : > { %4959 = vmatpush1.msra.mxu0 %v9655_v14  ;;  %5036 = vmatpush1.msra.mxu1 %v9658_v45 }
 0xc24   : > { %4960 = vmatprep.subr.mxu0 %v9661_v49  ;;  %5037 = vmatprep.subr.mxu1 %v9664_v38 }
 0xc25   : > { %4961 = vmatpush1.msra.mxu0 %v9667_v39  ;;  %5038 = vmatpush1.msra.mxu1 %v9670_v60 }
 0xc26   : > { %4962 = vmatprep.subr.mxu0 %v9673_v35  ;;  %5039 = vmatprep.subr.mxu1 %v9676_v20 }
 0xc27   : > { %4963 = vmatpush1.msra.mxu0 %v9679_v1  ;;  %5040 = vmatpush1.msra.mxu1 %v9682_v17 }
 0xc28   : > { %4964 = vmatprep.subr.mxu0 %v9685_v41  ;;  %5041 = vmatprep.subr.mxu1 %v9688_v30 }
 0xc29   : > { %4965 = vmatpush1.msra.mxu0 %v9691_v0  ;;  %5042 = vmatpush1.msra.mxu1 %v9694_v63 }
 0xc2a   : > { %4966 = vmatprep.subr.mxu0 %v9697_v51  ;;  %5043 = vmatprep.subr.mxu1 %v9700_v50 }
 0xc2b   : > { %4967 = vmatpush1.msra.mxu0 %v9703_v11  ;;  %5044 = vmatpush1.msra.mxu1 %v9706_v40 }
 0xc2c   : > { %4968 = vmatprep.subr.mxu0 %v9709_v34  ;;  %5045 = vmatprep.subr.mxu1 %v9712_v46 }
 0xc2d   : > { %4969 = vmatpush1.msra.mxu0 %v9715_v25  ;;  %5046 = vmatpush1.msra.mxu1 %v9718_v29 }
 0xc2e   : > { %4970 = vmatprep.subr.mxu0 %v9721_v42  ;;  %5047 = vmatprep.subr.mxu1 %v9724_v48 }
 0xc2f   : > { %4971 = vmatpush1.msra.mxu0 %v9727_v44  ;;  %5048 = vmatpush1.msra.mxu1 %v9730_v59 }
 0xc30   : > { %4972 = vmatprep.subr.mxu0 %v9733_v15  ;;  %5049 = vmatprep.subr.mxu1 %v9736_v6 }
 0xc31   : > { %4973 = vmatpush1.msra.mxu0 %v9739_v43  ;;  %5050 = vmatpush1.msra.mxu1 %v9742_v37 }
 0xc32   : > { %4974 = vmatprep.subr.mxu0 %v11421_v62  ;;  %5051 = vmatprep.subr.mxu1 %v11422_v36 }
 0xc33   : > { %4975 = vmatpush1.msra.mxu0 %v11423_v52  ;;  %5052 = vmatpush1.msra.mxu1 %v11424_v56 }
 0xc34   : > { %4976 = vmatprep.subr.mxu0 %v11425_v8  ;;  %5053 = vmatprep.subr.mxu1 %v11426_v16 }
 0xc35   : > { %4977 = vmatpush1.msra.mxu0 %v11427_v18  ;;  %5054 = vmatpush1.msra.mxu1 %v11428_v31 }
 0xc36   : > { %4978 = vmatprep.subr.mxu0 %v11429_v53  ;;  %5055 = vmatprep.subr.mxu1 %v11430_v58  ;;  %v11441_v58 = vld [vmem:[#allocation65_spill] sm:$0xff] }
 0xc37   : > { %4979 = vmatpush1.msra.mxu0 %v11431_v7  ;;  %5056 = vmatpush1.msra.mxu1 %v11432_v61  ;;  %v11442_v7 = vld [vmem:[#allocation80_spill] sm:$0xff]  ;;  %v11443_v61 = vld [vmem:[#allocation67_spill] sm:$0xff] }
 0xc38   : > { %4980 = vmatprep.subr.mxu0 %v11433_v5  ;;  %5057 = vmatprep.subr.mxu1 %v11434_v4  ;;  %v11444_v4 = vld [vmem:[#allocation82_spill] sm:$0xff] }
 0xc39   : > { %4981 = vmatpush1.msra.mxu0 %v11435_v57  ;;  %5058 = vmatpush1.msra.mxu1 %v11436_v27  ;;  %v11445_v27 = vld [vmem:[#allocation70_spill] sm:$0xff] }
 0xc3a   : > { %4982 = vmatprep.subr.mxu0 %v11437_v26  ;;  %5059 = vmatprep.subr.mxu1 %v11438_v21  ;;  %v11446_v26 = vld [vmem:[#allocation73_spill] sm:$0xff]  ;;  %v11447_v21 = vld [vmem:[#allocation62_spill] sm:$0xff] }
 0xc3b   : > { %4983 = vmatpush1.msra.mxu0 %v11439_v55  ;;  %5060 = vmatpush1.msra.mxu1 %v11440_v9  ;;  %v11448_v55 = vld [vmem:[#allocation32_spill] sm:$0xff] }
 0xc3c   : > { %4984 = vmatprep.subr.mxu0 %v11441_v58  ;;  %5061 = vmatprep.subr.mxu1 %v11442_v7  ;;  %v3512_v57 = vadd.f32 %v11448_v55, %v11447_v21  ;;  %v11449_v58 = vld [vmem:[#allocation33_spill] sm:$0xff] }
 0xc3d   : > { %4985 = vmatpush1.msra.mxu0 %v11443_v61  ;;  %5018 = vmatprep.mubr.f32.mxu0 %v10797_v54  ;;  %v3514_v5 = vadd.f32 %v11449_v58, %v9497_v13  ;;  %v11450_v61 = vld [vmem:[#allocation34_spill] sm:$0xff] }
 0xc3e   : > { %5062 = vmatpush1.msra.mxu1 %v11444_v4  ;;  %5095 = vmatprep.mubr.f32.mxu1 %v10797_v54  ;;  %v3518_v31 = vadd.f32 %v11450_v61, %v11447_v21 }
 0xc3f   : > { %5173 = vmatprep.subr.mxu0 %v11445_v27  ;;  %5250 = vmatprep.subr.mxu1 %v11446_v26  ;;  %v11451_v27 = vld [vmem:[#allocation37_spill] sm:$0xff] }
 0xc40   : > { %v3520_v56 = vadd.f32 %v11451_v27, %v9497_v13 }
 0xcdc   : > { %v4801_v9 = vpop.f32.mrf.mxu0  ;;  %v4878_v4 = vpop.f32.mrf.mxu1 }
 0xcdd   : > { %v4889_v7 = vadd.f32 %v4801_v9, %v3512_v57  ;;  %v11452_v57 = vld [vmem:[#allocation40_spill] sm:$0xff] }
 0xcde   : > { %v4803_v53 = vpop.f32.mrf.mxu0  ;;  %v4880_v36 = vpop.f32.mrf.mxu1  ;;  %v3673_v9 = vadd.f32 %v11452_v57, %v9514_v22 }
 0xcdf   : > { %v5998_v18 = vmul.f32 -1.442695, %v4889_v7  ;;  %v4890_v16 = vadd.f32 %v4803_v53, %v3514_v5  ;;  %v11453_v53 = vld [vmem:[#allocation43_spill] sm:$0xff] }
 0xce0   : > { %v4807_v8 = vpop.f32.mrf.mxu0  ;;  %v4891_v7 = vadd.f32 %v4878_v4, %v3673_v9  ;;  %v4884_v21 = vpop.f32.mrf.mxu1  ;;  %v3679_v5 = vadd.f32 %v11453_v53, %v9514_v22 }
 0xce1   : > { %6643 = vpow2.f32 %v5998_v18  ;;  %v5999_v26 = vmul.f32 -1.442695, %v4890_v16  ;;  %v4893_v52 = vadd.f32 %v4807_v8, %v3518_v31  ;;  %v11454_v18 = vld [vmem:[#allocation42_spill] sm:$0xff] }
 0xce2   : > { %v4809_v55 = vpop.f32.mrf.mxu0  ;;  %v3675_v16 = vadd.f32 %v11454_v18, %v9519_v47  ;;  %v4895_v8 = vadd.f32 %v4884_v21, %v3679_v5  ;;  %v6000_v31 = vmul.f32 -1.442695, %v4891_v7 }
 0xce3   : > { %6645 = vpow2.f32 %v5999_v26  ;;  %v6001_v62 = vmul.f32 -1.442695, %v4893_v52  ;;  %v4894_v58 = vadd.f32 %v4809_v55, %v3520_v56  ;;  %v4886_v26 = vpop.f32.mrf.mxu1  ;;  %v11455_v56 = vld [vmem:[#allocation45_spill] sm:$0xff] }
 0xce4   : > { %v4892_v27 = vadd.f32 %v4880_v36, %v3675_v16  ;;  %v3681_v55 = vadd.f32 %v11455_v56, %v9519_v47  ;;  %v6003_v57 = vmul.f32 -1.442695, %v4895_v8 }
 0xce5   : > { %6647 = vpow2.f32 %v6001_v62  ;;  %v6002_v61 = vmul.f32 -1.442695, %v4894_v58 }
 0xce6   : > { %v4896_v58 = vadd.f32 %v4886_v26, %v3681_v55 }
 0xce7   : > { %6649 = vpow2.f32 %v6002_v61 }
 0xce8   : > { %6651 = vpow2.f32 %v6000_v31 }
 0xce9   : > { %6653 = vtanh.f32 %v4892_v27 }
 0xcee   : > { %v6644_v52 = vpop.eup %6643 }
 0xcef   : > { %v4915_v62 = vadd.f32 1.0, %v6644_v52 }
 0xcf0   : > { %v6646_v4 = vpop.eup %6645 }
 0xcf1   : > { %6655 = vrcp.f32 %v4915_v62  ;;  %v4916_v9 = vadd.f32 1.0, %v6646_v4 }
 0xcf2   : > { %v6648_v61 = vpop.eup %6647  ;;  %6657 = vpow2.f32 %v6003_v57 }
 0xcf3   : > { %6659 = vrcp.f32 %v4916_v9  ;;  %v4918_v53 = vadd.f32 1.0, %v6648_v61 }
 0xcf4   : > { %v6650_v21 = vpop.eup %6649  ;;  %6661 = vtanh.f32 %v4896_v58 }
 0xcf5   : > { %6663 = vrcp.f32 %v4918_v53  ;;  %v4919_v36 = vadd.f32 1.0, %v6650_v21  ;;  %v6652_v7 = vpop.eup %6651 }
 0xcf6   : > { %v6654_v5 = vpop.eup %6653  ;;  %v4917_v52 = vadd.f32 1.0, %v6652_v7 }
 0xcf7   : > { %6665 = vrcp.f32 %v4919_v36 }
 0xcf8   : > { %6667 = vrcp.f32 %v4917_v52 }
 0xcfe   : > { %v6656_v18 = vpop.eup %6655 }
 0xcff   : > { %v6658_v16 = vpop.eup %6657  ;;  %v4937_v8 = vmul.f32 %v6656_v18, %v6654_v5  ;;  %v11484_v18 = vld [vmem:[#allocation26_spill] sm:$0xff] }
 0xd00   : > { %v6660_v31 = vpop.eup %6659  ;;  %v4920_v4 = vadd.f32 1.0, %v6658_v16  ;;  %v3532_v16 = vadd.f32 %v11484_v18, %v9497_v13  ;;  %v6969_v18 = vld [vmem:[#allocation14 + $0x1c0] sm:$0xff] }
 0xd01   : > { %v6662_v27 = vpop.eup %6661  ;;  %v4935_v26 = vmul.f32 %v6660_v31, %v9930_v28 }
 0xd02   : > { %v6664_v56 = vpop.eup %6663 }
 0xd03   : > { %v10022_v55 = vadd.f32 %v4937_v8, %v4935_v26  ;;  %v4938_v57 = vmul.f32 %v6664_v56, %v6662_v27 }
 0xd04   : > { %v6666_v62 = vpop.eup %6665 }
 0xd05   : > { %6669 = vtanh.f32 %v10022_v55  ;;  %v4936_v58 = vmul.f32 %v6666_v62, %v9934_v12  ;;  %v6668_v61 = vpop.eup %6667 }
 0xd06   : > { %6671 = vrcp.f32 %v4920_v4 }
 0xd07   : > { %v10026_v9 = vadd.f32 %v4938_v57, %v4936_v58  ;;  %v11485_v57 = vld [vmem:[#allocation47_spill] sm:$0xff] }
 0xd08   : > { %v3685_v62 = vadd.f32 %v11485_v57, %v9514_v22  ;;  %v6977_v57 = vld [vmem:[#allocation14 + $0x180] sm:$0xff] }
 0xd09   : > { %6673 = vtanh.f32 %v10026_v9 }
 0xd12   : > { %v6670_v53 = vpop.eup %6669 }
 0xd13   : > { %v4943_v21 = vmul.f32 %v6670_v53, %v6668_v61  ;;  %v6672_v28 = vpop.eup %6671  ;;  %v11486_v53 = vld [vmem:[#allocation25_spill] sm:$0xff] }
 0xd15   : > { %5019 = vmatmul.mubr.f32.vlgmr.msra.gmra.mxu0 %v4943_v21  ;;  %5096 = vmatmul.mubr.f32.vlgmr.msra.gmra.mxu1 %v4943_v21  ;;  %v3691_v21 = vadd.f32 %v11486_v53, %v9514_v22  ;;  %v6982_v53 = vld [vmem:[#allocation14 + $0x170] sm:$0xff] }
 0xd16   : > { %v6674_v36 = vpop.eup %6673  ;;  %5024 = vmatprep.mubr.f32.mxu0 %v10797_v54  ;;  %5101 = vmatprep.mubr.f32.mxu1 %v10797_v54 }
 0xd17   : > { %v4944_v7 = vmul.f32 %v6674_v36, %v6672_v28  ;;  %5174 = vmatpush1.msra.mxu0 %v9631_v2  ;;  %5251 = vmatpush1.msra.mxu1 %v9634_v24  ;;  %v11456_v2 = vld [vmem:[#allocation51_spill] sm:$0xff]  ;;  %v11457_v24 = vld [vmem:[#allocation46_spill] sm:$0xff]  ;;  %v11487_v28 = vld [vmem:[#allocation49_spill] sm:$0xff] }
 0xd18   : > { %5175 = vmatprep.subr.mxu0 %v9637_v32  ;;  %5252 = vmatprep.subr.mxu1 %v9640_v10  ;;  %v11458_v32 = vld [vmem:[#allocation53_spill] sm:$0xff]  ;;  %v11459_v10 = vld [vmem:[#allocation48_spill] sm:$0xff]  ;;  %v3687_v36 = vadd.f32 %v11487_v28, %v9519_v47 }
 0xd19   : > { %5025 = vmatmul.mubr.f32.gmra.mxu0 %v4944_v7  ;;  %5102 = vmatmul.mubr.f32.gmra.mxu1 %v4944_v7  ;;  %v6984_v28 = vld [vmem:[#allocation14 + $0x158] sm:$0xff] }
 0xd1a   : > { %5176 = vmatpush1.msra.mxu0 %v9643_v23  ;;  %5253 = vmatpush1.msra.mxu1 %v9646_v19  ;;  %v11460_v23 = vld [vmem:[#allocation55_spill] sm:$0xff]  ;;  %v11461_v19 = vld [vmem:[#allocation50_spill] sm:$0xff] }
 0xd1b   : > { %5177 = vmatprep.subr.mxu0 %v9649_v33  ;;  %5254 = vmatprep.subr.mxu1 %v9652_v3  ;;  %v11462_v33 = vld [vmem:[#allocation57_spill] sm:$0xff]  ;;  %v11463_v3 = vld [vmem:[#allocation52_spill] sm:$0xff] }
 0xd1c   : > { %5178 = vmatpush1.msra.mxu0 %v9655_v14  ;;  %5255 = vmatpush1.msra.mxu1 %v9658_v45  ;;  %v11464_v14 = vld [vmem:[#allocation59_spill] sm:$0xff]  ;;  %v11465_v45 = vld [vmem:[#allocation54_spill] sm:$0xff] }
 0xd1d   : > { %5179 = vmatprep.subr.mxu0 %v9661_v49  ;;  %5256 = vmatprep.subr.mxu1 %v9664_v38  ;;  %v11466_v49 = vld [vmem:[#allocation61_spill] sm:$0xff]  ;;  %v11467_v38 = vld [vmem:[#allocation56_spill] sm:$0xff] }
 0xd1e   : > { %5180 = vmatpush1.msra.mxu0 %v9667_v39  ;;  %5257 = vmatpush1.msra.mxu1 %v9670_v60  ;;  %v11468_v39 = vld [vmem:[#allocation20_spill] sm:$0xff]  ;;  %v11469_v60 = vld [vmem:[#allocation58_spill] sm:$0xff] }
 0xd1f   : > { %5181 = vmatprep.subr.mxu0 %v9673_v35  ;;  %5258 = vmatprep.subr.mxu1 %v9676_v20  ;;  %v11470_v35 = vld [vmem:[#allocation79_spill] sm:$0xff]  ;;  %v11471_v20 = vld [vmem:[#allocation60_spill] sm:$0xff] }
 0xd20   : > { %5182 = vmatpush1.msra.mxu0 %v9679_v1  ;;  %5259 = vmatpush1.msra.mxu1 %v9682_v17  ;;  %v11472_v1 = vld [vmem:[#allocation81_spill] sm:$0xff]  ;;  %v11473_v17 = vld [vmem:[#allocation19_spill] sm:$0xff] }
 0xd21   : > { %5183 = vmatprep.subr.mxu0 %v9685_v41  ;;  %5260 = vmatprep.subr.mxu1 %v9688_v30  ;;  %v11474_v41 = vld [vmem:[#allocation64_spill] sm:$0xff]  ;;  %v11475_v30 = vld [vmem:[#allocation74_spill] sm:$0xff] }
 0xd22   : > { %5184 = vmatpush1.msra.mxu0 %v9691_v0  ;;  %5261 = vmatpush1.msra.mxu1 %v9694_v63  ;;  %v11476_v0 = vld [vmem:[#allocation65_spill] sm:$0xff]  ;;  %v11477_v63 = vld [vmem:[#allocation80_spill] sm:$0xff] }
 0xd23   : > { %5185 = vmatprep.subr.mxu0 %v9697_v51  ;;  %5262 = vmatprep.subr.mxu1 %v9700_v50  ;;  %v11478_v51 = vld [vmem:[#allocation67_spill] sm:$0xff]  ;;  %v11479_v50 = vld [vmem:[#allocation82_spill] sm:$0xff] }
 0xd24   : > { %5186 = vmatpush1.msra.mxu0 %v9703_v11  ;;  %5263 = vmatpush1.msra.mxu1 %v9706_v40  ;;  %v6963_v11 = vld [vmem:[#allocation14 + $0x1e8] sm:$0xff]  ;;  %v6964_v40 = vld [vmem:[#allocation14 + $0x1f8] sm:$0xff] }
 0xd25   : > { %5187 = vmatprep.subr.mxu0 %v9709_v34  ;;  %5264 = vmatprep.subr.mxu1 %v9712_v46  ;;  %v11480_v34 = vld [vmem:[#allocation62_spill] sm:$0xff]  ;;  %v11481_v46 = vld [vmem:[#allocation39_spill] sm:$0xff] }
 0xd26   : > { %5188 = vmatpush1.msra.mxu0 %v9715_v25  ;;  %5265 = vmatpush1.msra.mxu1 %v9718_v29  ;;  %v3524_v25 = vadd.f32 %v11481_v46, %v11480_v34 }
 0xd27   : > { %5189 = vmatprep.subr.mxu0 %v9721_v42  ;;  %5266 = vmatprep.subr.mxu1 %v9724_v48  ;;  %v11482_v42 = vld [vmem:[#allocation41_spill] sm:$0xff] }
 0xd28   : > { %5190 = vmatpush1.msra.mxu0 %v9727_v44  ;;  %5267 = vmatpush1.msra.mxu1 %v9730_v59  ;;  %v3526_v48 = vadd.f32 %v11482_v42, %v9497_v13 }
 0xd29   : > { %5191 = vmatprep.subr.mxu0 %v9733_v15  ;;  %5268 = vmatprep.subr.mxu1 %v9736_v6  ;;  %v11483_v15 = vld [vmem:[#allocation44_spill] sm:$0xff] }
 0xd2a   : > { %5192 = vmatpush1.msra.mxu0 %v9739_v43  ;;  %5269 = vmatpush1.msra.mxu1 %v9742_v37  ;;  %v3530_v6 = vadd.f32 %v11483_v15, %v11480_v34 }
 0xd2b   : > { %5193 = vmatprep.subr.mxu0 %v11456_v2  ;;  %5270 = vmatprep.subr.mxu1 %v11457_v24 }
 0xd2c   : > { %5194 = vmatpush1.msra.mxu0 %v11458_v32  ;;  %5271 = vmatpush1.msra.mxu1 %v11459_v10 }
 0xd2d   : > { %5195 = vmatprep.subr.mxu0 %v11460_v23  ;;  %5272 = vmatprep.subr.mxu1 %v11461_v19  ;;  %v11488_v23 = vld [vmem:[#allocation87_spill] sm:$0xff] }
 0xd2e   : > { %5196 = vmatpush1.msra.mxu0 %v11462_v33  ;;  %5273 = vmatpush1.msra.mxu1 %v11463_v3  ;;  %v3693_v19 = vadd.f32 %v11488_v23, %v9519_v47  ;;  %v6991_v23 = vld [vmem:[#allocation14 + $0x108] sm:$0xff] }
 0xd2f   : > { %5197 = vmatprep.subr.mxu0 %v11464_v14  ;;  %5274 = vmatprep.subr.mxu1 %v11465_v45 }
 0xd30   : > { %5198 = vmatpush1.msra.mxu0 %v11466_v49  ;;  %5275 = vmatpush1.msra.mxu1 %v11467_v38 }
 0xd31   : > { %5199 = vmatprep.subr.mxu0 %v11468_v39  ;;  %5276 = vmatprep.subr.mxu1 %v11469_v60 }
 0xd32   : > { %5200 = vmatpush1.msra.mxu0 %v11470_v35  ;;  %5277 = vmatpush1.msra.mxu1 %v11471_v20 }
 0xd33   : > { %5201 = vmatprep.subr.mxu0 %v11472_v1  ;;  %5278 = vmatprep.subr.mxu1 %v11473_v17 }
 0xd34   : > { %5202 = vmatpush1.msra.mxu0 %v11474_v41  ;;  %5279 = vmatpush1.msra.mxu1 %v11475_v30 }
 0xd35   : > { %5203 = vmatprep.subr.mxu0 %v11476_v0  ;;  %5280 = vmatprep.subr.mxu1 %v11477_v63 }
 0xd36   : > { %5204 = vmatpush1.msra.mxu0 %v11478_v51  ;;  %5237 = vmatprep.mubr.f32.mxu0 %v10797_v54 }
 0xd37   : > { %5281 = vmatpush1.msra.mxu1 %v11479_v50  ;;  %5314 = vmatprep.mubr.f32.mxu1 %v10797_v54 }
 0xd38   : > { %5392 = vmatprep.subr.mxu0 %v6963_v11  ;;  %5469 = vmatprep.subr.mxu1 %v6964_v40 }
 0xdd5   : > { %v5020_v29 = vpop.f32.mrf.mxu0  ;;  %v5097_v37 = vpop.f32.mrf.mxu1 }
 0xdd6   : > { %v5108_v44 = vadd.f32 %v5020_v29, %v3524_v25  ;;  %v5110_v58 = vadd.f32 %v5097_v37, %v3685_v62  ;;  %v6965_v37 = vld [vmem:[#allocation14 + $0x1e0] sm:$0xff]  ;;  %v6978_v62 = vld [vmem:[#allocation14 + $0x190] sm:$0xff] }
 0xdd7   : > { %v5022_v59 = vpop.f32.mrf.mxu0  ;;  %v5099_v27 = vpop.f32.mrf.mxu1 }
 0xdd8   : > { %v6004_v43 = vmul.f32 -1.442695, %v5108_v44  ;;  %v5109_v12 = vadd.f32 %v5022_v59, %v3526_v48  ;;  %v6006_v2 = vmul.f32 -1.442695, %v5110_v58  ;;  %v5111_v24 = vadd.f32 %v5099_v27, %v3687_v36  ;;  %v6974_v27 = vld [vmem:[#allocation14 + $0x1b0] sm:$0xff]  ;;  %v6980_v58 = vld [vmem:[#allocation14 + $0x178] sm:$0xff] }
 0xdd9   : > { %v5026_v5 = vpop.f32.mrf.mxu0  ;;  %v5103_v61 = vpop.f32.mrf.mxu1  ;;  %v6985_v36 = vld [vmem:[#allocation14 + $0x140] sm:$0xff] }
 0xdda   : > { %6675 = vpow2.f32 %v6004_v43  ;;  %v6005_v8 = vmul.f32 -1.442695, %v5109_v12  ;;  %v5112_v31 = vadd.f32 %v5026_v5, %v3530_v6  ;;  %v5114_v7 = vadd.f32 %v5103_v61, %v3691_v21  ;;  %v6967_v12 = vld [vmem:[#allocation14 + $0x1c8] sm:$0xff]  ;;  %v6968_v5 = vld [vmem:[#allocation14 + $0x1d8] sm:$0xff]  ;;  %v6981_v61 = vld [vmem:[#allocation14 + $0x160] sm:$0xff] }
 0xddb   : > { %v5028_v52 = vpop.f32.mrf.mxu0  ;;  %v5105_v32 = vpop.f32.mrf.mxu1  ;;  %v6983_v21 = vld [vmem:[#allocation14 + $0x148] sm:$0xff] }
 0xddc   : > { %6677 = vpow2.f32 %v6005_v8  ;;  %v6007_v26 = vmul.f32 -1.442695, %v5112_v31  ;;  %v5113_v56 = vadd.f32 %v5028_v52, %v3532_v16  ;;  %v6009_v33 = vmul.f32 -1.442695, %v5114_v7  ;;  %v6970_v16 = vld [vmem:[#allocation14 + $0x1d0] sm:$0xff]  ;;  %v6971_v8 = vld [vmem:[#allocation14 + $0x1a8] sm:$0xff] }
 0xddd   : > { %v5115_v45 = vadd.f32 %v5105_v32, %v3693_v19  ;;  %v6972_v31 = vld [vmem:[#allocation14 + $0x1b8] sm:$0xff]  ;;  %v6973_v52 = vld [vmem:[#allocation14 + $0x1a0] sm:$0xff]  ;;  %v6986_v7 = vld [vmem:[#allocation14 + $0x150] sm:$0xff] }
 0xdde   : > { %6679 = vpow2.f32 %v6007_v26  ;;  %v6008_v4 = vmul.f32 -1.442695, %v5113_v56  ;;  %v6975_v26 = vld [vmem:[#allocation14 + $0x188] sm:$0xff]  ;;  %v6976_v56 = vld [vmem:[#allocation14 + $0x198] sm:$0xff]  ;;  %v6989_v32 = vld [vmem:[#allocation14 + $0x120] sm:$0xff] }
 0xddf   : > { %v6992_v19 = vld [vmem:[#allocation14 + $0x118] sm:$0xff] }
 0xde0   : > { %6681 = vpow2.f32 %v6008_v4  ;;  %v6979_v4 = vld [vmem:[#allocation14 + $0x168] sm:$0xff] }
 0xde1   : > { %6683 = vpow2.f32 %v6006_v2  ;;  %v6987_v2 = vld [vmem:[#allocation14 + $0x128] sm:$0xff] }
 0xde2   : > { %6685 = vtanh.f32 %v5111_v24  ;;  %v6988_v24 = vld [vmem:[#allocation14 + $0x138] sm:$0xff] }
 0xde7   : > { %v6676_v10 = vpop.eup %6675 }
 0xde8   : > { %v5134_v3 = vadd.f32 1.0, %v6676_v10  ;;  %v6990_v10 = vld [vmem:[#allocation14 + $0x130] sm:$0xff] }
 0xde9   : > { %v6678_v14 = vpop.eup %6677 }
 0xdea   : > { %6687 = vrcp.f32 %v5134_v3  ;;  %v5135_v49 = vadd.f32 1.0, %v6678_v14  ;;  %v6994_v3 = vld [vmem:[#allocation14 + $0x110] sm:$0xff]  ;;  %v6995_v14 = vld [vmem:[#allocation14 + $0xe8] sm:$0xff] }
 0xdeb   : > { %v6680_v38 = vpop.eup %6679  ;;  %6689 = vpow2.f32 %v6009_v33  ;;  %v6993_v33 = vld [vmem:[#allocation14 + $0x100] sm:$0xff] }
 0xdec   : > { %6691 = vrcp.f32 %v5135_v49  ;;  %v5137_v39 = vadd.f32 1.0, %v6680_v38  ;;  %v6997_v49 = vld [vmem:[#allocation14 + $0xe0] sm:$0xff]  ;;  %v6998_v38 = vld [vmem:[#allocation14 + $0xf0] sm:$0xff] }
 0xded   : > { %v6682_v60 = vpop.eup %6681  ;;  %6693 = vtanh.f32 %v5115_v45  ;;  %v6996_v45 = vld [vmem:[#allocation14 + $0xf8] sm:$0xff] }
 0xdee   : > { %6695 = vrcp.f32 %v5137_v39  ;;  %v5138_v35 = vadd.f32 1.0, %v6682_v60  ;;  %v6684_v20 = vpop.eup %6683  ;;  %v6999_v39 = vld [vmem:[#allocation14 + $0xc8] sm:$0xff]  ;;  %v7000_v60 = vld [vmem:[#allocation14 + $0xd8] sm:$0xff] }
 0xdef   : > { %v6686_v1 = vpop.eup %6685  ;;  %v5136_v63 = vadd.f32 1.0, %v6684_v20  ;;  %v7002_v20 = vld [vmem:[#allocation14 + $0xd0] sm:$0xff] }
 0xdf0   : > { %6697 = vrcp.f32 %v5138_v35  ;;  %v7001_v35 = vld [vmem:[#allocation14 + $0xc0] sm:$0xff] }
 0xdf1   : > { %6699 = vrcp.f32 %v5136_v63  ;;  %v7008_v63 = vld [vmem:[#allocation14 + $0x98] sm:$0xff] }
 0xdf7   : > { %v6688_v17 = vpop.eup %6687 }
 0xdf8   : > { %v6690_v41 = vpop.eup %6689  ;;  %v5156_v30 = vmul.f32 %v6688_v17, %v6686_v1  ;;  %v7003_v1 = vld [vmem:[#allocation14 + $0xa8] sm:$0xff]  ;;  %v7004_v17 = vld [vmem:[#allocation14 + $0xb8] sm:$0xff] }
 0xdf9   : > { %v6692_v0 = vpop.eup %6691  ;;  %v5139_v29 = vadd.f32 1.0, %v6690_v41  ;;  %v7005_v41 = vld [vmem:[#allocation14 + $0xa0] sm:$0xff] }
 0xdfa   : > { %v6694_v51 = vpop.eup %6693  ;;  %v5154_v50 = vmul.f32 %v6692_v0, %v10022_v55  ;;  %v7007_v0 = vld [vmem:[#allocation14 + $0x88] sm:$0xff] }
 0xdfb   : > { %v6696_v11 = vpop.eup %6695 }
 0xdfc   : > { %v10112_v40 = vadd.f32 %v5156_v30, %v5154_v50  ;;  %v5157_v46 = vmul.f32 %v6696_v11, %v6694_v51  ;;  %v7006_v30 = vld [vmem:[#allocation14 + $0xb0] sm:$0xff]  ;;  %v7009_v51 = vld [vmem:[#allocation14 + $0x80] sm:$0xff]  ;;  %v7011_v11 = vld [vmem:[#allocation14 + $0x68] sm:$0xff] }
 0xdfd   : > { %v6698_v25 = vpop.eup %6697  ;;  %v7010_v50 = vld [vmem:[#allocation14 + $0x90] sm:$0xff] }
 0xdfe   : > { %6701 = vtanh.f32 %v10112_v40  ;;  %v5155_v42 = vmul.f32 %v6698_v25, %v10026_v9  ;;  %v6700_v44 = vpop.eup %6699  ;;  %v6966_v9 = vld [vmem:[#allocation14 + $0x1f0] sm:$0xff]  ;;  %v7013_v25 = vld [vmem:[#allocation14 + $0x60] sm:$0xff] }
 0xdff   : > { %6703 = vrcp.f32 %v5139_v29  ;;  %v7014_v29 = vld [vmem:[#allocation14 + $0x70] sm:$0xff] }
 0xe00   : > { %v10116_v48 = vadd.f32 %v5157_v46, %v5155_v42  ;;  %v7012_v46 = vld [vmem:[#allocation14 + $0x78] sm:$0xff]  ;;  %v7015_v42 = vld [vmem:[#allocation14 + $0x48] sm:$0xff] }
 0xe02   : > { %6705 = vtanh.f32 %v10116_v48 }
 0xe0b   : > { %v6702_v59 = vpop.eup %6701 }
 0xe0c   : > { %v5162_v15 = vmul.f32 %v6702_v59, %v6700_v44  ;;  %v6704_v55 = vpop.eup %6703  ;;  %v7016_v44 = vld [vmem:[#allocation14 + $0x58] sm:$0xff]  ;;  %v7017_v59 = vld [vmem:[#allocation14 + $0x40] sm:$0xff] }
 0xe0e   : > { %5238 = vmatmul.mubr.f32.vlgmr.msra.gmra.mxu0 %v5162_v15  ;;  %5315 = vmatmul.mubr.f32.vlgmr.msra.gmra.mxu1 %v5162_v15  ;;  %v7018_v15 = vld [vmem:[#allocation14 + $0x50] sm:$0xff] }
 0xe0f   : > { %v6706_v6 = vpop.eup %6705  ;;  %5243 = vmatprep.mubr.f32.mxu0 %v10797_v54  ;;  %5320 = vmatprep.mubr.f32.mxu1 %v10797_v54 }
 0xe10   : > { %v5163_v43 = vmul.f32 %v6706_v6, %v6704_v55  ;;  %5393 = vmatpush1.msra.mxu0 %v6965_v37  ;;  %5470 = vmatpush1.msra.mxu1 %v6966_v9  ;;  %v7019_v55 = vld [vmem:[#allocation14 + $0x28] sm:$0xff]  ;;  %v7020_v6 = vld [vmem:[#allocation14 + $0x38] sm:$0xff]  ;;  %v7022_v37 = vld [vmem:[#allocation14 + $0x30] sm:$0xff] }
 0xe11   : > { %5394 = vmatprep.subr.mxu0 %v6967_v12  ;;  %5471 = vmatprep.subr.mxu1 %v6968_v5  ;;  %v7023_v9 = vld [vmem:[#allocation14 + $0x8] sm:$0xff]  ;;  %v7024_v12 = vld [vmem:[#allocation14 + $0x18] sm:$0xff]  ;;  %v7025_v5 = vld [vmem:[#allocation14] sm:$0xff] }
 0xe12   : > { %5244 = vmatmul.mubr.f32.gmra.mxu0 %v5163_v43  ;;  %5321 = vmatmul.mubr.f32.gmra.mxu1 %v5163_v43  ;;  %v7021_v43 = vld [vmem:[#allocation14 + $0x20] sm:$0xff] }
 0xe13   : > { %5395 = vmatpush1.msra.mxu0 %v6969_v18  ;;  %5472 = vmatpush1.msra.mxu1 %v6970_v16  ;;  %v7026_v18 = vld [vmem:[#allocation14 + $0x10] sm:$0xff]  ;;  %v11489_v16 = vld [vmem:[#allocation88_spill] sm:$0xff] }
 0xe14   : > { %5396 = vmatprep.subr.mxu0 %v6971_v8  ;;  %5473 = vmatprep.subr.mxu1 %v6972_v31  ;;  %v3536_v8 = vadd.f32 %v11489_v16, %v11480_v34 }
 0xe15   : > { %5397 = vmatpush1.msra.mxu0 %v6973_v52  ;;  %5474 = vmatpush1.msra.mxu1 %v6974_v27  ;;  %v11490_v52 = vld [vmem:[#allocation90_spill] sm:$0xff] }
 0xe16   : > { %5398 = vmatprep.subr.mxu0 %v6975_v26  ;;  %5475 = vmatprep.subr.mxu1 %v6976_v56  ;;  %v3538_v27 = vadd.f32 %v11490_v52, %v9497_v13 }
 0xe17   : > { %5399 = vmatpush1.msra.mxu0 %v6977_v57  ;;  %5476 = vmatpush1.msra.mxu1 %v6978_v62  ;;  %v11491_v57 = vld [vmem:[#allocation92_spill] sm:$0xff] }
 0xe18   : > { %5400 = vmatprep.subr.mxu0 %v6979_v4  ;;  %5477 = vmatprep.subr.mxu1 %v6980_v58  ;;  %v3542_v62 = vadd.f32 %v11491_v57, %v11480_v34 }
 0xe19   : > { %5401 = vmatpush1.msra.mxu0 %v6981_v61  ;;  %5478 = vmatpush1.msra.mxu1 %v6982_v53  ;;  %v11492_v53 = vld [vmem:[#allocation94_spill] sm:$0xff] }
 0xe1a   : > { %5402 = vmatprep.subr.mxu0 %v6983_v21  ;;  %5479 = vmatprep.subr.mxu1 %v6984_v28  ;;  %v3544_v21 = vadd.f32 %v11492_v53, %v9497_v13  ;;  %v11498_v53 = vld [vmem:[#allocation98_spill] sm:$0xff] }
 0xe1b   : > { %5403 = vmatpush1.msra.mxu0 %v6985_v36  ;;  %5480 = vmatpush1.msra.mxu1 %v6986_v7 }
 0xe1c   : > { %5404 = vmatprep.subr.mxu0 %v6987_v2  ;;  %5481 = vmatprep.subr.mxu1 %v6988_v24 }
 0xe1d   : > { %5405 = vmatpush1.msra.mxu0 %v6989_v32  ;;  %5482 = vmatpush1.msra.mxu1 %v6990_v10  ;;  %v11493_v10 = vld [vmem:[#allocation89_spill] sm:$0xff] }
 0xe1e   : > { %5406 = vmatprep.subr.mxu0 %v6991_v23  ;;  %5483 = vmatprep.subr.mxu1 %v6992_v19  ;;  %v3697_v23 = vadd.f32 %v11493_v10, %v9514_v22 }
 0xe1f   : > { %5407 = vmatpush1.msra.mxu0 %v6993_v33  ;;  %5484 = vmatpush1.msra.mxu1 %v6994_v3 }
 0xe20   : > { %5408 = vmatprep.subr.mxu0 %v6995_v14  ;;  %5485 = vmatprep.subr.mxu1 %v6996_v45  ;;  %v11494_v45 = vld [vmem:[#allocation91_spill] sm:$0xff] }
 0xe21   : > { %5409 = vmatpush1.msra.mxu0 %v6997_v49  ;;  %5486 = vmatpush1.msra.mxu1 %v6998_v38  ;;  %v3699_v49 = vadd.f32 %v11494_v45, %v9519_v47  ;;  %v11495_v38 = vld [vmem:[#allocation93_spill] sm:$0xff] }
 0xe22   : > { %5410 = vmatprep.subr.mxu0 %v6999_v39  ;;  %5487 = vmatprep.subr.mxu1 %v7000_v60  ;;  %v3703_v39 = vadd.f32 %v11495_v38, %v9514_v22 }
 0xe23   : > { %5411 = vmatpush1.msra.mxu0 %v7001_v35  ;;  %5488 = vmatpush1.msra.mxu1 %v7002_v20 }
 0xe24   : > { %5412 = vmatprep.subr.mxu0 %v7003_v1  ;;  %5489 = vmatprep.subr.mxu1 %v7004_v17 }
 0xe25   : > { %5413 = vmatpush1.msra.mxu0 %v7005_v41  ;;  %5490 = vmatpush1.msra.mxu1 %v7006_v30 }
 0xe26   : > { %5414 = vmatprep.subr.mxu0 %v7007_v0  ;;  %5491 = vmatprep.subr.mxu1 %v7008_v63  ;;  %v11496_v0 = vld [vmem:[#allocation95_spill] sm:$0xff] }
 0xe27   : > { %5415 = vmatpush1.msra.mxu0 %v7009_v51  ;;  %5492 = vmatpush1.msra.mxu1 %v7010_v50  ;;  %v3705_v63 = vadd.f32 %v11496_v0, %v9519_v47 }
 0xe28   : > { %5416 = vmatprep.subr.mxu0 %v7011_v11  ;;  %5493 = vmatprep.subr.mxu1 %v7012_v46 }
 0xe29   : > { %5417 = vmatpush1.msra.mxu0 %v7013_v25  ;;  %5494 = vmatpush1.msra.mxu1 %v7014_v29 }
 0xe2a   : > { %5418 = vmatprep.subr.mxu0 %v7015_v42  ;;  %5495 = vmatprep.subr.mxu1 %v7016_v44 }
 0xe2b   : > { %5419 = vmatpush1.msra.mxu0 %v7017_v59  ;;  %5496 = vmatpush1.msra.mxu1 %v7018_v15 }
 0xe2c   : > { %5420 = vmatprep.subr.mxu0 %v7019_v55  ;;  %5497 = vmatprep.subr.mxu1 %v7020_v6 }
 0xe2d   : > { %5421 = vmatpush1.msra.mxu0 %v7021_v43  ;;  %5498 = vmatpush1.msra.mxu1 %v7022_v37 }
 0xe2e   : > { %5422 = vmatprep.subr.mxu0 %v7023_v9  ;;  %5499 = vmatprep.subr.mxu1 %v7024_v12 }
 0xe2f   : > { %5423 = vmatpush1.msra.mxu0 %v7025_v5  ;;  %5456 = vmatprep.mubr.f32.mxu0 %v10797_v54 }
 0xe30   : > { %5500 = vmatpush1.msra.mxu1 %v7026_v18  ;;  %5533 = vmatprep.mubr.f32.mxu1 %v10797_v54 }
 0xece   : > { %v5239_v31 = vpop.f32.mrf.mxu0  ;;  %v5316_v28 = vpop.f32.mrf.mxu1 }
 0xecf   : > { %v5327_v26 = vadd.f32 %v5239_v31, %v3536_v8  ;;  %v5329_v3 = vadd.f32 %v5316_v28, %v3697_v23 }
 0xed0   : > { %v5241_v56 = vpop.f32.mrf.mxu0  ;;  %v5318_v19 = vpop.f32.mrf.mxu1 }
 0xed1   : > { %v6010_v4 = vmul.f32 -1.442695, %v5327_v26  ;;  %v5328_v58 = vadd.f32 %v5241_v56, %v3538_v27  ;;  %v6012_v60 = vmul.f32 -1.442695, %v5329_v3  ;;  %v5330_v35 = vadd.f32 %v5318_v19, %v3699_v49 }
 0xed2   : > { %v5245_v61 = vpop.f32.mrf.mxu0  ;;  %v5322_v14 = vpop.f32.mrf.mxu1 }
 0xed3   : > { %6707 = vpow2.f32 %v6010_v4  ;;  %v6011_v36 = vmul.f32 -1.442695, %v5328_v58  ;;  %v5331_v7 = vadd.f32 %v5245_v61, %v3542_v62  ;;  %v5333_v20 = vadd.f32 %v5322_v14, %v3703_v39  ;;  %v11501_v39 = vld [vmem:[#allocation97_spill] sm:$0xff] }
 0xed4   : > { %v5247_v2 = vpop.f32.mrf.mxu0  ;;  %v5324_v41 = vpop.f32.mrf.mxu1 }
 0xed5   : > { %6709 = vpow2.f32 %v6011_v36  ;;  %v6013_v24 = vmul.f32 -1.442695, %v5331_v7  ;;  %v5332_v32 = vadd.f32 %v5247_v2, %v3544_v21  ;;  %v6015_v51 = vmul.f32 -1.442695, %v5333_v20  ;;  %v11499_v7 = vld [vmem:[#allocation100_spill] sm:$0xff] }
 0xed6   : > { %v5334_v46 = vadd.f32 %v5324_v41, %v3705_v63  ;;  %v3550_v21 = vadd.f32 %v11498_v53, %v9497_v13  ;;  %v3554_v2 = vadd.f32 %v11499_v7, %v11480_v34 }
 0xed7   : > { %6711 = vpow2.f32 %v6013_v24  ;;  %v6014_v33 = vmul.f32 -1.442695, %v5332_v32 }
 0xed9   : > { %6713 = vpow2.f32 %v6014_v33 }
 0xeda   : > { %6715 = vpow2.f32 %v6012_v60  ;;  %v3709_v60 = vadd.f32 %v11501_v39, %v9514_v22 }
 0xedb   : > { %6717 = vtanh.f32 %v5330_v35 }
 0xee0   : > { %v6708_v1 = vpop.eup %6707 }
 0xee1   : > { %v5353_v17 = vadd.f32 1.0, %v6708_v1  ;;  %v11502_v1 = vld [vmem:[#allocation63_spill] sm:$0xff] }
 0xee2   : > { %v6710_v30 = vpop.eup %6709 }
 0xee3   : > { %6719 = vrcp.f32 %v5353_v17  ;;  %v5354_v50 = vadd.f32 1.0, %v6710_v30  ;;  %v3715_v17 = vadd.f32 %v11502_v1, %v9514_v22 }
 0xee4   : > { %v6712_v11 = vpop.eup %6711 }
 0xee5   : > { %6721 = vrcp.f32 %v5354_v50  ;;  %v5356_v25 = vadd.f32 1.0, %v6712_v11  ;;  %v11504_v11 = vld [vmem:[#allocation102_spill] sm:$0xff] }
 0xee6   : > { %v6714_v29 = vpop.eup %6713  ;;  %6723 = vpow2.f32 %v6015_v51 }
 0xee7   : > { %6725 = vrcp.f32 %v5356_v25  ;;  %v5357_v42 = vadd.f32 1.0, %v6714_v29  ;;  %v6716_v44 = vpop.eup %6715 }
 0xee8   : > { %6727 = vtanh.f32 %v5334_v46  ;;  %v6718_v59 = vpop.eup %6717  ;;  %v5355_v43 = vadd.f32 1.0, %v6716_v44  ;;  %v3717_v46 = vadd.f32 %v11504_v11, %v9519_v47 }
 0xee9   : > { %6729 = vrcp.f32 %v5357_v42 }
 0xeea   : > { %6731 = vrcp.f32 %v5355_v43 }
 0xef0   : > { %v6720_v15 = vpop.eup %6719 }
 0xef1   : > { %v5375_v55 = vmul.f32 %v6720_v15, %v6718_v59 }
 0xef2   : > { %v6722_v6 = vpop.eup %6721 }
 0xef3   : > { %v6724_v37 = vpop.eup %6723  ;;  %v5373_v9 = vmul.f32 %v6722_v6, %v10112_v40 }
 0xef4   : > { %v6726_v12 = vpop.eup %6725  ;;  %v5358_v8 = vadd.f32 1.0, %v6724_v37 }
 0xef5   : > { %v6728_v5 = vpop.eup %6727  ;;  %v10140_v18 = vadd.f32 %v5375_v55, %v5373_v9 }
 0xef6   : > { %v6730_v16 = vpop.eup %6729  ;;  %v5376_v52 = vmul.f32 %v6728_v5, %v6726_v12 }
 0xef7   : > { %6733 = vtanh.f32 %v10140_v18  ;;  %v5374_v31 = vmul.f32 %v6730_v16, %v10116_v48  ;;  %v6732_v26 = vpop.eup %6731  ;;  %v11497_v48 = vld [vmem:[#allocation96_spill] sm:$0xff] }
 0xef8   : > { %6735 = vrcp.f32 %v5358_v8  ;;  %v3548_v58 = vadd.f32 %v11497_v48, %v11480_v34 }
 0xef9   : > { %v10144_v27 = vadd.f32 %v5376_v52, %v5374_v31 }
 0xefb   : > { %6737 = vtanh.f32 %v10144_v27 }
 0xf04   : > { %v6734_v56 = vpop.eup %6733 }
 0xf05   : > { %v5381_v40 = vmul.f32 %v6734_v56, %v6732_v26  ;;  %v6736_v57 = vpop.eup %6735 }
 0xf07   : > { %5457 = vmatmul.mubr.f32.vlgmr.msra.gmra.mxu0 %v5381_v40  ;;  %5534 = vmatmul.mubr.f32.vlgmr.msra.gmra.mxu1 %v5381_v40 }
 0xf08   : > { %v6738_v62 = vpop.eup %6737  ;;  %5462 = vmatprep.mubr.f32.mxu0 %v10797_v54  ;;  %5539 = vmatprep.mubr.f32.mxu1 %v10797_v54  ;;  %v11500_v54 = vld [vmem:[#allocation101_spill] sm:$0xff] }
 0xf09   : > { %v5382_v4 = vmul.f32 %v6738_v62, %v6736_v57  ;;  %v3556_v19 = vadd.f32 %v11500_v54, %v9497_v13  ;;  %v11503_v13 = vld [vmem:[#allocation99_spill] sm:$0xff] }
 0xf0a   : > { %v3711_v41 = vadd.f32 %v11503_v13, %v9519_v47 }
 0xf0b   : > { %5463 = vmatmul.mubr.f32.gmra.mxu0 %v5382_v4  ;;  %5540 = vmatmul.mubr.f32.gmra.mxu1 %v5382_v4 }
 0xfc7   : > { %v5458_v61 = vpop.f32.mrf.mxu0  ;;  %v5535_v32 = vpop.f32.mrf.mxu1 }
 0xfc8   : > { %v5546_v28 = vadd.f32 %v5458_v61, %v3548_v58  ;;  %v5548_v35 = vadd.f32 %v5535_v32, %v3709_v60 }
 0xfc9   : > { %v5460_v36 = vpop.f32.mrf.mxu0  ;;  %v5537_v45 = vpop.f32.mrf.mxu1 }
 0xfca   : > { %v6016_v24 = vmul.f32 -1.442695, %v5546_v28  ;;  %v5547_v10 = vadd.f32 %v5460_v36, %v3550_v21  ;;  %v6018_v0 = vmul.f32 -1.442695, %v5548_v35  ;;  %v5549_v63 = vadd.f32 %v5537_v45, %v3711_v41 }
 0xfcb   : > { %v5464_v23 = vpop.f32.mrf.mxu0  ;;  %v5541_v20 = vpop.f32.mrf.mxu1 }
 0xfcc   : > { %6739 = vpow2.f32 %v6016_v24  ;;  %v6017_v33 = vmul.f32 -1.442695, %v5547_v10  ;;  %v5550_v3 = vadd.f32 %v5464_v23, %v3554_v2  ;;  %v5552_v30 = vadd.f32 %v5541_v20, %v3715_v17 }
 0xfcd   : > { %v5466_v14 = vpop.f32.mrf.mxu0  ;;  %v5543_v51 = vpop.f32.mrf.mxu1 }
 0xfce   : > { %6741 = vpow2.f32 %v6017_v33  ;;  %v6019_v49 = vmul.f32 -1.442695, %v5550_v3  ;;  %v5551_v38 = vadd.f32 %v5466_v14, %v3556_v19  ;;  %v6021_v25 = vmul.f32 -1.442695, %v5552_v30 }
 0xfcf   : > { %v5553_v44 = vadd.f32 %v5543_v51, %v3717_v46 }
 0xfd0   : > { %6743 = vpow2.f32 %v6019_v49  ;;  %v6020_v34 = vmul.f32 -1.442695, %v5551_v38 }
 0xfd2   : > { %6745 = vpow2.f32 %v6020_v34 }
 0xfd3   : > { %6747 = vpow2.f32 %v6018_v0 }
 0xfd4   : > { %6749 = vtanh.f32 %v5549_v63 }
 0xfd9   : > { %v6740_v50 = vpop.eup %6739 }
 0xfda   : > { %v5572_v29 = vadd.f32 1.0, %v6740_v50 }
 0xfdb   : > { %v6742_v42 = vpop.eup %6741 }
 0xfdc   : > { %6751 = vrcp.f32 %v5572_v29  ;;  %v5573_v59 = vadd.f32 1.0, %v6742_v42 }
 0xfdd   : > { %v6744_v22 = vpop.eup %6743  ;;  %6753 = vpow2.f32 %v6021_v25 }
 0xfde   : > { %6755 = vrcp.f32 %v5573_v59  ;;  %v5575_v15 = vadd.f32 1.0, %v6744_v22 }
 0xfdf   : > { %v6746_v55 = vpop.eup %6745  ;;  %6757 = vtanh.f32 %v5553_v44 }
 0xfe0   : > { %6759 = vrcp.f32 %v5575_v15  ;;  %v5576_v6 = vadd.f32 1.0, %v6746_v55  ;;  %v6748_v43 = vpop.eup %6747 }
 0xfe1   : > { %v6750_v37 = vpop.eup %6749  ;;  %v5574_v16 = vadd.f32 1.0, %v6748_v43 }
 0xfe2   : > { %6761 = vrcp.f32 %v5576_v6 }
 0xfe3   : > { %6763 = vrcp.f32 %v5574_v16 }
 0xfe9   : > { %v6752_v47 = vpop.eup %6751 }
 0xfea   : > { %v6754_v9 = vpop.eup %6753  ;;  %v5594_v12 = vmul.f32 %v6752_v47, %v6750_v37 }
 0xfeb   : > { %v6756_v5 = vpop.eup %6755  ;;  %v5577_v57 = vadd.f32 1.0, %v6754_v9 }
 0xfec   : > { %v6758_v8 = vpop.eup %6757  ;;  %v5592_v31 = vmul.f32 %v6756_v5, %v10140_v18 }
 0xfed   : > { %v6760_v52 = vpop.eup %6759 }
 0xfee   : > { %v5596_v26 = vadd.f32 %v5594_v12, %v5592_v31  ;;  %v5595_v56 = vmul.f32 %v6760_v52, %v6758_v8 }
 0xfef   : > { %v6762_v40 = vpop.eup %6761 }
 0xff0   : > { %6765 = vtanh.f32 %v5596_v26  ;;  %5604 = vst [vmem:[#allocation8] sm:$0xff] %v5596_v26  ;;  %v5593_v62 = vmul.f32 %v6762_v40, %v10144_v27  ;;  %v6764_v48 = vpop.eup %6763 }
 0xff1   : > { %6767 = vrcp.f32 %v5577_v57 }
 0xff2   : > { %v5597_v4 = vadd.f32 %v5595_v56, %v5593_v62 }
 0xff4   : > { %6769 = vtanh.f32 %v5597_v4  ;;  %5605 = vst [vmem:[#allocation8 + $0x8] sm:$0xff] %v5597_v4 }
 0xffd   : > { %v6766_v58 = vpop.eup %6765 }
 0xffe   : > { %v5600_v61 = vmul.f32 %v6766_v58, %v6764_v48  ;;  %v6768_v53 = vpop.eup %6767 }
0x1000   : > { %5602 = vst [vmem:[#allocation7 + $0x8] sm:$0xff] %v5600_v61  ;;  %5609 = sbr.rel (%p6022_p2) target bundleno = 4532 (0x11b4), region = 84 }
0x1001   : > { %v6770_v18 = vpop.eup %6769 }
0x1002   : > { %v10167_v21 = vmul.f32 %v6770_v18, %v6768_v53 }
0x1004   : > { %5603 = vst [vmem:[#allocation7] sm:$0xff] %v10167_v21 }
0x1005   : > { %v5625_v27 = vld [vmem:[%s10307_s7 + $0x78] sm:$0xff]  ;;  %v5624_v28 = vld [vmem:[%s10307_s7 + $0x70] sm:$0xff]  ;;  %6098 = vmatprep.mubr.f32.mxu0 %v5600_v61  ;;  %v5623_v36 = vld [vmem:[%s10307_s7 + $0x68] sm:$0xff] }
0x1006   : > { %6066 = vmatprep.subr.mxu0 %v5625_v27  ;;  %v5622_v7 = vld [vmem:[%s10307_s7 + $0x60] sm:$0xff]  ;;  %v5725_v2 = vld [vmem:[%s10309_s9 + $0x78] sm:$0xff]  ;;  %v5724_v24 = vld [vmem:[%s10309_s9 + $0x70] sm:$0xff] }
0x1007   : > { %6067 = vmatpush3.msra.mxu0 %v5625_v27  ;;  %v5621_v32 = vld [vmem:[%s10307_s7 + $0x58] sm:$0xff]  ;;  %6101 = vmatprep.subr.mxu1 %v5725_v2  ;;  %v5723_v10 = vld [vmem:[%s10309_s9 + $0x68] sm:$0xff]  ;;  %v5620_v23 = vld [vmem:[%s10307_s7 + $0x50] sm:$0xff] }
0x1008   : > { %6068 = vmatprep.subr.mxu0 %v5624_v28  ;;  %6102 = vmatpush3.msra.mxu1 %v5725_v2  ;;  %v5722_v54 = vld [vmem:[%s10309_s9 + $0x60] sm:$0xff]  ;;  %v5619_v19 = vld [vmem:[%s10307_s7 + $0x48] sm:$0xff]  ;;  %v5721_v33 = vld [vmem:[%s10309_s9 + $0x58] sm:$0xff] }
0x1009   : > { %6069 = vmatpush3.msra.mxu0 %v5624_v28  ;;  %6103 = vmatprep.subr.mxu1 %v5724_v24  ;;  %v5618_v3 = vld [vmem:[%s10307_s7 + $0x40] sm:$0xff]  ;;  %v5720_v14 = vld [vmem:[%s10309_s9 + $0x50] sm:$0xff]  ;;  %v5617_v45 = vld [vmem:[%s10307_s7 + $0x38] sm:$0xff] }
0x100a   : > { %6070 = vmatprep.subr.mxu0 %v5623_v36  ;;  %6104 = vmatpush3.msra.mxu1 %v5724_v24  ;;  %v5719_v49 = vld [vmem:[%s10309_s9 + $0x48] sm:$0xff]  ;;  %v5616_v38 = vld [vmem:[%s10307_s7 + $0x30] sm:$0xff]  ;;  %v5718_v39 = vld [vmem:[%s10309_s9 + $0x40] sm:$0xff] }
0x100b   : > { %6071 = vmatpush3.msra.mxu0 %v5623_v36  ;;  %6105 = vmatprep.subr.mxu1 %v5723_v10  ;;  %v5615_v60 = vld [vmem:[%s10307_s7 + $0x28] sm:$0xff]  ;;  %v5717_v34 = vld [vmem:[%s10309_s9 + $0x38] sm:$0xff]  ;;  %v5614_v35 = vld [vmem:[%s10307_s7 + $0x20] sm:$0xff] }
0x100c   : > { %6072 = vmatprep.subr.mxu0 %v5622_v7  ;;  %6106 = vmatpush3.msra.mxu1 %v5723_v10  ;;  %v5716_v20 = vld [vmem:[%s10309_s9 + $0x30] sm:$0xff]  ;;  %v5613_v1 = vld [vmem:[%s10307_s7 + $0x18] sm:$0xff]  ;;  %v5715_v17 = vld [vmem:[%s10309_s9 + $0x28] sm:$0xff] }
0x100d   : > { %6073 = vmatpush3.msra.mxu0 %v5622_v7  ;;  %6107 = vmatprep.subr.mxu1 %v5722_v54  ;;  %v5612_v13 = vld [vmem:[%s10307_s7 + $0x10] sm:$0xff]  ;;  %v5714_v41 = vld [vmem:[%s10309_s9 + $0x20] sm:$0xff]  ;;  %v5611_v30 = vld [vmem:[%s10307_s7 + $0x8] sm:$0xff] }
0x100e   : > { %6074 = vmatprep.subr.mxu0 %v5621_v32  ;;  %6108 = vmatpush3.msra.mxu1 %v5722_v54  ;;  %v5610_v0 = vld [vmem:[%s10307_s7] sm:$0xff]  ;;  %v5713_v63 = vld [vmem:[%s10309_s9 + $0x18] sm:$0xff]  ;;  %v5712_v51 = vld [vmem:[%s10309_s9 + $0x10] sm:$0xff] }
0x100f   : > { %6075 = vmatpush3.msra.mxu0 %v5621_v32  ;;  %6109 = vmatprep.subr.mxu1 %v5721_v33  ;;  %v5711_v50 = vld [vmem:[%s10309_s9 + $0x8] sm:$0xff]  ;;  %v5710_v11 = vld [vmem:[%s10309_s9] sm:$0xff] }
0x1010   : > { %6076 = vmatprep.subr.mxu0 %v5620_v23  ;;  %6110 = vmatpush3.msra.mxu1 %v5721_v33  ;;  %v6023_v46 = vld [vmem:[%s10308_s8] ss:$0 sm:$0xff] }
0x1011   : > { %6077 = vmatpush3.msra.mxu0 %v5620_v23  ;;  %6111 = vmatprep.subr.mxu1 %v5720_v14  ;;  %v6024_v15 = vld [vmem:[%s10310_s10] ss:$0 sm:$0xff] }
0x1012   : > { %6078 = vmatprep.subr.mxu0 %v5619_v19  ;;  %6112 = vmatpush3.msra.mxu1 %v5720_v14 }
0x1013   : > { %6079 = vmatpush3.msra.mxu0 %v5619_v19  ;;  %6113 = vmatprep.subr.mxu1 %v5719_v49 }
0x1014   : > { %6080 = vmatprep.subr.mxu0 %v5618_v3  ;;  %6114 = vmatpush3.msra.mxu1 %v5719_v49 }
0x1015   : > { %6081 = vmatpush3.msra.mxu0 %v5618_v3  ;;  %6115 = vmatprep.subr.mxu1 %v5718_v39 }
0x1016   : > { %6082 = vmatprep.subr.mxu0 %v5617_v45  ;;  %6116 = vmatpush3.msra.mxu1 %v5718_v39 }
0x1017   : > { %6083 = vmatpush3.msra.mxu0 %v5617_v45  ;;  %6117 = vmatprep.subr.mxu1 %v5717_v34 }
0x1018   : > { %6084 = vmatprep.subr.mxu0 %v5616_v38  ;;  %6118 = vmatpush3.msra.mxu1 %v5717_v34 }
0x1019   : > { %6085 = vmatpush3.msra.mxu0 %v5616_v38  ;;  %6119 = vmatprep.subr.mxu1 %v5716_v20 }
0x101a   : > { %6086 = vmatprep.subr.mxu0 %v5615_v60  ;;  %6120 = vmatpush3.msra.mxu1 %v5716_v20 }
0x101b   : > { %6087 = vmatpush3.msra.mxu0 %v5615_v60  ;;  %6121 = vmatprep.subr.mxu1 %v5715_v17 }
0x101c   : > { %6088 = vmatprep.subr.mxu0 %v5614_v35  ;;  %6122 = vmatpush3.msra.mxu1 %v5715_v17 }
0x101d   : > { %6089 = vmatpush3.msra.mxu0 %v5614_v35  ;;  %6123 = vmatprep.subr.mxu1 %v5714_v41 }
0x101e   : > { %6090 = vmatprep.subr.mxu0 %v5613_v1  ;;  %6124 = vmatpush3.msra.mxu1 %v5714_v41 }
0x101f   : > { %6091 = vmatpush3.msra.mxu0 %v5613_v1  ;;  %6125 = vmatprep.subr.mxu1 %v5713_v63 }
0x1020   : > { %6092 = vmatprep.subr.mxu0 %v5612_v13  ;;  %6126 = vmatpush3.msra.mxu1 %v5713_v63 }
0x1021   : > { %6093 = vmatpush3.msra.mxu0 %v5612_v13  ;;  %6127 = vmatprep.subr.mxu1 %v5712_v51 }
0x1022   : > { %6094 = vmatprep.subr.mxu0 %v5611_v30  ;;  %6128 = vmatpush3.msra.mxu1 %v5712_v51 }
0x1023   : > { %6095 = vmatpush3.msra.mxu0 %v5611_v30  ;;  %6129 = vmatprep.subr.mxu1 %v5711_v50 }
0x1024   : > { %6096 = vmatprep.subr.mxu0 %v5610_v0  ;;  %6130 = vmatpush3.msra.mxu1 %v5711_v50 }
0x1025   : > { %6097 = vmatpush3.msra.mxu0 %v5610_v0  ;;  %6131 = vmatprep.subr.mxu1 %v5710_v11 }
0x1026   : > { %6099 = vmatmul.mubr.f32.vlgmr.msra.gmra.mxu0 %v10167_v21  ;;  %6132 = vmatpush3.msra.mxu1 %v5710_v11 }
0x10e6   : > { %v6100_v25 = vpop.f32.mrf.mxu0 }
0x10e7   : > { %v5705_v29 = vadd.f32 %v6100_v25, %v6023_v46 }
0x10e8   : > { %v5699_v42 = vpop.f32.mrf.mxu0 }
0x10e9   : > { %v5700_v44 = vadd.f32 %v6023_v46, %v5699_v42  ;;  %v5709_v22 = vmax.f32 %v5705_v29, 0.0 }
0x10eb   : > { %v5708_v59 = vmax.f32 %v5700_v44, 0.0 }
0x10ed   : > { %6133 = vmatprep.mubr.f32.mxu1 %v5708_v59 }
0x10ee   : > { %6134 = vmatmul.mubr.f32.vlgmr.msra.gmra.mxu1 %v5709_v22 }
0x11ae   : > { %v6135_v55 = vpop.f32.mrf.mxu1 }
0x11af   : > { %v5805_v6 = vadd.f32 %v6135_v55, %v6024_v15 }
0x11b0   : > { %v5799_v43 = vpop.f32.mrf.mxu1 }
0x11b1   : > { %5809 = vst [vmem:[#allocation15 + $0x8] sm:$0xff] %v5805_v6  ;;  %v5800_v37 = vadd.f32 %v6024_v15, %v5799_v43 }
0x11b3   : > { %5808 = vst [vmem:[#allocation15] sm:$0xff] %v5800_v37 }
0x11b4 PF: > { %p10276_p5 = scmp.eq.s32.totalorder %s5909_s20, 1  ;;  %s7176_s30 = smov [#allocation15]  }
0x11b5   : > { %s5819_s29 = sshll.u32 %s7176_s30, 4  ;;  %s5820_s29 = int_to_ptr.vmem [resolvable:$true] %s5819_s29 }
0x11b6   : > { %s7105_s14 = scalar_lea.vmem %s5820_s29, 256  ;;  %p7112_p6 = scmp.lt.s32.totalorder %s5820_s29, %s5820_s29 }
0x11b7   : > { %p7106_p10 = scmp.ne.s32.totalorder %s5820_s29, %s7105_s14  ;;  %p7113_p13 = scmp.lt.s32.totalorder %s7105_s14, %s7105_s14 }
0x11b9   : > { %p7107_p11 = pnand %p7106_p10, %p10276_p5  ;;  %p7114_p0 = por %p7113_p13, %p7112_p6 }
0x11bb   : > { %p7108_p12 = pneg %p7107_p11 }
0x11bd   : > { %p7115_p1 = pnand %p7114_p0, %p7108_p12 }
0x11bf   : > { %7118 = shalt.err (!%p7115_p1)
}
0x11c0   : > { %s7177_s25 = smov 128   ;;  %s7178_s20 = smov 8  }
0x11c1   : > { %6149 = dma.vmem_to_hbm [thread:$0]  (%p10276_p5), %s5820_s29, 256, %s10311_s11, [#allocation11], %s7177_s25, %s7177_s25, %s7178_s20  }
0x11c2   : > { %7150 = dma.done.wait (%p10276_p5), [#allocation11], 256  }
0x11c3   : > { %7152 = vsyncadd (%p10276_p5), [#allocation11], 4294967040 }
0x11c4 PF: > { %s24_s19 = sadd.s32 1, %s7163_s19   ;;  %s11506_s17 = smov %s7159_s18 }
0x11c5   : > { %p21_p4 = scmp.ge.s32.totalorder %s24_s19, 4   ;;  %s11507_s18 = smov %s11509_s26 }
0x11c7   :  { %23 = sbr.rel (!%p21_p4) target bundleno = 4 (0x4), region = 137 }
0x11cc   :  { %5835 = vsyncpa [#allocation10], 1 }
0x11cd   :  { %5837 = vsyncpa [#allocation10 + $0x1], 1 }
0x11ce   :  { %5838 = vsyncpa [#allocation13], 1 }
0x11cf   :  { %5839 = vsyncpa [#allocation11], 1 }
0x11d0   :  { %5841 = vsyncpa [#allocation11 + $0x1], 1 }

</bundles_post_ra>
